<compile_context>
chip_gen: v7x
topology: tpu7x:2x2x1
jax: 0.10.0
libtpu: 0.0.40
codegen_flags: <defaults>
</compile_context>

<pallas_src>
import jax
import jax.numpy as jnp
from jax.experimental import pallas as pl
from jax.experimental.pallas import tpu as pltpu

NEG_SLOPE = 0.01          # tcnn LeakyReLU slope
HIDDEN = 128              # imnet hidden width
IN_FEATS = 7              # [rel_coord(2), rel_cell(2), laplacian(3)]
KK = 27                   # in_channel(3) * 3 * 3  (unfolded patch length)
KK_PAD = 32               # patch length zero-padded to a 32-lane group
OUT_CH = 3                # out_channel
MAX_TM = 2048             # max rows per grid step


def _leaky(x):
    return jnp.where(x > 0, x, NEG_SLOPE * x)


# ----------------------------------------------------------------------------
# Kernel: fused imnet MLP + per-pixel kernel application.
#   inp   (TM, 7)  -> 5-layer MLP (bf16 matmuls, f32 acc) -> hidden (TM,128)
#   single merged output matmul -> grouped local weights (TM, 96) where head o
#   lives in columns [32*o, 32*o + 27) (zero-padded to 32).
#   patch (TM, 32) (last 5 lanes zero); out[t, o] = sum_k patch[t,k]*lw[t,k,o]
# ----------------------------------------------------------------------------
def _fused_imnet_apply_kernel(inp_ref, pat_ref, w0_ref, wh_ref, wo_ref,
                              out_ref):
    # MLP on the MXU in bf16 with f32 accumulation; LeakyReLU in f32.
    h = jnp.dot(inp_ref[...], w0_ref[...], preferred_element_type=jnp.float32)
    h = _leaky(h).astype(jnp.bfloat16)
    for l in range(4):
        h = jnp.dot(h, wh_ref[l], preferred_element_type=jnp.float32)
        h = _leaky(h).astype(jnp.bfloat16)

    # Single merged output-layer matmul: (TM,128) x (128,96).
    lw = jnp.dot(h, wo_ref[...], preferred_element_type=jnp.float32)  # (TM,96)

    # Per-head f32 contraction on VPU/XLU (separate slots; hidden under MXU).
    p = pat_ref[...]                                                  # (TM,32)
    cols = [jnp.sum(p * lw[:, o * KK_PAD:(o + 1) * KK_PAD],
                    axis=1, keepdims=True) for o in range(OUT_CH)]
    out_ref[...] = jnp.concatenate(cols, axis=1)                      # (TM,3)


def _choose_tm(n, max_tm=MAX_TM):
    """Adaptive row-tile: single tile for small N, max_tm for large N."""
    if n >= max_tm:
        return max_tm
    return max(8, ((n + 7) // 8) * 8)


def fused_imnet_apply(inp, patches, imnet_weights, max_tm=MAX_TM):
    """inp (N,7) f32, patches (N,27) f32 -> (N,3) f32."""
    N = inp.shape[0]
    tm = _choose_tm(N, max_tm)
    n_pad = (-N) % tm
    Np = N + n_pad

    w0, w1, w2, w3, w4, wout = imnet_weights

    # bf16 weights for the MXU.
    w0_b = w0.astype(jnp.bfloat16)                                   # (7,128)
    wh_b = jnp.stack([w1, w2, w3, w4], 0).astype(jnp.bfloat16)       # (4,128,128)

    # local_weight.view(b, -1, 27, 3)[..., k, o] == flat[..., 3k + o].
    # Regroup output columns per head o, zero-padded to 32 lanes each.
    wo_g = jnp.zeros((HIDDEN, OUT_CH * KK_PAD), jnp.float32)
    for o in range(OUT_CH):
        wo_g = wo_g.at[:, o * KK_PAD:o * KK_PAD + KK].set(wout[:, o::3])
    wo_g = wo_g.astype(jnp.bfloat16)                                 # (128,96)

    inp_p = jnp.pad(inp.astype(jnp.float32),
                    ((0, n_pad), (0, 0))).astype(jnp.bfloat16)       # (Np,7)
    pat_p = jnp.pad(patches.astype(jnp.float32),
                    ((0, n_pad), (0, KK_PAD - KK)))                  # (Np,32)

    out = pl.pallas_call(
        _fused_imnet_apply_kernel,
        out_shape=jax.ShapeDtypeStruct((Np, OUT_CH), jnp.float32),
        grid_spec=pltpu.PrefetchScalarGridSpec(
            num_scalar_prefetch=0,
            grid=(Np // tm,),
            in_specs=[
                pl.BlockSpec((tm, IN_FEATS), lambda i: (i, 0)),
                pl.BlockSpec((tm, KK_PAD), lambda i: (i, 0)),
                # Weight operands: constant block index -> fetched once,
                # resident in VMEM across all grid steps.
                pl.BlockSpec((IN_FEATS, HIDDEN), lambda i: (0, 0)),
                pl.BlockSpec((4, HIDDEN, HIDDEN), lambda i: (0, 0, 0)),
                pl.BlockSpec((HIDDEN, OUT_CH * KK_PAD), lambda i: (0, 0)),
            ],
            out_specs=pl.BlockSpec((tm, OUT_CH), lambda i: (i, 0)),
        ),
        compiler_params=pltpu.CompilerParams(
            dimension_semantics=("parallel",),
            vmem_limit_bytes=32 * 1024 * 1024),
    )(inp_p, pat_p, w0_b, wh_b, wo_g)
    return out[:N]


def _imnet_apply_ref(inp, patches, imnet_weights):
    """Pure-f32 JAX reference of the fused kernel (for numerics check)."""
    w0, w1, w2, w3, w4, wout = imnet_weights
    h = _leaky(inp @ w0)
    for w in (w1, w2, w3, w4):
        h = _leaky(h @ w)
    lw = (h @ wout).reshape(-1, KK, OUT_CH)          # flat 81 -> (27,3)
    return jnp.einsum("nk,nko->no", patches, lw)


# ----------------------------------------------------------------------------
# Glue (plain JAX)
# ----------------------------------------------------------------------------
def make_coord(shape):
    """Grid-center coordinates in [-1, 1], shape (H, W, 2) = (y, x)."""
    seqs = []
    for n in shape:
        r = 1.0 / n
        seqs.append(-1.0 + r + 2.0 * r * jnp.arange(n, dtype=jnp.float32))
    yy, xx = jnp.meshgrid(seqs[0], seqs[1], indexing="ij")
    return jnp.stack([yy, xx], axis=-1)


def resize_nchw(x, out_hw):
    # TODO(synk): reference `resize` implementation is external (matlab-style
    # imresize); using jax.image.resize bicubic with antialias=False.
    b, c = x.shape[0], x.shape[1]
    return jax.image.resize(x, (b, c, out_hw[0], out_hw[1]),
                            method="bicubic", antialias=False)


def lmar_forward(params, x, down_size, up_size):
    """Replicates LMAR_model.train_model (test_flag=False path)."""
    b, c, H, W = x.shape
    h, w = down_size
    down_x = resize_nchw(x, down_size)

    # hr_coord_ (clamped), grid_sample(lr_coord, ..., 'nearest',
    # align_corners=False), rel_coord scaled by LR spatial dims.
    hr = make_coord((H, W))
    hr_c = jnp.clip(hr, -1.0 + 1e-6, 1.0 - 1e-6)
    iy = jnp.clip(jnp.round(((hr_c[..., 0] + 1.0) * h - 1.0) / 2.0), 0, h - 1)
    ix = jnp.clip(jnp.round(((hr_c[..., 1] + 1.0) * w - 1.0) / 2.0), 0, w - 1)
    q_y = (2.0 * iy + 1.0) / h - 1.0
    q_x = (2.0 * ix + 1.0) / w - 1.0
    rel_y = (hr_c[..., 0] - q_y) * h
    rel_x = (hr_c[..., 1] - q_x) * w
    rel_coord = jnp.stack([rel_y, rel_x], axis=-1).reshape(1, H * W, 2)
    rel_coord = jnp.broadcast_to(rel_coord, (b, H * W, 2))

    rel_cell = jnp.broadcast_to(
        jnp.array([2.0 * h / H, 2.0 * w / W], jnp.float32), (b, H * W, 2))

    lap = x - resize_nchw(down_x, up_size)
    lap = lap.reshape(b, c, -1).transpose(0, 2, 1)          # (b, HW, 3)

    inp = jnp.concatenate([rel_coord, rel_cell, lap], axis=-1)  # (b, HW, 7)

    # F.unfold(x, 3, padding=1): channel index = c*9 + ky*3 + kx
    # TODO(synk): perf follow-up -- fuse this unfold into the Pallas kernel
    # (read halo rows per tile) to avoid materializing the 9x tensor in HBM.
    xpad = jnp.pad(x, ((0, 0), (0, 0), (1, 1), (1, 1)))
    pats = jnp.stack([xpad[:, :, ky:ky + H, kx:kx + W]
                      for ky in range(3) for kx in range(3)], axis=2)
    pats = pats.reshape(b, c * 9, H * W).transpose(0, 2, 1)     # (b, HW, 27)

    N = b * H * W
    out_flat = fused_imnet_apply(inp.reshape(N, IN_FEATS).astype(jnp.float32),
                                 pats.reshape(N, KK).astype(jnp.float32),
                                 params["imnet"])               # (N, 3)

    out_img = out_flat.reshape(b, H, W, OUT_CH).transpose(0, 3, 1, 2)
    out_lr = resize_nchw(out_img, down_size)                    # residual

    # modulation = nn.Conv2d(6, 3, 1, 1, 0) -- left to XLA (VPU-trivial).
    mod_in = jnp.concatenate([down_x, out_lr], axis=1)          # (b, 6, h, w)
    down_x_mod = (jnp.einsum("bchw,co->bohw", mod_in, params["mod_w"])
                  + params["mod_b"].reshape(1, OUT_CH, 1, 1))

    # TODO(synk): hr_feature / ori_lr_feature / new_lr_feature come from an
    # external pretrained backbone (`net(args)` + create_feature_extractor on
    # 'hr_backbone.skip2'); not reproducible here.
    hr_feature = None
    new_lr_feature = None
    ori_lr_feature = None
    res = 0
    return down_x_mod, hr_feature, new_lr_feature, ori_lr_feature, out_lr, res


def init_params(key):
    ks = jax.random.split(key, 8)
    sc = 0.1
    imnet = (
        sc * jax.random.normal(ks[0], (IN_FEATS, HIDDEN), jnp.float32),
        sc * jax.random.normal(ks[1], (HIDDEN, HIDDEN), jnp.float32),
        sc * jax.random.normal(ks[2], (HIDDEN, HIDDEN), jnp.float32),
        sc * jax.random.normal(ks[3], (HIDDEN, HIDDEN), jnp.float32),
        sc * jax.random.normal(ks[4], (HIDDEN, HIDDEN), jnp.float32),
        sc * jax.random.normal(ks[5], (HIDDEN, KK * OUT_CH), jnp.float32),
    )
    mod_w = sc * jax.random.normal(ks[6], (6, OUT_CH), jnp.float32)
    mod_b = sc * jax.random.normal(ks[7], (OUT_CH,), jnp.float32)
    return {"imnet": imnet, "mod_w": mod_w, "mod_b": mod_b}


if __name__ == "__main__":
    key = jax.random.PRNGKey(0)
    pkey, xkey = jax.random.split(key)
    params = init_params(pkey)

    # Numerics sanity check of the fused kernel vs a pure-f32 reference on a
    # non-multiple-of-8 row count (exercises the padding path).
    ck0, ck1, ck2 = jax.random.split(xkey, 3)
    inp_t = 0.5 * jax.random.normal(ck0, (600, IN_FEATS), jnp.float32)
    pat_t = jax.random.normal(ck1, (600, KK), jnp.float32)
    got = fused_imnet_apply(inp_t, pat_t, params["imnet"])
    ref = _imnet_apply_ref(inp_t, pat_t, params["imnet"])
    err = float(jnp.max(jnp.abs(got - ref)))
    assert got.shape == (600, OUT_CH)
    assert err < 0.15, f"fused kernel mismatch: max abs err {err}"

    # Full forward: x (batch=2, channels=3, H=16, W=16); down=(8,8); up=(16,16)
    x = jax.random.normal(ck2, (2, 3, 16, 16), jnp.float32)
    fwd = jax.jit(lmar_forward, static_argnums=(2, 3))
    outs = fwd(params, x, (8, 8), (16, 16))

    arrays = [o for o in outs if isinstance(o, jax.Array)]
    jax.block_until_ready(arrays)
    assert arrays[0].shape == (2, 3, 8, 8)   # modulated down_x
    assert arrays[1].shape == (2, 3, 8, 8)   # residual (out resized to LR)
    assert bool(jnp.isfinite(arrays[0]).all()) and bool(jnp.isfinite(arrays[1]).all())
    print("KERNEL_OK")
</pallas_src>

<mosaic_0001>
module attributes {stable_mosaic.version = 11 : i64} {
  func.func @_fused_imnet_apply_kernel(%arg0: i32, %arg1: memref<600x7xbf16, #tpu.memory_space<vmem>>, %arg2: memref<600x32xf32, #tpu.memory_space<vmem>>, %arg3: memref<7x128xbf16, #tpu.memory_space<vmem>>, %arg4: memref<4x128x128xbf16, #tpu.memory_space<vmem>>, %arg5: memref<128x96xbf16, #tpu.memory_space<vmem>>, %arg6: memref<600x3xf32, #tpu.memory_space<vmem>>) attributes {dimension_semantics = [#tpu.dimension_semantics<parallel>], iteration_bounds = array<i64: 1>, scalar_prefetch = 0 : i64, scratch_operands = 0 : i64, tpu.core_type = #tpu.core_type<tc>, window_params = [{transform_indices = @transform_0, window_bounds = array<i64: 600, 7>}, {transform_indices = @transform_1, window_bounds = array<i64: 600, 32>}, {pipeline_mode = #tpu.pipeline_mode<synchronous>, transform_indices = @transform_2, window_bounds = array<i64: 7, 128>}, {pipeline_mode = #tpu.pipeline_mode<synchronous>, transform_indices = @transform_3, window_bounds = array<i64: 4, 128, 128>}, {pipeline_mode = #tpu.pipeline_mode<synchronous>, transform_indices = @transform_4, window_bounds = array<i64: 128, 96>}, {transform_indices = @transform_5, window_bounds = array<i64: 600, 3>}]} {
    %c0 = arith.constant 0 : index
    %c0_0 = arith.constant 0 : index
    %0 = vector.load %arg1[%c0, %c0_0] : memref<600x7xbf16, #tpu.memory_space<vmem>>, vector<600x7xbf16>
    %c0_1 = arith.constant 0 : index
    %c0_2 = arith.constant 0 : index
    %1 = vector.load %arg3[%c0_1, %c0_2] : memref<7x128xbf16, #tpu.memory_space<vmem>>, vector<7x128xbf16>
    %cst = arith.constant dense<0.000000e+00> : vector<600x128xf32>
    %2 = tpu.matmul %0, %1, %cst {dimension_numbers = #tpu.dot_dimension_numbers<[1], [0], [0], [1], [0, 0, 1, 1], [], []>} : vector<600x7xbf16>, vector<7x128xbf16>, vector<600x128xf32> -> vector<600x128xf32>
    %cst_3 = arith.constant 0.000000e+00 : f32
    %3 = vector.broadcast %cst_3 : f32 to vector<600x128xf32>
    %4 = arith.cmpf ogt, %2, %3 : vector<600x128xf32>
    %cst_4 = arith.constant 0.00999999977 : f32
    %5 = vector.broadcast %cst_4 : f32 to vector<600x128xf32>
    %6 = arith.mulf %5, %2 : vector<600x128xf32>
    %7 = arith.select %4, %2, %6 : vector<600x128xi1>, vector<600x128xf32>
    %8 = arith.truncf %7 : vector<600x128xf32> to vector<600x128xbf16>
    %c0_5 = arith.constant 0 : index
    %c0_6 = arith.constant 0 : index
    %c0_7 = arith.constant 0 : index
    %9 = vector.load %arg4[%c0_5, %c0_6, %c0_7] : memref<4x128x128xbf16, #tpu.memory_space<vmem>>, vector<1x128x128xbf16>
    %10 = vector.shape_cast %9 : vector<1x128x128xbf16> to vector<128x128xbf16>
    %cst_8 = arith.constant dense<0.000000e+00> : vector<600x128xf32>
    %11 = tpu.matmul %8, %10, %cst_8 {dimension_numbers = #tpu.dot_dimension_numbers<[1], [0], [0], [1], [0, 0, 1, 1], [], []>} : vector<600x128xbf16>, vector<128x128xbf16>, vector<600x128xf32> -> vector<600x128xf32>
    %cst_9 = arith.constant 0.000000e+00 : f32
    %12 = vector.broadcast %cst_9 : f32 to vector<600x128xf32>
    %13 = arith.cmpf ogt, %11, %12 : vector<600x128xf32>
    %cst_10 = arith.constant 0.00999999977 : f32
    %14 = vector.broadcast %cst_10 : f32 to vector<600x128xf32>
    %15 = arith.mulf %14, %11 : vector<600x128xf32>
    %16 = arith.select %13, %11, %15 : vector<600x128xi1>, vector<600x128xf32>
    %17 = arith.truncf %16 : vector<600x128xf32> to vector<600x128xbf16>
    %c1 = arith.constant 1 : index
    %c0_11 = arith.constant 0 : index
    %c0_12 = arith.constant 0 : index
    %18 = vector.load %arg4[%c1, %c0_11, %c0_12] : memref<4x128x128xbf16, #tpu.memory_space<vmem>>, vector<1x128x128xbf16>
    %19 = vector.shape_cast %18 : vector<1x128x128xbf16> to vector<128x128xbf16>
    %cst_13 = arith.constant dense<0.000000e+00> : vector<600x128xf32>
    %20 = tpu.matmul %17, %19, %cst_13 {dimension_numbers = #tpu.dot_dimension_numbers<[1], [0], [0], [1], [0, 0, 1, 1], [], []>} : vector<600x128xbf16>, vector<128x128xbf16>, vector<600x128xf32> -> vector<600x128xf32>
    %cst_14 = arith.constant 0.000000e+00 : f32
    %21 = vector.broadcast %cst_14 : f32 to vector<600x128xf32>
    %22 = arith.cmpf ogt, %20, %21 : vector<600x128xf32>
    %cst_15 = arith.constant 0.00999999977 : f32
    %23 = vector.broadcast %cst_15 : f32 to vector<600x128xf32>
    %24 = arith.mulf %23, %20 : vector<600x128xf32>
    %25 = arith.select %22, %20, %24 : vector<600x128xi1>, vector<600x128xf32>
    %26 = arith.truncf %25 : vector<600x128xf32> to vector<600x128xbf16>
    %c2 = arith.constant 2 : index
    %c0_16 = arith.constant 0 : index
    %c0_17 = arith.constant 0 : index
    %27 = vector.load %arg4[%c2, %c0_16, %c0_17] : memref<4x128x128xbf16, #tpu.memory_space<vmem>>, vector<1x128x128xbf16>
    %28 = vector.shape_cast %27 : vector<1x128x128xbf16> to vector<128x128xbf16>
    %cst_18 = arith.constant dense<0.000000e+00> : vector<600x128xf32>
    %29 = tpu.matmul %26, %28, %cst_18 {dimension_numbers = #tpu.dot_dimension_numbers<[1], [0], [0], [1], [0, 0, 1, 1], [], []>} : vector<600x128xbf16>, vector<128x128xbf16>, vector<600x128xf32> -> vector<600x128xf32>
    %cst_19 = arith.constant 0.000000e+00 : f32
    %30 = vector.broadcast %cst_19 : f32 to vector<600x128xf32>
    %31 = arith.cmpf ogt, %29, %30 : vector<600x128xf32>
    %cst_20 = arith.constant 0.00999999977 : f32
    %32 = vector.broadcast %cst_20 : f32 to vector<600x128xf32>
    %33 = arith.mulf %32, %29 : vector<600x128xf32>
    %34 = arith.select %31, %29, %33 : vector<600x128xi1>, vector<600x128xf32>
    %35 = arith.truncf %34 : vector<600x128xf32> to vector<600x128xbf16>
    %c3 = arith.constant 3 : index
    %c0_21 = arith.constant 0 : index
    %c0_22 = arith.constant 0 : index
    %36 = vector.load %arg4[%c3, %c0_21, %c0_22] : memref<4x128x128xbf16, #tpu.memory_space<vmem>>, vector<1x128x128xbf16>
    %37 = vector.shape_cast %36 : vector<1x128x128xbf16> to vector<128x128xbf16>
    %cst_23 = arith.constant dense<0.000000e+00> : vector<600x128xf32>
    %38 = tpu.matmul %35, %37, %cst_23 {dimension_numbers = #tpu.dot_dimension_numbers<[1], [0], [0], [1], [0, 0, 1, 1], [], []>} : vector<600x128xbf16>, vector<128x128xbf16>, vector<600x128xf32> -> vector<600x128xf32>
    %cst_24 = arith.constant 0.000000e+00 : f32
    %39 = vector.broadcast %cst_24 : f32 to vector<600x128xf32>
    %40 = arith.cmpf ogt, %38, %39 : vector<600x128xf32>
    %cst_25 = arith.constant 0.00999999977 : f32
    %41 = vector.broadcast %cst_25 : f32 to vector<600x128xf32>
    %42 = arith.mulf %41, %38 : vector<600x128xf32>
    %43 = arith.select %40, %38, %42 : vector<600x128xi1>, vector<600x128xf32>
    %44 = arith.truncf %43 : vector<600x128xf32> to vector<600x128xbf16>
    %c0_26 = arith.constant 0 : index
    %c0_27 = arith.constant 0 : index
    %45 = vector.load %arg5[%c0_26, %c0_27] : memref<128x96xbf16, #tpu.memory_space<vmem>>, vector<128x96xbf16>
    %cst_28 = arith.constant dense<0.000000e+00> : vector<600x96xf32>
    %46 = tpu.matmul %44, %45, %cst_28 {dimension_numbers = #tpu.dot_dimension_numbers<[1], [0], [0], [1], [0, 0, 1, 1], [], []>} : vector<600x128xbf16>, vector<128x96xbf16>, vector<600x96xf32> -> vector<600x96xf32>
    %c0_29 = arith.constant 0 : index
    %c0_30 = arith.constant 0 : index
    %47 = vector.load %arg2[%c0_29, %c0_30] : memref<600x32xf32, #tpu.memory_space<vmem>>, vector<600x32xf32>
    %48 = vector.extract_strided_slice %46 {offsets = [0, 0], sizes = [600, 32], strides = [1, 1]} : vector<600x96xf32> to vector<600x32xf32>
    %49 = arith.mulf %47, %48 : vector<600x32xf32>
    %cst_31 = arith.constant dense<0.000000e+00> : vector<600xf32>
    %50 = vector.multi_reduction <add>, %49, %cst_31 [1] : vector<600x32xf32> to vector<600xf32>
    %51 = vector.shape_cast %50 : vector<600xf32> to vector<600x1xf32>
    %52 = vector.extract_strided_slice %46 {offsets = [0, 32], sizes = [600, 32], strides = [1, 1]} : vector<600x96xf32> to vector<600x32xf32>
    %53 = arith.mulf %47, %52 : vector<600x32xf32>
    %cst_32 = arith.constant dense<0.000000e+00> : vector<600xf32>
    %54 = vector.multi_reduction <add>, %53, %cst_32 [1] : vector<600x32xf32> to vector<600xf32>
    %55 = vector.shape_cast %54 : vector<600xf32> to vector<600x1xf32>
    %56 = vector.extract_strided_slice %46 {offsets = [0, 64], sizes = [600, 32], strides = [1, 1]} : vector<600x96xf32> to vector<600x32xf32>
    %57 = arith.mulf %47, %56 : vector<600x32xf32>
    %cst_33 = arith.constant dense<0.000000e+00> : vector<600xf32>
    %58 = vector.multi_reduction <add>, %57, %cst_33 [1] : vector<600x32xf32> to vector<600xf32>
    %59 = vector.shape_cast %58 : vector<600xf32> to vector<600x1xf32>
    %60 = tpu.concatenate %51, %55, %59 in 1 : vector<600x1xf32>, vector<600x1xf32>, vector<600x1xf32> -> vector<600x3xf32>
    %c0_34 = arith.constant 0 : index
    %c0_35 = arith.constant 0 : index
    %61 = vector.load %arg6[%c0_34, %c0_35] : memref<600x3xf32, #tpu.memory_space<vmem>>, vector<600x3xf32>
    tpu.vector_store %arg6[%c0_34, %c0_35], %60 {strides = array<i32>} : memref<600x3xf32, #tpu.memory_space<vmem>>, vector<600x3xf32>,
    return
  }
  func.func @transform_0(%arg0: i32) -> (i32, i32) {
    %c0_i32 = arith.constant 0 : i32
    %c0_i32_0 = arith.constant 0 : i32
    return %arg0, %c0_i32 : i32, i32
  }
  func.func @transform_1(%arg0: i32) -> (i32, i32) {
    %c0_i32 = arith.constant 0 : i32
    %c0_i32_0 = arith.constant 0 : i32
    return %arg0, %c0_i32 : i32, i32
  }
  func.func @transform_2(%arg0: i32) -> (i32, i32) {
    %c0_i32 = arith.constant 0 : i32
    %c0_i32_0 = arith.constant 0 : i32
    %c0_i32_1 = arith.constant 0 : i32
    return %c0_i32, %c0_i32_0 : i32, i32
  }
  func.func @transform_3(%arg0: i32) -> (i32, i32, i32) {
    %c0_i32 = arith.constant 0 : i32
    %c0_i32_0 = arith.constant 0 : i32
    %c0_i32_1 = arith.constant 0 : i32
    %c0_i32_2 = arith.constant 0 : i32
    return %c0_i32, %c0_i32_0, %c0_i32_1 : i32, i32, i32
  }
  func.func @transform_4(%arg0: i32) -> (i32, i32) {
    %c0_i32 = arith.constant 0 : i32
    %c0_i32_0 = arith.constant 0 : i32
    %c0_i32_1 = arith.constant 0 : i32
    return %c0_i32, %c0_i32_0 : i32, i32
  }
  func.func @transform_5(%arg0: i32) -> (i32, i32) {
    %c0_i32 = arith.constant 0 : i32
    %c0_i32_0 = arith.constant 0 : i32
    return %arg0, %c0_i32 : i32, i32
  }
}

</mosaic_0001>

<bundles_post_ra>
// kernel: tpu_custom_call.1
= control target key start
LH: loop header
LB: loop body
LE: loop exit
PB: predicated region body
PF: predicated region fallthrough
CT: control target
= control target key end

     0   :  { %vm400_vm0 = vcmask 1042432   ;;  %vm401_vm1 = vcmask 1043456   ;;  %vm285_vm2 = vcmask 56320   ;;  %v6925_v1 = vmov 65535   ;;  %s6927_s16 = smov 64   ;;  %s9560_s2 = inlined_call_operand.vmem [shape: bf16[7,128], index: 2, kind: input, shape index: {}]   ;;  %s9561_s0 = inlined_call_operand.vmem [shape: bf16[600,7], index: 0, kind: input, shape index: {}]   ;;  %s9562_s3 = inlined_call_operand.vmem [shape: bf16[4,128,128], index: 3, kind: input, shape index: {}]   ;;  %s9563_s4 = inlined_call_operand.vmem [shape: bf16[128,96], index: 4, kind: input, shape index: {}]   ;;  %s9564_s1 = inlined_call_operand.vmem [shape: f32[600,32], index: 1, kind: input, shape index: {}]   ;;  %s9565_s5 = inlined_call_operand.vmem [shape: f32[600,3], index: 5, kind: output, shape index: {}]  }
   0x1   :  { %v96_v0 = vld [vmem:[%s9560_s2] sm:$0xf]  ;;  %v402_v2 = vsel %vm400_vm0, 4294967295, %v6925_v1  ;;  %v6785_v6 = vld [vmem:[%s9561_s0 + $0x8] sm:$0xff]   ;;  %v6786_v7 = vld [vmem:[%s9561_s0 + $0x10] sm:$0xff]  }
   0x2   :  { %v6784_v3 = vld [vmem:[%s9561_s0] sm:$0xff]   ;;  %v403_v4 = vsel %vm401_vm1, %v402_v2, 0  ;;  %v6787_v8 = vld [vmem:[%s9561_s0 + $0x18] sm:$0xff]   ;;  %v6789_v10 = vld [vmem:[%s9561_s0 + $0x28] sm:$0xff]  }
   0x3   :  { %v405_v5 = vand.u32 %v403_v4, %v96_v0  ;;  %6229 = vmatprep.mubr.msk.bf16.mxu0 %vm285_vm2, %v6784_v3  ;;  %v6788_v9 = vld [vmem:[%s9561_s0 + $0x20] sm:$0xff]   ;;  %v6790_v11 = vld [vmem:[%s9561_s0 + $0x30] sm:$0xff]   ;;  %v6791_v12 = vld [vmem:[%s9561_s0 + $0x38] sm:$0xff]  }
   0x4   :  { %v6792_v13 = vld [vmem:[%s9561_s0 + $0x40] sm:$0xff]   ;;  %v6793_v14 = vld [vmem:[%s9561_s0 + $0x48] sm:$0xff]   ;;  %v6794_v15 = vld [vmem:[%s9561_s0 + $0x50] sm:$0xff]  }
   0x5   :  { %6227 = vmatprep.subr.bf16.mxu0 %v405_v5  ;;  %v6822_v16 = vld [vmem:[%s9562_s3] sm:$0xff]   ;;  %v6823_v17 = vld [vmem:[%s9562_s3 + $0x8] sm:$0xff]   ;;  %v6795_v18 = vld [vmem:[%s9561_s0 + $0x58] sm:$0xff]  }
   0x6   :  { %6228 = vmatpush3.bf16.msra.mxu0 %v405_v5  ;;  %6305 = vmatprep.subr.bf16.mxu1 %v6822_v16  ;;  %v6824_v19 = vld [vmem:[%s9562_s3 + $0x10] sm:$0xff]   ;;  %v6796_v20 = vld [vmem:[%s9561_s0 + $0x60] sm:$0xff]   ;;  %v6825_v21 = vld [vmem:[%s9562_s3 + $0x18] sm:$0xff]  }
   0x7   :  { %6306 = vmatpush3.bf16.msra.mxu1 %v6822_v16  ;;  %v6826_v22 = vld [vmem:[%s9562_s3 + $0x20] sm:$0xff]   ;;  %v6797_v23 = vld [vmem:[%s9561_s0 + $0x68] sm:$0xff]   ;;  %v6798_v24 = vld [vmem:[%s9561_s0 + $0x70] sm:$0xff]  }
   0x8   :  { %6307 = vmatprep.subr.bf16.mxu1 %v6823_v17  ;;  %v6827_v25 = vld [vmem:[%s9562_s3 + $0x28] sm:$0xff]   ;;  %v6799_v26 = vld [vmem:[%s9561_s0 + $0x78] sm:$0xff]   ;;  %v6800_v27 = vld [vmem:[%s9561_s0 + $0x80] sm:$0xff]  }
   0x9   :  { %6230 = vmatmul.mubr.msk.bf16.vlgmr.msra.gmra.mrb[0].mxu0 %vm285_vm2, %v6785_v6  ;;  %v6801_v28 = vld [vmem:[%s9561_s0 + $0x88] sm:$0xff]   ;;  %v6802_v29 = vld [vmem:[%s9561_s0 + $0x90] sm:$0xff]   ;;  %v6803_v30 = vld [vmem:[%s9561_s0 + $0x98] sm:$0xff]  }
   0xa   :  { %6233 = vmatprep.mubr.msk.bf16.mxu0 %vm285_vm2, %v6786_v7  ;;  %v6804_v31 = vld [vmem:[%s9561_s0 + $0xa0] sm:$0xff]   ;;  %v6805_v32 = vld [vmem:[%s9561_s0 + $0xa8] sm:$0xff]   ;;  %v6806_v33 = vld [vmem:[%s9561_s0 + $0xb0] sm:$0xff]  }
   0xb   :  { %6308 = vmatpush3.bf16.msra.mxu1 %v6823_v17  ;;  %v6828_v34 = vld [vmem:[%s9562_s3 + $0x30] sm:$0xff]   ;;  %v6807_v35 = vld [vmem:[%s9561_s0 + $0xb8] sm:$0xff]   ;;  %v6808_v36 = vld [vmem:[%s9561_s0 + $0xc0] sm:$0xff]  }
   0xc   :  { %6309 = vmatprep.subr.bf16.mxu1 %v6824_v19  ;;  %v6829_v37 = vld [vmem:[%s9562_s3 + $0x38] sm:$0xff]   ;;  %v6809_v38 = vld [vmem:[%s9561_s0 + $0xc8] sm:$0xff]   ;;  %v6810_v39 = vld [vmem:[%s9561_s0 + $0xd0] sm:$0xff]  }
   0xd   :  { %v6811_v40 = vld [vmem:[%s9561_s0 + $0xd8] sm:$0xff]   ;;  %v6812_v41 = vld [vmem:[%s9561_s0 + $0xe0] sm:$0xff]   ;;  %v6813_v42 = vld [vmem:[%s9561_s0 + $0xe8] sm:$0xff]  }
   0xe   :  { %v6814_v43 = vld [vmem:[%s9561_s0 + $0xf0] sm:$0xff]   ;;  %v6815_v44 = vld [vmem:[%s9561_s0 + $0xf8] sm:$0xff]   ;;  %v6816_v45 = vld [vmem:[%s9561_s0 + $0x100] sm:$0xff]  }
   0xf   :  { %6310 = vmatpush3.bf16.msra.mxu1 %v6824_v19  ;;  %v6817_v46 = vld [vmem:[%s9561_s0 + $0x108] sm:$0xff]   ;;  %v6818_v47 = vld [vmem:[%s9561_s0 + $0x110] sm:$0xff]   ;;  %v6830_v48 = vld [vmem:[%s9562_s3 + $0x40] sm:$0xff]  }
  0x10   :  { %6311 = vmatprep.subr.bf16.mxu1 %v6825_v21  ;;  %6397 = vmatprep.subr.bf16.mxu0 %v6830_v48  ;;  %v6819_v49 = vld [vmem:[%s9561_s0 + $0x118] sm:$0xff]   ;;  %v6820_v50 = vld [vmem:[%s9561_s0 + $0x120] sm:$0xff]   ;;  %v6821_v51 = vld [vmem:[%s9561_s0 + $0x128] ss:$0 sps:$4 sm:$0xff]  }
  0x11   :  { %6234 = vmatmul.mubr.msk.bf16.gmra.mrb[4].mxu0 %vm285_vm2, %v6787_v8  ;;  %v6831_v52 = vld [vmem:[%s9562_s3 + $0x48] sm:$0xff]   ;;  %v6832_v53 = vld [vmem:[%s9562_s3 + $0x50] sm:$0xff]   ;;  %v6833_v54 = vld [vmem:[%s9562_s3 + $0x58] sm:$0xff]  }
  0x12   :  { %6237 = vmatprep.mubr.msk.bf16.mxu0 %vm285_vm2, %v6788_v9  ;;  %6398 = vmatpush3.bf16.msra.mxu0 %v6830_v48  ;;  %v6834_v55 = vld [vmem:[%s9562_s3 + $0x60] sm:$0xff]   ;;  %v6835_v16 = vld [vmem:[%s9562_s3 + $0x68] sm:$0xff]  }
  0x13   :  { %6312 = vmatpush3.bf16.msra.mxu1 %v6825_v21  ;;  %6399 = vmatprep.subr.bf16.mxu0 %v6831_v52 }
  0x14   :  { %6313 = vmatprep.subr.bf16.mxu1 %v6826_v22 }
  0x16   :  { %6400 = vmatpush3.bf16.msra.mxu0 %v6831_v52 }
  0x17   :  { %6314 = vmatpush3.bf16.msra.mxu1 %v6826_v22  ;;  %6401 = vmatprep.subr.bf16.mxu0 %v6832_v53 }
  0x18   :  { %6315 = vmatprep.subr.bf16.mxu1 %v6827_v25 }
  0x19   :  { %6238 = vmatmul.mubr.msk.bf16.gmra.mrb[8].mxu0 %vm285_vm2, %v6789_v10 }
  0x1a   :  { %6241 = vmatprep.mubr.msk.bf16.mxu0 %vm285_vm2, %v6790_v11  ;;  %6402 = vmatpush3.bf16.msra.mxu0 %v6832_v53 }
  0x1b   :  { %6316 = vmatpush3.bf16.msra.mxu1 %v6827_v25  ;;  %6403 = vmatprep.subr.bf16.mxu0 %v6833_v54 }
  0x1c   :  { %6317 = vmatprep.subr.bf16.mxu1 %v6828_v34 }
  0x1e   :  { %6404 = vmatpush3.bf16.msra.mxu0 %v6833_v54 }
  0x1f   :  { %6318 = vmatpush3.bf16.msra.mxu1 %v6828_v34  ;;  %6405 = vmatprep.subr.bf16.mxu0 %v6834_v55 }
  0x20   :  { %6319 = vmatprep.subr.bf16.mxu1 %v6829_v37 }
  0x21   :  { %6242 = vmatmul.mubr.msk.bf16.gmra.mrb[12].mxu0 %vm285_vm2, %v6791_v12 }
  0x22   :  { %6245 = vmatprep.mubr.msk.bf16.mxu0 %vm285_vm2, %v6792_v13  ;;  %6406 = vmatpush3.bf16.msra.mxu0 %v6834_v55 }
  0x23   :  { %6320 = vmatpush3.bf16.msra.mxu1 %v6829_v37  ;;  %6407 = vmatprep.subr.bf16.mxu0 %v6835_v16 }
  0x26   :  { %6408 = vmatpush3.bf16.msra.mxu0 %v6835_v16 }
  0x29   :  { %6246 = vmatmul.mubr.msk.bf16.gmra.mrb[16].mxu0 %vm285_vm2, %v6793_v14 }
  0x2a   :  { %6249 = vmatprep.mubr.msk.bf16.mxu0 %vm285_vm2, %v6794_v15 }
  0x31   :  { %6250 = vmatmul.mubr.msk.bf16.gmra.mrb[20].mxu0 %vm285_vm2, %v6795_v18 }
  0x32   :  { %6253 = vmatprep.mubr.msk.bf16.mxu0 %vm285_vm2, %v6796_v20 }
  0x39   :  { %6254 = vmatmul.mubr.msk.bf16.gmra.mrb[24].mxu0 %vm285_vm2, %v6797_v23 }
  0x3a   :  { %6257 = vmatprep.mubr.msk.bf16.mxu0 %vm285_vm2, %v6798_v24 }
  0x41   :  { %6258 = vmatmul.mubr.msk.bf16.gmra.mrb[28].mxu0 %vm285_vm2, %v6799_v26 }
  0x42   :  { %6261 = vmatprep.mubr.msk.bf16.mxu0 %vm285_vm2, %v6800_v27 }
  0x49   :  { %6262 = vmatmul.mubr.msk.bf16.gmra.mrb[32].mxu0 %vm285_vm2, %v6801_v28 }
  0x4a   :  { %6265 = vmatprep.mubr.msk.bf16.mxu0 %vm285_vm2, %v6802_v29 }
  0x51   :  { %6266 = vmatmul.mubr.msk.bf16.gmra.mrb[36].mxu0 %vm285_vm2, %v6803_v30 }
  0x52   :  { %6269 = vmatprep.mubr.msk.bf16.mxu0 %vm285_vm2, %v6804_v31 }
  0x59   :  { %6270 = vmatmul.mubr.msk.bf16.gmra.mrb[40].mxu0 %vm285_vm2, %v6805_v32 }
  0x5a   :  { %6273 = vmatprep.mubr.msk.bf16.mxu0 %vm285_vm2, %v6806_v33 }
  0x61   :  { %6274 = vmatmul.mubr.msk.bf16.gmra.mrb[44].mxu0 %vm285_vm2, %v6807_v35 }
  0x62   :  { %6277 = vmatprep.mubr.msk.bf16.mxu0 %vm285_vm2, %v6808_v36 }
  0x69   :  { %6278 = vmatmul.mubr.msk.bf16.gmra.mrb[48].mxu0 %vm285_vm2, %v6809_v38 }
  0x6a   :  { %6281 = vmatprep.mubr.msk.bf16.mxu0 %vm285_vm2, %v6810_v39 }
  0x71   :  { %6282 = vmatmul.mubr.msk.bf16.gmra.mrb[52].mxu0 %vm285_vm2, %v6811_v40  ;;  %v6836_v40 = vld [vmem:[%s9562_s3 + $0x70] sm:$0xff]  }
  0x72   :  { %6285 = vmatprep.mubr.msk.bf16.mxu0 %vm285_vm2, %v6812_v41  ;;  %v6837_v41 = vld [vmem:[%s9562_s3 + $0x78] sm:$0xff]   ;;  %6409 = vmatprep.subr.bf16.mxu0 %v6836_v40 }
  0x73   :  { %6410 = vmatpush3.bf16.msra.mxu0 %v6836_v40 }
  0x74   :  { %6411 = vmatprep.subr.bf16.mxu0 %v6837_v41 }
  0x77   :  { %6412 = vmatpush3.bf16.msra.mxu0 %v6837_v41 }
  0x79   :  { %6286 = vmatmul.mubr.msk.bf16.gmra.mrb[56].mxu0 %vm285_vm2, %v6813_v42 }
  0x7a   :  { %6289 = vmatprep.mubr.msk.bf16.mxu0 %vm285_vm2, %v6814_v43 }
  0x81   :  { %6290 = vmatmul.mubr.msk.bf16.gmra.mrb[60].mxu0 %vm285_vm2, %v6815_v44 }
  0x82   :  { %6293 = vmatprep.mubr.msk.bf16.mxu0 %vm285_vm2, %v6816_v45 }
  0x89   :  { %6294 = vmatmul.mubr.msk.bf16.gmra.mrb[64].mxu0 %vm285_vm2, %v6817_v46 }
  0x8a   :  { %6297 = vmatprep.mubr.msk.bf16.mxu0 %vm285_vm2, %v6818_v47 }
  0x91   :  { %6298 = vmatmul.mubr.msk.bf16.gmra.mrb[68].mxu0 %vm285_vm2, %v6819_v49 }
  0x92   :  { %6301 = vmatprep.mubr.msk.bf16.mxu0 %vm285_vm2, %v6820_v50 }
  0x99   :  { %6302 = vmatmul.mubr.msk.bf16.gmra.mrb[72].mxu0 %vm285_vm2, %v6821_v51 }
  0xdc   :  { %v6231_v56 = vpop.f32.mrb[0].mxu0 }
  0xdd   :  { %v820_v57 = vmul.f32 0.01, %v6231_v56  ;;  %v441_v58 = vpop.f32.mrb[1].mxu0  ;;  %vm745_vm3 = vcmp.gt.f32.partialorder %v6231_v56, 0.0 }
  0xde   :  { %v818_v59 = vmul.f32 0.01, %v441_v58  ;;  %v6232_v60 = vpop.f32.mrb[2].mxu0  ;;  %vm743_vm5 = vcmp.gt.f32.partialorder %v441_v58, 0.0 }
  0xdf   :  { %vm746_vm4 = vcmp.gt.f32.partialorder %v6232_v60, 0.0  ;;  %v821_v61 = vmul.f32 0.01, %v6232_v60  ;;  %v444_v62 = vpop.f32.mrb[3].mxu0  ;;  %v895_v0 = vsel %vm745_vm3, %v6231_v56, %v820_v57 }
  0xe0   :  { %v819_v63 = vmul.f32 0.01, %v444_v62  ;;  %vm744_vm6 = vcmp.gt.f32.partialorder %v444_v62, 0.0  ;;  %v893_v2 = vsel %vm743_vm5, %v441_v58, %v818_v59 }
  0xe1   :  { %v896_v1 = vsel %vm746_vm4, %v6232_v60, %v821_v61 }
  0xe2   :  { %v894_v3 = vsel %vm744_vm6, %v444_v62, %v819_v63  ;;  %v969_v4 = vpack.c.bf16 %v896_v1, %v895_v0 }
  0xe3   :  { %v968_v5 = vpack.c.bf16 %v894_v3, %v893_v2 }
  0xe4   :  { %v6235_v6 = vpop.f32.mrb[4].mxu0 }
  0xe5   :  { %6321 = vmatprep.mubr.bf16.mxu1 %v968_v5  ;;  %vm749_vm7 = vcmp.gt.f32.partialorder %v6235_v6, 0.0  ;;  %v824_v7 = vmul.f32 0.01, %v6235_v6  ;;  %v457_v8 = vpop.f32.mrb[5].mxu0 }
  0xe6   :  { %6322 = vmatmul.mubr.bf16.vlgmr.msra.gmra.mrb[0].mxu1 %v969_v4  ;;  %vm747_vm8 = vcmp.gt.f32.partialorder %v457_v8, 0.0  ;;  %v822_v9 = vmul.f32 0.01, %v457_v8  ;;  %v6236_v10 = vpop.f32.mrb[6].mxu0 }
  0xe7   :  { %v899_v11 = vsel %vm749_vm7, %v6235_v6, %v824_v7  ;;  %vm750_vm9 = vcmp.gt.f32.partialorder %v6236_v10, 0.0  ;;  %v825_v12 = vmul.f32 0.01, %v6236_v10  ;;  %v460_v13 = vpop.f32.mrb[7].mxu0 }
  0xe8   :  { %v897_v14 = vsel %vm747_vm8, %v457_v8, %v822_v9  ;;  %vm748_vm10 = vcmp.gt.f32.partialorder %v460_v13, 0.0  ;;  %v823_v15 = vmul.f32 0.01, %v460_v13 }
  0xe9   :  { %v900_v17 = vsel %vm750_vm9, %v6236_v10, %v825_v12 }
  0xea   :  { %v898_v18 = vsel %vm748_vm10, %v460_v13, %v823_v15  ;;  %v971_v19 = vpack.c.bf16 %v900_v17, %v899_v11 }
  0xeb   :  { %v970_v20 = vpack.c.bf16 %v898_v18, %v897_v14 }
  0xec   :  { %v6239_v21 = vpop.f32.mrb[8].mxu0 }
  0xed   :  { %6325 = vmatprep.mubr.bf16.mxu1 %v970_v20  ;;  %vm753_vm11 = vcmp.gt.f32.partialorder %v6239_v21, 0.0  ;;  %v828_v22 = vmul.f32 0.01, %v6239_v21  ;;  %v473_v23 = vpop.f32.mrb[9].mxu0 }
  0xee   :  { %6326 = vmatmul.mubr.bf16.gmra.mrb[4].mxu1 %v971_v19  ;;  %vm751_vm12 = vcmp.gt.f32.partialorder %v473_v23, 0.0  ;;  %v826_v24 = vmul.f32 0.01, %v473_v23  ;;  %v6240_v25 = vpop.f32.mrb[10].mxu0 }
  0xef   :  { %v903_v26 = vsel %vm753_vm11, %v6239_v21, %v828_v22  ;;  %vm754_vm13 = vcmp.gt.f32.partialorder %v6240_v25, 0.0  ;;  %v829_v27 = vmul.f32 0.01, %v6240_v25  ;;  %v476_v28 = vpop.f32.mrb[11].mxu0 }
  0xf0   :  { %v901_v29 = vsel %vm751_vm12, %v473_v23, %v826_v24  ;;  %vm752_vm14 = vcmp.gt.f32.partialorder %v476_v28, 0.0  ;;  %v827_v30 = vmul.f32 0.01, %v476_v28 }
  0xf1   :  { %v904_v31 = vsel %vm754_vm13, %v6240_v25, %v829_v27 }
  0xf2   :  { %v902_v32 = vsel %vm752_vm14, %v476_v28, %v827_v30  ;;  %v973_v33 = vpack.c.bf16 %v904_v31, %v903_v26 }
  0xf3   :  { %v972_v34 = vpack.c.bf16 %v902_v32, %v901_v29 }
  0xf4   :  { %v6243_v35 = vpop.f32.mrb[12].mxu0 }
  0xf5   :  { %vm757_vm15 = vcmp.gt.f32.partialorder %v6243_v35, 0.0  ;;  %v832_v36 = vmul.f32 0.01, %v6243_v35  ;;  %v489_v37 = vpop.f32.mrb[13].mxu0  ;;  %6329 = vmatprep.mubr.bf16.mxu1 %v972_v34 }
  0xf6   :  { %vm755_vm0 = vcmp.gt.f32.partialorder %v489_v37, 0.0  ;;  %v830_v38 = vmul.f32 0.01, %v489_v37  ;;  %v6244_v39 = vpop.f32.mrb[14].mxu0  ;;  %6330 = vmatmul.mubr.bf16.gmra.mrb[8].mxu1 %v973_v33 }
  0xf7   :  { %v907_v42 = vsel %vm757_vm15, %v6243_v35, %v832_v36  ;;  %vm758_vm1 = vcmp.gt.f32.partialorder %v6244_v39, 0.0  ;;  %v833_v43 = vmul.f32 0.01, %v6244_v39  ;;  %v492_v44 = vpop.f32.mrb[15].mxu0 }
  0xf8   :  { %v905_v45 = vsel %vm755_vm0, %v489_v37, %v830_v38  ;;  %vm756_vm2 = vcmp.gt.f32.partialorder %v492_v44, 0.0  ;;  %v831_v46 = vmul.f32 0.01, %v492_v44 }
  0xf9   :  { %v908_v47 = vsel %vm758_vm1, %v6244_v39, %v833_v43 }
  0xfa   :  { %v906_v48 = vsel %vm756_vm2, %v492_v44, %v831_v46  ;;  %v975_v49 = vpack.c.bf16 %v908_v47, %v907_v42 }
  0xfb   :  { %v974_v50 = vpack.c.bf16 %v906_v48, %v905_v45 }
  0xfc   :  { %v6247_v51 = vpop.f32.mrb[16].mxu0 }
  0xfd   :  { %vm761_vm3 = vcmp.gt.f32.partialorder %v6247_v51, 0.0  ;;  %v836_v52 = vmul.f32 0.01, %v6247_v51  ;;  %v505_v53 = vpop.f32.mrb[17].mxu0  ;;  %6333 = vmatprep.mubr.bf16.mxu1 %v974_v50 }
  0xfe   :  { %vm759_vm4 = vcmp.gt.f32.partialorder %v505_v53, 0.0  ;;  %v834_v54 = vmul.f32 0.01, %v505_v53  ;;  %v6248_v55 = vpop.f32.mrb[18].mxu0  ;;  %6334 = vmatmul.mubr.bf16.gmra.mrb[12].mxu1 %v975_v49 }
  0xff   :  { %v911_v56 = vsel %vm761_vm3, %v6247_v51, %v836_v52  ;;  %vm762_vm5 = vcmp.gt.f32.partialorder %v6248_v55, 0.0  ;;  %v837_v57 = vmul.f32 0.01, %v6248_v55  ;;  %v508_v58 = vpop.f32.mrb[19].mxu0 }
 0x100   :  { %v909_v59 = vsel %vm759_vm4, %v505_v53, %v834_v54  ;;  %vm760_vm6 = vcmp.gt.f32.partialorder %v508_v58, 0.0  ;;  %v835_v60 = vmul.f32 0.01, %v508_v58 }
 0x101   :  { %v912_v61 = vsel %vm762_vm5, %v6248_v55, %v837_v57 }
 0x102   :  { %v910_v62 = vsel %vm760_vm6, %v508_v58, %v835_v60  ;;  %v977_v63 = vpack.c.bf16 %v912_v61, %v911_v56 }
 0x103   :  { %v976_v0 = vpack.c.bf16 %v910_v62, %v909_v59 }
 0x104   :  { %v6251_v1 = vpop.f32.mrb[20].mxu0 }
 0x105   :  { %vm765_vm7 = vcmp.gt.f32.partialorder %v6251_v1, 0.0  ;;  %v840_v2 = vmul.f32 0.01, %v6251_v1  ;;  %v521_v3 = vpop.f32.mrb[21].mxu0  ;;  %6337 = vmatprep.mubr.bf16.mxu1 %v976_v0 }
 0x106   :  { %vm763_vm8 = vcmp.gt.f32.partialorder %v521_v3, 0.0  ;;  %v838_v4 = vmul.f32 0.01, %v521_v3  ;;  %v6252_v5 = vpop.f32.mrb[22].mxu0  ;;  %6338 = vmatmul.mubr.bf16.gmra.mrb[16].mxu1 %v977_v63 }
 0x107   :  { %v915_v6 = vsel %vm765_vm7, %v6251_v1, %v840_v2  ;;  %vm766_vm9 = vcmp.gt.f32.partialorder %v6252_v5, 0.0  ;;  %v841_v7 = vmul.f32 0.01, %v6252_v5  ;;  %v524_v8 = vpop.f32.mrb[23].mxu0 }
 0x108   :  { %v913_v9 = vsel %vm763_vm8, %v521_v3, %v838_v4  ;;  %vm764_vm10 = vcmp.gt.f32.partialorder %v524_v8, 0.0  ;;  %v839_v10 = vmul.f32 0.01, %v524_v8 }
 0x109   :  { %v916_v11 = vsel %vm766_vm9, %v6252_v5, %v841_v7 }
 0x10a   :  { %v914_v12 = vsel %vm764_vm10, %v524_v8, %v839_v10  ;;  %v979_v13 = vpack.c.bf16 %v916_v11, %v915_v6 }
 0x10b   :  { %v978_v14 = vpack.c.bf16 %v914_v12, %v913_v9 }
 0x10c   :  { %v6255_v15 = vpop.f32.mrb[24].mxu0 }
 0x10d   :  { %vm769_vm11 = vcmp.gt.f32.partialorder %v6255_v15, 0.0  ;;  %v844_v16 = vmul.f32 0.01, %v6255_v15  ;;  %v537_v17 = vpop.f32.mrb[25].mxu0  ;;  %6341 = vmatprep.mubr.bf16.mxu1 %v978_v14 }
 0x10e   :  { %vm767_vm12 = vcmp.gt.f32.partialorder %v537_v17, 0.0  ;;  %v842_v18 = vmul.f32 0.01, %v537_v17  ;;  %v6256_v19 = vpop.f32.mrb[26].mxu0  ;;  %6342 = vmatmul.mubr.bf16.gmra.mrb[20].mxu1 %v979_v13 }
 0x10f   :  { %v919_v20 = vsel %vm769_vm11, %v6255_v15, %v844_v16  ;;  %vm770_vm13 = vcmp.gt.f32.partialorder %v6256_v19, 0.0  ;;  %v845_v21 = vmul.f32 0.01, %v6256_v19  ;;  %v540_v22 = vpop.f32.mrb[27].mxu0 }
 0x110   :  { %v917_v23 = vsel %vm767_vm12, %v537_v17, %v842_v18  ;;  %vm768_vm14 = vcmp.gt.f32.partialorder %v540_v22, 0.0  ;;  %v843_v24 = vmul.f32 0.01, %v540_v22 }
 0x111   :  { %v920_v25 = vsel %vm770_vm13, %v6256_v19, %v845_v21 }
 0x112   :  { %v918_v26 = vsel %vm768_vm14, %v540_v22, %v843_v24  ;;  %v981_v27 = vpack.c.bf16 %v920_v25, %v919_v20 }
 0x113   :  { %v980_v28 = vpack.c.bf16 %v918_v26, %v917_v23 }
 0x114   :  { %v6259_v29 = vpop.f32.mrb[28].mxu0 }
 0x115   :  { %vm773_vm15 = vcmp.gt.f32.partialorder %v6259_v29, 0.0  ;;  %v848_v30 = vmul.f32 0.01, %v6259_v29  ;;  %v553_v31 = vpop.f32.mrb[29].mxu0  ;;  %6345 = vmatprep.mubr.bf16.mxu1 %v980_v28 }
 0x116   :  { %vm771_vm0 = vcmp.gt.f32.partialorder %v553_v31, 0.0  ;;  %v846_v32 = vmul.f32 0.01, %v553_v31  ;;  %v6260_v33 = vpop.f32.mrb[30].mxu0  ;;  %6346 = vmatmul.mubr.bf16.gmra.mrb[24].mxu1 %v981_v27 }
 0x117   :  { %v923_v34 = vsel %vm773_vm15, %v6259_v29, %v848_v30  ;;  %vm774_vm1 = vcmp.gt.f32.partialorder %v6260_v33, 0.0  ;;  %v849_v35 = vmul.f32 0.01, %v6260_v33  ;;  %v556_v36 = vpop.f32.mrb[31].mxu0 }
 0x118   :  { %v921_v37 = vsel %vm771_vm0, %v553_v31, %v846_v32  ;;  %vm772_vm2 = vcmp.gt.f32.partialorder %v556_v36, 0.0  ;;  %v847_v38 = vmul.f32 0.01, %v556_v36 }
 0x119   :  { %v924_v39 = vsel %vm774_vm1, %v6260_v33, %v849_v35 }
 0x11a   :  { %v922_v40 = vsel %vm772_vm2, %v556_v36, %v847_v38  ;;  %v983_v41 = vpack.c.bf16 %v924_v39, %v923_v34 }
 0x11b   :  { %v982_v42 = vpack.c.bf16 %v922_v40, %v921_v37 }
 0x11c   :  { %v6263_v43 = vpop.f32.mrb[32].mxu0 }
 0x11d   :  { %vm777_vm3 = vcmp.gt.f32.partialorder %v6263_v43, 0.0  ;;  %v852_v44 = vmul.f32 0.01, %v6263_v43  ;;  %v569_v45 = vpop.f32.mrb[33].mxu0  ;;  %6349 = vmatprep.mubr.bf16.mxu1 %v982_v42 }
 0x11e   :  { %vm775_vm4 = vcmp.gt.f32.partialorder %v569_v45, 0.0  ;;  %v850_v46 = vmul.f32 0.01, %v569_v45  ;;  %v6264_v47 = vpop.f32.mrb[34].mxu0  ;;  %6350 = vmatmul.mubr.bf16.gmra.mrb[28].mxu1 %v983_v41 }
 0x11f   :  { %v927_v48 = vsel %vm777_vm3, %v6263_v43, %v852_v44  ;;  %vm778_vm5 = vcmp.gt.f32.partialorder %v6264_v47, 0.0  ;;  %v853_v49 = vmul.f32 0.01, %v6264_v47  ;;  %v572_v50 = vpop.f32.mrb[35].mxu0 }
 0x120   :  { %v925_v51 = vsel %vm775_vm4, %v569_v45, %v850_v46  ;;  %vm776_vm6 = vcmp.gt.f32.partialorder %v572_v50, 0.0  ;;  %v851_v52 = vmul.f32 0.01, %v572_v50 }
 0x121   :  { %v928_v53 = vsel %vm778_vm5, %v6264_v47, %v853_v49 }
 0x122   :  { %v926_v54 = vsel %vm776_vm6, %v572_v50, %v851_v52  ;;  %v985_v55 = vpack.c.bf16 %v928_v53, %v927_v48 }
 0x123   :  { %v984_v56 = vpack.c.bf16 %v926_v54, %v925_v51 }
 0x124   :  { %v6267_v57 = vpop.f32.mrb[36].mxu0 }
 0x125   :  { %vm781_vm7 = vcmp.gt.f32.partialorder %v6267_v57, 0.0  ;;  %v856_v58 = vmul.f32 0.01, %v6267_v57  ;;  %v585_v59 = vpop.f32.mrb[37].mxu0  ;;  %6353 = vmatprep.mubr.bf16.mxu1 %v984_v56 }
 0x126   :  { %vm779_vm8 = vcmp.gt.f32.partialorder %v585_v59, 0.0  ;;  %v854_v60 = vmul.f32 0.01, %v585_v59  ;;  %v6268_v61 = vpop.f32.mrb[38].mxu0  ;;  %6354 = vmatmul.mubr.bf16.gmra.mrb[32].mxu1 %v985_v55 }
 0x127   :  { %v931_v62 = vsel %vm781_vm7, %v6267_v57, %v856_v58  ;;  %vm782_vm9 = vcmp.gt.f32.partialorder %v6268_v61, 0.0  ;;  %v857_v63 = vmul.f32 0.01, %v6268_v61  ;;  %v588_v0 = vpop.f32.mrb[39].mxu0 }
 0x128   :  { %v929_v1 = vsel %vm779_vm8, %v585_v59, %v854_v60  ;;  %vm780_vm10 = vcmp.gt.f32.partialorder %v588_v0, 0.0  ;;  %v855_v2 = vmul.f32 0.01, %v588_v0 }
 0x129   :  { %v932_v3 = vsel %vm782_vm9, %v6268_v61, %v857_v63 }
 0x12a   :  { %v930_v4 = vsel %vm780_vm10, %v588_v0, %v855_v2  ;;  %v987_v5 = vpack.c.bf16 %v932_v3, %v931_v62 }
 0x12b   :  { %v986_v6 = vpack.c.bf16 %v930_v4, %v929_v1 }
 0x12c   :  { %v6271_v7 = vpop.f32.mrb[40].mxu0 }
 0x12d   :  { %vm785_vm11 = vcmp.gt.f32.partialorder %v6271_v7, 0.0  ;;  %v860_v8 = vmul.f32 0.01, %v6271_v7  ;;  %v601_v9 = vpop.f32.mrb[41].mxu0  ;;  %6357 = vmatprep.mubr.bf16.mxu1 %v986_v6 }
 0x12e   :  { %vm783_vm12 = vcmp.gt.f32.partialorder %v601_v9, 0.0  ;;  %v858_v10 = vmul.f32 0.01, %v601_v9  ;;  %v6272_v11 = vpop.f32.mrb[42].mxu0  ;;  %6358 = vmatmul.mubr.bf16.gmra.mrb[36].mxu1 %v987_v5 }
 0x12f   :  { %v935_v12 = vsel %vm785_vm11, %v6271_v7, %v860_v8  ;;  %vm786_vm13 = vcmp.gt.f32.partialorder %v6272_v11, 0.0  ;;  %v861_v13 = vmul.f32 0.01, %v6272_v11  ;;  %v604_v14 = vpop.f32.mrb[43].mxu0 }
 0x130   :  { %v933_v15 = vsel %vm783_vm12, %v601_v9, %v858_v10  ;;  %vm784_vm14 = vcmp.gt.f32.partialorder %v604_v14, 0.0  ;;  %v859_v16 = vmul.f32 0.01, %v604_v14 }
 0x131   :  { %v936_v17 = vsel %vm786_vm13, %v6272_v11, %v861_v13 }
 0x132   :  { %v934_v18 = vsel %vm784_vm14, %v604_v14, %v859_v16  ;;  %v989_v19 = vpack.c.bf16 %v936_v17, %v935_v12 }
 0x133   :  { %v988_v20 = vpack.c.bf16 %v934_v18, %v933_v15 }
 0x134   :  { %v6275_v21 = vpop.f32.mrb[44].mxu0 }
 0x135   :  { %vm789_vm15 = vcmp.gt.f32.partialorder %v6275_v21, 0.0  ;;  %v864_v22 = vmul.f32 0.01, %v6275_v21  ;;  %v617_v23 = vpop.f32.mrb[45].mxu0  ;;  %6361 = vmatprep.mubr.bf16.mxu1 %v988_v20 }
 0x136   :  { %vm787_vm0 = vcmp.gt.f32.partialorder %v617_v23, 0.0  ;;  %v862_v24 = vmul.f32 0.01, %v617_v23  ;;  %v6276_v25 = vpop.f32.mrb[46].mxu0  ;;  %6362 = vmatmul.mubr.bf16.gmra.mrb[40].mxu1 %v989_v19 }
 0x137   :  { %v939_v26 = vsel %vm789_vm15, %v6275_v21, %v864_v22  ;;  %vm790_vm1 = vcmp.gt.f32.partialorder %v6276_v25, 0.0  ;;  %v865_v27 = vmul.f32 0.01, %v6276_v25  ;;  %v620_v28 = vpop.f32.mrb[47].mxu0 }
 0x138   :  { %v937_v29 = vsel %vm787_vm0, %v617_v23, %v862_v24  ;;  %vm788_vm2 = vcmp.gt.f32.partialorder %v620_v28, 0.0  ;;  %v863_v30 = vmul.f32 0.01, %v620_v28 }
 0x139   :  { %v940_v31 = vsel %vm790_vm1, %v6276_v25, %v865_v27 }
 0x13a   :  { %v938_v32 = vsel %vm788_vm2, %v620_v28, %v863_v30  ;;  %v991_v33 = vpack.c.bf16 %v940_v31, %v939_v26 }
 0x13b   :  { %v990_v34 = vpack.c.bf16 %v938_v32, %v937_v29 }
 0x13c   :  { %v6279_v35 = vpop.f32.mrb[48].mxu0 }
 0x13d   :  { %vm793_vm3 = vcmp.gt.f32.partialorder %v6279_v35, 0.0  ;;  %v868_v36 = vmul.f32 0.01, %v6279_v35  ;;  %v633_v37 = vpop.f32.mrb[49].mxu0  ;;  %6365 = vmatprep.mubr.bf16.mxu1 %v990_v34 }
 0x13e   :  { %vm791_vm4 = vcmp.gt.f32.partialorder %v633_v37, 0.0  ;;  %v866_v38 = vmul.f32 0.01, %v633_v37  ;;  %v6280_v39 = vpop.f32.mrb[50].mxu0  ;;  %6366 = vmatmul.mubr.bf16.gmra.mrb[44].mxu1 %v991_v33 }
 0x13f   :  { %v943_v40 = vsel %vm793_vm3, %v6279_v35, %v868_v36  ;;  %vm794_vm5 = vcmp.gt.f32.partialorder %v6280_v39, 0.0  ;;  %v869_v41 = vmul.f32 0.01, %v6280_v39  ;;  %v636_v42 = vpop.f32.mrb[51].mxu0 }
 0x140   :  { %v941_v43 = vsel %vm791_vm4, %v633_v37, %v866_v38  ;;  %vm792_vm6 = vcmp.gt.f32.partialorder %v636_v42, 0.0  ;;  %v867_v44 = vmul.f32 0.01, %v636_v42 }
 0x141   :  { %v944_v45 = vsel %vm794_vm5, %v6280_v39, %v869_v41 }
 0x142   :  { %v942_v46 = vsel %vm792_vm6, %v636_v42, %v867_v44  ;;  %v993_v47 = vpack.c.bf16 %v944_v45, %v943_v40 }
 0x143   :  { %v992_v48 = vpack.c.bf16 %v942_v46, %v941_v43  ;;  %v6838_v46 = vld [vmem:[%s9562_s3 + $0x80] sm:$0xff]  }
 0x144   :  { %v6283_v49 = vpop.f32.mrb[52].mxu0  ;;  %6489 = vmatprep.subr.bf16.mxu1 %v6838_v46 }
 0x145   :  { %vm797_vm7 = vcmp.gt.f32.partialorder %v6283_v49, 0.0  ;;  %v872_v50 = vmul.f32 0.01, %v6283_v49  ;;  %v649_v51 = vpop.f32.mrb[53].mxu0  ;;  %6369 = vmatprep.mubr.bf16.mxu1 %v992_v48  ;;  %6490 = vmatpush3.bf16.msra.mxu1 %v6838_v46 }
 0x146   :  { %vm795_vm8 = vcmp.gt.f32.partialorder %v649_v51, 0.0  ;;  %v870_v52 = vmul.f32 0.01, %v649_v51  ;;  %v6284_v53 = vpop.f32.mrb[54].mxu0  ;;  %6370 = vmatmul.mubr.bf16.gmra.mrb[48].mxu1 %v993_v47 }
 0x147   :  { %v947_v54 = vsel %vm797_vm7, %v6283_v49, %v872_v50  ;;  %vm798_vm9 = vcmp.gt.f32.partialorder %v6284_v53, 0.0  ;;  %v873_v55 = vmul.f32 0.01, %v6284_v53  ;;  %v652_v56 = vpop.f32.mrb[55].mxu0 }
 0x148   :  { %v945_v57 = vsel %vm795_vm8, %v649_v51, %v870_v52  ;;  %vm796_vm10 = vcmp.gt.f32.partialorder %v652_v56, 0.0  ;;  %v871_v58 = vmul.f32 0.01, %v652_v56 }
 0x149   :  { %v948_v59 = vsel %vm798_vm9, %v6284_v53, %v873_v55 }
 0x14a   :  { %v946_v60 = vsel %vm796_vm10, %v652_v56, %v871_v58  ;;  %v995_v61 = vpack.c.bf16 %v948_v59, %v947_v54 }
 0x14b   :  { %v994_v62 = vpack.c.bf16 %v946_v60, %v945_v57 }
 0x14c   :  { %v6287_v63 = vpop.f32.mrb[56].mxu0 }
 0x14d   :  { %vm801_vm11 = vcmp.gt.f32.partialorder %v6287_v63, 0.0  ;;  %v876_v0 = vmul.f32 0.01, %v6287_v63  ;;  %v665_v1 = vpop.f32.mrb[57].mxu0  ;;  %6373 = vmatprep.mubr.bf16.mxu1 %v994_v62 }
 0x14e   :  { %vm799_vm12 = vcmp.gt.f32.partialorder %v665_v1, 0.0  ;;  %v874_v2 = vmul.f32 0.01, %v665_v1  ;;  %v6288_v3 = vpop.f32.mrb[58].mxu0  ;;  %6374 = vmatmul.mubr.bf16.gmra.mrb[52].mxu1 %v995_v61 }
 0x14f   :  { %v951_v4 = vsel %vm801_vm11, %v6287_v63, %v876_v0  ;;  %vm802_vm13 = vcmp.gt.f32.partialorder %v6288_v3, 0.0  ;;  %v877_v5 = vmul.f32 0.01, %v6288_v3  ;;  %v668_v6 = vpop.f32.mrb[59].mxu0 }
 0x150   :  { %v949_v7 = vsel %vm799_vm12, %v665_v1, %v874_v2  ;;  %vm800_vm14 = vcmp.gt.f32.partialorder %v668_v6, 0.0  ;;  %v875_v8 = vmul.f32 0.01, %v668_v6 }
 0x151   :  { %v952_v9 = vsel %vm802_vm13, %v6288_v3, %v877_v5  ;;  %v6840_v5 = vld [vmem:[%s9562_s3 + $0x90] sm:$0xff]  }
 0x152   :  { %v950_v10 = vsel %vm800_vm14, %v668_v6, %v875_v8  ;;  %v997_v11 = vpack.c.bf16 %v952_v9, %v951_v4  ;;  %v6839_v4 = vld [vmem:[%s9562_s3 + $0x88] sm:$0xff]   ;;  %v6841_v6 = vld [vmem:[%s9562_s3 + $0x98] sm:$0xff]  }
 0x153   :  { %v996_v12 = vpack.c.bf16 %v950_v10, %v949_v7  ;;  %6491 = vmatprep.subr.bf16.mxu1 %v6839_v4  ;;  %v6842_v7 = vld [vmem:[%s9562_s3 + $0xa0] sm:$0xff]  }
 0x154   :  { %v6291_v13 = vpop.f32.mrb[60].mxu0  ;;  %6492 = vmatpush3.bf16.msra.mxu1 %v6839_v4 }
 0x155   :  { %vm805_vm15 = vcmp.gt.f32.partialorder %v6291_v13, 0.0  ;;  %v880_v14 = vmul.f32 0.01, %v6291_v13  ;;  %v681_v15 = vpop.f32.mrb[61].mxu0  ;;  %6377 = vmatprep.mubr.bf16.mxu1 %v996_v12  ;;  %6493 = vmatprep.subr.bf16.mxu1 %v6840_v5 }
 0x156   :  { %vm803_vm0 = vcmp.gt.f32.partialorder %v681_v15, 0.0  ;;  %v878_v16 = vmul.f32 0.01, %v681_v15  ;;  %v6292_v17 = vpop.f32.mrb[62].mxu0  ;;  %6378 = vmatmul.mubr.bf16.gmra.mrb[56].mxu1 %v997_v11 }
 0x157   :  { %v955_v18 = vsel %vm805_vm15, %v6291_v13, %v880_v14  ;;  %vm806_vm1 = vcmp.gt.f32.partialorder %v6292_v17, 0.0  ;;  %v881_v19 = vmul.f32 0.01, %v6292_v17  ;;  %v684_v20 = vpop.f32.mrb[63].mxu0 }
 0x158   :  { %v953_v21 = vsel %vm803_vm0, %v681_v15, %v878_v16  ;;  %vm804_vm2 = vcmp.gt.f32.partialorder %v684_v20, 0.0  ;;  %v879_v22 = vmul.f32 0.01, %v684_v20  ;;  %6494 = vmatpush3.bf16.msra.mxu1 %v6840_v5 }
 0x159   :  { %v956_v23 = vsel %vm806_vm1, %v6292_v17, %v881_v19  ;;  %6495 = vmatprep.subr.bf16.mxu1 %v6841_v6 }
 0x15a   :  { %v954_v24 = vsel %vm804_vm2, %v684_v20, %v879_v22  ;;  %v999_v25 = vpack.c.bf16 %v956_v23, %v955_v18 }
 0x15b   :  { %v998_v26 = vpack.c.bf16 %v954_v24, %v953_v21 }
 0x15c   :  { %v6295_v27 = vpop.f32.mrb[64].mxu0  ;;  %6496 = vmatpush3.bf16.msra.mxu1 %v6841_v6 }
 0x15d   :  { %vm809_vm3 = vcmp.gt.f32.partialorder %v6295_v27, 0.0  ;;  %v884_v28 = vmul.f32 0.01, %v6295_v27  ;;  %v697_v29 = vpop.f32.mrb[65].mxu0  ;;  %6381 = vmatprep.mubr.bf16.mxu1 %v998_v26  ;;  %6497 = vmatprep.subr.bf16.mxu1 %v6842_v7 }
 0x15e   :  { %vm807_vm4 = vcmp.gt.f32.partialorder %v697_v29, 0.0  ;;  %v882_v30 = vmul.f32 0.01, %v697_v29  ;;  %v6296_v31 = vpop.f32.mrb[66].mxu0  ;;  %6382 = vmatmul.mubr.bf16.gmra.mrb[60].mxu1 %v999_v25 }
 0x15f   :  { %v959_v32 = vsel %vm809_vm3, %v6295_v27, %v884_v28  ;;  %vm810_vm5 = vcmp.gt.f32.partialorder %v6296_v31, 0.0  ;;  %v885_v33 = vmul.f32 0.01, %v6296_v31  ;;  %v700_v34 = vpop.f32.mrb[67].mxu0 }
 0x160   :  { %v957_v35 = vsel %vm807_vm4, %v697_v29, %v882_v30  ;;  %vm808_vm6 = vcmp.gt.f32.partialorder %v700_v34, 0.0  ;;  %v883_v36 = vmul.f32 0.01, %v700_v34  ;;  %6498 = vmatpush3.bf16.msra.mxu1 %v6842_v7 }
 0x161   :  { %v960_v37 = vsel %vm810_vm5, %v6296_v31, %v885_v33 }
 0x162   :  { %v958_v38 = vsel %vm808_vm6, %v700_v34, %v883_v36  ;;  %v1001_v39 = vpack.c.bf16 %v960_v37, %v959_v32  ;;  %v6843_v32 = vld [vmem:[%s9562_s3 + $0xa8] sm:$0xff]  }
 0x163   :  { %v1000_v40 = vpack.c.bf16 %v958_v38, %v957_v35  ;;  %6499 = vmatprep.subr.bf16.mxu1 %v6843_v32 }
 0x164   :  { %v6299_v41 = vpop.f32.mrb[68].mxu0  ;;  %6500 = vmatpush3.bf16.msra.mxu1 %v6843_v32 }
 0x165   :  { %vm813_vm7 = vcmp.gt.f32.partialorder %v6299_v41, 0.0  ;;  %v888_v42 = vmul.f32 0.01, %v6299_v41  ;;  %v713_v43 = vpop.f32.mrb[69].mxu0  ;;  %6385 = vmatprep.mubr.bf16.mxu1 %v1000_v40 }
 0x166   :  { %vm811_vm8 = vcmp.gt.f32.partialorder %v713_v43, 0.0  ;;  %v886_v44 = vmul.f32 0.01, %v713_v43  ;;  %v6300_v45 = vpop.f32.mrb[70].mxu0  ;;  %6386 = vmatmul.mubr.bf16.gmra.mrb[64].mxu1 %v1001_v39 }
 0x167   :  { %v963_v47 = vsel %vm813_vm7, %v6299_v41, %v888_v42  ;;  %vm814_vm9 = vcmp.gt.f32.partialorder %v6300_v45, 0.0  ;;  %v889_v48 = vmul.f32 0.01, %v6300_v45  ;;  %v716_v49 = vpop.f32.mrb[71].mxu0 }
 0x168   :  { %v961_v50 = vsel %vm811_vm8, %v713_v43, %v886_v44  ;;  %vm812_vm10 = vcmp.gt.f32.partialorder %v716_v49, 0.0  ;;  %v887_v51 = vmul.f32 0.01, %v716_v49 }
 0x169   :  { %v964_v52 = vsel %vm814_vm9, %v6300_v45, %v889_v48 }
 0x16a   :  { %v962_v53 = vsel %vm812_vm10, %v716_v49, %v887_v51  ;;  %v1003_v54 = vpack.c.bf16 %v964_v52, %v963_v47 }
 0x16b   :  { %v1002_v55 = vpack.c.bf16 %v962_v53, %v961_v50 }
 0x16c   :  { %v6303_v56 = vpop.f32.mrb[72].mxu0 }
 0x16d   :  { %vm817_vm11 = vcmp.gt.f32.partialorder %v6303_v56, 0.0  ;;  %v892_v57 = vmul.f32 0.01, %v6303_v56  ;;  %v729_v58 = vpop.f32.mrb[73].mxu0  ;;  %6389 = vmatprep.mubr.bf16.mxu1 %v1002_v55 }
 0x16e   :  { %vm815_vm12 = vcmp.gt.f32.partialorder %v729_v58, 0.0  ;;  %v890_v59 = vmul.f32 0.01, %v729_v58  ;;  %v6304_v60 = vpop.f32.mrb[74].mxu0  ;;  %6390 = vmatmul.mubr.bf16.gmra.mrb[68].mxu1 %v1003_v54 }
 0x16f   :  { %v967_v61 = vsel %vm817_vm11, %v6303_v56, %v892_v57  ;;  %v732_v62 = vpop.f32.mrb[75].mxu0  ;;  %v6844_v56 = vld [vmem:[%s9562_s3 + $0xb0] sm:$0xff]   ;;  %v6845_v57 = vld [vmem:[%s9562_s3 + $0xb8] sm:$0xff]  }
 0x170   :  { %v965_v63 = vsel %vm815_vm12, %v729_v58, %v890_v59  ;;  %vm816_vm13 = vcmp.gt.f32.partialorder %v732_v62, 0.0  ;;  %v891_v0 = vmul.f32 0.01, %v732_v62  ;;  %v1005_v1 = vpack.c.bf16 %v967_v61, %v967_v61  ;;  %6501 = vmatprep.subr.bf16.mxu1 %v6844_v56 }
 0x171   :  { %6502 = vmatpush3.bf16.msra.mxu1 %v6844_v56 }
 0x172   :  { %v966_v2 = vsel %vm816_vm13, %v732_v62, %v891_v0  ;;  %6503 = vmatprep.subr.bf16.mxu1 %v6845_v57 }
 0x173   :  { %v1004_v3 = vpack.c.bf16 %v966_v2, %v965_v63 }
 0x175   :  { %6393 = vmatprep.mubr.bf16.mxu1 %v1004_v3  ;;  %6504 = vmatpush3.bf16.msra.mxu1 %v6845_v57 }
 0x176   :  { %6394 = vmatmul.mubr.bf16.gmra.mrb[72].mxu1 %v1005_v1 }
 0x1b9   :  { %v6323_v8 = vpop.f32.mrb[0].mxu1 }
 0x1ba   :  { %v1483_v9 = vmul.f32 0.01, %v6323_v8  ;;  %v1104_v10 = vpop.f32.mrb[1].mxu1  ;;  %vm1408_vm14 = vcmp.gt.f32.partialorder %v6323_v8, 0.0 }
 0x1bb   :  { %v1481_v11 = vmul.f32 0.01, %v1104_v10  ;;  %v6324_v12 = vpop.f32.mrb[2].mxu1  ;;  %vm1406_vm15 = vcmp.gt.f32.partialorder %v1104_v10, 0.0 }
 0x1bc   :  { %vm1409_vm0 = vcmp.gt.f32.partialorder %v6324_v12, 0.0  ;;  %v1484_v13 = vmul.f32 0.01, %v6324_v12  ;;  %v1107_v14 = vpop.f32.mrb[3].mxu1  ;;  %v1558_v16 = vsel %vm1408_vm14, %v6323_v8, %v1483_v9 }
 0x1bd   :  { %vm1407_vm1 = vcmp.gt.f32.partialorder %v1107_v14, 0.0  ;;  %v1482_v15 = vmul.f32 0.01, %v1107_v14  ;;  %v1556_v18 = vsel %vm1406_vm15, %v1104_v10, %v1481_v11 }
 0x1be   :  { %v1559_v17 = vsel %vm1409_vm0, %v6324_v12, %v1484_v13 }
 0x1bf   :  { %v1632_v19 = vpack.c.bf16 %v1559_v17, %v1558_v16  ;;  %v1557_v20 = vsel %vm1407_vm1, %v1107_v14, %v1482_v15 }
 0x1c0   :  { %v1631_v21 = vpack.c.bf16 %v1557_v20, %v1556_v18 }
 0x1c1   :  { %v6327_v22 = vpop.f32.mrb[4].mxu1 }
 0x1c2   :  { %6413 = vmatprep.mubr.bf16.mxu0 %v1631_v21  ;;  %vm1412_vm2 = vcmp.gt.f32.partialorder %v6327_v22, 0.0  ;;  %v1487_v23 = vmul.f32 0.01, %v6327_v22  ;;  %v1120_v24 = vpop.f32.mrb[5].mxu1 }
 0x1c3   :  { %6414 = vmatmul.mubr.bf16.vlgmr.msra.gmra.mrb[76].mxu0 %v1632_v19  ;;  %vm1410_vm3 = vcmp.gt.f32.partialorder %v1120_v24, 0.0  ;;  %v1485_v25 = vmul.f32 0.01, %v1120_v24  ;;  %v6328_v26 = vpop.f32.mrb[6].mxu1 }
 0x1c4   :  { %v1562_v27 = vsel %vm1412_vm2, %v6327_v22, %v1487_v23  ;;  %vm1413_vm4 = vcmp.gt.f32.partialorder %v6328_v26, 0.0  ;;  %v1488_v28 = vmul.f32 0.01, %v6328_v26  ;;  %v1123_v29 = vpop.f32.mrb[7].mxu1 }
 0x1c5   :  { %v1560_v30 = vsel %vm1410_vm3, %v1120_v24, %v1485_v25  ;;  %vm1411_vm5 = vcmp.gt.f32.partialorder %v1123_v29, 0.0  ;;  %v1486_v31 = vmul.f32 0.01, %v1123_v29 }
 0x1c6   :  { %v1563_v33 = vsel %vm1413_vm4, %v6328_v26, %v1488_v28 }
 0x1c7   :  { %v1561_v34 = vsel %vm1411_vm5, %v1123_v29, %v1486_v31  ;;  %v1634_v35 = vpack.c.bf16 %v1563_v33, %v1562_v27 }
 0x1c8   :  { %v1633_v36 = vpack.c.bf16 %v1561_v34, %v1560_v30 }
 0x1c9   :  { %v6331_v37 = vpop.f32.mrb[8].mxu1 }
 0x1ca   :  { %6417 = vmatprep.mubr.bf16.mxu0 %v1633_v36  ;;  %vm1416_vm6 = vcmp.gt.f32.partialorder %v6331_v37, 0.0  ;;  %v1491_v38 = vmul.f32 0.01, %v6331_v37  ;;  %v1136_v39 = vpop.f32.mrb[9].mxu1 }
 0x1cb   :  { %6418 = vmatmul.mubr.bf16.gmra.mrb[80].mxu0 %v1634_v35  ;;  %vm1414_vm7 = vcmp.gt.f32.partialorder %v1136_v39, 0.0  ;;  %v1489_v40 = vmul.f32 0.01, %v1136_v39  ;;  %v6332_v41 = vpop.f32.mrb[10].mxu1 }
 0x1cc   :  { %v1566_v42 = vsel %vm1416_vm6, %v6331_v37, %v1491_v38  ;;  %vm1417_vm8 = vcmp.gt.f32.partialorder %v6332_v41, 0.0  ;;  %v1492_v43 = vmul.f32 0.01, %v6332_v41  ;;  %v1139_v44 = vpop.f32.mrb[11].mxu1 }
 0x1cd   :  { %v1564_v45 = vsel %vm1414_vm7, %v1136_v39, %v1489_v40  ;;  %vm1415_vm9 = vcmp.gt.f32.partialorder %v1139_v44, 0.0  ;;  %v1490_v46 = vmul.f32 0.01, %v1139_v44 }
 0x1ce   :  { %v1567_v47 = vsel %vm1417_vm8, %v6332_v41, %v1492_v43 }
 0x1cf   :  { %v1565_v48 = vsel %vm1415_vm9, %v1139_v44, %v1490_v46  ;;  %v1636_v49 = vpack.c.bf16 %v1567_v47, %v1566_v42 }
 0x1d0   :  { %v1635_v50 = vpack.c.bf16 %v1565_v48, %v1564_v45 }
 0x1d1   :  { %v6335_v51 = vpop.f32.mrb[12].mxu1 }
 0x1d2   :  { %vm1420_vm10 = vcmp.gt.f32.partialorder %v6335_v51, 0.0  ;;  %v1495_v52 = vmul.f32 0.01, %v6335_v51  ;;  %v1152_v53 = vpop.f32.mrb[13].mxu1  ;;  %6421 = vmatprep.mubr.bf16.mxu0 %v1635_v50 }
 0x1d3   :  { %vm1418_vm11 = vcmp.gt.f32.partialorder %v1152_v53, 0.0  ;;  %v1493_v54 = vmul.f32 0.01, %v1152_v53  ;;  %v6336_v55 = vpop.f32.mrb[14].mxu1  ;;  %6422 = vmatmul.mubr.bf16.gmra.mrb[84].mxu0 %v1636_v49 }
 0x1d4   :  { %v1570_v58 = vsel %vm1420_vm10, %v6335_v51, %v1495_v52  ;;  %vm1421_vm12 = vcmp.gt.f32.partialorder %v6336_v55, 0.0  ;;  %v1496_v59 = vmul.f32 0.01, %v6336_v55  ;;  %v1155_v60 = vpop.f32.mrb[15].mxu1 }
 0x1d5   :  { %v1568_v61 = vsel %vm1418_vm11, %v1152_v53, %v1493_v54  ;;  %vm1419_vm13 = vcmp.gt.f32.partialorder %v1155_v60, 0.0  ;;  %v1494_v62 = vmul.f32 0.01, %v1155_v60 }
 0x1d6   :  { %v1571_v63 = vsel %vm1421_vm12, %v6336_v55, %v1496_v59 }
 0x1d7   :  { %v1569_v0 = vsel %vm1419_vm13, %v1155_v60, %v1494_v62  ;;  %v1638_v1 = vpack.c.bf16 %v1571_v63, %v1570_v58 }
 0x1d8   :  { %v1637_v2 = vpack.c.bf16 %v1569_v0, %v1568_v61 }
 0x1d9   :  { %v6339_v3 = vpop.f32.mrb[16].mxu1 }
 0x1da   :  { %vm1424_vm14 = vcmp.gt.f32.partialorder %v6339_v3, 0.0  ;;  %v1499_v4 = vmul.f32 0.01, %v6339_v3  ;;  %v1168_v5 = vpop.f32.mrb[17].mxu1  ;;  %6425 = vmatprep.mubr.bf16.mxu0 %v1637_v2 }
 0x1db   :  { %vm1422_vm15 = vcmp.gt.f32.partialorder %v1168_v5, 0.0  ;;  %v1497_v6 = vmul.f32 0.01, %v1168_v5  ;;  %v6340_v7 = vpop.f32.mrb[18].mxu1  ;;  %6426 = vmatmul.mubr.bf16.gmra.mrb[88].mxu0 %v1638_v1 }
 0x1dc   :  { %v1574_v8 = vsel %vm1424_vm14, %v6339_v3, %v1499_v4  ;;  %vm1425_vm0 = vcmp.gt.f32.partialorder %v6340_v7, 0.0  ;;  %v1500_v9 = vmul.f32 0.01, %v6340_v7  ;;  %v1171_v10 = vpop.f32.mrb[19].mxu1 }
 0x1dd   :  { %v1572_v11 = vsel %vm1422_vm15, %v1168_v5, %v1497_v6  ;;  %vm1423_vm1 = vcmp.gt.f32.partialorder %v1171_v10, 0.0  ;;  %v1498_v12 = vmul.f32 0.01, %v1171_v10 }
 0x1de   :  { %v1575_v13 = vsel %vm1425_vm0, %v6340_v7, %v1500_v9 }
 0x1df   :  { %v1573_v14 = vsel %vm1423_vm1, %v1171_v10, %v1498_v12  ;;  %v1640_v15 = vpack.c.bf16 %v1575_v13, %v1574_v8 }
 0x1e0   :  { %v1639_v16 = vpack.c.bf16 %v1573_v14, %v1572_v11 }
 0x1e1   :  { %v6343_v17 = vpop.f32.mrb[20].mxu1 }
 0x1e2   :  { %vm1428_vm2 = vcmp.gt.f32.partialorder %v6343_v17, 0.0  ;;  %v1503_v18 = vmul.f32 0.01, %v6343_v17  ;;  %v1184_v19 = vpop.f32.mrb[21].mxu1  ;;  %6429 = vmatprep.mubr.bf16.mxu0 %v1639_v16 }
 0x1e3   :  { %vm1426_vm3 = vcmp.gt.f32.partialorder %v1184_v19, 0.0  ;;  %v1501_v20 = vmul.f32 0.01, %v1184_v19  ;;  %v6344_v21 = vpop.f32.mrb[22].mxu1  ;;  %6430 = vmatmul.mubr.bf16.gmra.mrb[92].mxu0 %v1640_v15 }
 0x1e4   :  { %v1578_v22 = vsel %vm1428_vm2, %v6343_v17, %v1503_v18  ;;  %vm1429_vm4 = vcmp.gt.f32.partialorder %v6344_v21, 0.0  ;;  %v1504_v23 = vmul.f32 0.01, %v6344_v21  ;;  %v1187_v24 = vpop.f32.mrb[23].mxu1 }
 0x1e5   :  { %v1576_v25 = vsel %vm1426_vm3, %v1184_v19, %v1501_v20  ;;  %vm1427_vm5 = vcmp.gt.f32.partialorder %v1187_v24, 0.0  ;;  %v1502_v26 = vmul.f32 0.01, %v1187_v24 }
 0x1e6   :  { %v1579_v27 = vsel %vm1429_vm4, %v6344_v21, %v1504_v23 }
 0x1e7   :  { %v1577_v28 = vsel %vm1427_vm5, %v1187_v24, %v1502_v26  ;;  %v1642_v29 = vpack.c.bf16 %v1579_v27, %v1578_v22 }
 0x1e8   :  { %v1641_v30 = vpack.c.bf16 %v1577_v28, %v1576_v25 }
 0x1e9   :  { %v6347_v31 = vpop.f32.mrb[24].mxu1 }
 0x1ea   :  { %vm1432_vm6 = vcmp.gt.f32.partialorder %v6347_v31, 0.0  ;;  %v1507_v32 = vmul.f32 0.01, %v6347_v31  ;;  %v1200_v33 = vpop.f32.mrb[25].mxu1  ;;  %6433 = vmatprep.mubr.bf16.mxu0 %v1641_v30 }
 0x1eb   :  { %vm1430_vm7 = vcmp.gt.f32.partialorder %v1200_v33, 0.0  ;;  %v1505_v34 = vmul.f32 0.01, %v1200_v33  ;;  %v6348_v35 = vpop.f32.mrb[26].mxu1  ;;  %6434 = vmatmul.mubr.bf16.gmra.mrb[96].mxu0 %v1642_v29 }
 0x1ec   :  { %v1582_v36 = vsel %vm1432_vm6, %v6347_v31, %v1507_v32  ;;  %vm1433_vm8 = vcmp.gt.f32.partialorder %v6348_v35, 0.0  ;;  %v1508_v37 = vmul.f32 0.01, %v6348_v35  ;;  %v1203_v38 = vpop.f32.mrb[27].mxu1 }
 0x1ed   :  { %v1580_v39 = vsel %vm1430_vm7, %v1200_v33, %v1505_v34  ;;  %vm1431_vm9 = vcmp.gt.f32.partialorder %v1203_v38, 0.0  ;;  %v1506_v40 = vmul.f32 0.01, %v1203_v38 }
 0x1ee   :  { %v1583_v41 = vsel %vm1433_vm8, %v6348_v35, %v1508_v37 }
 0x1ef   :  { %v1581_v42 = vsel %vm1431_vm9, %v1203_v38, %v1506_v40  ;;  %v1644_v43 = vpack.c.bf16 %v1583_v41, %v1582_v36 }
 0x1f0   :  { %v1643_v44 = vpack.c.bf16 %v1581_v42, %v1580_v39 }
 0x1f1   :  { %v6351_v45 = vpop.f32.mrb[28].mxu1 }
 0x1f2   :  { %vm1436_vm10 = vcmp.gt.f32.partialorder %v6351_v45, 0.0  ;;  %v1511_v46 = vmul.f32 0.01, %v6351_v45  ;;  %v1216_v47 = vpop.f32.mrb[29].mxu1  ;;  %6437 = vmatprep.mubr.bf16.mxu0 %v1643_v44 }
 0x1f3   :  { %vm1434_vm11 = vcmp.gt.f32.partialorder %v1216_v47, 0.0  ;;  %v1509_v48 = vmul.f32 0.01, %v1216_v47  ;;  %v6352_v49 = vpop.f32.mrb[30].mxu1  ;;  %6438 = vmatmul.mubr.bf16.gmra.mrb[100].mxu0 %v1644_v43 }
 0x1f4   :  { %v1586_v50 = vsel %vm1436_vm10, %v6351_v45, %v1511_v46  ;;  %vm1437_vm12 = vcmp.gt.f32.partialorder %v6352_v49, 0.0  ;;  %v1512_v51 = vmul.f32 0.01, %v6352_v49  ;;  %v1219_v52 = vpop.f32.mrb[31].mxu1 }
 0x1f5   :  { %v1584_v53 = vsel %vm1434_vm11, %v1216_v47, %v1509_v48  ;;  %vm1435_vm13 = vcmp.gt.f32.partialorder %v1219_v52, 0.0  ;;  %v1510_v54 = vmul.f32 0.01, %v1219_v52 }
 0x1f6   :  { %v1587_v55 = vsel %vm1437_vm12, %v6352_v49, %v1512_v51 }
 0x1f7   :  { %v1585_v56 = vsel %vm1435_vm13, %v1219_v52, %v1510_v54  ;;  %v1646_v57 = vpack.c.bf16 %v1587_v55, %v1586_v50 }
 0x1f8   :  { %v1645_v58 = vpack.c.bf16 %v1585_v56, %v1584_v53 }
 0x1f9   :  { %v6355_v59 = vpop.f32.mrb[32].mxu1 }
 0x1fa   :  { %vm1440_vm14 = vcmp.gt.f32.partialorder %v6355_v59, 0.0  ;;  %v1515_v60 = vmul.f32 0.01, %v6355_v59  ;;  %v1232_v61 = vpop.f32.mrb[33].mxu1  ;;  %6441 = vmatprep.mubr.bf16.mxu0 %v1645_v58 }
 0x1fb   :  { %vm1438_vm15 = vcmp.gt.f32.partialorder %v1232_v61, 0.0  ;;  %v1513_v62 = vmul.f32 0.01, %v1232_v61  ;;  %v6356_v63 = vpop.f32.mrb[34].mxu1  ;;  %6442 = vmatmul.mubr.bf16.gmra.mrb[104].mxu0 %v1646_v57 }
 0x1fc   :  { %v1590_v0 = vsel %vm1440_vm14, %v6355_v59, %v1515_v60  ;;  %vm1441_vm0 = vcmp.gt.f32.partialorder %v6356_v63, 0.0  ;;  %v1516_v1 = vmul.f32 0.01, %v6356_v63  ;;  %v1235_v2 = vpop.f32.mrb[35].mxu1 }
 0x1fd   :  { %v1588_v3 = vsel %vm1438_vm15, %v1232_v61, %v1513_v62  ;;  %vm1439_vm1 = vcmp.gt.f32.partialorder %v1235_v2, 0.0  ;;  %v1514_v4 = vmul.f32 0.01, %v1235_v2 }
 0x1fe   :  { %v1591_v5 = vsel %vm1441_vm0, %v6356_v63, %v1516_v1 }
 0x1ff   :  { %v1589_v6 = vsel %vm1439_vm1, %v1235_v2, %v1514_v4  ;;  %v1648_v7 = vpack.c.bf16 %v1591_v5, %v1590_v0 }
 0x200   :  { %v1647_v8 = vpack.c.bf16 %v1589_v6, %v1588_v3 }
 0x201   :  { %v6359_v9 = vpop.f32.mrb[36].mxu1 }
 0x202   :  { %vm1444_vm2 = vcmp.gt.f32.partialorder %v6359_v9, 0.0  ;;  %v1519_v10 = vmul.f32 0.01, %v6359_v9  ;;  %v1248_v11 = vpop.f32.mrb[37].mxu1  ;;  %6445 = vmatprep.mubr.bf16.mxu0 %v1647_v8 }
 0x203   :  { %vm1442_vm3 = vcmp.gt.f32.partialorder %v1248_v11, 0.0  ;;  %v1517_v12 = vmul.f32 0.01, %v1248_v11  ;;  %v6360_v13 = vpop.f32.mrb[38].mxu1  ;;  %6446 = vmatmul.mubr.bf16.gmra.mrb[108].mxu0 %v1648_v7 }
 0x204   :  { %v1594_v14 = vsel %vm1444_vm2, %v6359_v9, %v1519_v10  ;;  %vm1445_vm4 = vcmp.gt.f32.partialorder %v6360_v13, 0.0  ;;  %v1520_v15 = vmul.f32 0.01, %v6360_v13  ;;  %v1251_v16 = vpop.f32.mrb[39].mxu1 }
 0x205   :  { %v1592_v17 = vsel %vm1442_vm3, %v1248_v11, %v1517_v12  ;;  %vm1443_vm5 = vcmp.gt.f32.partialorder %v1251_v16, 0.0  ;;  %v1518_v18 = vmul.f32 0.01, %v1251_v16 }
 0x206   :  { %v1595_v19 = vsel %vm1445_vm4, %v6360_v13, %v1520_v15 }
 0x207   :  { %v1593_v20 = vsel %vm1443_vm5, %v1251_v16, %v1518_v18  ;;  %v1650_v21 = vpack.c.bf16 %v1595_v19, %v1594_v14 }
 0x208   :  { %v1649_v22 = vpack.c.bf16 %v1593_v20, %v1592_v17 }
 0x209   :  { %v6363_v23 = vpop.f32.mrb[40].mxu1 }
 0x20a   :  { %vm1448_vm6 = vcmp.gt.f32.partialorder %v6363_v23, 0.0  ;;  %v1523_v24 = vmul.f32 0.01, %v6363_v23  ;;  %v1264_v25 = vpop.f32.mrb[41].mxu1  ;;  %6449 = vmatprep.mubr.bf16.mxu0 %v1649_v22 }
 0x20b   :  { %vm1446_vm7 = vcmp.gt.f32.partialorder %v1264_v25, 0.0  ;;  %v1521_v26 = vmul.f32 0.01, %v1264_v25  ;;  %v6364_v27 = vpop.f32.mrb[42].mxu1  ;;  %6450 = vmatmul.mubr.bf16.gmra.mrb[112].mxu0 %v1650_v21 }
 0x20c   :  { %v1598_v28 = vsel %vm1448_vm6, %v6363_v23, %v1523_v24  ;;  %vm1449_vm8 = vcmp.gt.f32.partialorder %v6364_v27, 0.0  ;;  %v1524_v29 = vmul.f32 0.01, %v6364_v27  ;;  %v1267_v30 = vpop.f32.mrb[43].mxu1 }
 0x20d   :  { %v1596_v31 = vsel %vm1446_vm7, %v1264_v25, %v1521_v26  ;;  %vm1447_vm9 = vcmp.gt.f32.partialorder %v1267_v30, 0.0  ;;  %v1522_v32 = vmul.f32 0.01, %v1267_v30 }
 0x20e   :  { %v1599_v33 = vsel %vm1449_vm8, %v6364_v27, %v1524_v29 }
 0x20f   :  { %v1597_v34 = vsel %vm1447_vm9, %v1267_v30, %v1522_v32  ;;  %v1652_v35 = vpack.c.bf16 %v1599_v33, %v1598_v28 }
 0x210   :  { %v1651_v36 = vpack.c.bf16 %v1597_v34, %v1596_v31 }
 0x211   :  { %v6367_v37 = vpop.f32.mrb[44].mxu1 }
 0x212   :  { %vm1452_vm10 = vcmp.gt.f32.partialorder %v6367_v37, 0.0  ;;  %v1527_v38 = vmul.f32 0.01, %v6367_v37  ;;  %v1280_v39 = vpop.f32.mrb[45].mxu1  ;;  %6453 = vmatprep.mubr.bf16.mxu0 %v1651_v36 }
 0x213   :  { %vm1450_vm11 = vcmp.gt.f32.partialorder %v1280_v39, 0.0  ;;  %v1525_v40 = vmul.f32 0.01, %v1280_v39  ;;  %v6368_v41 = vpop.f32.mrb[46].mxu1  ;;  %6454 = vmatmul.mubr.bf16.gmra.mrb[116].mxu0 %v1652_v35 }
 0x214   :  { %v1602_v42 = vsel %vm1452_vm10, %v6367_v37, %v1527_v38  ;;  %vm1453_vm12 = vcmp.gt.f32.partialorder %v6368_v41, 0.0  ;;  %v1528_v43 = vmul.f32 0.01, %v6368_v41  ;;  %v1283_v44 = vpop.f32.mrb[47].mxu1 }
 0x215   :  { %v1600_v45 = vsel %vm1450_vm11, %v1280_v39, %v1525_v40  ;;  %vm1451_vm13 = vcmp.gt.f32.partialorder %v1283_v44, 0.0  ;;  %v1526_v46 = vmul.f32 0.01, %v1283_v44 }
 0x216   :  { %v1603_v47 = vsel %vm1453_vm12, %v6368_v41, %v1528_v43 }
 0x217   :  { %v1601_v48 = vsel %vm1451_vm13, %v1283_v44, %v1526_v46  ;;  %v1654_v49 = vpack.c.bf16 %v1603_v47, %v1602_v42 }
 0x218   :  { %v1653_v50 = vpack.c.bf16 %v1601_v48, %v1600_v45 }
 0x219   :  { %v6371_v51 = vpop.f32.mrb[48].mxu1 }
 0x21a   :  { %vm1456_vm14 = vcmp.gt.f32.partialorder %v6371_v51, 0.0  ;;  %v1531_v52 = vmul.f32 0.01, %v6371_v51  ;;  %v1296_v53 = vpop.f32.mrb[49].mxu1  ;;  %6457 = vmatprep.mubr.bf16.mxu0 %v1653_v50 }
 0x21b   :  { %vm1454_vm15 = vcmp.gt.f32.partialorder %v1296_v53, 0.0  ;;  %v1529_v54 = vmul.f32 0.01, %v1296_v53  ;;  %v6372_v55 = vpop.f32.mrb[50].mxu1  ;;  %6458 = vmatmul.mubr.bf16.gmra.mrb[120].mxu0 %v1654_v49 }
 0x21c   :  { %v1606_v56 = vsel %vm1456_vm14, %v6371_v51, %v1531_v52  ;;  %vm1457_vm0 = vcmp.gt.f32.partialorder %v6372_v55, 0.0  ;;  %v1532_v57 = vmul.f32 0.01, %v6372_v55  ;;  %v1299_v58 = vpop.f32.mrb[51].mxu1 }
 0x21d   :  { %v1604_v59 = vsel %vm1454_vm15, %v1296_v53, %v1529_v54  ;;  %vm1455_vm1 = vcmp.gt.f32.partialorder %v1299_v58, 0.0  ;;  %v1530_v60 = vmul.f32 0.01, %v1299_v58 }
 0x21e   :  { %v1607_v61 = vsel %vm1457_vm0, %v6372_v55, %v1532_v57 }
 0x21f   :  { %v1605_v62 = vsel %vm1455_vm1, %v1299_v58, %v1530_v60  ;;  %v1656_v63 = vpack.c.bf16 %v1607_v61, %v1606_v56 }
 0x220   :  { %v1655_v0 = vpack.c.bf16 %v1605_v62, %v1604_v59  ;;  %v6846_v62 = vld [vmem:[%s9562_s3 + $0xc0] sm:$0xff]  }
 0x221   :  { %v6375_v1 = vpop.f32.mrb[52].mxu1  ;;  %6581 = vmatprep.subr.bf16.mxu0 %v6846_v62 }
 0x222   :  { %vm1460_vm2 = vcmp.gt.f32.partialorder %v6375_v1, 0.0  ;;  %v1535_v2 = vmul.f32 0.01, %v6375_v1  ;;  %v1312_v3 = vpop.f32.mrb[53].mxu1  ;;  %6461 = vmatprep.mubr.bf16.mxu0 %v1655_v0  ;;  %6582 = vmatpush3.bf16.msra.mxu0 %v6846_v62 }
 0x223   :  { %vm1458_vm3 = vcmp.gt.f32.partialorder %v1312_v3, 0.0  ;;  %v1533_v4 = vmul.f32 0.01, %v1312_v3  ;;  %v6376_v5 = vpop.f32.mrb[54].mxu1  ;;  %6462 = vmatmul.mubr.bf16.gmra.mrb[124].mxu0 %v1656_v63 }
 0x224   :  { %v1610_v6 = vsel %vm1460_vm2, %v6375_v1, %v1535_v2  ;;  %vm1461_vm4 = vcmp.gt.f32.partialorder %v6376_v5, 0.0  ;;  %v1536_v7 = vmul.f32 0.01, %v6376_v5  ;;  %v1315_v8 = vpop.f32.mrb[55].mxu1 }
 0x225   :  { %v1608_v9 = vsel %vm1458_vm3, %v1312_v3, %v1533_v4  ;;  %vm1459_vm5 = vcmp.gt.f32.partialorder %v1315_v8, 0.0  ;;  %v1534_v10 = vmul.f32 0.01, %v1315_v8 }
 0x226   :  { %v1611_v11 = vsel %vm1461_vm4, %v6376_v5, %v1536_v7 }
 0x227   :  { %v1609_v12 = vsel %vm1459_vm5, %v1315_v8, %v1534_v10  ;;  %v1658_v13 = vpack.c.bf16 %v1611_v11, %v1610_v6 }
 0x228   :  { %v1657_v14 = vpack.c.bf16 %v1609_v12, %v1608_v9 }
 0x229   :  { %v6379_v15 = vpop.f32.mrb[56].mxu1 }
 0x22a   :  { %vm1464_vm6 = vcmp.gt.f32.partialorder %v6379_v15, 0.0  ;;  %v1539_v16 = vmul.f32 0.01, %v6379_v15  ;;  %v1328_v17 = vpop.f32.mrb[57].mxu1  ;;  %6465 = vmatprep.mubr.bf16.mxu0 %v1657_v14 }
 0x22b   :  { %vm1462_vm7 = vcmp.gt.f32.partialorder %v1328_v17, 0.0  ;;  %v1537_v18 = vmul.f32 0.01, %v1328_v17  ;;  %v6380_v19 = vpop.f32.mrb[58].mxu1  ;;  %6466 = vmatmul.mubr.bf16.gmra.mrb[128].mxu0 %v1658_v13 }
 0x22c   :  { %v1614_v20 = vsel %vm1464_vm6, %v6379_v15, %v1539_v16  ;;  %vm1465_vm8 = vcmp.gt.f32.partialorder %v6380_v19, 0.0  ;;  %v1540_v21 = vmul.f32 0.01, %v6380_v19  ;;  %v1331_v22 = vpop.f32.mrb[59].mxu1 }
 0x22d   :  { %v1612_v23 = vsel %vm1462_vm7, %v1328_v17, %v1537_v18  ;;  %vm1463_vm9 = vcmp.gt.f32.partialorder %v1331_v22, 0.0  ;;  %v1538_v24 = vmul.f32 0.01, %v1331_v22 }
 0x22e   :  { %v1615_v25 = vsel %vm1465_vm8, %v6380_v19, %v1540_v21  ;;  %v6848_v21 = vld [vmem:[%s9562_s3 + $0xd0] sm:$0xff]  }
 0x22f   :  { %v1613_v26 = vsel %vm1463_vm9, %v1331_v22, %v1538_v24  ;;  %v1660_v27 = vpack.c.bf16 %v1615_v25, %v1614_v20  ;;  %v6847_v20 = vld [vmem:[%s9562_s3 + $0xc8] sm:$0xff]   ;;  %v6849_v22 = vld [vmem:[%s9562_s3 + $0xd8] sm:$0xff]  }
 0x230   :  { %v1659_v28 = vpack.c.bf16 %v1613_v26, %v1612_v23  ;;  %6583 = vmatprep.subr.bf16.mxu0 %v6847_v20  ;;  %v6850_v23 = vld [vmem:[%s9562_s3 + $0xe0] sm:$0xff]  }
 0x231   :  { %v6383_v29 = vpop.f32.mrb[60].mxu1  ;;  %6584 = vmatpush3.bf16.msra.mxu0 %v6847_v20 }
 0x232   :  { %vm1468_vm10 = vcmp.gt.f32.partialorder %v6383_v29, 0.0  ;;  %v1543_v30 = vmul.f32 0.01, %v6383_v29  ;;  %v1344_v31 = vpop.f32.mrb[61].mxu1  ;;  %6469 = vmatprep.mubr.bf16.mxu0 %v1659_v28  ;;  %6585 = vmatprep.subr.bf16.mxu0 %v6848_v21 }
 0x233   :  { %vm1466_vm11 = vcmp.gt.f32.partialorder %v1344_v31, 0.0  ;;  %v1541_v32 = vmul.f32 0.01, %v1344_v31  ;;  %v6384_v33 = vpop.f32.mrb[62].mxu1  ;;  %6470 = vmatmul.mubr.bf16.gmra.mrb[132].mxu0 %v1660_v27 }
 0x234   :  { %v1618_v34 = vsel %vm1468_vm10, %v6383_v29, %v1543_v30  ;;  %vm1469_vm12 = vcmp.gt.f32.partialorder %v6384_v33, 0.0  ;;  %v1544_v35 = vmul.f32 0.01, %v6384_v33  ;;  %v1347_v36 = vpop.f32.mrb[63].mxu1 }
 0x235   :  { %v1616_v37 = vsel %vm1466_vm11, %v1344_v31, %v1541_v32  ;;  %vm1467_vm13 = vcmp.gt.f32.partialorder %v1347_v36, 0.0  ;;  %v1542_v38 = vmul.f32 0.01, %v1347_v36  ;;  %6586 = vmatpush3.bf16.msra.mxu0 %v6848_v21 }
 0x236   :  { %v1619_v39 = vsel %vm1469_vm12, %v6384_v33, %v1544_v35  ;;  %6587 = vmatprep.subr.bf16.mxu0 %v6849_v22 }
 0x237   :  { %v1617_v40 = vsel %vm1467_vm13, %v1347_v36, %v1542_v38  ;;  %v1662_v41 = vpack.c.bf16 %v1619_v39, %v1618_v34 }
 0x238   :  { %v1661_v42 = vpack.c.bf16 %v1617_v40, %v1616_v37 }
 0x239   :  { %v6387_v43 = vpop.f32.mrb[64].mxu1  ;;  %6588 = vmatpush3.bf16.msra.mxu0 %v6849_v22 }
 0x23a   :  { %vm1472_vm14 = vcmp.gt.f32.partialorder %v6387_v43, 0.0  ;;  %v1547_v44 = vmul.f32 0.01, %v6387_v43  ;;  %v1360_v45 = vpop.f32.mrb[65].mxu1  ;;  %6473 = vmatprep.mubr.bf16.mxu0 %v1661_v42  ;;  %6589 = vmatprep.subr.bf16.mxu0 %v6850_v23 }
 0x23b   :  { %vm1470_vm15 = vcmp.gt.f32.partialorder %v1360_v45, 0.0  ;;  %v1545_v46 = vmul.f32 0.01, %v1360_v45  ;;  %v6388_v47 = vpop.f32.mrb[66].mxu1  ;;  %6474 = vmatmul.mubr.bf16.gmra.mrb[136].mxu0 %v1662_v41 }
 0x23c   :  { %v1622_v48 = vsel %vm1472_vm14, %v6387_v43, %v1547_v44  ;;  %vm1473_vm0 = vcmp.gt.f32.partialorder %v6388_v47, 0.0  ;;  %v1548_v49 = vmul.f32 0.01, %v6388_v47  ;;  %v1363_v50 = vpop.f32.mrb[67].mxu1 }
 0x23d   :  { %v1620_v51 = vsel %vm1470_vm15, %v1360_v45, %v1545_v46  ;;  %vm1471_vm1 = vcmp.gt.f32.partialorder %v1363_v50, 0.0  ;;  %v1546_v52 = vmul.f32 0.01, %v1363_v50  ;;  %6590 = vmatpush3.bf16.msra.mxu0 %v6850_v23 }
 0x23e   :  { %v1623_v53 = vsel %vm1473_vm0, %v6388_v47, %v1548_v49 }
 0x23f   :  { %v1621_v54 = vsel %vm1471_vm1, %v1363_v50, %v1546_v52  ;;  %v1664_v55 = vpack.c.bf16 %v1623_v53, %v1622_v48  ;;  %v6851_v48 = vld [vmem:[%s9562_s3 + $0xe8] sm:$0xff]  }
 0x240   :  { %v1663_v56 = vpack.c.bf16 %v1621_v54, %v1620_v51  ;;  %6591 = vmatprep.subr.bf16.mxu0 %v6851_v48 }
 0x241   :  { %v6391_v57 = vpop.f32.mrb[68].mxu1  ;;  %6592 = vmatpush3.bf16.msra.mxu0 %v6851_v48 }
 0x242   :  { %vm1476_vm2 = vcmp.gt.f32.partialorder %v6391_v57, 0.0  ;;  %v1551_v58 = vmul.f32 0.01, %v6391_v57  ;;  %v1376_v59 = vpop.f32.mrb[69].mxu1  ;;  %6477 = vmatprep.mubr.bf16.mxu0 %v1663_v56 }
 0x243   :  { %vm1474_vm3 = vcmp.gt.f32.partialorder %v1376_v59, 0.0  ;;  %v1549_v60 = vmul.f32 0.01, %v1376_v59  ;;  %v6392_v61 = vpop.f32.mrb[70].mxu1  ;;  %6478 = vmatmul.mubr.bf16.gmra.mrb[140].mxu0 %v1664_v55 }
 0x244   :  { %v1626_v63 = vsel %vm1476_vm2, %v6391_v57, %v1551_v58  ;;  %vm1477_vm4 = vcmp.gt.f32.partialorder %v6392_v61, 0.0  ;;  %v1552_v0 = vmul.f32 0.01, %v6392_v61  ;;  %v1379_v1 = vpop.f32.mrb[71].mxu1 }
 0x245   :  { %v1624_v2 = vsel %vm1474_vm3, %v1376_v59, %v1549_v60  ;;  %vm1475_vm5 = vcmp.gt.f32.partialorder %v1379_v1, 0.0  ;;  %v1550_v3 = vmul.f32 0.01, %v1379_v1 }
 0x246   :  { %v1627_v4 = vsel %vm1477_vm4, %v6392_v61, %v1552_v0 }
 0x247   :  { %v1625_v5 = vsel %vm1475_vm5, %v1379_v1, %v1550_v3  ;;  %v1666_v6 = vpack.c.bf16 %v1627_v4, %v1626_v63 }
 0x248   :  { %v1665_v7 = vpack.c.bf16 %v1625_v5, %v1624_v2 }
 0x249   :  { %v6395_v8 = vpop.f32.mrb[72].mxu1 }
 0x24a   :  { %vm1480_vm6 = vcmp.gt.f32.partialorder %v6395_v8, 0.0  ;;  %v1555_v9 = vmul.f32 0.01, %v6395_v8  ;;  %v1392_v10 = vpop.f32.mrb[73].mxu1  ;;  %6481 = vmatprep.mubr.bf16.mxu0 %v1665_v7 }
 0x24b   :  { %vm1478_vm7 = vcmp.gt.f32.partialorder %v1392_v10, 0.0  ;;  %v1553_v11 = vmul.f32 0.01, %v1392_v10  ;;  %v6396_v12 = vpop.f32.mrb[74].mxu1  ;;  %6482 = vmatmul.mubr.bf16.gmra.mrb[144].mxu0 %v1666_v6 }
 0x24c   :  { %v1630_v13 = vsel %vm1480_vm6, %v6395_v8, %v1555_v9  ;;  %v1395_v14 = vpop.f32.mrb[75].mxu1  ;;  %v6852_v8 = vld [vmem:[%s9562_s3 + $0xf0] sm:$0xff]   ;;  %v6853_v9 = vld [vmem:[%s9562_s3 + $0xf8] sm:$0xff]  }
 0x24d   :  { %v1628_v15 = vsel %vm1478_vm7, %v1392_v10, %v1553_v11  ;;  %vm1479_vm8 = vcmp.gt.f32.partialorder %v1395_v14, 0.0  ;;  %v1554_v16 = vmul.f32 0.01, %v1395_v14  ;;  %v1668_v17 = vpack.c.bf16 %v1630_v13, %v1630_v13  ;;  %6593 = vmatprep.subr.bf16.mxu0 %v6852_v8 }
 0x24e   :  { %6594 = vmatpush3.bf16.msra.mxu0 %v6852_v8 }
 0x24f   :  { %v1629_v18 = vsel %vm1479_vm8, %v1395_v14, %v1554_v16  ;;  %6595 = vmatprep.subr.bf16.mxu0 %v6853_v9 }
 0x250   :  { %v1667_v19 = vpack.c.bf16 %v1629_v18, %v1628_v15 }
 0x252   :  { %6485 = vmatprep.mubr.bf16.mxu0 %v1667_v19  ;;  %6596 = vmatpush3.bf16.msra.mxu0 %v6853_v9 }
 0x253   :  { %6486 = vmatmul.mubr.bf16.gmra.mrb[148].mxu0 %v1668_v17 }
 0x296   :  { %v6415_v24 = vpop.f32.mrb[76].mxu0 }
 0x297   :  { %v2147_v25 = vmul.f32 0.01, %v6415_v24  ;;  %v1768_v26 = vpop.f32.mrb[77].mxu0  ;;  %vm2072_vm9 = vcmp.gt.f32.partialorder %v6415_v24, 0.0 }
 0x298   :  { %v2145_v27 = vmul.f32 0.01, %v1768_v26  ;;  %v6416_v28 = vpop.f32.mrb[78].mxu0  ;;  %vm2070_vm10 = vcmp.gt.f32.partialorder %v1768_v26, 0.0 }
 0x299   :  { %vm2073_vm11 = vcmp.gt.f32.partialorder %v6416_v28, 0.0  ;;  %v2148_v29 = vmul.f32 0.01, %v6416_v28  ;;  %v1771_v30 = vpop.f32.mrb[79].mxu0  ;;  %v2222_v32 = vsel %vm2072_vm9, %v6415_v24, %v2147_v25 }
 0x29a   :  { %vm2071_vm12 = vcmp.gt.f32.partialorder %v1771_v30, 0.0  ;;  %v2146_v31 = vmul.f32 0.01, %v1771_v30  ;;  %v2220_v34 = vsel %vm2070_vm10, %v1768_v26, %v2145_v27 }
 0x29b   :  { %v2223_v33 = vsel %vm2073_vm11, %v6416_v28, %v2148_v29 }
 0x29c   :  { %v2296_v35 = vpack.c.bf16 %v2223_v33, %v2222_v32  ;;  %v2221_v36 = vsel %vm2071_vm12, %v1771_v30, %v2146_v31 }
 0x29d   :  { %v2295_v37 = vpack.c.bf16 %v2221_v36, %v2220_v34 }
 0x29e   :  { %v6419_v38 = vpop.f32.mrb[80].mxu0 }
 0x29f   :  { %6505 = vmatprep.mubr.bf16.mxu1 %v2295_v37  ;;  %vm2076_vm13 = vcmp.gt.f32.partialorder %v6419_v38, 0.0  ;;  %v2151_v39 = vmul.f32 0.01, %v6419_v38  ;;  %v1784_v40 = vpop.f32.mrb[81].mxu0 }
 0x2a0   :  { %6506 = vmatmul.mubr.bf16.vlgmr.msra.gmra.mrb[76].mxu1 %v2296_v35  ;;  %vm2074_vm14 = vcmp.gt.f32.partialorder %v1784_v40, 0.0  ;;  %v2149_v41 = vmul.f32 0.01, %v1784_v40  ;;  %v6420_v42 = vpop.f32.mrb[82].mxu0 }
 0x2a1   :  { %v2226_v43 = vsel %vm2076_vm13, %v6419_v38, %v2151_v39  ;;  %vm2077_vm15 = vcmp.gt.f32.partialorder %v6420_v42, 0.0  ;;  %v2152_v44 = vmul.f32 0.01, %v6420_v42  ;;  %v1787_v45 = vpop.f32.mrb[83].mxu0 }
 0x2a2   :  { %v2224_v46 = vsel %vm2074_vm14, %v1784_v40, %v2149_v41  ;;  %vm2075_vm0 = vcmp.gt.f32.partialorder %v1787_v45, 0.0  ;;  %v2150_v47 = vmul.f32 0.01, %v1787_v45 }
 0x2a3   :  { %v2227_v49 = vsel %vm2077_vm15, %v6420_v42, %v2152_v44 }
 0x2a4   :  { %v2225_v50 = vsel %vm2075_vm0, %v1787_v45, %v2150_v47  ;;  %v2298_v51 = vpack.c.bf16 %v2227_v49, %v2226_v43 }
 0x2a5   :  { %v2297_v52 = vpack.c.bf16 %v2225_v50, %v2224_v46 }
 0x2a6   :  { %v6423_v53 = vpop.f32.mrb[84].mxu0 }
 0x2a7   :  { %6509 = vmatprep.mubr.bf16.mxu1 %v2297_v52  ;;  %vm2080_vm1 = vcmp.gt.f32.partialorder %v6423_v53, 0.0  ;;  %v2155_v54 = vmul.f32 0.01, %v6423_v53  ;;  %v1800_v55 = vpop.f32.mrb[85].mxu0 }
 0x2a8   :  { %6510 = vmatmul.mubr.bf16.gmra.mrb[80].mxu1 %v2298_v51  ;;  %vm2078_vm2 = vcmp.gt.f32.partialorder %v1800_v55, 0.0  ;;  %v2153_v56 = vmul.f32 0.01, %v1800_v55  ;;  %v6424_v57 = vpop.f32.mrb[86].mxu0 }
 0x2a9   :  { %v2230_v58 = vsel %vm2080_vm1, %v6423_v53, %v2155_v54  ;;  %vm2081_vm3 = vcmp.gt.f32.partialorder %v6424_v57, 0.0  ;;  %v2156_v59 = vmul.f32 0.01, %v6424_v57  ;;  %v1803_v60 = vpop.f32.mrb[87].mxu0 }
 0x2aa   :  { %v2228_v61 = vsel %vm2078_vm2, %v1800_v55, %v2153_v56  ;;  %vm2079_vm4 = vcmp.gt.f32.partialorder %v1803_v60, 0.0  ;;  %v2154_v62 = vmul.f32 0.01, %v1803_v60 }
 0x2ab   :  { %v2231_v63 = vsel %vm2081_vm3, %v6424_v57, %v2156_v59 }
 0x2ac   :  { %v2229_v0 = vsel %vm2079_vm4, %v1803_v60, %v2154_v62  ;;  %v2300_v1 = vpack.c.bf16 %v2231_v63, %v2230_v58 }
 0x2ad   :  { %v2299_v2 = vpack.c.bf16 %v2229_v0, %v2228_v61 }
 0x2ae   :  { %v6427_v3 = vpop.f32.mrb[88].mxu0 }
 0x2af   :  { %vm2084_vm5 = vcmp.gt.f32.partialorder %v6427_v3, 0.0  ;;  %v2159_v4 = vmul.f32 0.01, %v6427_v3  ;;  %v1816_v5 = vpop.f32.mrb[89].mxu0  ;;  %6513 = vmatprep.mubr.bf16.mxu1 %v2299_v2 }
 0x2b0   :  { %vm2082_vm6 = vcmp.gt.f32.partialorder %v1816_v5, 0.0  ;;  %v2157_v6 = vmul.f32 0.01, %v1816_v5  ;;  %v6428_v7 = vpop.f32.mrb[90].mxu0  ;;  %6514 = vmatmul.mubr.bf16.gmra.mrb[84].mxu1 %v2300_v1 }
 0x2b1   :  { %v2234_v10 = vsel %vm2084_vm5, %v6427_v3, %v2159_v4  ;;  %vm2085_vm7 = vcmp.gt.f32.partialorder %v6428_v7, 0.0  ;;  %v2160_v11 = vmul.f32 0.01, %v6428_v7  ;;  %v1819_v12 = vpop.f32.mrb[91].mxu0 }
 0x2b2   :  { %v2232_v13 = vsel %vm2082_vm6, %v1816_v5, %v2157_v6  ;;  %vm2083_vm8 = vcmp.gt.f32.partialorder %v1819_v12, 0.0  ;;  %v2158_v14 = vmul.f32 0.01, %v1819_v12 }
 0x2b3   :  { %v2235_v15 = vsel %vm2085_vm7, %v6428_v7, %v2160_v11 }
 0x2b4   :  { %v2233_v16 = vsel %vm2083_vm8, %v1819_v12, %v2158_v14  ;;  %v2302_v17 = vpack.c.bf16 %v2235_v15, %v2234_v10 }
 0x2b5   :  { %v2301_v18 = vpack.c.bf16 %v2233_v16, %v2232_v13 }
 0x2b6   :  { %v6431_v19 = vpop.f32.mrb[92].mxu0 }
 0x2b7   :  { %vm2088_vm9 = vcmp.gt.f32.partialorder %v6431_v19, 0.0  ;;  %v2163_v20 = vmul.f32 0.01, %v6431_v19  ;;  %v1832_v21 = vpop.f32.mrb[93].mxu0  ;;  %6517 = vmatprep.mubr.bf16.mxu1 %v2301_v18 }
 0x2b8   :  { %vm2086_vm10 = vcmp.gt.f32.partialorder %v1832_v21, 0.0  ;;  %v2161_v22 = vmul.f32 0.01, %v1832_v21  ;;  %v6432_v23 = vpop.f32.mrb[94].mxu0  ;;  %6518 = vmatmul.mubr.bf16.gmra.mrb[88].mxu1 %v2302_v17 }
 0x2b9   :  { %v2238_v24 = vsel %vm2088_vm9, %v6431_v19, %v2163_v20  ;;  %vm2089_vm11 = vcmp.gt.f32.partialorder %v6432_v23, 0.0  ;;  %v2164_v25 = vmul.f32 0.01, %v6432_v23  ;;  %v1835_v26 = vpop.f32.mrb[95].mxu0 }
 0x2ba   :  { %v2236_v27 = vsel %vm2086_vm10, %v1832_v21, %v2161_v22  ;;  %vm2087_vm12 = vcmp.gt.f32.partialorder %v1835_v26, 0.0  ;;  %v2162_v28 = vmul.f32 0.01, %v1835_v26 }
 0x2bb   :  { %v2239_v29 = vsel %vm2089_vm11, %v6432_v23, %v2164_v25 }
 0x2bc   :  { %v2237_v30 = vsel %vm2087_vm12, %v1835_v26, %v2162_v28  ;;  %v2304_v31 = vpack.c.bf16 %v2239_v29, %v2238_v24 }
 0x2bd   :  { %v2303_v32 = vpack.c.bf16 %v2237_v30, %v2236_v27 }
 0x2be   :  { %v6435_v33 = vpop.f32.mrb[96].mxu0 }
 0x2bf   :  { %vm2092_vm13 = vcmp.gt.f32.partialorder %v6435_v33, 0.0  ;;  %v2167_v34 = vmul.f32 0.01, %v6435_v33  ;;  %v1848_v35 = vpop.f32.mrb[97].mxu0  ;;  %6521 = vmatprep.mubr.bf16.mxu1 %v2303_v32 }
 0x2c0   :  { %vm2090_vm14 = vcmp.gt.f32.partialorder %v1848_v35, 0.0  ;;  %v2165_v36 = vmul.f32 0.01, %v1848_v35  ;;  %v6436_v37 = vpop.f32.mrb[98].mxu0  ;;  %6522 = vmatmul.mubr.bf16.gmra.mrb[92].mxu1 %v2304_v31 }
 0x2c1   :  { %v2242_v38 = vsel %vm2092_vm13, %v6435_v33, %v2167_v34  ;;  %vm2093_vm15 = vcmp.gt.f32.partialorder %v6436_v37, 0.0  ;;  %v2168_v39 = vmul.f32 0.01, %v6436_v37  ;;  %v1851_v40 = vpop.f32.mrb[99].mxu0 }
 0x2c2   :  { %v2240_v41 = vsel %vm2090_vm14, %v1848_v35, %v2165_v36  ;;  %vm2091_vm0 = vcmp.gt.f32.partialorder %v1851_v40, 0.0  ;;  %v2166_v42 = vmul.f32 0.01, %v1851_v40 }
 0x2c3   :  { %v2243_v43 = vsel %vm2093_vm15, %v6436_v37, %v2168_v39 }
 0x2c4   :  { %v2241_v44 = vsel %vm2091_vm0, %v1851_v40, %v2166_v42  ;;  %v2306_v45 = vpack.c.bf16 %v2243_v43, %v2242_v38 }
 0x2c5   :  { %v2305_v46 = vpack.c.bf16 %v2241_v44, %v2240_v41 }
 0x2c6   :  { %v6439_v47 = vpop.f32.mrb[100].mxu0 }
 0x2c7   :  { %vm2096_vm1 = vcmp.gt.f32.partialorder %v6439_v47, 0.0  ;;  %v2171_v48 = vmul.f32 0.01, %v6439_v47  ;;  %v1864_v49 = vpop.f32.mrb[101].mxu0  ;;  %6525 = vmatprep.mubr.bf16.mxu1 %v2305_v46 }
 0x2c8   :  { %vm2094_vm2 = vcmp.gt.f32.partialorder %v1864_v49, 0.0  ;;  %v2169_v50 = vmul.f32 0.01, %v1864_v49  ;;  %v6440_v51 = vpop.f32.mrb[102].mxu0  ;;  %6526 = vmatmul.mubr.bf16.gmra.mrb[96].mxu1 %v2306_v45 }
 0x2c9   :  { %v2246_v52 = vsel %vm2096_vm1, %v6439_v47, %v2171_v48  ;;  %vm2097_vm3 = vcmp.gt.f32.partialorder %v6440_v51, 0.0  ;;  %v2172_v53 = vmul.f32 0.01, %v6440_v51  ;;  %v1867_v54 = vpop.f32.mrb[103].mxu0 }
 0x2ca   :  { %v2244_v55 = vsel %vm2094_vm2, %v1864_v49, %v2169_v50  ;;  %vm2095_vm4 = vcmp.gt.f32.partialorder %v1867_v54, 0.0  ;;  %v2170_v56 = vmul.f32 0.01, %v1867_v54 }
 0x2cb   :  { %v2247_v57 = vsel %vm2097_vm3, %v6440_v51, %v2172_v53 }
 0x2cc   :  { %v2245_v58 = vsel %vm2095_vm4, %v1867_v54, %v2170_v56  ;;  %v2308_v59 = vpack.c.bf16 %v2247_v57, %v2246_v52 }
 0x2cd   :  { %v2307_v60 = vpack.c.bf16 %v2245_v58, %v2244_v55 }
 0x2ce   :  { %v6443_v61 = vpop.f32.mrb[104].mxu0 }
 0x2cf   :  { %vm2100_vm5 = vcmp.gt.f32.partialorder %v6443_v61, 0.0  ;;  %v2175_v62 = vmul.f32 0.01, %v6443_v61  ;;  %v1880_v63 = vpop.f32.mrb[105].mxu0  ;;  %6529 = vmatprep.mubr.bf16.mxu1 %v2307_v60 }
 0x2d0   :  { %vm2098_vm6 = vcmp.gt.f32.partialorder %v1880_v63, 0.0  ;;  %v2173_v0 = vmul.f32 0.01, %v1880_v63  ;;  %v6444_v1 = vpop.f32.mrb[106].mxu0  ;;  %6530 = vmatmul.mubr.bf16.gmra.mrb[100].mxu1 %v2308_v59 }
 0x2d1   :  { %v2250_v2 = vsel %vm2100_vm5, %v6443_v61, %v2175_v62  ;;  %vm2101_vm7 = vcmp.gt.f32.partialorder %v6444_v1, 0.0  ;;  %v2176_v3 = vmul.f32 0.01, %v6444_v1  ;;  %v1883_v4 = vpop.f32.mrb[107].mxu0 }
 0x2d2   :  { %v2248_v5 = vsel %vm2098_vm6, %v1880_v63, %v2173_v0  ;;  %vm2099_vm8 = vcmp.gt.f32.partialorder %v1883_v4, 0.0  ;;  %v2174_v6 = vmul.f32 0.01, %v1883_v4 }
 0x2d3   :  { %v2251_v7 = vsel %vm2101_vm7, %v6444_v1, %v2176_v3 }
 0x2d4   :  { %v2249_v8 = vsel %vm2099_vm8, %v1883_v4, %v2174_v6  ;;  %v2310_v9 = vpack.c.bf16 %v2251_v7, %v2250_v2 }
 0x2d5   :  { %v2309_v10 = vpack.c.bf16 %v2249_v8, %v2248_v5 }
 0x2d6   :  { %v6447_v11 = vpop.f32.mrb[108].mxu0 }
 0x2d7   :  { %vm2104_vm9 = vcmp.gt.f32.partialorder %v6447_v11, 0.0  ;;  %v2179_v12 = vmul.f32 0.01, %v6447_v11  ;;  %v1896_v13 = vpop.f32.mrb[109].mxu0  ;;  %6533 = vmatprep.mubr.bf16.mxu1 %v2309_v10 }
 0x2d8   :  { %vm2102_vm10 = vcmp.gt.f32.partialorder %v1896_v13, 0.0  ;;  %v2177_v14 = vmul.f32 0.01, %v1896_v13  ;;  %v6448_v15 = vpop.f32.mrb[110].mxu0  ;;  %6534 = vmatmul.mubr.bf16.gmra.mrb[104].mxu1 %v2310_v9 }
 0x2d9   :  { %v2254_v16 = vsel %vm2104_vm9, %v6447_v11, %v2179_v12  ;;  %vm2105_vm11 = vcmp.gt.f32.partialorder %v6448_v15, 0.0  ;;  %v2180_v17 = vmul.f32 0.01, %v6448_v15  ;;  %v1899_v18 = vpop.f32.mrb[111].mxu0 }
 0x2da   :  { %v2252_v19 = vsel %vm2102_vm10, %v1896_v13, %v2177_v14  ;;  %vm2103_vm12 = vcmp.gt.f32.partialorder %v1899_v18, 0.0  ;;  %v2178_v20 = vmul.f32 0.01, %v1899_v18 }
 0x2db   :  { %v2255_v21 = vsel %vm2105_vm11, %v6448_v15, %v2180_v17 }
 0x2dc   :  { %v2253_v22 = vsel %vm2103_vm12, %v1899_v18, %v2178_v20  ;;  %v2312_v23 = vpack.c.bf16 %v2255_v21, %v2254_v16 }
 0x2dd   :  { %v2311_v24 = vpack.c.bf16 %v2253_v22, %v2252_v19 }
 0x2de   :  { %v6451_v25 = vpop.f32.mrb[112].mxu0 }
 0x2df   :  { %vm2108_vm13 = vcmp.gt.f32.partialorder %v6451_v25, 0.0  ;;  %v2183_v26 = vmul.f32 0.01, %v6451_v25  ;;  %v1912_v27 = vpop.f32.mrb[113].mxu0  ;;  %6537 = vmatprep.mubr.bf16.mxu1 %v2311_v24 }
 0x2e0   :  { %vm2106_vm14 = vcmp.gt.f32.partialorder %v1912_v27, 0.0  ;;  %v2181_v28 = vmul.f32 0.01, %v1912_v27  ;;  %v6452_v29 = vpop.f32.mrb[114].mxu0  ;;  %6538 = vmatmul.mubr.bf16.gmra.mrb[108].mxu1 %v2312_v23 }
 0x2e1   :  { %v2258_v30 = vsel %vm2108_vm13, %v6451_v25, %v2183_v26  ;;  %vm2109_vm15 = vcmp.gt.f32.partialorder %v6452_v29, 0.0  ;;  %v2184_v31 = vmul.f32 0.01, %v6452_v29  ;;  %v1915_v32 = vpop.f32.mrb[115].mxu0 }
 0x2e2   :  { %v2256_v33 = vsel %vm2106_vm14, %v1912_v27, %v2181_v28  ;;  %vm2107_vm0 = vcmp.gt.f32.partialorder %v1915_v32, 0.0  ;;  %v2182_v34 = vmul.f32 0.01, %v1915_v32 }
 0x2e3   :  { %v2259_v35 = vsel %vm2109_vm15, %v6452_v29, %v2184_v31 }
 0x2e4   :  { %v2257_v36 = vsel %vm2107_vm0, %v1915_v32, %v2182_v34  ;;  %v2314_v37 = vpack.c.bf16 %v2259_v35, %v2258_v30 }
 0x2e5   :  { %v2313_v38 = vpack.c.bf16 %v2257_v36, %v2256_v33 }
 0x2e6   :  { %v6455_v39 = vpop.f32.mrb[116].mxu0 }
 0x2e7   :  { %vm2112_vm1 = vcmp.gt.f32.partialorder %v6455_v39, 0.0  ;;  %v2187_v40 = vmul.f32 0.01, %v6455_v39  ;;  %v1928_v41 = vpop.f32.mrb[117].mxu0  ;;  %6541 = vmatprep.mubr.bf16.mxu1 %v2313_v38 }
 0x2e8   :  { %vm2110_vm2 = vcmp.gt.f32.partialorder %v1928_v41, 0.0  ;;  %v2185_v42 = vmul.f32 0.01, %v1928_v41  ;;  %v6456_v43 = vpop.f32.mrb[118].mxu0  ;;  %6542 = vmatmul.mubr.bf16.gmra.mrb[112].mxu1 %v2314_v37 }
 0x2e9   :  { %v2262_v44 = vsel %vm2112_vm1, %v6455_v39, %v2187_v40  ;;  %vm2113_vm3 = vcmp.gt.f32.partialorder %v6456_v43, 0.0  ;;  %v2188_v45 = vmul.f32 0.01, %v6456_v43  ;;  %v1931_v46 = vpop.f32.mrb[119].mxu0 }
 0x2ea   :  { %v2260_v47 = vsel %vm2110_vm2, %v1928_v41, %v2185_v42  ;;  %vm2111_vm4 = vcmp.gt.f32.partialorder %v1931_v46, 0.0  ;;  %v2186_v48 = vmul.f32 0.01, %v1931_v46 }
 0x2eb   :  { %v2263_v49 = vsel %vm2113_vm3, %v6456_v43, %v2188_v45 }
 0x2ec   :  { %v2261_v50 = vsel %vm2111_vm4, %v1931_v46, %v2186_v48  ;;  %v2316_v51 = vpack.c.bf16 %v2263_v49, %v2262_v44 }
 0x2ed   :  { %v2315_v52 = vpack.c.bf16 %v2261_v50, %v2260_v47 }
 0x2ee   :  { %v6459_v53 = vpop.f32.mrb[120].mxu0 }
 0x2ef   :  { %vm2116_vm5 = vcmp.gt.f32.partialorder %v6459_v53, 0.0  ;;  %v2191_v54 = vmul.f32 0.01, %v6459_v53  ;;  %v1944_v55 = vpop.f32.mrb[121].mxu0  ;;  %6545 = vmatprep.mubr.bf16.mxu1 %v2315_v52 }
 0x2f0   :  { %vm2114_vm6 = vcmp.gt.f32.partialorder %v1944_v55, 0.0  ;;  %v2189_v56 = vmul.f32 0.01, %v1944_v55  ;;  %v6460_v57 = vpop.f32.mrb[122].mxu0  ;;  %6546 = vmatmul.mubr.bf16.gmra.mrb[116].mxu1 %v2316_v51 }
 0x2f1   :  { %v2266_v58 = vsel %vm2116_vm5, %v6459_v53, %v2191_v54  ;;  %vm2117_vm7 = vcmp.gt.f32.partialorder %v6460_v57, 0.0  ;;  %v2192_v59 = vmul.f32 0.01, %v6460_v57  ;;  %v1947_v60 = vpop.f32.mrb[123].mxu0 }
 0x2f2   :  { %v2264_v61 = vsel %vm2114_vm6, %v1944_v55, %v2189_v56  ;;  %vm2115_vm8 = vcmp.gt.f32.partialorder %v1947_v60, 0.0  ;;  %v2190_v62 = vmul.f32 0.01, %v1947_v60 }
 0x2f3   :  { %v2267_v63 = vsel %vm2117_vm7, %v6460_v57, %v2192_v59 }
 0x2f4   :  { %v2265_v0 = vsel %vm2115_vm8, %v1947_v60, %v2190_v62  ;;  %v2318_v1 = vpack.c.bf16 %v2267_v63, %v2266_v58 }
 0x2f5   :  { %v2317_v2 = vpack.c.bf16 %v2265_v0, %v2264_v61 }
 0x2f6   :  { %v6463_v3 = vpop.f32.mrb[124].mxu0 }
 0x2f7   :  { %vm2120_vm9 = vcmp.gt.f32.partialorder %v6463_v3, 0.0  ;;  %v2195_v4 = vmul.f32 0.01, %v6463_v3  ;;  %v1960_v5 = vpop.f32.mrb[125].mxu0  ;;  %6549 = vmatprep.mubr.bf16.mxu1 %v2317_v2 }
 0x2f8   :  { %vm2118_vm10 = vcmp.gt.f32.partialorder %v1960_v5, 0.0  ;;  %v2193_v6 = vmul.f32 0.01, %v1960_v5  ;;  %v6464_v7 = vpop.f32.mrb[126].mxu0  ;;  %6550 = vmatmul.mubr.bf16.gmra.mrb[120].mxu1 %v2318_v1 }
 0x2f9   :  { %v2270_v8 = vsel %vm2120_vm9, %v6463_v3, %v2195_v4  ;;  %vm2121_vm11 = vcmp.gt.f32.partialorder %v6464_v7, 0.0  ;;  %v2196_v9 = vmul.f32 0.01, %v6464_v7  ;;  %v1963_v10 = vpop.f32.mrb[127].mxu0 }
 0x2fa   :  { %v2268_v11 = vsel %vm2118_vm10, %v1960_v5, %v2193_v6  ;;  %vm2119_vm12 = vcmp.gt.f32.partialorder %v1963_v10, 0.0  ;;  %v2194_v12 = vmul.f32 0.01, %v1963_v10 }
 0x2fb   :  { %v2271_v13 = vsel %vm2121_vm11, %v6464_v7, %v2196_v9 }
 0x2fc   :  { %v2269_v14 = vsel %vm2119_vm12, %v1963_v10, %v2194_v12  ;;  %v2320_v15 = vpack.c.bf16 %v2271_v13, %v2270_v8 }
 0x2fd   :  { %v2319_v16 = vpack.c.bf16 %v2269_v14, %v2268_v11 }
 0x2fe   :  { %v6467_v17 = vpop.f32.mrb[128].mxu0 }
 0x2ff   :  { %vm2124_vm13 = vcmp.gt.f32.partialorder %v6467_v17, 0.0  ;;  %v2199_v18 = vmul.f32 0.01, %v6467_v17  ;;  %v1976_v19 = vpop.f32.mrb[129].mxu0  ;;  %6553 = vmatprep.mubr.bf16.mxu1 %v2319_v16 }
 0x300   :  { %vm2122_vm14 = vcmp.gt.f32.partialorder %v1976_v19, 0.0  ;;  %v2197_v20 = vmul.f32 0.01, %v1976_v19  ;;  %v6468_v21 = vpop.f32.mrb[130].mxu0  ;;  %6554 = vmatmul.mubr.bf16.gmra.mrb[124].mxu1 %v2320_v15 }
 0x301   :  { %v2274_v22 = vsel %vm2124_vm13, %v6467_v17, %v2199_v18  ;;  %vm2125_vm15 = vcmp.gt.f32.partialorder %v6468_v21, 0.0  ;;  %v2200_v23 = vmul.f32 0.01, %v6468_v21  ;;  %v1979_v24 = vpop.f32.mrb[131].mxu0 }
 0x302   :  { %v2272_v25 = vsel %vm2122_vm14, %v1976_v19, %v2197_v20  ;;  %vm2123_vm0 = vcmp.gt.f32.partialorder %v1979_v24, 0.0  ;;  %v2198_v26 = vmul.f32 0.01, %v1979_v24  ;;  %v7212_v19 = vld [vmem:[%s9563_s4] sm:$0xff]  }
 0x303   :  { %v2275_v27 = vsel %vm2125_vm15, %v6468_v21, %v2200_v23  ;;  %6673 = vmatprep.subr.bf16.mxu0 %v7212_v19  ;;  %6765 = vmatprep.subr.bf16.mxu1 %v7212_v19 }
 0x304   :  { %v2273_v28 = vsel %vm2123_vm0, %v1979_v24, %v2198_v26  ;;  %v2322_v29 = vpack.c.bf16 %v2275_v27, %v2274_v22  ;;  %6773 = vmatpush3.bf16.msra.mxu1 %v7212_v19 }
 0x305   :  { %v2321_v30 = vpack.c.bf16 %v2273_v28, %v2272_v25 }
 0x306   :  { %v6471_v31 = vpop.f32.mrb[132].mxu0 }
 0x307   :  { %vm2128_vm1 = vcmp.gt.f32.partialorder %v6471_v31, 0.0  ;;  %v2203_v32 = vmul.f32 0.01, %v6471_v31  ;;  %v1992_v33 = vpop.f32.mrb[133].mxu0  ;;  %6557 = vmatprep.mubr.bf16.mxu1 %v2321_v30 }
 0x308   :  { %vm2126_vm2 = vcmp.gt.f32.partialorder %v1992_v33, 0.0  ;;  %v2201_v34 = vmul.f32 0.01, %v1992_v33  ;;  %v6472_v35 = vpop.f32.mrb[134].mxu0  ;;  %6558 = vmatmul.mubr.bf16.gmra.mrb[128].mxu1 %v2322_v29 }
 0x309   :  { %v2278_v36 = vsel %vm2128_vm1, %v6471_v31, %v2203_v32  ;;  %vm2129_vm3 = vcmp.gt.f32.partialorder %v6472_v35, 0.0  ;;  %v2204_v37 = vmul.f32 0.01, %v6472_v35  ;;  %v1995_v38 = vpop.f32.mrb[135].mxu0 }
 0x30a   :  { %v2276_v39 = vsel %vm2126_vm2, %v1992_v33, %v2201_v34  ;;  %vm2127_vm4 = vcmp.gt.f32.partialorder %v1995_v38, 0.0  ;;  %v2202_v40 = vmul.f32 0.01, %v1995_v38 }
 0x30b   :  { %v2279_v41 = vsel %vm2129_vm3, %v6472_v35, %v2204_v37  ;;  %v7223_v37 = vld [vmem:[%s9563_s4 + $0x10] sm:$0xff]  }
 0x30c   :  { %v2277_v42 = vsel %vm2127_vm4, %v1995_v38, %v2202_v40  ;;  %v2324_v43 = vpack.c.bf16 %v2279_v41, %v2278_v36  ;;  %v6855_v36 = vld [vmem:[%s9563_s4 + $0x8] sm:$0xff]   ;;  %v7230_v38 = vld [vmem:[%s9563_s4 + $0x18] sm:$0xff]  }
 0x30d   :  { %v2323_v44 = vpack.c.bf16 %v2277_v42, %v2276_v39  ;;  %6766 = vmatprep.subr.bf16.mxu1 %v6855_v36  ;;  %v7237_v39 = vld [vmem:[%s9563_s4 + $0x20] sm:$0xff]  }
 0x30e   :  { %v6475_v45 = vpop.f32.mrb[136].mxu0  ;;  %6774 = vmatpush3.bf16.msra.mxu1 %v6855_v36 }
 0x30f   :  { %vm2132_vm5 = vcmp.gt.f32.partialorder %v6475_v45, 0.0  ;;  %v2207_v46 = vmul.f32 0.01, %v6475_v45  ;;  %v2008_v47 = vpop.f32.mrb[137].mxu0  ;;  %6561 = vmatprep.mubr.bf16.mxu1 %v2323_v44  ;;  %6767 = vmatprep.subr.bf16.mxu1 %v7223_v37 }
 0x310   :  { %vm2130_vm6 = vcmp.gt.f32.partialorder %v2008_v47, 0.0  ;;  %v2205_v48 = vmul.f32 0.01, %v2008_v47  ;;  %v6476_v49 = vpop.f32.mrb[138].mxu0  ;;  %6562 = vmatmul.mubr.bf16.gmra.mrb[132].mxu1 %v2324_v43 }
 0x311   :  { %v2282_v50 = vsel %vm2132_vm5, %v6475_v45, %v2207_v46  ;;  %vm2133_vm7 = vcmp.gt.f32.partialorder %v6476_v49, 0.0  ;;  %v2208_v51 = vmul.f32 0.01, %v6476_v49  ;;  %v2011_v52 = vpop.f32.mrb[139].mxu0 }
 0x312   :  { %v2280_v53 = vsel %vm2130_vm6, %v2008_v47, %v2205_v48  ;;  %vm2131_vm8 = vcmp.gt.f32.partialorder %v2011_v52, 0.0  ;;  %v2206_v54 = vmul.f32 0.01, %v2011_v52  ;;  %6775 = vmatpush3.bf16.msra.mxu1 %v7223_v37 }
 0x313   :  { %v2283_v55 = vsel %vm2133_vm7, %v6476_v49, %v2208_v51  ;;  %6768 = vmatprep.subr.bf16.mxu1 %v7230_v38 }
 0x314   :  { %v2281_v56 = vsel %vm2131_vm8, %v2011_v52, %v2206_v54  ;;  %v2326_v57 = vpack.c.bf16 %v2283_v55, %v2282_v50 }
 0x315   :  { %v2325_v58 = vpack.c.bf16 %v2281_v56, %v2280_v53 }
 0x316   :  { %v6479_v59 = vpop.f32.mrb[140].mxu0  ;;  %6776 = vmatpush3.bf16.msra.mxu1 %v7230_v38 }
 0x317   :  { %vm2136_vm9 = vcmp.gt.f32.partialorder %v6479_v59, 0.0  ;;  %v2211_v60 = vmul.f32 0.01, %v6479_v59  ;;  %v2024_v61 = vpop.f32.mrb[141].mxu0  ;;  %6565 = vmatprep.mubr.bf16.mxu1 %v2325_v58  ;;  %6769 = vmatprep.subr.bf16.mxu1 %v7237_v39 }
 0x318   :  { %vm2134_vm10 = vcmp.gt.f32.partialorder %v2024_v61, 0.0  ;;  %v2209_v62 = vmul.f32 0.01, %v2024_v61  ;;  %v6480_v63 = vpop.f32.mrb[142].mxu0  ;;  %6566 = vmatmul.mubr.bf16.gmra.mrb[136].mxu1 %v2326_v57 }
 0x319   :  { %v2286_v0 = vsel %vm2136_vm9, %v6479_v59, %v2211_v60  ;;  %vm2137_vm11 = vcmp.gt.f32.partialorder %v6480_v63, 0.0  ;;  %v2212_v1 = vmul.f32 0.01, %v6480_v63  ;;  %v2027_v2 = vpop.f32.mrb[143].mxu0 }
 0x31a   :  { %v2284_v3 = vsel %vm2134_vm10, %v2024_v61, %v2209_v62  ;;  %vm2135_vm12 = vcmp.gt.f32.partialorder %v2027_v2, 0.0  ;;  %v2210_v4 = vmul.f32 0.01, %v2027_v2  ;;  %6777 = vmatpush3.bf16.msra.mxu1 %v7237_v39 }
 0x31b   :  { %v2287_v5 = vsel %vm2137_vm11, %v6480_v63, %v2212_v1 }
 0x31c   :  { %v2285_v6 = vsel %vm2135_vm12, %v2027_v2, %v2210_v4  ;;  %v2328_v7 = vpack.c.bf16 %v2287_v5, %v2286_v0  ;;  %v6859_v0 = vld [vmem:[%s9563_s4 + $0x28] sm:$0xff]  }
 0x31d   :  { %v2327_v8 = vpack.c.bf16 %v2285_v6, %v2284_v3  ;;  %6770 = vmatprep.subr.bf16.mxu1 %v6859_v0 }
 0x31e   :  { %v6483_v9 = vpop.f32.mrb[144].mxu0  ;;  %6778 = vmatpush3.bf16.msra.mxu1 %v6859_v0 }
 0x31f   :  { %vm2140_vm13 = vcmp.gt.f32.partialorder %v6483_v9, 0.0  ;;  %v2215_v10 = vmul.f32 0.01, %v6483_v9  ;;  %v2040_v11 = vpop.f32.mrb[145].mxu0  ;;  %6569 = vmatprep.mubr.bf16.mxu1 %v2327_v8 }
 0x320   :  { %vm2138_vm14 = vcmp.gt.f32.partialorder %v2040_v11, 0.0  ;;  %v2213_v12 = vmul.f32 0.01, %v2040_v11  ;;  %v6484_v13 = vpop.f32.mrb[146].mxu0  ;;  %6570 = vmatmul.mubr.bf16.gmra.mrb[140].mxu1 %v2328_v7 }
 0x321   :  { %v2290_v14 = vsel %vm2140_vm13, %v6483_v9, %v2215_v10  ;;  %vm2141_vm15 = vcmp.gt.f32.partialorder %v6484_v13, 0.0  ;;  %v2216_v15 = vmul.f32 0.01, %v6484_v13  ;;  %v2043_v16 = vpop.f32.mrb[147].mxu0 }
 0x322   :  { %v2288_v17 = vsel %vm2138_vm14, %v2040_v11, %v2213_v12  ;;  %vm2139_vm0 = vcmp.gt.f32.partialorder %v2043_v16, 0.0  ;;  %v2214_v18 = vmul.f32 0.01, %v2043_v16 }
 0x323   :  { %v2291_v20 = vsel %vm2141_vm15, %v6484_v13, %v2216_v15 }
 0x324   :  { %v2289_v21 = vsel %vm2139_vm0, %v2043_v16, %v2214_v18  ;;  %v2330_v22 = vpack.c.bf16 %v2291_v20, %v2290_v14 }
 0x325   :  { %v2329_v23 = vpack.c.bf16 %v2289_v21, %v2288_v17 }
 0x326   :  { %v6487_v24 = vpop.f32.mrb[148].mxu0 }
 0x327   :  { %vm2144_vm1 = vcmp.gt.f32.partialorder %v6487_v24, 0.0  ;;  %v2219_v25 = vmul.f32 0.01, %v6487_v24  ;;  %v2056_v26 = vpop.f32.mrb[149].mxu0  ;;  %6573 = vmatprep.mubr.bf16.mxu1 %v2329_v23 }
 0x328   :  { %vm2142_vm2 = vcmp.gt.f32.partialorder %v2056_v26, 0.0  ;;  %v2217_v27 = vmul.f32 0.01, %v2056_v26  ;;  %v6488_v28 = vpop.f32.mrb[150].mxu0  ;;  %6574 = vmatmul.mubr.bf16.gmra.mrb[144].mxu1 %v2330_v22 }
 0x329   :  { %v2294_v29 = vsel %vm2144_vm1, %v6487_v24, %v2219_v25  ;;  %v2059_v30 = vpop.f32.mrb[151].mxu0  ;;  %v6860_v24 = vld [vmem:[%s9563_s4 + $0x30] sm:$0xff]  }
 0x32a   :  { %v2292_v31 = vsel %vm2142_vm2, %v2056_v26, %v2217_v27  ;;  %vm2143_vm3 = vcmp.gt.f32.partialorder %v2059_v30, 0.0  ;;  %v2218_v32 = vmul.f32 0.01, %v2059_v30  ;;  %v2332_v33 = vpack.c.bf16 %v2294_v29, %v2294_v29  ;;  %6771 = vmatprep.subr.bf16.mxu1 %v6860_v24 }
 0x32b   :  { %6779 = vmatpush3.bf16.msra.mxu1 %v6860_v24 }
 0x32c   :  { %v2293_v34 = vsel %vm2143_vm3, %v2059_v30, %v2218_v32  ;;  %v6861_v30 = vld [vmem:[%s9563_s4 + $0x38] sm:$0xff]   ;;  %s6926_s4 = smov 96  }
 0x32d   :  { %v2331_v35 = vpack.c.bf16 %v2293_v34, %v2292_v31  ;;  %6772 = vmatprep.subr.bf16.mxu1 %v6861_v30 }
 0x32f   :  { %6577 = vmatprep.mubr.bf16.mxu1 %v2331_v35  ;;  %6780 = vmatpush3.bf16.msra.mxu1 %v6861_v30 }
 0x330   :  { %6578 = vmatmul.mubr.bf16.gmra.mrb[148].mxu1 %v2332_v33 }
 0x373   :  { %v6507_v40 = vpop.f32.mrb[76].mxu1 }
 0x374   :  { %v2811_v41 = vmul.f32 0.01, %v6507_v40  ;;  %v2432_v42 = vpop.f32.mrb[77].mxu1  ;;  %vm2736_vm4 = vcmp.gt.f32.partialorder %v6507_v40, 0.0 }
 0x375   :  { %v2809_v43 = vmul.f32 0.01, %v2432_v42  ;;  %v6508_v44 = vpop.f32.mrb[78].mxu1  ;;  %vm2734_vm5 = vcmp.gt.f32.partialorder %v2432_v42, 0.0 }
 0x376   :  { %vm2737_vm6 = vcmp.gt.f32.partialorder %v6508_v44, 0.0  ;;  %v2812_v45 = vmul.f32 0.01, %v6508_v44  ;;  %v2435_v46 = vpop.f32.mrb[79].mxu1  ;;  %v2886_v48 = vsel %vm2736_vm4, %v6507_v40, %v2811_v41 }
 0x377   :  { %vm2735_vm7 = vcmp.gt.f32.partialorder %v2435_v46, 0.0  ;;  %v2810_v47 = vmul.f32 0.01, %v2435_v46  ;;  %v2884_v50 = vsel %vm2734_vm5, %v2432_v42, %v2809_v43 }
 0x378   :  { %v2887_v49 = vsel %vm2737_vm6, %v6508_v44, %v2812_v45 }
 0x379   :  { %v2960_v51 = vpack.c.bf16 %v2887_v49, %v2886_v48  ;;  %v2885_v52 = vsel %vm2735_vm7, %v2435_v46, %v2810_v47 }
 0x37a   :  { %v2959_v53 = vpack.c.bf16 %v2885_v52, %v2884_v50 }
 0x37b   :  { %v6511_v54 = vpop.f32.mrb[80].mxu1 }
 0x37c   :  { %6597 = vmatprep.mubr.bf16.mxu0 %v2959_v53  ;;  %vm2740_vm8 = vcmp.gt.f32.partialorder %v6511_v54, 0.0  ;;  %v2815_v55 = vmul.f32 0.01, %v6511_v54  ;;  %v2448_v56 = vpop.f32.mrb[81].mxu1 }
 0x37d   :  { %6598 = vmatmul.mubr.bf16.vlgmr.msra.gmra.mrb[152].mxu0 %v2960_v51  ;;  %vm2738_vm9 = vcmp.gt.f32.partialorder %v2448_v56, 0.0  ;;  %v2813_v57 = vmul.f32 0.01, %v2448_v56  ;;  %v6512_v58 = vpop.f32.mrb[82].mxu1 }
 0x37e   :  { %v2890_v59 = vsel %vm2740_vm8, %v6511_v54, %v2815_v55  ;;  %vm2741_vm10 = vcmp.gt.f32.partialorder %v6512_v58, 0.0  ;;  %v2816_v60 = vmul.f32 0.01, %v6512_v58  ;;  %v2451_v61 = vpop.f32.mrb[83].mxu1  ;;  %6674 = vmatpush3.bf16.msra.mxu0 %v7212_v19 }
 0x37f   :  { %v2888_v62 = vsel %vm2738_vm9, %v2448_v56, %v2813_v57  ;;  %vm2739_vm11 = vcmp.gt.f32.partialorder %v2451_v61, 0.0  ;;  %v2814_v63 = vmul.f32 0.01, %v2451_v61  ;;  %6675 = vmatprep.subr.bf16.mxu0 %v6855_v36 }
 0x380   :  { %v2891_v1 = vsel %vm2741_vm10, %v6512_v58, %v2816_v60 }
 0x381   :  { %v2889_v2 = vsel %vm2739_vm11, %v2451_v61, %v2814_v63  ;;  %v2962_v3 = vpack.c.bf16 %v2891_v1, %v2890_v59 }
 0x382   :  { %v2961_v4 = vpack.c.bf16 %v2889_v2, %v2888_v62  ;;  %6676 = vmatpush3.bf16.msra.mxu0 %v6855_v36 }
 0x383   :  { %v6515_v5 = vpop.f32.mrb[84].mxu1  ;;  %6677 = vmatprep.subr.bf16.mxu0 %v7223_v37 }
 0x384   :  { %6601 = vmatprep.mubr.bf16.mxu0 %v2961_v4  ;;  %vm2744_vm12 = vcmp.gt.f32.partialorder %v6515_v5, 0.0  ;;  %v2819_v6 = vmul.f32 0.01, %v6515_v5  ;;  %v2464_v7 = vpop.f32.mrb[85].mxu1 }
 0x385   :  { %6602 = vmatmul.mubr.bf16.gmra.mrb[156].mxu0 %v2962_v3  ;;  %vm2742_vm13 = vcmp.gt.f32.partialorder %v2464_v7, 0.0  ;;  %v2817_v8 = vmul.f32 0.01, %v2464_v7  ;;  %v6516_v9 = vpop.f32.mrb[86].mxu1 }
 0x386   :  { %v2894_v10 = vsel %vm2744_vm12, %v6515_v5, %v2819_v6  ;;  %vm2745_vm14 = vcmp.gt.f32.partialorder %v6516_v9, 0.0  ;;  %v2820_v11 = vmul.f32 0.01, %v6516_v9  ;;  %v2467_v12 = vpop.f32.mrb[87].mxu1  ;;  %6678 = vmatpush3.bf16.msra.mxu0 %v7223_v37 }
 0x387   :  { %v2892_v13 = vsel %vm2742_vm13, %v2464_v7, %v2817_v8  ;;  %vm2743_vm15 = vcmp.gt.f32.partialorder %v2467_v12, 0.0  ;;  %v2818_v14 = vmul.f32 0.01, %v2467_v12  ;;  %6679 = vmatprep.subr.bf16.mxu0 %v7230_v38 }
 0x388   :  { %v2895_v15 = vsel %vm2745_vm14, %v6516_v9, %v2820_v11 }
 0x389   :  { %v2893_v16 = vsel %vm2743_vm15, %v2467_v12, %v2818_v14  ;;  %v2964_v17 = vpack.c.bf16 %v2895_v15, %v2894_v10 }
 0x38a   :  { %v2963_v18 = vpack.c.bf16 %v2893_v16, %v2892_v13  ;;  %6680 = vmatpush3.bf16.msra.mxu0 %v7230_v38 }
 0x38b   :  { %v6519_v19 = vpop.f32.mrb[88].mxu1  ;;  %6681 = vmatprep.subr.bf16.mxu0 %v7237_v39 }
 0x38c   :  { %vm2748_vm0 = vcmp.gt.f32.partialorder %v6519_v19, 0.0  ;;  %v2823_v20 = vmul.f32 0.01, %v6519_v19  ;;  %v2480_v21 = vpop.f32.mrb[89].mxu1  ;;  %6605 = vmatprep.mubr.bf16.mxu0 %v2963_v18 }
 0x38d   :  { %vm2746_vm1 = vcmp.gt.f32.partialorder %v2480_v21, 0.0  ;;  %v2821_v22 = vmul.f32 0.01, %v2480_v21  ;;  %v6520_v23 = vpop.f32.mrb[90].mxu1  ;;  %6606 = vmatmul.mubr.bf16.gmra.mrb[160].mxu0 %v2964_v17 }
 0x38e   :  { %v2898_v25 = vsel %vm2748_vm0, %v6519_v19, %v2823_v20  ;;  %vm2749_vm2 = vcmp.gt.f32.partialorder %v6520_v23, 0.0  ;;  %v2824_v26 = vmul.f32 0.01, %v6520_v23  ;;  %v2483_v27 = vpop.f32.mrb[91].mxu1  ;;  %6682 = vmatpush3.bf16.msra.mxu0 %v7237_v39 }
 0x38f   :  { %v2896_v28 = vsel %vm2746_vm1, %v2480_v21, %v2821_v22  ;;  %vm2747_vm3 = vcmp.gt.f32.partialorder %v2483_v27, 0.0  ;;  %v2822_v29 = vmul.f32 0.01, %v2483_v27  ;;  %6683 = vmatprep.subr.bf16.mxu0 %v6859_v0 }
 0x390   :  { %v2899_v31 = vsel %vm2749_vm2, %v6520_v23, %v2824_v26 }
 0x391   :  { %v2897_v32 = vsel %vm2747_vm3, %v2483_v27, %v2822_v29  ;;  %v2966_v33 = vpack.c.bf16 %v2899_v31, %v2898_v25 }
 0x392   :  { %v2965_v34 = vpack.c.bf16 %v2897_v32, %v2896_v28  ;;  %6684 = vmatpush3.bf16.msra.mxu0 %v6859_v0 }
 0x393   :  { %v6523_v35 = vpop.f32.mrb[92].mxu1  ;;  %6685 = vmatprep.subr.bf16.mxu0 %v6860_v24 }
 0x394   :  { %vm2752_vm4 = vcmp.gt.f32.partialorder %v6523_v35, 0.0  ;;  %v2827_v36 = vmul.f32 0.01, %v6523_v35  ;;  %v2496_v37 = vpop.f32.mrb[93].mxu1  ;;  %6609 = vmatprep.mubr.bf16.mxu0 %v2965_v34 }
 0x395   :  { %vm2750_vm5 = vcmp.gt.f32.partialorder %v2496_v37, 0.0  ;;  %v2825_v38 = vmul.f32 0.01, %v2496_v37  ;;  %v6524_v39 = vpop.f32.mrb[94].mxu1  ;;  %6610 = vmatmul.mubr.bf16.gmra.mrb[164].mxu0 %v2966_v33 }
 0x396   :  { %v2902_v40 = vsel %vm2752_vm4, %v6523_v35, %v2827_v36  ;;  %vm2753_vm6 = vcmp.gt.f32.partialorder %v6524_v39, 0.0  ;;  %v2828_v41 = vmul.f32 0.01, %v6524_v39  ;;  %v2499_v42 = vpop.f32.mrb[95].mxu1  ;;  %6686 = vmatpush3.bf16.msra.mxu0 %v6860_v24 }
 0x397   :  { %v2900_v43 = vsel %vm2750_vm5, %v2496_v37, %v2825_v38  ;;  %vm2751_vm7 = vcmp.gt.f32.partialorder %v2499_v42, 0.0  ;;  %v2826_v44 = vmul.f32 0.01, %v2499_v42  ;;  %6687 = vmatprep.subr.bf16.mxu0 %v6861_v30 }
 0x398   :  { %v2903_v45 = vsel %vm2753_vm6, %v6524_v39, %v2828_v41 }
 0x399   :  { %v2901_v46 = vsel %vm2751_vm7, %v2499_v42, %v2826_v44  ;;  %v2968_v47 = vpack.c.bf16 %v2903_v45, %v2902_v40 }
 0x39a   :  { %v2967_v48 = vpack.c.bf16 %v2901_v46, %v2900_v43  ;;  %6688 = vmatpush3.bf16.msra.mxu0 %v6861_v30 }
 0x39b   :  { %v6527_v49 = vpop.f32.mrb[96].mxu1 }
 0x39c   :  { %vm2756_vm8 = vcmp.gt.f32.partialorder %v6527_v49, 0.0  ;;  %v2831_v50 = vmul.f32 0.01, %v6527_v49  ;;  %v2512_v51 = vpop.f32.mrb[97].mxu1  ;;  %6613 = vmatprep.mubr.bf16.mxu0 %v2967_v48 }
 0x39d   :  { %vm2754_vm9 = vcmp.gt.f32.partialorder %v2512_v51, 0.0  ;;  %v2829_v52 = vmul.f32 0.01, %v2512_v51  ;;  %v6528_v53 = vpop.f32.mrb[98].mxu1  ;;  %6614 = vmatmul.mubr.bf16.gmra.mrb[168].mxu0 %v2968_v47 }
 0x39e   :  { %v2906_v54 = vsel %vm2756_vm8, %v6527_v49, %v2831_v50  ;;  %vm2757_vm10 = vcmp.gt.f32.partialorder %v6528_v53, 0.0  ;;  %v2832_v55 = vmul.f32 0.01, %v6528_v53  ;;  %v2515_v56 = vpop.f32.mrb[99].mxu1 }
 0x39f   :  { %v2904_v57 = vsel %vm2754_vm9, %v2512_v51, %v2829_v52  ;;  %vm2755_vm11 = vcmp.gt.f32.partialorder %v2515_v56, 0.0  ;;  %v2830_v58 = vmul.f32 0.01, %v2515_v56 }
 0x3a0   :  { %v2907_v59 = vsel %vm2757_vm10, %v6528_v53, %v2832_v55 }
 0x3a1   :  { %v2905_v60 = vsel %vm2755_vm11, %v2515_v56, %v2830_v58  ;;  %v2970_v61 = vpack.c.bf16 %v2907_v59, %v2906_v54 }
 0x3a2   :  { %v2969_v62 = vpack.c.bf16 %v2905_v60, %v2904_v57 }
 0x3a3   :  { %v6531_v63 = vpop.f32.mrb[100].mxu1 }
 0x3a4   :  { %vm2760_vm12 = vcmp.gt.f32.partialorder %v6531_v63, 0.0  ;;  %v2835_v0 = vmul.f32 0.01, %v6531_v63  ;;  %v2528_v1 = vpop.f32.mrb[101].mxu1  ;;  %6617 = vmatprep.mubr.bf16.mxu0 %v2969_v62 }
 0x3a5   :  { %vm2758_vm13 = vcmp.gt.f32.partialorder %v2528_v1, 0.0  ;;  %v2833_v2 = vmul.f32 0.01, %v2528_v1  ;;  %v6532_v3 = vpop.f32.mrb[102].mxu1  ;;  %6618 = vmatmul.mubr.bf16.gmra.mrb[172].mxu0 %v2970_v61 }
 0x3a6   :  { %v2910_v4 = vsel %vm2760_vm12, %v6531_v63, %v2835_v0  ;;  %vm2761_vm14 = vcmp.gt.f32.partialorder %v6532_v3, 0.0  ;;  %v2836_v5 = vmul.f32 0.01, %v6532_v3  ;;  %v2531_v6 = vpop.f32.mrb[103].mxu1 }
 0x3a7   :  { %v2908_v7 = vsel %vm2758_vm13, %v2528_v1, %v2833_v2  ;;  %vm2759_vm15 = vcmp.gt.f32.partialorder %v2531_v6, 0.0  ;;  %v2834_v8 = vmul.f32 0.01, %v2531_v6 }
 0x3a8   :  { %v2911_v9 = vsel %vm2761_vm14, %v6532_v3, %v2836_v5 }
 0x3a9   :  { %v2909_v10 = vsel %vm2759_vm15, %v2531_v6, %v2834_v8  ;;  %v2972_v11 = vpack.c.bf16 %v2911_v9, %v2910_v4 }
 0x3aa   :  { %v2971_v12 = vpack.c.bf16 %v2909_v10, %v2908_v7 }
 0x3ab   :  { %v6535_v13 = vpop.f32.mrb[104].mxu1 }
 0x3ac   :  { %vm2764_vm0 = vcmp.gt.f32.partialorder %v6535_v13, 0.0  ;;  %v2839_v14 = vmul.f32 0.01, %v6535_v13  ;;  %v2544_v15 = vpop.f32.mrb[105].mxu1  ;;  %6621 = vmatprep.mubr.bf16.mxu0 %v2971_v12 }
 0x3ad   :  { %vm2762_vm1 = vcmp.gt.f32.partialorder %v2544_v15, 0.0  ;;  %v2837_v16 = vmul.f32 0.01, %v2544_v15  ;;  %v6536_v17 = vpop.f32.mrb[106].mxu1  ;;  %6622 = vmatmul.mubr.bf16.gmra.mrb[176].mxu0 %v2972_v11 }
 0x3ae   :  { %v2914_v18 = vsel %vm2764_vm0, %v6535_v13, %v2839_v14  ;;  %vm2765_vm2 = vcmp.gt.f32.partialorder %v6536_v17, 0.0  ;;  %v2840_v19 = vmul.f32 0.01, %v6536_v17  ;;  %v2547_v20 = vpop.f32.mrb[107].mxu1 }
 0x3af   :  { %v2912_v21 = vsel %vm2762_vm1, %v2544_v15, %v2837_v16  ;;  %vm2763_vm3 = vcmp.gt.f32.partialorder %v2547_v20, 0.0  ;;  %v2838_v22 = vmul.f32 0.01, %v2547_v20 }
 0x3b0   :  { %v2915_v23 = vsel %vm2765_vm2, %v6536_v17, %v2840_v19 }
 0x3b1   :  { %v2913_v24 = vsel %vm2763_vm3, %v2547_v20, %v2838_v22  ;;  %v2974_v25 = vpack.c.bf16 %v2915_v23, %v2914_v18 }
 0x3b2   :  { %v2973_v26 = vpack.c.bf16 %v2913_v24, %v2912_v21 }
 0x3b3   :  { %v6539_v27 = vpop.f32.mrb[108].mxu1 }
 0x3b4   :  { %vm2768_vm4 = vcmp.gt.f32.partialorder %v6539_v27, 0.0  ;;  %v2843_v28 = vmul.f32 0.01, %v6539_v27  ;;  %v2560_v29 = vpop.f32.mrb[109].mxu1  ;;  %6625 = vmatprep.mubr.bf16.mxu0 %v2973_v26 }
 0x3b5   :  { %vm2766_vm5 = vcmp.gt.f32.partialorder %v2560_v29, 0.0  ;;  %v2841_v30 = vmul.f32 0.01, %v2560_v29  ;;  %v6540_v31 = vpop.f32.mrb[110].mxu1  ;;  %6626 = vmatmul.mubr.bf16.gmra.mrb[180].mxu0 %v2974_v25 }
 0x3b6   :  { %v2918_v32 = vsel %vm2768_vm4, %v6539_v27, %v2843_v28  ;;  %vm2769_vm6 = vcmp.gt.f32.partialorder %v6540_v31, 0.0  ;;  %v2844_v33 = vmul.f32 0.01, %v6540_v31  ;;  %v2563_v34 = vpop.f32.mrb[111].mxu1 }
 0x3b7   :  { %v2916_v35 = vsel %vm2766_vm5, %v2560_v29, %v2841_v30  ;;  %vm2767_vm7 = vcmp.gt.f32.partialorder %v2563_v34, 0.0  ;;  %v2842_v36 = vmul.f32 0.01, %v2563_v34 }
 0x3b8   :  { %v2919_v37 = vsel %vm2769_vm6, %v6540_v31, %v2844_v33 }
 0x3b9   :  { %v2917_v38 = vsel %vm2767_vm7, %v2563_v34, %v2842_v36  ;;  %v2976_v39 = vpack.c.bf16 %v2919_v37, %v2918_v32 }
 0x3ba   :  { %v2975_v40 = vpack.c.bf16 %v2917_v38, %v2916_v35 }
 0x3bb   :  { %v6543_v41 = vpop.f32.mrb[112].mxu1 }
 0x3bc   :  { %vm2772_vm8 = vcmp.gt.f32.partialorder %v6543_v41, 0.0  ;;  %v2847_v42 = vmul.f32 0.01, %v6543_v41  ;;  %v2576_v43 = vpop.f32.mrb[113].mxu1  ;;  %6629 = vmatprep.mubr.bf16.mxu0 %v2975_v40 }
 0x3bd   :  { %vm2770_vm9 = vcmp.gt.f32.partialorder %v2576_v43, 0.0  ;;  %v2845_v44 = vmul.f32 0.01, %v2576_v43  ;;  %v6544_v45 = vpop.f32.mrb[114].mxu1  ;;  %6630 = vmatmul.mubr.bf16.gmra.mrb[184].mxu0 %v2976_v39 }
 0x3be   :  { %v2922_v46 = vsel %vm2772_vm8, %v6543_v41, %v2847_v42  ;;  %vm2773_vm10 = vcmp.gt.f32.partialorder %v6544_v45, 0.0  ;;  %v2848_v47 = vmul.f32 0.01, %v6544_v45  ;;  %v2579_v48 = vpop.f32.mrb[115].mxu1 }
 0x3bf   :  { %v2920_v49 = vsel %vm2770_vm9, %v2576_v43, %v2845_v44  ;;  %vm2771_vm11 = vcmp.gt.f32.partialorder %v2579_v48, 0.0  ;;  %v2846_v50 = vmul.f32 0.01, %v2579_v48 }
 0x3c0   :  { %v2923_v51 = vsel %vm2773_vm10, %v6544_v45, %v2848_v47 }
 0x3c1   :  { %v2921_v52 = vsel %vm2771_vm11, %v2579_v48, %v2846_v50  ;;  %v2978_v53 = vpack.c.bf16 %v2923_v51, %v2922_v46 }
 0x3c2   :  { %v2977_v54 = vpack.c.bf16 %v2921_v52, %v2920_v49 }
 0x3c3   :  { %v6547_v55 = vpop.f32.mrb[116].mxu1 }
 0x3c4   :  { %vm2776_vm12 = vcmp.gt.f32.partialorder %v6547_v55, 0.0  ;;  %v2851_v56 = vmul.f32 0.01, %v6547_v55  ;;  %v2592_v57 = vpop.f32.mrb[117].mxu1  ;;  %6633 = vmatprep.mubr.bf16.mxu0 %v2977_v54 }
 0x3c5   :  { %vm2774_vm13 = vcmp.gt.f32.partialorder %v2592_v57, 0.0  ;;  %v2849_v58 = vmul.f32 0.01, %v2592_v57  ;;  %v6548_v59 = vpop.f32.mrb[118].mxu1  ;;  %6634 = vmatmul.mubr.bf16.gmra.mrb[188].mxu0 %v2978_v53 }
 0x3c6   :  { %v2926_v60 = vsel %vm2776_vm12, %v6547_v55, %v2851_v56  ;;  %vm2777_vm14 = vcmp.gt.f32.partialorder %v6548_v59, 0.0  ;;  %v2852_v61 = vmul.f32 0.01, %v6548_v59  ;;  %v2595_v62 = vpop.f32.mrb[119].mxu1 }
 0x3c7   :  { %v2924_v63 = vsel %vm2774_vm13, %v2592_v57, %v2849_v58  ;;  %vm2775_vm15 = vcmp.gt.f32.partialorder %v2595_v62, 0.0  ;;  %v2850_v0 = vmul.f32 0.01, %v2595_v62 }
 0x3c8   :  { %v2927_v1 = vsel %vm2777_vm14, %v6548_v59, %v2852_v61 }
 0x3c9   :  { %v2925_v2 = vsel %vm2775_vm15, %v2595_v62, %v2850_v0  ;;  %v2980_v3 = vpack.c.bf16 %v2927_v1, %v2926_v60 }
 0x3ca   :  { %v2979_v4 = vpack.c.bf16 %v2925_v2, %v2924_v63 }
 0x3cb   :  { %v6551_v5 = vpop.f32.mrb[120].mxu1 }
 0x3cc   :  { %vm2780_vm0 = vcmp.gt.f32.partialorder %v6551_v5, 0.0  ;;  %v2855_v6 = vmul.f32 0.01, %v6551_v5  ;;  %v2608_v7 = vpop.f32.mrb[121].mxu1  ;;  %6637 = vmatprep.mubr.bf16.mxu0 %v2979_v4 }
 0x3cd   :  { %vm2778_vm1 = vcmp.gt.f32.partialorder %v2608_v7, 0.0  ;;  %v2853_v8 = vmul.f32 0.01, %v2608_v7  ;;  %v6552_v9 = vpop.f32.mrb[122].mxu1  ;;  %6638 = vmatmul.mubr.bf16.gmra.mrb[192].mxu0 %v2980_v3 }
 0x3ce   :  { %v2930_v10 = vsel %vm2780_vm0, %v6551_v5, %v2855_v6  ;;  %vm2781_vm2 = vcmp.gt.f32.partialorder %v6552_v9, 0.0  ;;  %v2856_v11 = vmul.f32 0.01, %v6552_v9  ;;  %v2611_v12 = vpop.f32.mrb[123].mxu1 }
 0x3cf   :  { %v2928_v13 = vsel %vm2778_vm1, %v2608_v7, %v2853_v8  ;;  %vm2779_vm3 = vcmp.gt.f32.partialorder %v2611_v12, 0.0  ;;  %v2854_v14 = vmul.f32 0.01, %v2611_v12 }
 0x3d0   :  { %v2931_v15 = vsel %vm2781_vm2, %v6552_v9, %v2856_v11 }
 0x3d1   :  { %v2929_v16 = vsel %vm2779_vm3, %v2611_v12, %v2854_v14  ;;  %v2982_v17 = vpack.c.bf16 %v2931_v15, %v2930_v10 }
 0x3d2   :  { %v2981_v18 = vpack.c.bf16 %v2929_v16, %v2928_v13 }
 0x3d3   :  { %v6555_v19 = vpop.f32.mrb[124].mxu1 }
 0x3d4   :  { %vm2784_vm4 = vcmp.gt.f32.partialorder %v6555_v19, 0.0  ;;  %v2859_v20 = vmul.f32 0.01, %v6555_v19  ;;  %v2624_v21 = vpop.f32.mrb[125].mxu1  ;;  %6641 = vmatprep.mubr.bf16.mxu0 %v2981_v18 }
 0x3d5   :  { %vm2782_vm5 = vcmp.gt.f32.partialorder %v2624_v21, 0.0  ;;  %v2857_v22 = vmul.f32 0.01, %v2624_v21  ;;  %v6556_v23 = vpop.f32.mrb[126].mxu1  ;;  %6642 = vmatmul.mubr.bf16.gmra.mrb[196].mxu0 %v2982_v17 }
 0x3d6   :  { %v2934_v24 = vsel %vm2784_vm4, %v6555_v19, %v2859_v20  ;;  %vm2785_vm6 = vcmp.gt.f32.partialorder %v6556_v23, 0.0  ;;  %v2860_v25 = vmul.f32 0.01, %v6556_v23  ;;  %v2627_v26 = vpop.f32.mrb[127].mxu1 }
 0x3d7   :  { %v2932_v27 = vsel %vm2782_vm5, %v2624_v21, %v2857_v22  ;;  %vm2783_vm7 = vcmp.gt.f32.partialorder %v2627_v26, 0.0  ;;  %v2858_v28 = vmul.f32 0.01, %v2627_v26 }
 0x3d8   :  { %v2935_v29 = vsel %vm2785_vm6, %v6556_v23, %v2860_v25 }
 0x3d9   :  { %v2933_v30 = vsel %vm2783_vm7, %v2627_v26, %v2858_v28  ;;  %v2984_v31 = vpack.c.bf16 %v2935_v29, %v2934_v24 }
 0x3da   :  { %v2983_v32 = vpack.c.bf16 %v2933_v30, %v2932_v27 }
 0x3db   :  { %v6559_v33 = vpop.f32.mrb[128].mxu1 }
 0x3dc   :  { %vm2788_vm8 = vcmp.gt.f32.partialorder %v6559_v33, 0.0  ;;  %v2863_v34 = vmul.f32 0.01, %v6559_v33  ;;  %v2640_v35 = vpop.f32.mrb[129].mxu1  ;;  %6645 = vmatprep.mubr.bf16.mxu0 %v2983_v32 }
 0x3dd   :  { %vm2786_vm9 = vcmp.gt.f32.partialorder %v2640_v35, 0.0  ;;  %v2861_v36 = vmul.f32 0.01, %v2640_v35  ;;  %v6560_v37 = vpop.f32.mrb[130].mxu1  ;;  %6646 = vmatmul.mubr.bf16.gmra.mrb[200].mxu0 %v2984_v31 }
 0x3de   :  { %v2938_v38 = vsel %vm2788_vm8, %v6559_v33, %v2863_v34  ;;  %vm2789_vm10 = vcmp.gt.f32.partialorder %v6560_v37, 0.0  ;;  %v2864_v39 = vmul.f32 0.01, %v6560_v37  ;;  %v2643_v40 = vpop.f32.mrb[131].mxu1 }
 0x3df   :  { %v2936_v41 = vsel %vm2786_vm9, %v2640_v35, %v2861_v36  ;;  %vm2787_vm11 = vcmp.gt.f32.partialorder %v2643_v40, 0.0  ;;  %v2862_v42 = vmul.f32 0.01, %v2643_v40 }
 0x3e0   :  { %v2939_v43 = vsel %vm2789_vm10, %v6560_v37, %v2864_v39 }
 0x3e1   :  { %v2937_v44 = vsel %vm2787_vm11, %v2643_v40, %v2862_v42  ;;  %v2986_v45 = vpack.c.bf16 %v2939_v43, %v2938_v38 }
 0x3e2   :  { %v2985_v46 = vpack.c.bf16 %v2937_v44, %v2936_v41 }
 0x3e3   :  { %v6563_v47 = vpop.f32.mrb[132].mxu1 }
 0x3e4   :  { %vm2792_vm12 = vcmp.gt.f32.partialorder %v6563_v47, 0.0  ;;  %v2867_v48 = vmul.f32 0.01, %v6563_v47  ;;  %v2656_v49 = vpop.f32.mrb[133].mxu1  ;;  %6649 = vmatprep.mubr.bf16.mxu0 %v2985_v46 }
 0x3e5   :  { %vm2790_vm13 = vcmp.gt.f32.partialorder %v2656_v49, 0.0  ;;  %v2865_v50 = vmul.f32 0.01, %v2656_v49  ;;  %v6564_v51 = vpop.f32.mrb[134].mxu1  ;;  %6650 = vmatmul.mubr.bf16.gmra.mrb[204].mxu0 %v2986_v45 }
 0x3e6   :  { %v2942_v52 = vsel %vm2792_vm12, %v6563_v47, %v2867_v48  ;;  %vm2793_vm14 = vcmp.gt.f32.partialorder %v6564_v51, 0.0  ;;  %v2868_v53 = vmul.f32 0.01, %v6564_v51  ;;  %v2659_v54 = vpop.f32.mrb[135].mxu1 }
 0x3e7   :  { %v2940_v55 = vsel %vm2790_vm13, %v2656_v49, %v2865_v50  ;;  %vm2791_vm15 = vcmp.gt.f32.partialorder %v2659_v54, 0.0  ;;  %v2866_v56 = vmul.f32 0.01, %v2659_v54 }
 0x3e8   :  { %v2943_v57 = vsel %vm2793_vm14, %v6564_v51, %v2868_v53 }
 0x3e9   :  { %v2941_v58 = vsel %vm2791_vm15, %v2659_v54, %v2866_v56  ;;  %v2988_v59 = vpack.c.bf16 %v2943_v57, %v2942_v52 }
 0x3ea   :  { %v2987_v60 = vpack.c.bf16 %v2941_v58, %v2940_v55 }
 0x3eb   :  { %v6567_v61 = vpop.f32.mrb[136].mxu1 }
 0x3ec   :  { %vm2796_vm0 = vcmp.gt.f32.partialorder %v6567_v61, 0.0  ;;  %v2871_v62 = vmul.f32 0.01, %v6567_v61  ;;  %v2672_v63 = vpop.f32.mrb[137].mxu1  ;;  %6653 = vmatprep.mubr.bf16.mxu0 %v2987_v60 }
 0x3ed   :  { %vm2794_vm1 = vcmp.gt.f32.partialorder %v2672_v63, 0.0  ;;  %v2869_v0 = vmul.f32 0.01, %v2672_v63  ;;  %v6568_v1 = vpop.f32.mrb[138].mxu1  ;;  %6654 = vmatmul.mubr.bf16.gmra.mrb[208].mxu0 %v2988_v59 }
 0x3ee   :  { %v2946_v2 = vsel %vm2796_vm0, %v6567_v61, %v2871_v62  ;;  %vm2797_vm2 = vcmp.gt.f32.partialorder %v6568_v1, 0.0  ;;  %v2872_v3 = vmul.f32 0.01, %v6568_v1  ;;  %v2675_v4 = vpop.f32.mrb[139].mxu1 }
 0x3ef   :  { %v2944_v5 = vsel %vm2794_vm1, %v2672_v63, %v2869_v0  ;;  %vm2795_vm3 = vcmp.gt.f32.partialorder %v2675_v4, 0.0  ;;  %v2870_v6 = vmul.f32 0.01, %v2675_v4 }
 0x3f0   :  { %v2947_v7 = vsel %vm2797_vm2, %v6568_v1, %v2872_v3 }
 0x3f1   :  { %v2945_v8 = vsel %vm2795_vm3, %v2675_v4, %v2870_v6  ;;  %v2990_v9 = vpack.c.bf16 %v2947_v7, %v2946_v2 }
 0x3f2   :  { %v2989_v10 = vpack.c.bf16 %v2945_v8, %v2944_v5 }
 0x3f3   :  { %v6571_v11 = vpop.f32.mrb[140].mxu1 }
 0x3f4   :  { %vm2800_vm4 = vcmp.gt.f32.partialorder %v6571_v11, 0.0  ;;  %v2875_v12 = vmul.f32 0.01, %v6571_v11  ;;  %v2688_v13 = vpop.f32.mrb[141].mxu1  ;;  %6657 = vmatprep.mubr.bf16.mxu0 %v2989_v10 }
 0x3f5   :  { %vm2798_vm5 = vcmp.gt.f32.partialorder %v2688_v13, 0.0  ;;  %v2873_v14 = vmul.f32 0.01, %v2688_v13  ;;  %v6572_v15 = vpop.f32.mrb[142].mxu1  ;;  %6658 = vmatmul.mubr.bf16.gmra.mrb[212].mxu0 %v2990_v9 }
 0x3f6   :  { %v2950_v16 = vsel %vm2800_vm4, %v6571_v11, %v2875_v12  ;;  %vm2801_vm6 = vcmp.gt.f32.partialorder %v6572_v15, 0.0  ;;  %v2876_v17 = vmul.f32 0.01, %v6572_v15  ;;  %v2691_v18 = vpop.f32.mrb[143].mxu1 }
 0x3f7   :  { %v2948_v19 = vsel %vm2798_vm5, %v2688_v13, %v2873_v14  ;;  %vm2799_vm7 = vcmp.gt.f32.partialorder %v2691_v18, 0.0  ;;  %v2874_v20 = vmul.f32 0.01, %v2691_v18 }
 0x3f8   :  { %v2951_v21 = vsel %vm2801_vm6, %v6572_v15, %v2876_v17 }
 0x3f9   :  { %v2949_v22 = vsel %vm2799_vm7, %v2691_v18, %v2874_v20  ;;  %v2992_v23 = vpack.c.bf16 %v2951_v21, %v2950_v16 }
 0x3fa   :  { %v2991_v24 = vpack.c.bf16 %v2949_v22, %v2948_v19 }
 0x3fb   :  { %v6575_v25 = vpop.f32.mrb[144].mxu1 }
 0x3fc   :  { %vm2804_vm8 = vcmp.gt.f32.partialorder %v6575_v25, 0.0  ;;  %v2879_v26 = vmul.f32 0.01, %v6575_v25  ;;  %v2704_v27 = vpop.f32.mrb[145].mxu1  ;;  %6661 = vmatprep.mubr.bf16.mxu0 %v2991_v24 }
 0x3fd   :  { %vm2802_vm9 = vcmp.gt.f32.partialorder %v2704_v27, 0.0  ;;  %v2877_v28 = vmul.f32 0.01, %v2704_v27  ;;  %v6576_v29 = vpop.f32.mrb[146].mxu1  ;;  %6662 = vmatmul.mubr.bf16.gmra.mrb[216].mxu0 %v2992_v23 }
 0x3fe   :  { %v2954_v30 = vsel %vm2804_vm8, %v6575_v25, %v2879_v26  ;;  %vm2805_vm10 = vcmp.gt.f32.partialorder %v6576_v29, 0.0  ;;  %v2880_v31 = vmul.f32 0.01, %v6576_v29  ;;  %v2707_v32 = vpop.f32.mrb[147].mxu1 }
 0x3ff   :  { %v2952_v33 = vsel %vm2802_vm9, %v2704_v27, %v2877_v28  ;;  %vm2803_vm11 = vcmp.gt.f32.partialorder %v2707_v32, 0.0  ;;  %v2878_v34 = vmul.f32 0.01, %v2707_v32 }
 0x400   :  { %v2955_v35 = vsel %vm2805_vm10, %v6576_v29, %v2880_v31 }
 0x401   :  { %v2953_v36 = vsel %vm2803_vm11, %v2707_v32, %v2878_v34  ;;  %v2994_v37 = vpack.c.bf16 %v2955_v35, %v2954_v30 }
 0x402   :  { %v2993_v38 = vpack.c.bf16 %v2953_v36, %v2952_v33 }
 0x403   :  { %v6579_v39 = vpop.f32.mrb[148].mxu1 }
 0x404   :  { %vm2808_vm12 = vcmp.gt.f32.partialorder %v6579_v39, 0.0  ;;  %v2883_v40 = vmul.f32 0.01, %v6579_v39  ;;  %v2720_v41 = vpop.f32.mrb[149].mxu1  ;;  %6665 = vmatprep.mubr.bf16.mxu0 %v2993_v38 }
 0x405   :  { %vm2806_vm13 = vcmp.gt.f32.partialorder %v2720_v41, 0.0  ;;  %v2881_v42 = vmul.f32 0.01, %v2720_v41  ;;  %v6580_v43 = vpop.f32.mrb[150].mxu1  ;;  %6666 = vmatmul.mubr.bf16.gmra.mrb[220].mxu0 %v2994_v37 }
 0x406   :  { %v2958_v44 = vsel %vm2808_vm12, %v6579_v39, %v2883_v40  ;;  %v2723_v45 = vpop.f32.mrb[151].mxu1 }
 0x407   :  { %v2956_v46 = vsel %vm2806_vm13, %v2720_v41, %v2881_v42  ;;  %vm2807_vm14 = vcmp.gt.f32.partialorder %v2723_v45, 0.0  ;;  %v2882_v47 = vmul.f32 0.01, %v2723_v45  ;;  %v2996_v48 = vpack.c.bf16 %v2958_v44, %v2958_v44 }
 0x409   :  { %v2957_v49 = vsel %vm2807_vm14, %v2723_v45, %v2882_v47 }
 0x40a   :  { %v2995_v50 = vpack.c.bf16 %v2957_v49, %v2956_v46 }
 0x40c   :  { %6669 = vmatprep.mubr.bf16.mxu0 %v2995_v50 }
 0x40d   :  { %6670 = vmatmul.mubr.bf16.gmra.mrb[224].mxu0 %v2996_v48 }
 0x450   :  { %v6599_v51 = vpop.f32.mrb[152].mxu0 }
 0x451   :  { %v3475_v52 = vmul.f32 0.01, %v6599_v51  ;;  %v3096_v53 = vpop.f32.mrb[153].mxu0  ;;  %vm3400_vm15 = vcmp.gt.f32.partialorder %v6599_v51, 0.0 }
 0x452   :  { %v3473_v54 = vmul.f32 0.01, %v3096_v53  ;;  %v6600_v55 = vpop.f32.mrb[154].mxu0  ;;  %vm3398_vm0 = vcmp.gt.f32.partialorder %v3096_v53, 0.0 }
 0x453   :  { %vm3401_vm1 = vcmp.gt.f32.partialorder %v6600_v55, 0.0  ;;  %v3476_v56 = vmul.f32 0.01, %v6600_v55  ;;  %v3099_v57 = vpop.f32.mrb[155].mxu0  ;;  %v3550_v59 = vsel %vm3400_vm15, %v6599_v51, %v3475_v52 }
 0x454   :  { %vm3399_vm2 = vcmp.gt.f32.partialorder %v3099_v57, 0.0  ;;  %v3474_v58 = vmul.f32 0.01, %v3099_v57  ;;  %v3548_v61 = vsel %vm3398_vm0, %v3096_v53, %v3473_v54 }
 0x455   :  { %v3551_v60 = vsel %vm3401_vm1, %v6600_v55, %v3476_v56 }
 0x456   :  { %v3624_v62 = vpack.c.bf16 %v3551_v60, %v3550_v59  ;;  %v3549_v63 = vsel %vm3399_vm2, %v3099_v57, %v3474_v58 }
 0x457   :  { %v3623_v0 = vpack.c.bf16 %v3549_v63, %v3548_v61 }
 0x458   :  { %v6603_v1 = vpop.f32.mrb[156].mxu0 }
 0x459   :  { %6689 = vmatprep.mubr.bf16.mxu0 %v3623_v0  ;;  %vm3404_vm3 = vcmp.gt.f32.partialorder %v6603_v1, 0.0  ;;  %v3479_v2 = vmul.f32 0.01, %v6603_v1  ;;  %v3112_v3 = vpop.f32.mrb[157].mxu0 }
 0x45a   :  { %6690 = vmatmul.mubr.bf16.vlgmr.msra.gmra.mrb[228].mxu0 %v3624_v62  ;;  %vm3402_vm4 = vcmp.gt.f32.partialorder %v3112_v3, 0.0  ;;  %v3477_v4 = vmul.f32 0.01, %v3112_v3  ;;  %v6604_v5 = vpop.f32.mrb[158].mxu0 }
 0x45b   :  { %v3554_v6 = vsel %vm3404_vm3, %v6603_v1, %v3479_v2  ;;  %vm3405_vm5 = vcmp.gt.f32.partialorder %v6604_v5, 0.0  ;;  %v3480_v7 = vmul.f32 0.01, %v6604_v5  ;;  %v3115_v8 = vpop.f32.mrb[159].mxu0 }
 0x45c   :  { %v3552_v9 = vsel %vm3402_vm4, %v3112_v3, %v3477_v4  ;;  %vm3403_vm6 = vcmp.gt.f32.partialorder %v3115_v8, 0.0  ;;  %v3478_v10 = vmul.f32 0.01, %v3115_v8 }
 0x45d   :  { %v3555_v11 = vsel %vm3405_vm5, %v6604_v5, %v3480_v7 }
 0x45e   :  { %v3626_v12 = vpack.c.bf16 %v3555_v11, %v3554_v6  ;;  %v3553_v13 = vsel %vm3403_vm6, %v3115_v8, %v3478_v10 }
 0x45f   :  { %v3625_v14 = vpack.c.bf16 %v3553_v13, %v3552_v9 }
 0x460   :  { %v6607_v15 = vpop.f32.mrb[160].mxu0 }
 0x461   :  { %6693 = vmatprep.mubr.bf16.mxu1 %v3625_v14  ;;  %vm3408_vm7 = vcmp.gt.f32.partialorder %v6607_v15, 0.0  ;;  %v3483_v16 = vmul.f32 0.01, %v6607_v15  ;;  %v3128_v17 = vpop.f32.mrb[161].mxu0 }
 0x462   :  { %6694 = vmatmul.mubr.bf16.vlgmr.msra.gmra.mrb[152].mxu1 %v3626_v12  ;;  %vm3406_vm8 = vcmp.gt.f32.partialorder %v3128_v17, 0.0  ;;  %v3481_v18 = vmul.f32 0.01, %v3128_v17  ;;  %v6608_v19 = vpop.f32.mrb[162].mxu0 }
 0x463   :  { %v3558_v20 = vsel %vm3408_vm7, %v6607_v15, %v3483_v16  ;;  %vm3409_vm9 = vcmp.gt.f32.partialorder %v6608_v19, 0.0  ;;  %v3484_v21 = vmul.f32 0.01, %v6608_v19  ;;  %v3131_v22 = vpop.f32.mrb[163].mxu0 }
 0x464   :  { %v3556_v23 = vsel %vm3406_vm8, %v3128_v17, %v3481_v18  ;;  %vm3407_vm10 = vcmp.gt.f32.partialorder %v3131_v22, 0.0  ;;  %v3482_v24 = vmul.f32 0.01, %v3131_v22 }
 0x465   :  { %v3559_v25 = vsel %vm3409_vm9, %v6608_v19, %v3484_v21 }
 0x466   :  { %v3557_v26 = vsel %vm3407_vm10, %v3131_v22, %v3482_v24  ;;  %v3628_v27 = vpack.c.bf16 %v3559_v25, %v3558_v20 }
 0x467   :  { %v3627_v28 = vpack.c.bf16 %v3557_v26, %v3556_v23 }
 0x468   :  { %v6611_v29 = vpop.f32.mrb[164].mxu0 }
 0x469   :  { %vm3412_vm11 = vcmp.gt.f32.partialorder %v6611_v29, 0.0  ;;  %v3487_v30 = vmul.f32 0.01, %v6611_v29  ;;  %v3144_v31 = vpop.f32.mrb[165].mxu0  ;;  %6697 = vmatprep.mubr.bf16.mxu1 %v3627_v28 }
 0x46a   :  { %vm3410_vm12 = vcmp.gt.f32.partialorder %v3144_v31, 0.0  ;;  %v3485_v32 = vmul.f32 0.01, %v3144_v31  ;;  %v6612_v33 = vpop.f32.mrb[166].mxu0  ;;  %6698 = vmatmul.mubr.bf16.gmra.mrb[156].mxu1 %v3628_v27 }
 0x46b   :  { %v3562_v34 = vsel %vm3412_vm11, %v6611_v29, %v3487_v30  ;;  %vm3413_vm13 = vcmp.gt.f32.partialorder %v6612_v33, 0.0  ;;  %v3488_v35 = vmul.f32 0.01, %v6612_v33  ;;  %v3147_v36 = vpop.f32.mrb[167].mxu0 }
 0x46c   :  { %v3560_v37 = vsel %vm3410_vm12, %v3144_v31, %v3485_v32  ;;  %vm3411_vm14 = vcmp.gt.f32.partialorder %v3147_v36, 0.0  ;;  %v3486_v38 = vmul.f32 0.01, %v3147_v36 }
 0x46d   :  { %v3563_v39 = vsel %vm3413_vm13, %v6612_v33, %v3488_v35 }
 0x46e   :  { %v3561_v40 = vsel %vm3411_vm14, %v3147_v36, %v3486_v38  ;;  %v3630_v41 = vpack.c.bf16 %v3563_v39, %v3562_v34 }
 0x46f   :  { %v3629_v42 = vpack.c.bf16 %v3561_v40, %v3560_v37 }
 0x470   :  { %v6615_v43 = vpop.f32.mrb[168].mxu0 }
 0x471   :  { %vm3416_vm15 = vcmp.gt.f32.partialorder %v6615_v43, 0.0  ;;  %v3491_v44 = vmul.f32 0.01, %v6615_v43  ;;  %v3160_v45 = vpop.f32.mrb[169].mxu0  ;;  %6701 = vmatprep.mubr.bf16.mxu1 %v3629_v42 }
 0x472   :  { %vm3414_vm0 = vcmp.gt.f32.partialorder %v3160_v45, 0.0  ;;  %v3489_v46 = vmul.f32 0.01, %v3160_v45  ;;  %v6616_v47 = vpop.f32.mrb[170].mxu0  ;;  %6702 = vmatmul.mubr.bf16.gmra.mrb[160].mxu1 %v3630_v41 }
 0x473   :  { %v3566_v48 = vsel %vm3416_vm15, %v6615_v43, %v3491_v44  ;;  %vm3417_vm1 = vcmp.gt.f32.partialorder %v6616_v47, 0.0  ;;  %v3492_v49 = vmul.f32 0.01, %v6616_v47  ;;  %v3163_v50 = vpop.f32.mrb[171].mxu0 }
 0x474   :  { %v3564_v51 = vsel %vm3414_vm0, %v3160_v45, %v3489_v46  ;;  %vm3415_vm2 = vcmp.gt.f32.partialorder %v3163_v50, 0.0  ;;  %v3490_v52 = vmul.f32 0.01, %v3163_v50 }
 0x475   :  { %v3567_v53 = vsel %vm3417_vm1, %v6616_v47, %v3492_v49 }
 0x476   :  { %v3565_v54 = vsel %vm3415_vm2, %v3163_v50, %v3490_v52  ;;  %v3632_v55 = vpack.c.bf16 %v3567_v53, %v3566_v48 }
 0x477   :  { %v3631_v56 = vpack.c.bf16 %v3565_v54, %v3564_v51 }
 0x478   :  { %v6619_v57 = vpop.f32.mrb[172].mxu0 }
 0x479   :  { %vm3420_vm3 = vcmp.gt.f32.partialorder %v6619_v57, 0.0  ;;  %v3495_v58 = vmul.f32 0.01, %v6619_v57  ;;  %v3176_v59 = vpop.f32.mrb[173].mxu0  ;;  %6705 = vmatprep.mubr.bf16.mxu1 %v3631_v56 }
 0x47a   :  { %vm3418_vm4 = vcmp.gt.f32.partialorder %v3176_v59, 0.0  ;;  %v3493_v60 = vmul.f32 0.01, %v3176_v59  ;;  %v6620_v61 = vpop.f32.mrb[174].mxu0  ;;  %6706 = vmatmul.mubr.bf16.gmra.mrb[164].mxu1 %v3632_v55 }
 0x47b   :  { %v3570_v62 = vsel %vm3420_vm3, %v6619_v57, %v3495_v58  ;;  %vm3421_vm5 = vcmp.gt.f32.partialorder %v6620_v61, 0.0  ;;  %v3496_v63 = vmul.f32 0.01, %v6620_v61  ;;  %v3179_v0 = vpop.f32.mrb[175].mxu0 }
 0x47c   :  { %v3568_v1 = vsel %vm3418_vm4, %v3176_v59, %v3493_v60  ;;  %vm3419_vm6 = vcmp.gt.f32.partialorder %v3179_v0, 0.0  ;;  %v3494_v2 = vmul.f32 0.01, %v3179_v0 }
 0x47d   :  { %v3571_v3 = vsel %vm3421_vm5, %v6620_v61, %v3496_v63 }
 0x47e   :  { %v3569_v4 = vsel %vm3419_vm6, %v3179_v0, %v3494_v2  ;;  %v3634_v5 = vpack.c.bf16 %v3571_v3, %v3570_v62 }
 0x47f   :  { %v3633_v6 = vpack.c.bf16 %v3569_v4, %v3568_v1 }
 0x480   :  { %v6623_v7 = vpop.f32.mrb[176].mxu0 }
 0x481   :  { %vm3424_vm7 = vcmp.gt.f32.partialorder %v6623_v7, 0.0  ;;  %v3499_v8 = vmul.f32 0.01, %v6623_v7  ;;  %v3192_v9 = vpop.f32.mrb[177].mxu0  ;;  %6709 = vmatprep.mubr.bf16.mxu1 %v3633_v6 }
 0x482   :  { %vm3422_vm8 = vcmp.gt.f32.partialorder %v3192_v9, 0.0  ;;  %v3497_v10 = vmul.f32 0.01, %v3192_v9  ;;  %v6624_v11 = vpop.f32.mrb[178].mxu0  ;;  %6710 = vmatmul.mubr.bf16.gmra.mrb[168].mxu1 %v3634_v5 }
 0x483   :  { %v3574_v12 = vsel %vm3424_vm7, %v6623_v7, %v3499_v8  ;;  %vm3425_vm9 = vcmp.gt.f32.partialorder %v6624_v11, 0.0  ;;  %v3500_v13 = vmul.f32 0.01, %v6624_v11  ;;  %v3195_v14 = vpop.f32.mrb[179].mxu0 }
 0x484   :  { %v3572_v15 = vsel %vm3422_vm8, %v3192_v9, %v3497_v10  ;;  %vm3423_vm10 = vcmp.gt.f32.partialorder %v3195_v14, 0.0  ;;  %v3498_v16 = vmul.f32 0.01, %v3195_v14 }
 0x485   :  { %v3575_v17 = vsel %vm3425_vm9, %v6624_v11, %v3500_v13 }
 0x486   :  { %v3573_v18 = vsel %vm3423_vm10, %v3195_v14, %v3498_v16  ;;  %v3636_v19 = vpack.c.bf16 %v3575_v17, %v3574_v12 }
 0x487   :  { %v3635_v20 = vpack.c.bf16 %v3573_v18, %v3572_v15 }
 0x488   :  { %v6627_v21 = vpop.f32.mrb[180].mxu0 }
 0x489   :  { %vm3428_vm11 = vcmp.gt.f32.partialorder %v6627_v21, 0.0  ;;  %v3503_v22 = vmul.f32 0.01, %v6627_v21  ;;  %v3208_v23 = vpop.f32.mrb[181].mxu0  ;;  %6713 = vmatprep.mubr.bf16.mxu1 %v3635_v20 }
 0x48a   :  { %vm3426_vm12 = vcmp.gt.f32.partialorder %v3208_v23, 0.0  ;;  %v3501_v24 = vmul.f32 0.01, %v3208_v23  ;;  %v6628_v25 = vpop.f32.mrb[182].mxu0  ;;  %6714 = vmatmul.mubr.bf16.gmra.mrb[172].mxu1 %v3636_v19 }
 0x48b   :  { %v3578_v26 = vsel %vm3428_vm11, %v6627_v21, %v3503_v22  ;;  %vm3429_vm13 = vcmp.gt.f32.partialorder %v6628_v25, 0.0  ;;  %v3504_v27 = vmul.f32 0.01, %v6628_v25  ;;  %v3211_v28 = vpop.f32.mrb[183].mxu0 }
 0x48c   :  { %v3576_v29 = vsel %vm3426_vm12, %v3208_v23, %v3501_v24  ;;  %vm3427_vm14 = vcmp.gt.f32.partialorder %v3211_v28, 0.0  ;;  %v3502_v30 = vmul.f32 0.01, %v3211_v28 }
 0x48d   :  { %v3579_v31 = vsel %vm3429_vm13, %v6628_v25, %v3504_v27 }
 0x48e   :  { %v3577_v32 = vsel %vm3427_vm14, %v3211_v28, %v3502_v30  ;;  %v3638_v33 = vpack.c.bf16 %v3579_v31, %v3578_v26 }
 0x48f   :  { %v3637_v34 = vpack.c.bf16 %v3577_v32, %v3576_v29 }
 0x490   :  { %v6631_v35 = vpop.f32.mrb[184].mxu0 }
 0x491   :  { %vm3432_vm15 = vcmp.gt.f32.partialorder %v6631_v35, 0.0  ;;  %v3507_v36 = vmul.f32 0.01, %v6631_v35  ;;  %v3224_v37 = vpop.f32.mrb[185].mxu0  ;;  %6717 = vmatprep.mubr.bf16.mxu1 %v3637_v34 }
 0x492   :  { %vm3430_vm0 = vcmp.gt.f32.partialorder %v3224_v37, 0.0  ;;  %v3505_v38 = vmul.f32 0.01, %v3224_v37  ;;  %v6632_v39 = vpop.f32.mrb[186].mxu0  ;;  %6718 = vmatmul.mubr.bf16.gmra.mrb[176].mxu1 %v3638_v33 }
 0x493   :  { %v3582_v40 = vsel %vm3432_vm15, %v6631_v35, %v3507_v36  ;;  %vm3433_vm1 = vcmp.gt.f32.partialorder %v6632_v39, 0.0  ;;  %v3508_v41 = vmul.f32 0.01, %v6632_v39  ;;  %v3227_v42 = vpop.f32.mrb[187].mxu0 }
 0x494   :  { %v3580_v43 = vsel %vm3430_vm0, %v3224_v37, %v3505_v38  ;;  %vm3431_vm2 = vcmp.gt.f32.partialorder %v3227_v42, 0.0  ;;  %v3506_v44 = vmul.f32 0.01, %v3227_v42 }
 0x495   :  { %v3583_v45 = vsel %vm3433_vm1, %v6632_v39, %v3508_v41 }
 0x496   :  { %v3581_v46 = vsel %vm3431_vm2, %v3227_v42, %v3506_v44  ;;  %v3640_v47 = vpack.c.bf16 %v3583_v45, %v3582_v40 }
 0x497   :  { %v3639_v48 = vpack.c.bf16 %v3581_v46, %v3580_v43 }
 0x498   :  { %v6635_v49 = vpop.f32.mrb[188].mxu0 }
 0x499   :  { %vm3436_vm3 = vcmp.gt.f32.partialorder %v6635_v49, 0.0  ;;  %v3511_v50 = vmul.f32 0.01, %v6635_v49  ;;  %v3240_v51 = vpop.f32.mrb[189].mxu0  ;;  %6721 = vmatprep.mubr.bf16.mxu1 %v3639_v48 }
 0x49a   :  { %vm3434_vm4 = vcmp.gt.f32.partialorder %v3240_v51, 0.0  ;;  %v3509_v52 = vmul.f32 0.01, %v3240_v51  ;;  %v6636_v53 = vpop.f32.mrb[190].mxu0  ;;  %6722 = vmatmul.mubr.bf16.gmra.mrb[180].mxu1 %v3640_v47 }
 0x49b   :  { %v3586_v54 = vsel %vm3436_vm3, %v6635_v49, %v3511_v50  ;;  %vm3437_vm5 = vcmp.gt.f32.partialorder %v6636_v53, 0.0  ;;  %v3512_v55 = vmul.f32 0.01, %v6636_v53  ;;  %v3243_v56 = vpop.f32.mrb[191].mxu0 }
 0x49c   :  { %v3584_v57 = vsel %vm3434_vm4, %v3240_v51, %v3509_v52  ;;  %vm3435_vm6 = vcmp.gt.f32.partialorder %v3243_v56, 0.0  ;;  %v3510_v58 = vmul.f32 0.01, %v3243_v56 }
 0x49d   :  { %v3587_v59 = vsel %vm3437_vm5, %v6636_v53, %v3512_v55 }
 0x49e   :  { %v3585_v60 = vsel %vm3435_vm6, %v3243_v56, %v3510_v58  ;;  %v3642_v61 = vpack.c.bf16 %v3587_v59, %v3586_v54 }
 0x49f   :  { %v3641_v62 = vpack.c.bf16 %v3585_v60, %v3584_v57 }
 0x4a0   :  { %v6639_v63 = vpop.f32.mrb[192].mxu0 }
 0x4a1   :  { %vm3440_vm7 = vcmp.gt.f32.partialorder %v6639_v63, 0.0  ;;  %v3515_v0 = vmul.f32 0.01, %v6639_v63  ;;  %v3256_v1 = vpop.f32.mrb[193].mxu0  ;;  %6725 = vmatprep.mubr.bf16.mxu1 %v3641_v62 }
 0x4a2   :  { %vm3438_vm8 = vcmp.gt.f32.partialorder %v3256_v1, 0.0  ;;  %v3513_v2 = vmul.f32 0.01, %v3256_v1  ;;  %v6640_v3 = vpop.f32.mrb[194].mxu0  ;;  %6726 = vmatmul.mubr.bf16.gmra.mrb[184].mxu1 %v3642_v61 }
 0x4a3   :  { %v3590_v4 = vsel %vm3440_vm7, %v6639_v63, %v3515_v0  ;;  %vm3441_vm9 = vcmp.gt.f32.partialorder %v6640_v3, 0.0  ;;  %v3516_v5 = vmul.f32 0.01, %v6640_v3  ;;  %v3259_v6 = vpop.f32.mrb[195].mxu0 }
 0x4a4   :  { %v3588_v7 = vsel %vm3438_vm8, %v3256_v1, %v3513_v2  ;;  %vm3439_vm10 = vcmp.gt.f32.partialorder %v3259_v6, 0.0  ;;  %v3514_v8 = vmul.f32 0.01, %v3259_v6 }
 0x4a5   :  { %v3591_v9 = vsel %vm3441_vm9, %v6640_v3, %v3516_v5 }
 0x4a6   :  { %v3589_v10 = vsel %vm3439_vm10, %v3259_v6, %v3514_v8  ;;  %v3644_v11 = vpack.c.bf16 %v3591_v9, %v3590_v4 }
 0x4a7   :  { %v3643_v12 = vpack.c.bf16 %v3589_v10, %v3588_v7 }
 0x4a8   :  { %v6643_v13 = vpop.f32.mrb[196].mxu0 }
 0x4a9   :  { %vm3444_vm11 = vcmp.gt.f32.partialorder %v6643_v13, 0.0  ;;  %v3519_v14 = vmul.f32 0.01, %v6643_v13  ;;  %v3272_v15 = vpop.f32.mrb[197].mxu0  ;;  %6729 = vmatprep.mubr.bf16.mxu1 %v3643_v12 }
 0x4aa   :  { %vm3442_vm12 = vcmp.gt.f32.partialorder %v3272_v15, 0.0  ;;  %v3517_v16 = vmul.f32 0.01, %v3272_v15  ;;  %v6644_v17 = vpop.f32.mrb[198].mxu0  ;;  %6730 = vmatmul.mubr.bf16.gmra.mrb[188].mxu1 %v3644_v11 }
 0x4ab   :  { %v3594_v18 = vsel %vm3444_vm11, %v6643_v13, %v3519_v14  ;;  %vm3445_vm13 = vcmp.gt.f32.partialorder %v6644_v17, 0.0  ;;  %v3520_v19 = vmul.f32 0.01, %v6644_v17  ;;  %v3275_v20 = vpop.f32.mrb[199].mxu0 }
 0x4ac   :  { %v3592_v21 = vsel %vm3442_vm12, %v3272_v15, %v3517_v16  ;;  %vm3443_vm14 = vcmp.gt.f32.partialorder %v3275_v20, 0.0  ;;  %v3518_v22 = vmul.f32 0.01, %v3275_v20 }
 0x4ad   :  { %v3595_v23 = vsel %vm3445_vm13, %v6644_v17, %v3520_v19 }
 0x4ae   :  { %v3593_v24 = vsel %vm3443_vm14, %v3275_v20, %v3518_v22  ;;  %v3646_v25 = vpack.c.bf16 %v3595_v23, %v3594_v18 }
 0x4af   :  { %v3645_v26 = vpack.c.bf16 %v3593_v24, %v3592_v21 }
 0x4b0   :  { %v6647_v27 = vpop.f32.mrb[200].mxu0 }
 0x4b1   :  { %vm3448_vm15 = vcmp.gt.f32.partialorder %v6647_v27, 0.0  ;;  %v3523_v28 = vmul.f32 0.01, %v6647_v27  ;;  %v3288_v29 = vpop.f32.mrb[201].mxu0  ;;  %6733 = vmatprep.mubr.bf16.mxu1 %v3645_v26 }
 0x4b2   :  { %vm3446_vm0 = vcmp.gt.f32.partialorder %v3288_v29, 0.0  ;;  %v3521_v30 = vmul.f32 0.01, %v3288_v29  ;;  %v6648_v31 = vpop.f32.mrb[202].mxu0  ;;  %6734 = vmatmul.mubr.bf16.gmra.mrb[192].mxu1 %v3646_v25 }
 0x4b3   :  { %v3598_v32 = vsel %vm3448_vm15, %v6647_v27, %v3523_v28  ;;  %vm3449_vm1 = vcmp.gt.f32.partialorder %v6648_v31, 0.0  ;;  %v3524_v33 = vmul.f32 0.01, %v6648_v31  ;;  %v3291_v34 = vpop.f32.mrb[203].mxu0 }
 0x4b4   :  { %v3596_v35 = vsel %vm3446_vm0, %v3288_v29, %v3521_v30  ;;  %vm3447_vm2 = vcmp.gt.f32.partialorder %v3291_v34, 0.0  ;;  %v3522_v36 = vmul.f32 0.01, %v3291_v34 }
 0x4b5   :  { %v3599_v37 = vsel %vm3449_vm1, %v6648_v31, %v3524_v33 }
 0x4b6   :  { %v3597_v38 = vsel %vm3447_vm2, %v3291_v34, %v3522_v36  ;;  %v3648_v39 = vpack.c.bf16 %v3599_v37, %v3598_v32 }
 0x4b7   :  { %v3647_v40 = vpack.c.bf16 %v3597_v38, %v3596_v35 }
 0x4b8   :  { %v6651_v41 = vpop.f32.mrb[204].mxu0 }
 0x4b9   :  { %vm3452_vm3 = vcmp.gt.f32.partialorder %v6651_v41, 0.0  ;;  %v3527_v42 = vmul.f32 0.01, %v6651_v41  ;;  %v3304_v43 = vpop.f32.mrb[205].mxu0  ;;  %6737 = vmatprep.mubr.bf16.mxu1 %v3647_v40 }
 0x4ba   :  { %vm3450_vm4 = vcmp.gt.f32.partialorder %v3304_v43, 0.0  ;;  %v3525_v44 = vmul.f32 0.01, %v3304_v43  ;;  %v6652_v45 = vpop.f32.mrb[206].mxu0  ;;  %6738 = vmatmul.mubr.bf16.gmra.mrb[196].mxu1 %v3648_v39 }
 0x4bb   :  { %v3602_v46 = vsel %vm3452_vm3, %v6651_v41, %v3527_v42  ;;  %vm3453_vm5 = vcmp.gt.f32.partialorder %v6652_v45, 0.0  ;;  %v3528_v47 = vmul.f32 0.01, %v6652_v45  ;;  %v3307_v48 = vpop.f32.mrb[207].mxu0 }
 0x4bc   :  { %v3600_v49 = vsel %vm3450_vm4, %v3304_v43, %v3525_v44  ;;  %vm3451_vm6 = vcmp.gt.f32.partialorder %v3307_v48, 0.0  ;;  %v3526_v50 = vmul.f32 0.01, %v3307_v48 }
 0x4bd   :  { %v3603_v51 = vsel %vm3453_vm5, %v6652_v45, %v3528_v47 }
 0x4be   :  { %v3601_v52 = vsel %vm3451_vm6, %v3307_v48, %v3526_v50  ;;  %v3650_v53 = vpack.c.bf16 %v3603_v51, %v3602_v46 }
 0x4bf   :  { %v3649_v54 = vpack.c.bf16 %v3601_v52, %v3600_v49 }
 0x4c0   :  { %v6655_v55 = vpop.f32.mrb[208].mxu0 }
 0x4c1   :  { %vm3456_vm7 = vcmp.gt.f32.partialorder %v6655_v55, 0.0  ;;  %v3531_v56 = vmul.f32 0.01, %v6655_v55  ;;  %v3320_v57 = vpop.f32.mrb[209].mxu0  ;;  %6741 = vmatprep.mubr.bf16.mxu1 %v3649_v54 }
 0x4c2   :  { %vm3454_vm8 = vcmp.gt.f32.partialorder %v3320_v57, 0.0  ;;  %v3529_v58 = vmul.f32 0.01, %v3320_v57  ;;  %v6656_v59 = vpop.f32.mrb[210].mxu0  ;;  %6742 = vmatmul.mubr.bf16.gmra.mrb[200].mxu1 %v3650_v53 }
 0x4c3   :  { %v3606_v60 = vsel %vm3456_vm7, %v6655_v55, %v3531_v56  ;;  %vm3457_vm9 = vcmp.gt.f32.partialorder %v6656_v59, 0.0  ;;  %v3532_v61 = vmul.f32 0.01, %v6656_v59  ;;  %v3323_v62 = vpop.f32.mrb[211].mxu0 }
 0x4c4   :  { %v3604_v63 = vsel %vm3454_vm8, %v3320_v57, %v3529_v58  ;;  %vm3455_vm10 = vcmp.gt.f32.partialorder %v3323_v62, 0.0  ;;  %v3530_v0 = vmul.f32 0.01, %v3323_v62 }
 0x4c5   :  { %v3607_v1 = vsel %vm3457_vm9, %v6656_v59, %v3532_v61 }
 0x4c6   :  { %v3605_v2 = vsel %vm3455_vm10, %v3323_v62, %v3530_v0  ;;  %v3652_v3 = vpack.c.bf16 %v3607_v1, %v3606_v60  ;;  %vm4211_vm10 = vcmask 261120  }
 0x4c7   :  { %v3651_v4 = vpack.c.bf16 %v3605_v2, %v3604_v63 }
 0x4c8   :  { %v6659_v5 = vpop.f32.mrb[212].mxu0 }
 0x4c9   :  { %vm3460_vm11 = vcmp.gt.f32.partialorder %v6659_v5, 0.0  ;;  %v3535_v6 = vmul.f32 0.01, %v6659_v5  ;;  %v3336_v7 = vpop.f32.mrb[213].mxu0  ;;  %6745 = vmatprep.mubr.bf16.mxu1 %v3651_v4 }
 0x4ca   :  { %vm3458_vm12 = vcmp.gt.f32.partialorder %v3336_v7, 0.0  ;;  %v3533_v8 = vmul.f32 0.01, %v3336_v7  ;;  %v6660_v9 = vpop.f32.mrb[214].mxu0  ;;  %6746 = vmatmul.mubr.bf16.gmra.mrb[204].mxu1 %v3652_v3 }
 0x4cb   :  { %v3610_v10 = vsel %vm3460_vm11, %v6659_v5, %v3535_v6  ;;  %vm3461_vm13 = vcmp.gt.f32.partialorder %v6660_v9, 0.0  ;;  %v3536_v11 = vmul.f32 0.01, %v6660_v9  ;;  %v3339_v12 = vpop.f32.mrb[215].mxu0  ;;  %vm5562_vm11 = vcmask 7168  }
 0x4cc   :  { %v3608_v13 = vsel %vm3458_vm12, %v3336_v7, %v3533_v8  ;;  %vm3459_vm14 = vcmp.gt.f32.partialorder %v3339_v12, 0.0  ;;  %v3534_v14 = vmul.f32 0.01, %v3339_v12  ;;  %vm5638_vm12 = vcmask 15360  }
 0x4cd   :  { %v3611_v15 = vsel %vm3461_vm13, %v6660_v9, %v3536_v11  ;;  %v4061_v11 = vld [vmem:[%s9564_s1] sm:$0xff]  ;;  %vm5714_vm13 = vcmask 23552  }
 0x4ce   :  { %v3609_v16 = vsel %vm3459_vm14, %v3339_v12, %v3534_v14  ;;  %v3654_v17 = vpack.c.bf16 %v3611_v15, %v3610_v10 }
 0x4cf   :  { %v3653_v18 = vpack.c.bf16 %v3609_v16, %v3608_v13  ;;  %v7301_v16 = vld [vmem:[%s9564_s1 + $0x8] sm:$0xff] }
 0x4d0   :  { %v6663_v19 = vpop.f32.mrb[216].mxu0  ;;  %9593 = vst [vmem:[#allocation2_spill] sm:$0xff] %v7301_v16 }
 0x4d1   :  { %vm3464_vm15 = vcmp.gt.f32.partialorder %v6663_v19, 0.0  ;;  %v3539_v20 = vmul.f32 0.01, %v6663_v19  ;;  %v3352_v21 = vpop.f32.mrb[217].mxu0  ;;  %6749 = vmatprep.mubr.bf16.mxu1 %v3653_v18 }
 0x4d2   :  { %vm3462_vm0 = vcmp.gt.f32.partialorder %v3352_v21, 0.0  ;;  %v3537_v22 = vmul.f32 0.01, %v3352_v21  ;;  %v6664_v23 = vpop.f32.mrb[218].mxu0  ;;  %6750 = vmatmul.mubr.bf16.gmra.mrb[208].mxu1 %v3654_v17 }
 0x4d3   :  { %v3614_v24 = vsel %vm3464_vm15, %v6663_v19, %v3539_v20  ;;  %vm3465_vm1 = vcmp.gt.f32.partialorder %v6664_v23, 0.0  ;;  %v3540_v25 = vmul.f32 0.01, %v6664_v23  ;;  %v3355_v26 = vpop.f32.mrb[219].mxu0 }
 0x4d4   :  { %v3612_v27 = vsel %vm3462_vm0, %v3352_v21, %v3537_v22  ;;  %vm3463_vm2 = vcmp.gt.f32.partialorder %v3355_v26, 0.0  ;;  %v3538_v28 = vmul.f32 0.01, %v3355_v26 }
 0x4d5   :  { %v3615_v29 = vsel %vm3465_vm1, %v6664_v23, %v3540_v25 }
 0x4d6   :  { %v3613_v30 = vsel %vm3463_vm2, %v3355_v26, %v3538_v28  ;;  %v3656_v31 = vpack.c.bf16 %v3615_v29, %v3614_v24  ;;  %v4063_v26 = vld [vmem:[%s9564_s1 + $0x10] sm:$0xff] }
 0x4d7   :  { %v3655_v32 = vpack.c.bf16 %v3613_v30, %v3612_v27 }
 0x4d8   :  { %v6667_v33 = vpop.f32.mrb[220].mxu0 }
 0x4d9   :  { %vm3468_vm3 = vcmp.gt.f32.partialorder %v6667_v33, 0.0  ;;  %v3543_v34 = vmul.f32 0.01, %v6667_v33  ;;  %v3368_v35 = vpop.f32.mrb[221].mxu0  ;;  %6753 = vmatprep.mubr.bf16.mxu1 %v3655_v32 }
 0x4da   :  { %vm3466_vm4 = vcmp.gt.f32.partialorder %v3368_v35, 0.0  ;;  %v3541_v36 = vmul.f32 0.01, %v3368_v35  ;;  %v6668_v37 = vpop.f32.mrb[222].mxu0  ;;  %6754 = vmatmul.mubr.bf16.gmra.mrb[212].mxu1 %v3656_v31  ;;  %v4064_v31 = vld [vmem:[%s9564_s1 + $0x18] sm:$0xff] }
 0x4db   :  { %v3618_v38 = vsel %vm3468_vm3, %v6667_v33, %v3543_v34  ;;  %vm3469_vm5 = vcmp.gt.f32.partialorder %v6668_v37, 0.0  ;;  %v3544_v39 = vmul.f32 0.01, %v6668_v37  ;;  %v3371_v40 = vpop.f32.mrb[223].mxu0 }
 0x4dc   :  { %v3616_v41 = vsel %vm3466_vm4, %v3368_v35, %v3541_v36  ;;  %vm3467_vm6 = vcmp.gt.f32.partialorder %v3371_v40, 0.0  ;;  %v3542_v42 = vmul.f32 0.01, %v3371_v40 }
 0x4dd   :  { %v3619_v43 = vsel %vm3469_vm5, %v6668_v37, %v3544_v39 }
 0x4de   :  { %v3617_v44 = vsel %vm3467_vm6, %v3371_v40, %v3542_v42  ;;  %v3658_v45 = vpack.c.bf16 %v3619_v43, %v3618_v38 }
 0x4df   :  { %v3657_v46 = vpack.c.bf16 %v3617_v44, %v3616_v41 }
 0x4e0   :  { %v6671_v47 = vpop.f32.mrb[224].mxu0 }
 0x4e1   :  { %vm3472_vm7 = vcmp.gt.f32.partialorder %v6671_v47, 0.0  ;;  %v3547_v48 = vmul.f32 0.01, %v6671_v47  ;;  %v3384_v49 = vpop.f32.mrb[225].mxu0  ;;  %6757 = vmatprep.mubr.bf16.mxu1 %v3657_v46 }
 0x4e2   :  { %vm3470_vm8 = vcmp.gt.f32.partialorder %v3384_v49, 0.0  ;;  %v3545_v50 = vmul.f32 0.01, %v3384_v49  ;;  %v6672_v51 = vpop.f32.mrb[226].mxu0  ;;  %6758 = vmatmul.mubr.bf16.gmra.mrb[216].mxu1 %v3658_v45 }
 0x4e3   :  { %v3622_v52 = vsel %vm3472_vm7, %v6671_v47, %v3547_v48  ;;  %v3387_v53 = vpop.f32.mrb[227].mxu0 }
 0x4e4   :  { %v3620_v54 = vsel %vm3470_vm8, %v3384_v49, %v3545_v50  ;;  %vm3471_vm9 = vcmp.gt.f32.partialorder %v3387_v53, 0.0  ;;  %v3546_v55 = vmul.f32 0.01, %v3387_v53  ;;  %v3660_v56 = vpack.c.bf16 %v3622_v52, %v3622_v52 }
 0x4e6   :  { %v3621_v57 = vsel %vm3471_vm9, %v3387_v53, %v3546_v55  ;;  %v4067_v55 = vld [vmem:[%s9564_s1 + $0x30] sm:$0xff] }
 0x4e7   :  { %v3659_v58 = vpack.c.bf16 %v3621_v57, %v3620_v54 }
 0x4e9   :  { %6761 = vmatprep.mubr.bf16.mxu1 %v3659_v58 }
 0x4ea   :  { %6762 = vmatmul.mubr.bf16.gmra.mrb[220].mxu1 %v3660_v56 }
 0x52d   :  { %v6691_v59 = vpop.f32.mrb[228].mxu0 }
 0x52e   :  { %4516 = vrot.lane.b32.xlu1 %v6691_v59, %s6926_s4  ;;  %v3759_v60 = vpop.f32.mrb[229].mxu0  ;;  %v4138_v30 = vmul.f32 %v6691_v59, %v4063_v26 }
 0x52f   :  { %v6692_v61 = vpop.f32.mrb[230].mxu0  ;;  %v4136_v14 = vmul.f32 %v4061_v11, %v3759_v60 }
 0x530   :  { %v3762_v62 = vpop.f32.mrb[231].mxu0  ;;  %v4218_v32 = vsel %vm4211_vm10, %v4138_v30, 0.0  ;;  %v4139_v33 = vmul.f32 %v6692_v61, %v4064_v31  ;;  %v7416_v30 = vld [vmem:[%s9564_s1 + $0x38] sm:$0xff] }
 0x531   :  { %4514 = vrot.lane.b32.xlu0 %v3762_v62, %s6926_s4  ;;  %v4137_v18 = vmul.f32 %v7301_v16, %v3762_v62  ;;  %v4212_v19 = vsel %vm4211_vm10, %v4136_v14, 0.0  ;;  %9594 = vst [vmem:[#allocation3_spill] sm:$0xff] %v7416_v30 }
 0x532   :  { %5041 = vrot.lane.b32.xlu1 %v6691_v59, %s6927_s16  ;;  %v4221_v38 = vsel %vm4211_vm10, %v4139_v33, 0.0 }
 0x533   :  { %v4215_v22 = vsel %vm4211_vm10, %v4137_v18, 0.0 }
 0x535   :  { %5039 = vrot.lane.b32.xlu0 %v3762_v62, %s6927_s16  ;;  %v7261_v63 = vpop.f32.mrb[152].mxu1 }
 0x536   :  { %4512 = vrot.lane.b32.xlu1 %v3759_v60, %s6926_s4  ;;  %v7264_v0 = vpop.f32.mrb[153].mxu1  ;;  %v4142_v56 = vmul.f32 %v7261_v63, %v4067_v55 }
 0x537   :  { %v7266_v1 = vpop.f32.mrb[154].mxu1 }
 0x538   :  { %v7268_v2 = vpop.f32.mrb[155].mxu1 }
 0x53a   :  { %5037 = vrot.lane.b32.xlu1 %v3759_v60, %s6927_s16  ;;  %v4230_v60 = vsel %vm4211_vm10, %v4142_v56, 0.0 }
 0x53d   :  { %v7271_v3 = vpop.f32.mrb[156].mxu1 }
 0x53e   :  { %4518 = vrot.lane.b32.xlu1 %v6692_v61, %s6926_s4  ;;  %v7274_v4 = vpop.f32.mrb[157].mxu1 }
 0x53f   :  { %v7276_v5 = vpop.f32.mrb[158].mxu1 }
 0x540   :  { %v7278_v6 = vpop.f32.mrb[159].mxu1 }
 0x542   :  { %5043 = vrot.lane.b32.xlu1 %v6692_v61, %s6927_s16 }
 0x545   :  { %v7281_v7 = vpop.f32.mrb[160].mxu1 }
 0x546   :  { %v7283_v8 = vpop.f32.mrb[161].mxu1 }
 0x547   :  { %v7285_v9 = vpop.f32.mrb[162].mxu1 }
 0x548   :  { %v7287_v10 = vpop.f32.mrb[163].mxu1 }
 0x54d   :  { %v7292_v12 = vpop.f32.mrb[164].mxu1 }
 0x54e   :  { %v7294_v13 = vpop.f32.mrb[165].mxu1 }
 0x54f   :  { %v7296_v15 = vpop.f32.mrb[166].mxu1 }
 0x550   :  { %v7303_v17 = vpop.f32.mrb[167].mxu1 }
 0x554   :  { %4213 = vadd.xlane.f32.xlu0 %v4212_v19 }
 0x555   :  { %v7307_v20 = vpop.f32.mrb[168].mxu1 }
 0x556   :  { %v7309_v21 = vpop.f32.mrb[169].mxu1 }
 0x557   :  { %v7312_v23 = vpop.f32.mrb[170].mxu1 }
 0x558   :  { %4216 = vadd.xlane.f32.xlu0 %v4215_v22  ;;  %v7314_v24 = vpop.f32.mrb[171].mxu1 }
 0x55d   :  { %v7316_v25 = vpop.f32.mrb[172].mxu1 }
 0x55e   :  { %v7321_v27 = vpop.f32.mrb[173].mxu1 }
 0x55f   :  { %v7323_v28 = vpop.f32.mrb[174].mxu1 }
 0x560   :  { %v7325_v29 = vpop.f32.mrb[175].mxu1 }
 0x565   :  { %v7331_v34 = vpop.f32.mrb[176].mxu1 }
 0x566   :  { %4219 = vadd.xlane.f32.xlu1 %v4218_v32  ;;  %v7333_v35 = vpop.f32.mrb[177].mxu1  ;;  %v4143_v32 = vmul.f32 %v7266_v1, %v7416_v30 }
 0x567   :  { %v7335_v36 = vpop.f32.mrb[178].mxu1 }
 0x568   :  { %v7337_v37 = vpop.f32.mrb[179].mxu1 }
 0x56a   :  { %4222 = vadd.xlane.f32.xlu1 %v4221_v38  ;;  %v7429_v38 = vld [vmem:[%s9564_s1 + $0x28] sm:$0xff] }
 0x56b   :  { %9597 = vst [vmem:[#allocation6_spill] sm:$0xff] %v7429_v38  ;;  %v4141_v16 = vmul.f32 %v7429_v38, %v7268_v2 }
 0x56d   :  { %v7340_v39 = vpop.f32.mrb[180].mxu1  ;;  %v4227_v30 = vsel %vm4211_vm10, %v4141_v16, 0.0 }
 0x56e   :  { %4526 = vrot.lane.b32.xlu0 %v7266_v1, %s6926_s4  ;;  %v7344_v40 = vpop.f32.mrb[181].mxu1 }
 0x56f   :  { %v7346_v41 = vpop.f32.mrb[182].mxu1 }
 0x570   :  { %v7348_v42 = vpop.f32.mrb[183].mxu1 }
 0x572   :  { %5051 = vrot.lane.b32.xlu0 %v7266_v1, %s6927_s16 }
 0x575   :  { %v7352_v43 = vpop.f32.mrb[184].mxu1 }
 0x576   :  { %v7354_v44 = vpop.f32.mrb[185].mxu1 }
 0x577   :  { %v7356_v45 = vpop.f32.mrb[186].mxu1 }
 0x578   :  { %v7358_v46 = vpop.f32.mrb[187].mxu1 }
 0x57b   :  { %4524 = vrot.lane.b32.xlu1 %v7261_v63, %s6926_s4 }
 0x57d   :  { %v7362_v47 = vpop.f32.mrb[188].mxu1 }
 0x57e   :  { %v7364_v48 = vpop.f32.mrb[189].mxu1 }
 0x57f   :  { %5049 = vrot.lane.b32.xlu1 %v7261_v63, %s6927_s16  ;;  %v7368_v49 = vpop.f32.mrb[190].mxu1 }
 0x580   :  { %v7370_v50 = vpop.f32.mrb[191].mxu1 }
 0x583   :  { %4520 = vrot.lane.b32.xlu1 %v7264_v0, %s6926_s4 }
 0x585   :  { %v7374_v51 = vpop.f32.mrb[192].mxu1 }
 0x586   :  { %v7376_v52 = vpop.f32.mrb[193].mxu1 }
 0x587   :  { %5045 = vrot.lane.b32.xlu1 %v7264_v0, %s6927_s16  ;;  %v7380_v53 = vpop.f32.mrb[194].mxu1 }
 0x588   :  { %v7382_v54 = vpop.f32.mrb[195].mxu1 }
 0x58d   :  { %v7388_v57 = vpop.f32.mrb[196].mxu1 }
 0x58e   :  { %v7390_v58 = vpop.f32.mrb[197].mxu1 }
 0x58f   :  { %v7392_v59 = vpop.f32.mrb[198].mxu1 }
 0x590   :  { %v7395_v61 = vpop.f32.mrb[199].mxu1 }
 0x591   :  { %4231 = vadd.xlane.f32.xlu0 %v4230_v60  ;;  %v4233_v60 = vsel %vm4211_vm10, %v4143_v32, 0.0 }
 0x595   :  { %v7397_v62 = vpop.f32.mrb[200].mxu1 }
 0x596   :  { %v7399_v11 = vpop.f32.mrb[201].mxu1 }
 0x597   :  { %v7401_v14 = vpop.f32.mrb[202].mxu1 }
 0x598   :  { %v7403_v18 = vpop.f32.mrb[203].mxu1 }
 0x59d   :  { %v7405_v63 = vpop.f32.mrb[204].mxu1 }
 0x59e   :  { %v7407_v19 = vpop.f32.mrb[205].mxu1 }
 0x59f   :  { %v7409_v22 = vpop.f32.mrb[206].mxu1 }
 0x5a0   :  { %v7411_v26 = vpop.f32.mrb[207].mxu1 }
 0x5a5   :  { %v7418_v31 = vpop.f32.mrb[208].mxu1 }
 0x5a6   :  { %9595 = vst [vmem:[#allocation4_spill] sm:$0xff] %v7418_v31  ;;  %v7422_v33 = vpop.f32.mrb[209].mxu1 }
 0x5a7   :  { %9596 = vst [vmem:[#allocation5_spill] sm:$0xff] %v7422_v33  ;;  %4522 = vrot.lane.b32.xlu0 %v7268_v2, %s6926_s4  ;;  %v7431_v55 = vpop.f32.mrb[210].mxu1 }
 0x5a8   :  { %9598 = vst [vmem:[#allocation7_spill] sm:$0xff] %v7431_v55  ;;  %v7433_v56 = vpop.f32.mrb[211].mxu1 }
 0x5a9   :  { %9599 = vst [vmem:[#allocation8_spill] sm:$0xff] %v7433_v56 }
 0x5ab   :  { %4234 = vadd.xlane.f32.xlu1 %v4233_v60  ;;  %5047 = vrot.lane.b32.xlu0 %v7268_v2, %s6927_s16 }
 0x5ad   :  { %v7440_v1 = vpop.f32.mrb[212].mxu1 }
 0x5ae   :  { %9600 = vst [vmem:[#allocation9_spill] sm:$0xff] %v7440_v1  ;;  %v7443_v33 = vpop.f32.mrb[213].mxu1 }
 0x5af   :  { %4228 = vadd.xlane.f32.xlu1 %v4227_v30  ;;  %v7445_v31 = vpop.f32.mrb[214].mxu1 }
 0x5b0   :  { %v7447_v55 = vpop.f32.mrb[215].mxu1 }
 0x5b5   :  { %v7449_v56 = vpop.f32.mrb[216].mxu1 }
 0x5b6   :  { %9601 = vst [vmem:[#allocation10_spill] sm:$0xff] %v7449_v56  ;;  %v7451_v32 = vpop.f32.mrb[217].mxu1  ;;  %v4065_v56 = vld [vmem:[%s9564_s1 + $0x20] sm:$0xff] }
 0x5b7   :  { %9602 = vst [vmem:[#allocation11_spill] sm:$0xff] %v7451_v32  ;;  %v7453_v38 = vpop.f32.mrb[218].mxu1 }
 0x5b8   :  { %9603 = vst [vmem:[#allocation12_spill] sm:$0xff] %v7453_v38  ;;  %v7455_v60 = vpop.f32.mrb[219].mxu1  ;;  %v4140_v38 = vmul.f32 %v4065_v56, %v7264_v0 }
 0x5b9   :  { %9604 = vst [vmem:[#allocation13_spill] sm:$0xff] %v7455_v60 }
 0x5bd   :  { %v7457_v2 = vpop.f32.mrb[220].mxu1 }
 0x5be   :  { %9605 = vst [vmem:[#allocation14_spill] sm:$0xff] %v7457_v2  ;;  %v7459_v1 = vpop.f32.mrb[221].mxu1  ;;  %v4071_v2 = vld [vmem:[%s9564_s1 + $0x50] sm:$0xff] }
 0x5bf   :  { %9606 = vst [vmem:[#allocation15_spill] sm:$0xff] %v7459_v1  ;;  %v6764_v16 = vpop.f32.mrb[222].mxu1  ;;  %v4224_v1 = vsel %vm4211_vm10, %v4140_v38, 0.0  ;;  %v7490_v38 = vld [vmem:[%s9564_s1 + $0x48] sm:$0xff] }
 0x5c0   :  { %4532 = vrot.lane.b32.xlu1 %v7271_v3, %s6926_s4  ;;  %v7463_v30 = vpop.f32.mrb[223].mxu1  ;;  %v7483_v16 = vld [vmem:[%s9564_s1 + $0x58] sm:$0xff] }
 0x5c1   :  { %9607 = vst [vmem:[#allocation16_spill] sm:$0xff] %v7463_v30  ;;  %v4147_v0 = vmul.f32 %v7276_v5, %v7483_v16 }
 0x5c3   :  { %v4245_v56 = vsel %vm4211_vm10, %v4147_v0, 0.0 }
 0x5c4   :  { %5057 = vrot.lane.b32.xlu1 %v7271_v3, %s6927_s16 }
 0x5c8   :  { %4528 = vrot.lane.b32.xlu1 %v7274_v4, %s6926_s4 }
 0x5ca   :  { %4225 = vadd.xlane.f32.xlu0 %v4224_v1  ;;  %v4145_v1 = vmul.f32 %v7490_v38, %v7278_v6 }
 0x5cc   :  { %5053 = vrot.lane.b32.xlu1 %v7274_v4, %s6927_s16  ;;  %v4239_v30 = vsel %vm4211_vm10, %v4145_v1, 0.0 }
 0x5e0   :  { %4534 = vrot.lane.b32.xlu0 %v7276_v5, %s6926_s4 }
 0x5e4   :  { %5059 = vrot.lane.b32.xlu0 %v7276_v5, %s6927_s16  ;;  %v4146_v5 = vmul.f32 %v7271_v3, %v4071_v2  ;;  %v4076_v3 = vld [vmem:[%s9564_s1 + $0x78] sm:$0xff]  ;;  %v4074_v2 = vld [vmem:[%s9564_s1 + $0x68] sm:$0xff] }
 0x5e5   :  { %v4149_v0 = vmul.f32 %v4074_v2, %v7287_v10 }
 0x5e6   :  { %v4242_v60 = vsel %vm4211_vm10, %v4146_v5, 0.0 }
 0x5e7   :  { %v4251_v1 = vsel %vm4211_vm10, %v4149_v0, 0.0  ;;  %v4078_v0 = vld [vmem:[%s9564_s1 + $0x88] sm:$0xff] }
 0x5f0   :  { %4246 = vadd.xlane.f32.xlu1 %v4245_v56  ;;  %v4069_v56 = vld [vmem:[%s9564_s1 + $0x40] sm:$0xff] }
 0x5f4   :  { %4240 = vadd.xlane.f32.xlu1 %v4239_v30 }
 0x603   :  { %4243 = vadd.xlane.f32.xlu0 %v4242_v60  ;;  %v4151_v60 = vmul.f32 %v7285_v9, %v4076_v3 }
 0x605   :  { %4540 = vrot.lane.b32.xlu1 %v7281_v7, %s6926_s4  ;;  %v4257_v30 = vsel %vm4211_vm10, %v4151_v60, 0.0  ;;  %v4080_v60 = vld [vmem:[%s9564_s1 + $0x98] sm:$0xff] }
 0x609   :  { %5065 = vrot.lane.b32.xlu1 %v7281_v7, %s6927_s16 }
 0x60d   :  { %4536 = vrot.lane.b32.xlu1 %v7283_v8, %s6926_s4 }
 0x611   :  { %5061 = vrot.lane.b32.xlu1 %v7283_v8, %s6927_s16 }
 0x619   :  { %4530 = vrot.lane.b32.xlu0 %v7278_v6, %s6926_s4 }
 0x61d   :  { %5055 = vrot.lane.b32.xlu0 %v7278_v6, %s6927_s16  ;;  %v4144_v6 = vmul.f32 %v4069_v56, %v7274_v4  ;;  %v4075_v4 = vld [vmem:[%s9564_s1 + $0x70] sm:$0xff]  ;;  %v4153_v56 = vmul.f32 %v4078_v0, %v7303_v17 }
 0x61e   :  { %v4150_v3 = vmul.f32 %v7281_v7, %v4075_v4 }
 0x61f   :  { %v4236_v5 = vsel %vm4211_vm10, %v4144_v6, 0.0  ;;  %v4263_v7 = vsel %vm4211_vm10, %v4153_v56, 0.0  ;;  %v4073_v6 = vld [vmem:[%s9564_s1 + $0x60] sm:$0xff] }
 0x620   :  { %v4254_v2 = vsel %vm4211_vm10, %v4150_v3, 0.0  ;;  %v4082_v3 = vld [vmem:[%s9564_s1 + $0xa8] sm:$0xff] }
 0x635   :  { %4258 = vadd.xlane.f32.xlu1 %v4257_v30  ;;  %v4155_v30 = vmul.f32 %v7296_v15, %v4080_v60 }
 0x639   :  { %4252 = vadd.xlane.f32.xlu1 %v4251_v1  ;;  %v4148_v1 = vmul.f32 %v4073_v6, %v7283_v8 }
 0x63c   :  { %4237 = vadd.xlane.f32.xlu0 %v4236_v5  ;;  %v4248_v5 = vsel %vm4211_vm10, %v4148_v1, 0.0 }
 0x64a   :  { %4548 = vrot.lane.b32.xlu1 %v7292_v12, %s6926_s4 }
 0x64e   :  { %5073 = vrot.lane.b32.xlu1 %v7292_v12, %s6927_s16 }
 0x652   :  { %4544 = vrot.lane.b32.xlu1 %v7294_v13, %s6926_s4  ;;  %4542 = vrot.lane.b32.xlu0 %v7285_v9, %s6926_s4 }
 0x656   :  { %5069 = vrot.lane.b32.xlu1 %v7294_v13, %s6927_s16  ;;  %5067 = vrot.lane.b32.xlu0 %v7285_v9, %s6927_s16  ;;  %v4269_v9 = vsel %vm4211_vm10, %v4155_v30, 0.0  ;;  %v4079_v30 = vld [vmem:[%s9564_s1 + $0x90] sm:$0xff] }
 0x657   :  { %v4154_v0 = vmul.f32 %v7292_v12, %v4079_v30  ;;  %v7640_v30 = vpop.permute.xlu1 %4516 }
 0x675   :  { %4255 = vadd.xlane.f32.xlu0 %v4254_v2  ;;  %v4157_v2 = vmul.f32 %v4082_v3, %v7314_v24  ;;  %v4090_v3 = vld [vmem:[%s9564_s1 + $0xe8] sm:$0xff] }
 0x677   :  { %v4275_v8 = vsel %vm4211_vm10, %v4157_v2, 0.0 }
 0x67a   :  { %4270 = vadd.xlane.f32.xlu1 %v4269_v9  ;;  %v4088_v9 = vld [vmem:[%s9564_s1 + $0xd8] sm:$0xff] }
 0x67b   :  { %v4163_v56 = vmul.f32 %v7323_v28, %v4088_v9 }
 0x67d   :  { %v4293_v12 = vsel %vm4211_vm10, %v4163_v56, 0.0 }
 0x67e   :  { %4264 = vadd.xlane.f32.xlu1 %v4263_v7  ;;  %v4086_v7 = vld [vmem:[%s9564_s1 + $0xc8] sm:$0xff] }
 0x67f   :  { %v4161_v6 = vmul.f32 %v4086_v7, %v7325_v29 }
 0x681   :  { %v4287_v1 = vsel %vm4211_vm10, %v4161_v6, 0.0 }
 0x68b   :  { %4538 = vrot.lane.b32.xlu0 %v7287_v10, %s6926_s4 }
 0x68f   :  { %4556 = vrot.lane.b32.xlu1 %v7307_v20, %s6926_s4  ;;  %5063 = vrot.lane.b32.xlu0 %v7287_v10, %s6927_s16  ;;  %v4084_v10 = vld [vmem:[%s9564_s1 + $0xb8] sm:$0xff] }
 0x690   :  { %v4159_v4 = vmul.f32 %v7312_v23, %v4084_v10 }
 0x692   :  { %v4281_v60 = vsel %vm4211_vm10, %v4159_v4, 0.0 }
 0x693   :  { %5081 = vrot.lane.b32.xlu1 %v7307_v20, %s6927_s16 }
 0x697   :  { %4552 = vrot.lane.b32.xlu1 %v7309_v21, %s6926_s4 }
 0x69b   :  { %5077 = vrot.lane.b32.xlu1 %v7309_v21, %s6927_s16 }
 0x6ae   :  { %4249 = vadd.xlane.f32.xlu0 %v4248_v5  ;;  %v4077_v5 = vld [vmem:[%s9564_s1 + $0x80] sm:$0xff] }
 0x6af   :  { %v4152_v10 = vmul.f32 %v4077_v5, %v7294_v13  ;;  %v4092_v13 = vld [vmem:[%s9564_s1 + $0xf8] sm:$0xff]  ;;  %v4081_v5 = vld [vmem:[%s9564_s1 + $0xa0] sm:$0xff] }
 0x6b0   :  { %v4167_v4 = vmul.f32 %v7335_v36, %v4092_v13 }
 0x6b2   :  { %v4305_v2 = vsel %vm4211_vm10, %v4167_v4, 0.0 }
 0x6bf   :  { %4282 = vadd.xlane.f32.xlu1 %v4281_v60  ;;  %v4165_v60 = vmul.f32 %v4090_v3, %v7337_v37 }
 0x6c3   :  { %4276 = vadd.xlane.f32.xlu1 %v4275_v8  ;;  %v4299_v8 = vsel %vm4211_vm10, %v4165_v60, 0.0 }
 0x6c4   :  { %4550 = vrot.lane.b32.xlu0 %v7296_v15, %s6926_s4 }
 0x6c8   :  { %5075 = vrot.lane.b32.xlu0 %v7296_v15, %s6927_s16  ;;  %v4266_v15 = vsel %vm4211_vm10, %v4154_v0, 0.0 }
 0x6d4   :  { %4564 = vrot.lane.b32.xlu1 %v7316_v25, %s6926_s4 }
 0x6d8   :  { %5089 = vrot.lane.b32.xlu1 %v7316_v25, %s6927_s16 }
 0x6dc   :  { %4560 = vrot.lane.b32.xlu1 %v7321_v27, %s6926_s4 }
 0x6e0   :  { %5085 = vrot.lane.b32.xlu1 %v7321_v27, %s6927_s16 }
 0x6e7   :  { %4267 = vadd.xlane.f32.xlu0 %v4266_v15  ;;  %v7646_v15 = vpop.permute.xlu1 %5041 }
 0x6eb   :  { %v7649_v56 = vpop.permute.xlu1 %4512 }
 0x6ef   :  { %v7655_v7 = vpop.permute.xlu1 %5037 }
 0x6fd   :  { %4546 = vrot.lane.b32.xlu0 %v7303_v17, %s6926_s4 }
 0x701   :  { %5071 = vrot.lane.b32.xlu0 %v7303_v17, %s6927_s16  ;;  %v4260_v17 = vsel %vm4211_vm10, %v4152_v10, 0.0 }
 0x704   :  { %4294 = vadd.xlane.f32.xlu1 %v4293_v12  ;;  %v7659_v12 = vpop.permute.xlu1 %4518 }
 0x708   :  { %4288 = vadd.xlane.f32.xlu1 %v4287_v1  ;;  %v4094_v1 = vld [vmem:[%s9564_s1 + $0x108] sm:$0xff]  ;;  %v7680_v13 = vpop.permute.xlu1 %5043 }
 0x709   :  { %v4169_v10 = vmul.f32 %v4094_v1, %v7348_v42  ;;  %v4098_v1 = vld [vmem:[%s9564_s1 + $0x128] sm:$0xff] }
 0x70b   :  { %v4311_v4 = vsel %vm4211_vm10, %v4169_v10, 0.0 }
 0x70c   :  { %v7684_v60 = vpop.xlane.xlu1 %4219 }
 0x719   :  { %4572 = vrot.lane.b32.xlu1 %v7331_v34, %s6926_s4 }
 0x71d   :  { %5097 = vrot.lane.b32.xlu1 %v7331_v34, %s6927_s16 }
 0x720   :  { %4261 = vadd.xlane.f32.xlu0 %v4260_v17 }
 0x721   :  { %4568 = vrot.lane.b32.xlu1 %v7333_v35, %s6926_s4 }
 0x725   :  { %5093 = vrot.lane.b32.xlu1 %v7333_v35, %s6927_s16 }
 0x736   :  { %4558 = vrot.lane.b32.xlu0 %v7312_v23, %s6926_s4 }
 0x73a   :  { %5083 = vrot.lane.b32.xlu0 %v7312_v23, %s6927_s16  ;;  %v4083_v23 = vld [vmem:[%s9564_s1 + $0xb0] sm:$0xff] }
 0x73b   :  { %v4158_v0 = vmul.f32 %v7307_v20, %v4083_v23  ;;  %v4096_v20 = vld [vmem:[%s9564_s1 + $0x118] sm:$0xff] }
 0x73c   :  { %v4171_v6 = vmul.f32 %v7346_v41, %v4096_v20 }
 0x73d   :  { %v4278_v9 = vsel %vm4211_vm10, %v4158_v0, 0.0  ;;  %v4087_v0 = vld [vmem:[%s9564_s1 + $0xd0] sm:$0xff] }
 0x73e   :  { %v4317_v17 = vsel %vm4211_vm10, %v4171_v6, 0.0  ;;  %v4100_v6 = vld [vmem:[%s9564_s1 + $0x138] sm:$0xff] }
 0x749   :  { %4306 = vadd.xlane.f32.xlu1 %v4305_v2  ;;  %v7686_v2 = vpop.xlane.xlu1 %4222 }
 0x74d   :  { %4300 = vadd.xlane.f32.xlu1 %v4299_v8  ;;  %v7688_v8 = vpop.permute.xlu1 %4524 }
 0x759   :  { %4279 = vadd.xlane.f32.xlu0 %v4278_v9  ;;  %v4162_v9 = vmul.f32 %v7316_v25, %v4087_v0 }
 0x75b   :  { %v4290_v20 = vsel %vm4211_vm10, %v4162_v9, 0.0 }
 0x75e   :  { %4580 = vrot.lane.b32.xlu1 %v7340_v39, %s6926_s4 }
 0x762   :  { %5105 = vrot.lane.b32.xlu1 %v7340_v39, %s6927_s16 }
 0x766   :  { %4576 = vrot.lane.b32.xlu1 %v7344_v40, %s6926_s4 }
 0x76a   :  { %5101 = vrot.lane.b32.xlu1 %v7344_v40, %s6927_s16 }
 0x76f   :  { %4554 = vrot.lane.b32.xlu0 %v7314_v24, %s6926_s4 }
 0x773   :  { %5079 = vrot.lane.b32.xlu0 %v7314_v24, %s6927_s16  ;;  %v4156_v24 = vmul.f32 %v4081_v5, %v7309_v21  ;;  %v7696_v21 = vpop.permute.xlu1 %5049  ;;  %v4173_v5 = vmul.f32 %v4098_v1, %v7358_v46 }
 0x775   :  { %v4272_v3 = vsel %vm4211_vm10, %v4156_v24, 0.0  ;;  %v4323_v25 = vsel %vm4211_vm10, %v4173_v5, 0.0  ;;  %v4102_v5 = vld [vmem:[%s9564_s1 + $0x148] sm:$0xff] }
 0x777   :  { %v7702_v23 = vpop.permute.xlu1 %4520 }
 0x78e   :  { %4318 = vadd.xlane.f32.xlu1 %v4317_v17  ;;  %v7720_v17 = vpop.permute.xlu1 %5045 }
 0x792   :  { %4312 = vadd.xlane.f32.xlu1 %v4311_v4  ;;  %4273 = vadd.xlane.f32.xlu0 %v4272_v3  ;;  %v7723_v24 = vpop.xlane.xlu1 %4234 }
 0x796   :  { %v7727_v4 = vpop.xlane.xlu1 %4228 }
 0x79a   :  { %v7731_v3 = vpop.permute.xlu1 %4532 }
 0x79b   :  { %9608 = vst [vmem:[#allocation17_spill] sm:$0xff] %v7731_v3 }
 0x79e   :  { %v7737_v0 = vpop.permute.xlu1 %5057 }
 0x79f   :  { %9609 = vst [vmem:[#allocation18_spill] sm:$0xff] %v7737_v0 }
 0x7a2   :  { %v7741_v9 = vpop.permute.xlu1 %4528 }
 0x7a3   :  { %4588 = vrot.lane.b32.xlu1 %v7352_v43, %s6926_s4  ;;  %9610 = vst [vmem:[#allocation19_spill] sm:$0xff] %v7741_v9 }
 0x7a6   :  { %v7759_v9 = vpop.permute.xlu1 %5053 }
 0x7a7   :  { %5113 = vrot.lane.b32.xlu1 %v7352_v43, %s6927_s16  ;;  %9611 = vst [vmem:[#allocation20_spill] sm:$0xff] %v7759_v9 }
 0x7a8   :  { %4566 = vrot.lane.b32.xlu0 %v7323_v28, %s6926_s4 }
 0x7ab   :  { %4584 = vrot.lane.b32.xlu1 %v7354_v44, %s6926_s4 }
 0x7ac   :  { %5091 = vrot.lane.b32.xlu0 %v7323_v28, %s6927_s16  ;;  %v4175_v28 = vmul.f32 %v7356_v45, %v4100_v6 }
 0x7ae   :  { %v4329_v10 = vsel %vm4211_vm10, %v4175_v28, 0.0  ;;  %v4104_v28 = vld [vmem:[%s9564_s1 + $0x158] sm:$0xff] }
 0x7af   :  { %5109 = vrot.lane.b32.xlu1 %v7354_v44, %s6927_s16  ;;  %v4179_v1 = vmul.f32 %v7368_v49, %v4104_v28 }
 0x7cb   :  { %4291 = vadd.xlane.f32.xlu0 %v4290_v20 }
 0x7d3   :  { %4330 = vadd.xlane.f32.xlu1 %v4329_v10  ;;  %v4177_v10 = vmul.f32 %v4102_v5, %v7370_v50 }
 0x7d7   :  { %4324 = vadd.xlane.f32.xlu1 %v4323_v25  ;;  %v4341_v25 = vsel %vm4211_vm10, %v4179_v1, 0.0  ;;  %v4091_v1 = vld [vmem:[%s9564_s1 + $0xf0] sm:$0xff] }
 0x7e1   :  { %4562 = vrot.lane.b32.xlu0 %v7325_v29, %s6926_s4 }
 0x7e5   :  { %5087 = vrot.lane.b32.xlu0 %v7325_v29, %s6927_s16  ;;  %v4085_v29 = vld [vmem:[%s9564_s1 + $0xc0] sm:$0xff] }
 0x7e6   :  { %v4160_v20 = vmul.f32 %v4085_v29, %v7321_v27  ;;  %v4335_v27 = vsel %vm4211_vm10, %v4177_v10, 0.0  ;;  %v7764_v29 = vpop.xlane.xlu1 %4246 }
 0x7e8   :  { %4596 = vrot.lane.b32.xlu1 %v7362_v47, %s6926_s4  ;;  %v4284_v6 = vsel %vm4211_vm10, %v4160_v20, 0.0 }
 0x7ea   :  { %v7768_v20 = vpop.xlane.xlu1 %4240 }
 0x7ec   :  { %5121 = vrot.lane.b32.xlu1 %v7362_v47, %s6927_s16 }
 0x7f0   :  { %4592 = vrot.lane.b32.xlu1 %v7364_v48, %s6926_s4 }
 0x7f4   :  { %5117 = vrot.lane.b32.xlu1 %v7364_v48, %s6927_s16 }
 0x804   :  { %4285 = vadd.xlane.f32.xlu0 %v4284_v6  ;;  %v7770_v6 = vpop.permute.xlu1 %4540 }
 0x805   :  { %9612 = vst [vmem:[#allocation21_spill] sm:$0xff] %v7770_v6 }
 0x808   :  { %v7776_v28 = vpop.permute.xlu1 %5065 }
 0x809   :  { %9613 = vst [vmem:[#allocation22_spill] sm:$0xff] %v7776_v28 }
 0x80c   :  { %v7784_v5 = vpop.permute.xlu1 %4536 }
 0x80d   :  { %9614 = vst [vmem:[#allocation23_spill] sm:$0xff] %v7784_v5 }
 0x818   :  { %4342 = vadd.xlane.f32.xlu1 %v4341_v25  ;;  %v4108_v25 = vld [vmem:[%s9564_s1 + $0x178] sm:$0xff] }
 0x81a   :  { %4574 = vrot.lane.b32.xlu0 %v7335_v36, %s6926_s4 }
 0x81c   :  { %4336 = vadd.xlane.f32.xlu1 %v4335_v27  ;;  %v4106_v27 = vld [vmem:[%s9564_s1 + $0x168] sm:$0xff] }
 0x81e   :  { %5099 = vrot.lane.b32.xlu0 %v7335_v36, %s6927_s16  ;;  %v4166_v36 = vmul.f32 %v7331_v34, %v4091_v1  ;;  %v4183_v34 = vmul.f32 %v7380_v53, %v4108_v25  ;;  %v4181_v1 = vmul.f32 %v4106_v27, %v7382_v54 }
 0x820   :  { %v4302_v10 = vsel %vm4211_vm10, %v4166_v36, 0.0  ;;  %v4353_v36 = vsel %vm4211_vm10, %v4183_v34, 0.0  ;;  %v4347_v5 = vsel %vm4211_vm10, %v4181_v1, 0.0 }
 0x82d   :  { %4604 = vrot.lane.b32.xlu1 %v7374_v51, %s6926_s4 }
 0x831   :  { %5129 = vrot.lane.b32.xlu1 %v7374_v51, %s6927_s16 }
 0x835   :  { %4600 = vrot.lane.b32.xlu1 %v7376_v52, %s6926_s4 }
 0x839   :  { %5125 = vrot.lane.b32.xlu1 %v7376_v52, %s6927_s16 }
 0x83d   :  { %4303 = vadd.xlane.f32.xlu0 %v4302_v10  ;;  %v7802_v10 = vpop.permute.xlu1 %5061 }
 0x83e   :  { %9615 = vst [vmem:[#allocation24_spill] sm:$0xff] %v7802_v10 }
 0x841   :  { %v7805_v28 = vpop.xlane.xlu1 %4258 }
 0x842   :  { %9616 = vst [vmem:[#allocation25_spill] sm:$0xff] %v7805_v28 }
 0x845   :  { %v7807_v6 = vpop.xlane.xlu1 %4252 }
 0x846   :  { %9617 = vst [vmem:[#allocation26_spill] sm:$0xff] %v7807_v6 }
 0x849   :  { %v7813_v9 = vpop.permute.xlu1 %4548 }
 0x84a   :  { %9618 = vst [vmem:[#allocation27_spill] sm:$0xff] %v7813_v9 }
 0x853   :  { %4570 = vrot.lane.b32.xlu0 %v7337_v37, %s6926_s4 }
 0x857   :  { %5095 = vrot.lane.b32.xlu0 %v7337_v37, %s6927_s16  ;;  %v4089_v37 = vld [vmem:[%s9564_s1 + $0xe0] sm:$0xff] }
 0x858   :  { %v4164_v25 = vmul.f32 %v4089_v37, %v7333_v35  ;;  %v4112_v35 = vld [vmem:[%s9564_s1 + $0x198] sm:$0xff] }
 0x859   :  { %v4187_v1 = vmul.f32 %v7392_v59, %v4112_v35  ;;  %v4095_v35 = vld [vmem:[%s9564_s1 + $0x110] sm:$0xff] }
 0x85a   :  { %v4296_v34 = vsel %vm4211_vm10, %v4164_v25, 0.0 }
 0x85b   :  { %v4365_v25 = vsel %vm4211_vm10, %v4187_v1, 0.0 }
 0x85d   :  { %4354 = vadd.xlane.f32.xlu1 %v4353_v36  ;;  %v4110_v36 = vld [vmem:[%s9564_s1 + $0x188] sm:$0xff] }
 0x85e   :  { %v4185_v37 = vmul.f32 %v4110_v36, %v7395_v61 }
 0x861   :  { %4348 = vadd.xlane.f32.xlu1 %v4347_v5  ;;  %v7820_v5 = vpop.permute.xlu1 %5073 }
 0x862   :  { %9619 = vst [vmem:[#allocation28_spill] sm:$0xff] %v7820_v5  ;;  %v4170_v5 = vmul.f32 %v7340_v39, %v4095_v35 }
 0x864   :  { %v4314_v9 = vsel %vm4211_vm10, %v4170_v5, 0.0 }
 0x865   :  { %v7824_v27 = vpop.permute.xlu1 %4544 }
 0x866   :  { %9620 = vst [vmem:[#allocation29_spill] sm:$0xff] %v7824_v27  ;;  %v4359_v27 = vsel %vm4211_vm10, %v4185_v37, 0.0  ;;  %v7863_v37 = vpop.permute.xlu0 %4514 }
 0x872   :  { %4612 = vrot.lane.b32.xlu1 %v7388_v57, %s6926_s4 }
 0x876   :  { %5137 = vrot.lane.b32.xlu1 %v7388_v57, %s6927_s16  ;;  %4297 = vadd.xlane.f32.xlu0 %v4296_v34  ;;  %v7841_v34 = vpop.permute.xlu1 %5069 }
 0x877   :  { %9621 = vst [vmem:[#allocation30_spill] sm:$0xff] %v7841_v34 }
 0x87a   :  { %4608 = vrot.lane.b32.xlu1 %v7390_v58, %s6926_s4 }
 0x87e   :  { %5133 = vrot.lane.b32.xlu1 %v7390_v58, %s6927_s16 }
 0x88c   :  { %4582 = vrot.lane.b32.xlu0 %v7346_v41, %s6926_s4 }
 0x890   :  { %5107 = vrot.lane.b32.xlu0 %v7346_v41, %s6927_s16  ;;  %v7844_v41 = vpop.xlane.xlu1 %4270 }
 0x891   :  { %9622 = vst [vmem:[#allocation31_spill] sm:$0xff] %v7844_v41 }
 0x894   :  { %v7851_v36 = vpop.xlane.xlu1 %4264 }
 0x895   :  { %9623 = vst [vmem:[#allocation32_spill] sm:$0xff] %v7851_v36 }
 0x898   :  { %v7853_v1 = vpop.permute.xlu1 %4556 }
 0x899   :  { %9624 = vst [vmem:[#allocation33_spill] sm:$0xff] %v7853_v1 }
 0x8a2   :  { %4366 = vadd.xlane.f32.xlu1 %v4365_v25 }
 0x8a6   :  { %4360 = vadd.xlane.f32.xlu1 %v4359_v27  ;;  %v7859_v27 = vpop.permute.xlu1 %5081 }
 0x8a7   :  { %9625 = vst [vmem:[#allocation34_spill] sm:$0xff] %v7859_v27  ;;  %v4093_v27 = vld [vmem:[%s9564_s1 + $0x100] sm:$0xff] }
 0x8a8   :  { %v4168_v34 = vmul.f32 %v4093_v27, %v7344_v40 }
 0x8aa   :  { %v7865_v39 = vpop.permute.xlu1 %4552 }
 0x8ab   :  { %9626 = vst [vmem:[#allocation35_spill] sm:$0xff] %v7865_v39  ;;  %v4116_v39 = vld [vmem:[%s9564_s1 + $0x1b8] sm:$0xff] }
 0x8ac   :  { %v4191_v1 = vmul.f32 %v7401_v14, %v4116_v39 }
 0x8ae   :  { %v7875_v5 = vpop.permute.xlu1 %5077 }
 0x8af   :  { %4315 = vadd.xlane.f32.xlu0 %v4314_v9  ;;  %v7871_v9 = vpop.permute.xlu0 %5039  ;;  %9627 = vst [vmem:[#allocation36_spill] sm:$0xff] %v7875_v5 }
 0x8b2   :  { %v7877_v25 = vpop.xlane.xlu1 %4282 }
 0x8b3   :  { %9628 = vst [vmem:[#allocation37_spill] sm:$0xff] %v7877_v25  ;;  %v4308_v25 = vsel %vm4211_vm10, %v4168_v34, 0.0  ;;  %v7897_v36 = vpop.xlane.xlu0 %4213 }
 0x8b6   :  { %v7879_v35 = vpop.xlane.xlu1 %4276 }
 0x8b7   :  { %4620 = vrot.lane.b32.xlu1 %v7397_v62, %s6926_s4  ;;  %9629 = vst [vmem:[#allocation38_spill] sm:$0xff] %v7879_v35  ;;  %v4377_v35 = vsel %vm4211_vm10, %v4191_v1, 0.0 }
 0x8ba   :  { %v7892_v5 = vpop.permute.xlu1 %4564 }
 0x8bb   :  { %5145 = vrot.lane.b32.xlu1 %v7397_v62, %s6927_s16  ;;  %9630 = vst [vmem:[#allocation39_spill] sm:$0xff] %v7892_v5 }
 0x8be   :  { %v7899_v41 = vpop.permute.xlu1 %5089 }
 0x8bf   :  { %4616 = vrot.lane.b32.xlu1 %v7399_v11, %s6926_s4  ;;  %9631 = vst [vmem:[#allocation40_spill] sm:$0xff] %v7899_v41 }
 0x8c2   :  { %v7902_v27 = vpop.permute.xlu1 %4560 }
 0x8c3   :  { %5141 = vrot.lane.b32.xlu1 %v7399_v11, %s6927_s16  ;;  %9632 = vst [vmem:[#allocation41_spill] sm:$0xff] %v7902_v27 }
 0x8c5   :  { %4578 = vrot.lane.b32.xlu0 %v7348_v42, %s6926_s4 }
 0x8c6   :  { %v7904_v39 = vpop.permute.xlu1 %5085 }
 0x8c7   :  { %9633 = vst [vmem:[#allocation42_spill] sm:$0xff] %v7904_v39  ;;  %v4099_v39 = vld [vmem:[%s9564_s1 + $0x130] sm:$0xff] }
 0x8c9   :  { %5103 = vrot.lane.b32.xlu0 %v7348_v42, %s6927_s16  ;;  %v4114_v42 = vld [vmem:[%s9564_s1 + $0x1a8] sm:$0xff] }
 0x8ca   :  { %v4189_v10 = vmul.f32 %v4114_v42, %v7403_v18  ;;  %v7906_v5 = vpop.xlane.xlu1 %4294  ;;  %v7908_v42 = vpop.xlane.xlu0 %4216 }
 0x8cb   :  { %9634 = vst [vmem:[#allocation43_spill] sm:$0xff] %v7906_v5 }
 0x8cc   :  { %v4371_v40 = vsel %vm4211_vm10, %v4189_v10, 0.0 }
 0x8ce   :  { %v7914_v34 = vpop.xlane.xlu1 %4288  ;;  %v7918_v10 = vpop.permute.xlu0 %4526 }
 0x8cf   :  { %9635 = vst [vmem:[#allocation44_spill] sm:$0xff] %v7914_v34 }
 0x8d2   :  { %v7924_v1 = vpop.permute.xlu1 %4572 }
 0x8d3   :  { %9636 = vst [vmem:[#allocation45_spill] sm:$0xff] %v7924_v1  ;;  %v7941_v1 = vpop.permute.xlu0 %5051 }
 0x8d7   :  { %v7961_v5 = vpop.xlane.xlu0 %4231 }
 0x8d8   :  { %9645 = vst [vmem:[#allocation54_spill] sm:$0xff] %v7961_v5 }
 0x8e7   :  { %4378 = vadd.xlane.f32.xlu1 %v4377_v35 }
 0x8e8   :  { %4309 = vadd.xlane.f32.xlu0 %v4308_v25  ;;  %v7928_v25 = vpop.permute.xlu1 %5097 }
 0x8e9   :  { %9637 = vst [vmem:[#allocation46_spill] sm:$0xff] %v7928_v25 }
 0x8eb   :  { %4372 = vadd.xlane.f32.xlu1 %v4371_v40 }
 0x8ec   :  { %v7930_v35 = vpop.permute.xlu1 %4568 }
 0x8ed   :  { %9638 = vst [vmem:[#allocation47_spill] sm:$0xff] %v7930_v35  ;;  %v4120_v35 = vld [vmem:[%s9564_s1 + $0x1d8] sm:$0xff] }
 0x8f0   :  { %v7932_v40 = vpop.permute.xlu1 %5093 }
 0x8f1   :  { %9639 = vst [vmem:[#allocation48_spill] sm:$0xff] %v7932_v40  ;;  %v4195_v40 = vmul.f32 %v7409_v22, %v4120_v35 }
 0x8f4   :  { %v7937_v27 = vpop.xlane.xlu1 %4306 }
 0x8f5   :  { %9640 = vst [vmem:[#allocation49_spill] sm:$0xff] %v7937_v27  ;;  %v4118_v27 = vld [vmem:[%s9564_s1 + $0x1c8] sm:$0xff] }
 0x8f8   :  { %v7943_v34 = vpop.xlane.xlu1 %4300 }
 0x8f9   :  { %9641 = vst [vmem:[#allocation50_spill] sm:$0xff] %v7943_v34 }
 0x8fc   :  { %4628 = vrot.lane.b32.xlu1 %v7405_v63, %s6926_s4  ;;  %v7949_v25 = vpop.permute.xlu1 %4580 }
 0x8fd   :  { %9642 = vst [vmem:[#allocation51_spill] sm:$0xff] %v7949_v25  ;;  %v7967_v25 = vpop.permute.xlu0 %4522 }
 0x8fe   :  { %4590 = vrot.lane.b32.xlu0 %v7356_v45, %s6926_s4 }
 0x900   :  { %5153 = vrot.lane.b32.xlu1 %v7405_v63, %s6927_s16 }
 0x902   :  { %5115 = vrot.lane.b32.xlu0 %v7356_v45, %s6927_s16  ;;  %v4174_v45 = vmul.f32 %v7352_v43, %v4099_v39  ;;  %v4193_v43 = vmul.f32 %v4118_v27, %v7411_v26  ;;  %v4389_v39 = vsel %vm4211_vm10, %v4195_v40, 0.0  ;;  %v9648_v40 = vld [vmem:[#allocation4_spill] sm:$0xff] }
 0x904   :  { %4624 = vrot.lane.b32.xlu1 %v7407_v19, %s6926_s4  ;;  %v4326_v41 = vsel %vm4211_vm10, %v4174_v45, 0.0  ;;  %v7956_v45 = vpop.permute.xlu1 %5105 }
 0x905   :  { %9643 = vst [vmem:[#allocation52_spill] sm:$0xff] %v7956_v45 }
 0x908   :  { %5149 = vrot.lane.b32.xlu1 %v7407_v19, %s6927_s16  ;;  %v7959_v34 = vpop.permute.xlu1 %4576 }
 0x909   :  { %9644 = vst [vmem:[#allocation53_spill] sm:$0xff] %v7959_v34 }
 0x90c   :  { %v7965_v35 = vpop.permute.xlu1 %5101 }
 0x90d   :  { %9646 = vst [vmem:[#allocation55_spill] sm:$0xff] %v7965_v35 }
 0x910   :  { %v7971_v27 = vpop.xlane.xlu1 %4318 }
 0x911   :  { %9647 = vst [vmem:[#allocation56_spill] sm:$0xff] %v7971_v27  ;;  %v7992_v27 = vpop.permute.xlu0 %5047 }
 0x921   :  { %4327 = vadd.xlane.f32.xlu0 %v4326_v41  ;;  %v4383_v41 = vsel %vm4211_vm10, %v4193_v43, 0.0  ;;  %v7975_v43 = vpop.xlane.xlu1 %4312 }
 0x922   :  { %9649 = vst [vmem:[#allocation4_spill] sm:$0xff] %v7975_v43 }
 0x92c   :  { %4390 = vadd.xlane.f32.xlu1 %v4389_v39  ;;  %v7979_v39 = vpop.permute.xlu1 %4588 }
 0x92d   :  { %9650 = vst [vmem:[#allocation57_spill] sm:$0xff] %v7979_v39 }
 0x930   :  { %4384 = vadd.xlane.f32.xlu1 %v4383_v41  ;;  %v9651_v41 = vld [vmem:[#allocation5_spill] sm:$0xff]  ;;  %v7983_v35 = vpop.permute.xlu1 %5113 }
 0x931   :  { %9652 = vst [vmem:[#allocation5_spill] sm:$0xff] %v7983_v35  ;;  %v9657_v35 = vld [vmem:[#allocation2_spill] sm:$0xff] }
 0x932   :  { %v4738_v0 = vmul.f32 %v7863_v37, %v9657_v35 }
 0x934   :  { %v7989_v45 = vpop.permute.xlu1 %4584 }
 0x935   :  { %9653 = vst [vmem:[#allocation58_spill] sm:$0xff] %v7989_v45 }
 0x937   :  { %4586 = vrot.lane.b32.xlu0 %v7358_v46, %s6926_s4 }
 0x938   :  { %v7994_v6 = vpop.permute.xlu1 %5109 }
 0x939   :  { %9654 = vst [vmem:[#allocation59_spill] sm:$0xff] %v7994_v6 }
 0x93b   :  { %5111 = vrot.lane.b32.xlu0 %v7358_v46, %s6927_s16  ;;  %v4097_v46 = vld [vmem:[%s9564_s1 + $0x120] sm:$0xff] }
 0x93c   :  { %v4172_v34 = vmul.f32 %v4097_v46, %v7354_v44  ;;  %v7996_v39 = vpop.xlane.xlu1 %4330  ;;  %v4815_v44 = vsel %vm4211_vm10, %v4738_v0, 0.0  ;;  %v8005_v46 = vpop.xlane.xlu0 %4225 }
 0x93d   :  { %9655 = vst [vmem:[#allocation60_spill] sm:$0xff] %v7996_v39  ;;  %9659 = vst [vmem:[#allocation62_spill] sm:$0xff] %v8005_v46 }
 0x93e   :  { %v4320_v43 = vsel %vm4211_vm10, %v4172_v34, 0.0 }
 0x940   :  { %v7998_v5 = vpop.xlane.xlu1 %4324 }
 0x941   :  { %4636 = vrot.lane.b32.xlu1 %v9648_v40, %s6926_s4  ;;  %9656 = vst [vmem:[#allocation61_spill] sm:$0xff] %v7998_v5 }
 0x944   :  { %v8002_v3 = vpop.permute.xlu1 %4596 }
 0x945   :  { %5161 = vrot.lane.b32.xlu1 %v9648_v40, %s6927_s16  ;;  %9658 = vst [vmem:[#allocation2_spill] sm:$0xff] %v8002_v3 }
 0x948   :  { %v8009_v34 = vpop.permute.xlu1 %5121 }
 0x949   :  { %4632 = vrot.lane.b32.xlu1 %v9651_v41, %s6926_s4  ;;  %9660 = vst [vmem:[#allocation63_spill] sm:$0xff] %v8009_v34  ;;  %v4103_v34 = vld [vmem:[%s9564_s1 + $0x150] sm:$0xff] }
 0x94a   :  { %v4178_v45 = vmul.f32 %v7362_v47, %v4103_v34  ;;  %v4122_v34 = vld [vmem:[%s9564_s1 + $0x1e8] sm:$0xff] }
 0x94c   :  { %v8015_v6 = vpop.permute.xlu1 %4592 }
 0x94d   :  { %9661 = vst [vmem:[#allocation64_spill] sm:$0xff] %v8015_v6 }
 0x950   :  { %v8017_v37 = vpop.permute.xlu1 %5117 }
 0x951   :  { %9662 = vst [vmem:[#allocation65_spill] sm:$0xff] %v8017_v37 }
 0x954   :  { %v8021_v0 = vpop.xlane.xlu1 %4342 }
 0x955   :  { %9663 = vst [vmem:[#allocation66_spill] sm:$0xff] %v8021_v0  ;;  %v4124_v0 = vld [vmem:[%s9564_s1 + $0x1f8] sm:$0xff] }
 0x95a   :  { %4321 = vadd.xlane.f32.xlu0 %v4320_v43  ;;  %v8011_v43 = vpop.permute.xlu0 %4534 }
 0x95e   :  { %v8032_v6 = vpop.permute.xlu0 %5059 }
 0x96d   :  { %4816 = vadd.xlane.f32.xlu1 %v4815_v44  ;;  %v8023_v44 = vpop.xlane.xlu1 %4336 }
 0x96e   :  { %9664 = vst [vmem:[#allocation67_spill] sm:$0xff] %v8023_v44  ;;  %v5263_v44 = vmul.f32 %v7871_v9, %v9657_v35  ;;  %v8054_v35 = vpop.xlane.xlu0 %4243 }
 0x970   :  { %4598 = vrot.lane.b32.xlu0 %v7368_v49, %s6926_s4 }
 0x971   :  { %v8028_v3 = vpop.permute.xlu1 %4604 }
 0x972   :  { %9665 = vst [vmem:[#allocation68_spill] sm:$0xff] %v8028_v3  ;;  %v9669_v3 = vld [vmem:[#allocation7_spill] sm:$0xff] }
 0x973   :  { %v4199_v47 = vmul.f32 %v9669_v3, %v4124_v0 }
 0x974   :  { %5123 = vrot.lane.b32.xlu0 %v7368_v49, %s6927_s16  ;;  %v4338_v49 = vsel %vm4211_vm10, %v4178_v45, 0.0  ;;  %v5340_v45 = vsel %vm4211_vm10, %v5263_v44, 0.0  ;;  %v8061_v44 = vpop.permute.xlu0 %4530 }
 0x975   :  { %v8034_v37 = vpop.permute.xlu1 %5129  ;;  %v4401_v9 = vsel %vm4211_vm10, %v4199_v47, 0.0 }
 0x976   :  { %9666 = vst [vmem:[#allocation69_spill] sm:$0xff] %v8034_v37 }
 0x979   :  { %v8036_v5 = vpop.permute.xlu1 %4600 }
 0x97a   :  { %9667 = vst [vmem:[#allocation70_spill] sm:$0xff] %v8036_v5  ;;  %v9671_v5 = vld [vmem:[#allocation8_spill] sm:$0xff] }
 0x97b   :  { %v4197_v37 = vmul.f32 %v4122_v34, %v9671_v5  ;;  %9672 = vst [vmem:[#allocation8_spill] sm:$0xff] %v8054_v35 }
 0x97d   :  { %v8043_v39 = vpop.permute.xlu1 %5125  ;;  %v4395_v0 = vsel %vm4211_vm10, %v4197_v37, 0.0  ;;  %v4101_v37 = vld [vmem:[%s9564_s1 + $0x140] sm:$0xff] }
 0x97e   :  { %5157 = vrot.lane.b32.xlu1 %v9651_v41, %s6927_s16  ;;  %9668 = vst [vmem:[#allocation71_spill] sm:$0xff] %v8043_v39 }
 0x993   :  { %4339 = vadd.xlane.f32.xlu0 %v4338_v49  ;;  %v8050_v49 = vpop.xlane.xlu1 %4354 }
 0x994   :  { %9670 = vst [vmem:[#allocation7_spill] sm:$0xff] %v8050_v49 }
 0x997   :  { %v8056_v46 = vpop.xlane.xlu1 %4348 }
 0x998   :  { %9673 = vst [vmem:[#allocation72_spill] sm:$0xff] %v8056_v46  ;;  %v4176_v46 = vmul.f32 %v4101_v37, %v7364_v48 }
 0x9a2   :  { %5341 = vadd.xlane.f32.xlu1 %v5340_v45  ;;  %v8065_v45 = vpop.permute.xlu1 %4612 }
 0x9a3   :  { %9674 = vst [vmem:[#allocation73_spill] sm:$0xff] %v8065_v45  ;;  %v4332_v45 = vsel %vm4211_vm10, %v4176_v46, 0.0 }
 0x9a6   :  { %4402 = vadd.xlane.f32.xlu1 %v4401_v9  ;;  %v8067_v34 = vpop.permute.xlu1 %5137  ;;  %v9677_v9 = vld [vmem:[#allocation9_spill] sm:$0xff] }
 0x9a7   :  { %9675 = vst [vmem:[#allocation74_spill] sm:$0xff] %v8067_v34  ;;  %v8084_v34 = vpop.permute.xlu0 %5055 }
 0x9a9   :  { %4594 = vrot.lane.b32.xlu0 %v7370_v50, %s6926_s4 }
 0x9aa   :  { %4396 = vadd.xlane.f32.xlu1 %v4395_v0  ;;  %v8069_v47 = vpop.permute.xlu1 %4608 }
 0x9ab   :  { %9676 = vst [vmem:[#allocation75_spill] sm:$0xff] %v8069_v47  ;;  %v8095_v48 = vpop.xlane.xlu0 %4237 }
 0x9ac   :  { %9685 = vst [vmem:[#allocation80_spill] sm:$0xff] %v8095_v48 }
 0x9ad   :  { %5119 = vrot.lane.b32.xlu0 %v7370_v50, %s6927_s16 }
 0x9ae   :  { %v8073_v39 = vpop.permute.xlu1 %5133 }
 0x9af   :  { %9678 = vst [vmem:[#allocation9_spill] sm:$0xff] %v8073_v39  ;;  %v9683_v39 = vld [vmem:[#allocation3_spill] sm:$0xff] }
 0x9b0   :  { %v4744_v35 = vmul.f32 %v7918_v10, %v9683_v39 }
 0x9b2   :  { %v8078_v0 = vpop.xlane.xlu1 %4366 }
 0x9b3   :  { %9679 = vst [vmem:[#allocation76_spill] sm:$0xff] %v8078_v0  ;;  %v4833_v0 = vsel %vm4211_vm10, %v4744_v35, 0.0 }
 0x9b6   :  { %v8081_v50 = vpop.xlane.xlu1 %4360 }
 0x9b7   :  { %9680 = vst [vmem:[#allocation77_spill] sm:$0xff] %v8081_v50 }
 0x9ba   :  { %v8086_v47 = vpop.permute.xlu1 %4620 }
 0x9bb   :  { %4644 = vrot.lane.b32.xlu1 %v9677_v9, %s6926_s4  ;;  %9681 = vst [vmem:[#allocation78_spill] sm:$0xff] %v8086_v47 }
 0x9be   :  { %v8088_v49 = vpop.permute.xlu1 %5145 }
 0x9bf   :  { %9682 = vst [vmem:[#allocation79_spill] sm:$0xff] %v8088_v49 }
 0x9c2   :  { %v8092_v28 = vpop.permute.xlu1 %4616 }
 0x9c3   :  { %9684 = vst [vmem:[#allocation3_spill] sm:$0xff] %v8092_v28 }
 0x9c6   :  { %v8099_v46 = vpop.permute.xlu1 %5141 }
 0x9c7   :  { %9686 = vst [vmem:[#allocation81_spill] sm:$0xff] %v8099_v46  ;;  %v4107_v46 = vld [vmem:[%s9564_s1 + $0x170] sm:$0xff] }
 0x9c8   :  { %v4182_v49 = vmul.f32 %v7374_v51, %v4107_v46 }
 0x9ca   :  { %v8105_v37 = vpop.xlane.xlu1 %4378 }
 0x9cb   :  { %9687 = vst [vmem:[#allocation82_spill] sm:$0xff] %v8105_v37 }
 0x9cc   :  { %4333 = vadd.xlane.f32.xlu0 %v4332_v45  ;;  %v8101_v45 = vpop.permute.xlu0 %4542 }
 0x9ce   :  { %v8107_v10 = vpop.xlane.xlu1 %4372 }
 0x9cf   :  { %9688 = vst [vmem:[#allocation83_spill] sm:$0xff] %v8107_v10 }
 0x9d0   :  { %v8122_v47 = vpop.permute.xlu0 %5067 }
 0x9d2   :  { %v8111_v35 = vpop.permute.xlu1 %4628 }
 0x9d3   :  { %9689 = vst [vmem:[#allocation84_spill] sm:$0xff] %v8111_v35 }
 0x9d4   :  { %v8135_v51 = vpop.xlane.xlu0 %4255 }
 0x9d5   :  { %9696 = vst [vmem:[#allocation91_spill] sm:$0xff] %v8135_v51 }
 0x9d8   :  { %v8141_v46 = vpop.permute.xlu0 %4538 }
 0x9df   :  { %4834 = vadd.xlane.f32.xlu1 %v4833_v0  ;;  %v8113_v0 = vpop.permute.xlu1 %5153 }
 0x9e0   :  { %9690 = vst [vmem:[#allocation85_spill] sm:$0xff] %v8113_v0  ;;  %v5269_v0 = vmul.f32 %v7941_v1, %v9683_v39 }
 0x9e2   :  { %4606 = vrot.lane.b32.xlu0 %v7380_v53, %s6926_s4  ;;  %v5358_v50 = vsel %vm4211_vm10, %v5269_v0, 0.0 }
 0x9e3   :  { %v8118_v28 = vpop.permute.xlu1 %4624 }
 0x9e4   :  { %9691 = vst [vmem:[#allocation86_spill] sm:$0xff] %v8118_v28 }
 0x9e6   :  { %5131 = vrot.lane.b32.xlu0 %v7380_v53, %s6927_s16  ;;  %v4350_v53 = vsel %vm4211_vm10, %v4182_v49, 0.0 }
 0x9e7   :  { %v8124_v10 = vpop.permute.xlu1 %5149 }
 0x9e8   :  { %9692 = vst [vmem:[#allocation87_spill] sm:$0xff] %v8124_v10 }
 0x9eb   :  { %v8126_v37 = vpop.xlane.xlu1 %4390 }
 0x9ec   :  { %9693 = vst [vmem:[#allocation88_spill] sm:$0xff] %v8126_v37  ;;  %v4130_v37 = vld [vmem:[%s9564_s1 + $0x228] sm:$0xff] }
 0x9ef   :  { %v8130_v35 = vpop.xlane.xlu1 %4384 }
 0x9f0   :  { %5169 = vrot.lane.b32.xlu1 %v9677_v9, %s6927_s16  ;;  %9694 = vst [vmem:[#allocation89_spill] sm:$0xff] %v8130_v35 }
 0x9f3   :  { %v8133_v28 = vpop.permute.xlu1 %4636 }
 0x9f4   :  { %9695 = vst [vmem:[#allocation90_spill] sm:$0xff] %v8133_v28  ;;  %v8163_v28 = vpop.permute.xlu0 %5063 }
 0x9f7   :  { %v8137_v49 = vpop.permute.xlu1 %5161 }
 0x9f8   :  { %9697 = vst [vmem:[#allocation92_spill] sm:$0xff] %v8137_v49 }
 0x9fb   :  { %v8145_v1 = vpop.permute.xlu1 %4632 }
 0x9fc   :  { %9698 = vst [vmem:[#allocation93_spill] sm:$0xff] %v8145_v1 }
 0x9ff   :  { %v4817_v39 = vpop.xlane.xlu1 %4816 }
 0xa00   :  { %v5564_v0 = vsel %vm5562_vm11, %v7908_v42, %v4817_v39  ;;  %v9700_v42 = vld [vmem:[#allocation6_spill] sm:$0xff] }
 0xa01   :  { %v4742_v39 = vmul.f32 %v7967_v25, %v9700_v42 }
 0xa05   :  { %4351 = vadd.xlane.f32.xlu0 %v4350_v53 }
 0xa14   :  { %5359 = vadd.xlane.f32.xlu1 %v5358_v50  ;;  %v8149_v50 = vpop.permute.xlu1 %5157 }
 0xa15   :  { %9699 = vst [vmem:[#allocation94_spill] sm:$0xff] %v8149_v50 }
 0xa1b   :  { %4602 = vrot.lane.b32.xlu0 %v7382_v54, %s6926_s4 }
 0xa1f   :  { %5127 = vrot.lane.b32.xlu0 %v7382_v54, %s6927_s16  ;;  %v4105_v54 = vld [vmem:[%s9564_s1 + $0x160] sm:$0xff] }
 0xa20   :  { %v4180_v50 = vmul.f32 %v4105_v54, %v7376_v52  ;;  %v4111_v52 = vld [vmem:[%s9564_s1 + $0x190] sm:$0xff]  ;;  %v5267_v54 = vmul.f32 %v7992_v27, %v9700_v42 }
 0xa21   :  { %v4186_v25 = vmul.f32 %v7388_v57, %v4111_v52  ;;  %v8198_v57 = vld [vmem:[%s9564_s1 + $0x208] sm:$0xff] }
 0xa22   :  { %v4344_v1 = vsel %vm4211_vm10, %v4180_v50, 0.0  ;;  %9703 = vst [vmem:[#allocation96_spill] sm:$0xff] %v8198_v57  ;;  %v4201_v52 = vmul.f32 %v8198_v57, %v7447_v55 }
 0xa24   :  { %v4407_v42 = vsel %vm4211_vm10, %v4201_v52, 0.0  ;;  %v9708_v52 = vld [vmem:[#allocation10_spill] sm:$0xff] }
 0xa25   :  { %4640 = vrot.lane.b32.xlu1 %v7443_v33, %s6926_s4 }
 0xa2f   :  { %v5342_v53 = vpop.xlane.xlu1 %5341 }
 0xa30   :  { %v5640_v49 = vsel %vm5638_vm12, %v5564_v0, %v5342_v53  ;;  %v4827_v0 = vsel %vm4211_vm10, %v4742_v39, 0.0  ;;  %v8168_v53 = vpop.xlane.xlu0 %4249 }
 0xa31   :  { %5716 = vst.msk [vmem:[%s9565_s5 + $0x8] sm:$0xff] %vm5714_vm13, %v5640_v49  ;;  %9701 = vst [vmem:[#allocation6_spill] sm:$0xff] %v8168_v53 }
 0xa34   :  { %v8172_v49 = vpop.permute.xlu0 %4550 }
 0xa38   :  { %v8183_v50 = vpop.permute.xlu0 %5075 }
 0xa3e   :  { %4345 = vadd.xlane.f32.xlu0 %v4344_v1  ;;  %v4362_v1 = vsel %vm4211_vm10, %v4186_v25, 0.0  ;;  %v8204_v25 = vpop.xlane.xlu1 %4402 }
 0xa3f   :  { %9704 = vst [vmem:[#allocation97_spill] sm:$0xff] %v8204_v25 }
 0xa49   :  { %4828 = vadd.xlane.f32.xlu1 %v4827_v0  ;;  %v5352_v0 = vsel %vm4211_vm10, %v5267_v54, 0.0  ;;  %v8208_v54 = vpop.xlane.xlu1 %4396 }
 0xa4a   :  { %9706 = vst [vmem:[#allocation99_spill] sm:$0xff] %v8208_v54 }
 0xa54   :  { %4614 = vrot.lane.b32.xlu0 %v7392_v59, %s6926_s4 }
 0xa58   :  { %5139 = vrot.lane.b32.xlu0 %v7392_v59, %s6927_s16  ;;  %v8190_v59 = vld [vmem:[%s9564_s1 + $0x218] sm:$0xff] }
 0xa59   :  { %9702 = vst [vmem:[#allocation95_spill] sm:$0xff] %v8190_v59  ;;  %v4203_v39 = vmul.f32 %v7445_v31, %v8190_v59 }
 0xa5a   :  { %5165 = vrot.lane.b32.xlu1 %v7443_v33, %s6927_s16 }
 0xa5b   :  { %v4413_v27 = vsel %vm4211_vm10, %v4203_v39, 0.0 }
 0xa77   :  { %4363 = vadd.xlane.f32.xlu0 %v4362_v1  ;;  %v8206_v1 = vpop.xlane.xlu0 %4267 }
 0xa78   :  { %9705 = vst [vmem:[#allocation98_spill] sm:$0xff] %v8206_v1 }
 0xa7b   :  { %v8212_v10 = vpop.permute.xlu0 %4546 }
 0xa7e   :  { %5353 = vadd.xlane.f32.xlu1 %v5352_v0  ;;  %v8216_v0 = vpop.permute.xlu1 %4644 }
 0xa7f   :  { %9707 = vst [vmem:[#allocation100_spill] sm:$0xff] %v8216_v0 }
 0xa82   :  { %4414 = vadd.xlane.f32.xlu1 %v4413_v27  ;;  %v4835_v39 = vpop.xlane.xlu1 %4834 }
 0xa86   :  { %4408 = vadd.xlane.f32.xlu1 %v4407_v42  ;;  %v8220_v27 = vpop.permute.xlu1 %5169  ;;  %v5570_v42 = vsel %vm5562_vm11, %v7723_v24, %v4835_v39  ;;  %v4748_v24 = vmul.f32 %v8011_v43, %v7483_v16 }
 0xa87   :  { %9709 = vst [vmem:[#allocation101_spill] sm:$0xff] %v8220_v27  ;;  %v8234_v27 = vpop.permute.xlu0 %5071 }
 0xa8b   :  { %v8239_v39 = vpop.xlane.xlu0 %4261 }
 0xa8c   :  { %9710 = vst [vmem:[#allocation102_spill] sm:$0xff] %v8239_v39 }
 0xa8d   :  { %4610 = vrot.lane.b32.xlu0 %v7395_v61, %s6926_s4 }
 0xa91   :  { %5135 = vrot.lane.b32.xlu0 %v7395_v61, %s6927_s16  ;;  %v4109_v61 = vld [vmem:[%s9564_s1 + $0x180] sm:$0xff] }
 0xa92   :  { %v4184_v0 = vmul.f32 %v4109_v61, %v7390_v58  ;;  %v4115_v58 = vld [vmem:[%s9564_s1 + $0x1b0] sm:$0xff] }
 0xa93   :  { %v4190_v43 = vmul.f32 %v7397_v62, %v4115_v58 }
 0xa94   :  { %v4356_v51 = vsel %vm4211_vm10, %v4184_v0, 0.0 }
 0xa97   :  { %4652 = vrot.lane.b32.xlu1 %v9708_v52, %s6926_s4 }
 0xaa1   :  { %v5360_v1 = vpop.xlane.xlu1 %5359 }
 0xaa2   :  { %v5646_v53 = vsel %vm5638_vm12, %v5570_v42, %v5360_v1  ;;  %v4845_v1 = vsel %vm4211_vm10, %v4748_v24, 0.0  ;;  %v5273_v42 = vmul.f32 %v8032_v6, %v7483_v16 }
 0xaa3   :  { %5722 = vst.msk [vmem:[%s9565_s5 + $0x38] sm:$0xff] %vm5714_vm13, %v5646_v53  ;;  %v8243_v53 = vpop.permute.xlu0 %4558 }
 0xaa4   :  { %v5370_v61 = vsel %vm4211_vm10, %v5273_v42, 0.0 }
 0xaa5   :  { %v8265_v39 = vpop.permute.xlu1 %4640 }
 0xaa6   :  { %9712 = vst [vmem:[#allocation104_spill] sm:$0xff] %v8265_v39 }
 0xaa7   :  { %v8254_v0 = vpop.permute.xlu0 %5083 }
 0xab0   :  { %4357 = vadd.xlane.f32.xlu0 %v4356_v51  ;;  %v4374_v51 = vsel %vm4211_vm10, %v4190_v43, 0.0 }
 0xabb   :  { %4846 = vadd.xlane.f32.xlu1 %v4845_v1 }
 0xac6   :  { %4622 = vrot.lane.b32.xlu0 %v7401_v14, %s6926_s4 }
 0xaca   :  { %5147 = vrot.lane.b32.xlu0 %v7401_v14, %s6927_s16  ;;  %v8259_v14 = vpop.xlane.xlu0 %4279 }
 0xacb   :  { %9711 = vst [vmem:[#allocation103_spill] sm:$0xff] %v8259_v14 }
 0xacc   :  { %5177 = vrot.lane.b32.xlu1 %v9708_v52, %s6927_s16 }
 0xace   :  { %v8261_v24 = vpop.permute.xlu0 %4554 }
 0xad2   :  { %v8263_v1 = vpop.permute.xlu0 %5079 }
 0xad6   :  { %v8269_v62 = vpop.xlane.xlu0 %4273  ;;  %v4829_v58 = vpop.xlane.xlu1 %4828 }
 0xad7   :  { %9713 = vst [vmem:[#allocation105_spill] sm:$0xff] %v8269_v62  ;;  %v5568_v43 = vsel %vm5562_vm11, %v7727_v4, %v4829_v58 }
 0xada   :  { %v8275_v16 = vpop.permute.xlu0 %4566  ;;  %v8277_v6 = vpop.permute.xlu1 %5165 }
 0xadb   :  { %9714 = vst [vmem:[#allocation106_spill] sm:$0xff] %v8277_v6  ;;  %v4113_v6 = vld [vmem:[%s9564_s1 + $0x1a0] sm:$0xff] }
 0xadc   :  { %v4188_v4 = vmul.f32 %v4113_v6, %v7399_v11 }
 0xade   :  { %v4368_v62 = vsel %vm4211_vm10, %v4188_v4, 0.0 }
 0xae9   :  { %4375 = vadd.xlane.f32.xlu0 %v4374_v51 }
 0xaf0   :  { %5371 = vadd.xlane.f32.xlu1 %v5370_v61  ;;  %v8282_v61 = vpop.permute.xlu0 %5091 }
 0xaf4   :  { %v8288_v39 = vpop.xlane.xlu0 %4291 }
 0xaf5   :  { %9715 = vst [vmem:[#allocation107_spill] sm:$0xff] %v8288_v39 }
 0xaff   :  { %4618 = vrot.lane.b32.xlu0 %v7403_v18, %s6926_s4 }
 0xb01   :  { %4648 = vrot.lane.b32.xlu1 %v7451_v32, %s6926_s4 }
 0xb03   :  { %5143 = vrot.lane.b32.xlu0 %v7403_v18, %s6927_s16  ;;  %v8290_v18 = vpop.permute.xlu0 %4562 }
 0xb07   :  { %v8296_v58 = vpop.permute.xlu0 %5087 }
 0xb0b   :  { %v5354_v51 = vpop.xlane.xlu1 %5353 }
 0xb0c   :  { %v5644_v42 = vsel %vm5638_vm12, %v5568_v43, %v5354_v51  ;;  %v4746_v43 = vmul.f32 %v8061_v44, %v7490_v38  ;;  %v8300_v51 = vpop.xlane.xlu0 %4285 }
 0xb0d   :  { %5720 = vst.msk [vmem:[%s9565_s5 + $0x28] sm:$0xff] %vm5714_vm13, %v5644_v42  ;;  %9716 = vst [vmem:[#allocation108_spill] sm:$0xff] %v8300_v51 }
 0xb0e   :  { %v4839_v42 = vsel %vm4211_vm10, %v4746_v43, 0.0  ;;  %v4119_v43 = vld [vmem:[%s9564_s1 + $0x1d0] sm:$0xff] }
 0xb10   :  { %v8304_v39 = vpop.permute.xlu0 %4574 }
 0xb14   :  { %v8306_v14 = vpop.permute.xlu0 %5099 }
 0xb18   :  { %v8308_v54 = vpop.xlane.xlu0 %4303 }
 0xb19   :  { %9717 = vst [vmem:[#allocation109_spill] sm:$0xff] %v8308_v54  ;;  %v4194_v54 = vmul.f32 %v7405_v63, %v4119_v43  ;;  %v9722_v63 = vld [vmem:[#allocation13_spill] sm:$0xff] }
 0xb1a   :  { %v4205_v43 = vmul.f32 %v4130_v37, %v9722_v63 }
 0xb1c   :  { %v8312_v11 = vpop.permute.xlu0 %4570 }
 0xb20   :  { %v8318_v38 = vpop.permute.xlu0 %5095 }
 0xb22   :  { %4369 = vadd.xlane.f32.xlu0 %v4368_v62 }
 0xb24   :  { %v8320_v44 = vpop.xlane.xlu0 %4297 }
 0xb25   :  { %4840 = vadd.xlane.f32.xlu1 %v4839_v42  ;;  %9718 = vst [vmem:[#allocation110_spill] sm:$0xff] %v8320_v44  ;;  %v6862_v42 = vld [vmem:[%s9564_s1 + $0x48] sm:$0xff]  ;;  %v8339_v44 = vld [vmem:[%s9564_s1 + $0x238] sm:$0xff] }
 0xb26   :  { %9720 = vst [vmem:[#allocation112_spill] sm:$0xff] %v8339_v44 }
 0xb28   :  { %v8322_v62 = vpop.permute.xlu0 %4582 }
 0xb2c   :  { %v8324_v6 = vpop.permute.xlu0 %5107 }
 0xb30   :  { %v8326_v4 = vpop.xlane.xlu0 %4315 }
 0xb31   :  { %9719 = vst [vmem:[#allocation111_spill] sm:$0xff] %v8326_v4  ;;  %v9721_v4 = vld [vmem:[#allocation12_spill] sm:$0xff] }
 0xb32   :  { %v4207_v25 = vmul.f32 %v9721_v4, %v8339_v44  ;;  %v4419_v44 = vsel %vm4211_vm10, %v4205_v43, 0.0 }
 0xb34   :  { %v8341_v51 = vpop.permute.xlu0 %4578  ;;  %v4425_v48 = vsel %vm4211_vm10, %v4207_v25, 0.0  ;;  %v9728_v25 = vld [vmem:[#allocation14_spill] sm:$0xff] }
 0xb36   :  { %5173 = vrot.lane.b32.xlu1 %v7451_v32, %s6927_s16 }
 0xb38   :  { %4630 = vrot.lane.b32.xlu0 %v7409_v22, %s6926_s4 }
 0xb3c   :  { %5155 = vrot.lane.b32.xlu0 %v7409_v22, %s6927_s16  ;;  %v5271_v22 = vmul.f32 %v6862_v42, %v8084_v34  ;;  %v4386_v34 = vsel %vm4211_vm10, %v4194_v54, 0.0  ;;  %v8351_v42 = vpop.permute.xlu0 %5103 }
 0xb3e   :  { %v5364_v35 = vsel %vm4211_vm10, %v5271_v22, 0.0  ;;  %v8357_v22 = vpop.xlane.xlu1 %4414 }
 0xb3f   :  { %9724 = vst [vmem:[#allocation114_spill] sm:$0xff] %v8357_v22 }
 0xb40   :  { %v8354_v32 = vpop.xlane.xlu0 %4309 }
 0xb41   :  { %9723 = vst [vmem:[#allocation113_spill] sm:$0xff] %v8354_v32 }
 0xb44   :  { %v8359_v57 = vpop.permute.xlu0 %4590 }
 0xb48   :  { %v8363_v54 = vpop.permute.xlu0 %5115 }
 0xb4c   :  { %v8367_v37 = vpop.xlane.xlu0 %4327 }
 0xb4d   :  { %9727 = vst [vmem:[#allocation117_spill] sm:$0xff] %v8367_v37 }
 0xb5a   :  { %5365 = vadd.xlane.f32.xlu1 %v5364_v35  ;;  %v8361_v35 = vpop.xlane.xlu1 %4408 }
 0xb5b   :  { %4387 = vadd.xlane.f32.xlu0 %v4386_v34  ;;  %9725 = vst [vmem:[#allocation115_spill] sm:$0xff] %v8361_v35 }
 0xb5e   :  { %4426 = vadd.xlane.f32.xlu1 %v4425_v48  ;;  %v8365_v34 = vpop.permute.xlu1 %4652 }
 0xb5f   :  { %9726 = vst [vmem:[#allocation116_spill] sm:$0xff] %v8365_v34 }
 0xb62   :  { %4420 = vadd.xlane.f32.xlu1 %v4419_v44  ;;  %v4847_v48 = vpop.xlane.xlu1 %4846  ;;  %v8375_v44 = vpop.permute.xlu0 %4586 }
 0xb63   :  { %v5574_v34 = vsel %vm5562_vm11, %v7764_v29, %v4847_v48 }
 0xb66   :  { %v8377_v43 = vpop.permute.xlu1 %5177  ;;  %v8379_v32 = vpop.permute.xlu0 %5111 }
 0xb67   :  { %9729 = vst [vmem:[#allocation118_spill] sm:$0xff] %v8377_v43  ;;  %v4117_v43 = vld [vmem:[%s9564_s1 + $0x1c0] sm:$0xff] }
 0xb68   :  { %v4192_v29 = vmul.f32 %v4117_v43, %v7407_v19 }
 0xb6a   :  { %v8388_v22 = vpop.xlane.xlu0 %4321  ;;  %v4380_v59 = vsel %vm4211_vm10, %v4192_v29, 0.0 }
 0xb6b   :  { %9730 = vst [vmem:[#allocation119_spill] sm:$0xff] %v8388_v22 }
 0xb71   :  { %4626 = vrot.lane.b32.xlu0 %v7411_v26, %s6926_s4 }
 0xb73   :  { %4660 = vrot.lane.b32.xlu1 %v9728_v25, %s6926_s4 }
 0xb75   :  { %5151 = vrot.lane.b32.xlu0 %v7411_v26, %s6927_s16  ;;  %v8390_v26 = vpop.permute.xlu0 %4598 }
 0xb79   :  { %v8395_v63 = vpop.permute.xlu0 %5123 }
 0xb7d   :  { %v5372_v37 = vpop.xlane.xlu1 %5371  ;;  %v8398_v48 = vpop.xlane.xlu0 %4339 }
 0xb7e   :  { %v5650_v35 = vsel %vm5638_vm12, %v5574_v34, %v5372_v37  ;;  %9731 = vst [vmem:[#allocation120_spill] sm:$0xff] %v8398_v48  ;;  %v6863_v34 = vld [vmem:[%s9564_s1 + $0x78] sm:$0xff]  ;;  %v6864_v37 = vld [vmem:[%s9564_s1 + $0x10] sm:$0xff] }
 0xb7f   :  { %5726 = vst.msk [vmem:[%s9565_s5 + $0x58] sm:$0xff] %vm5714_vm13, %v5650_v35  ;;  %v4752_v35 = vmul.f32 %v6863_v34, %v8101_v45  ;;  %v4739_v22 = vmul.f32 %v6864_v37, %v7640_v30  ;;  %v5264_v19 = vmul.f32 %v6864_v37, %v7646_v15  ;;  %v6865_v45 = vld [vmem:[%s9564_s1] sm:$0xff] }
 0xb80   :  { %v4737_v4 = vmul.f32 %v6865_v45, %v7649_v56  ;;  %v5262_v29 = vmul.f32 %v6865_v45, %v7655_v7 }
 0xb81   :  { %v4857_v52 = vsel %vm4211_vm10, %v4752_v35, 0.0  ;;  %v8411_v43 = vpop.permute.xlu0 %4594  ;;  %v4818_v48 = vsel %vm4211_vm10, %v4739_v22, 0.0  ;;  %v5343_v30 = vsel %vm4211_vm10, %v5264_v19, 0.0  ;;  %v6866_v22 = vld [vmem:[%s9564_s1 + $0x18] sm:$0xff] }
 0xb82   :  { %v4812_v15 = vsel %vm4211_vm10, %v4737_v4, 0.0  ;;  %v5337_v56 = vsel %vm4211_vm10, %v5262_v29, 0.0  ;;  %v5265_v35 = vmul.f32 %v6866_v22, %v7680_v13  ;;  %v5277_v29 = vmul.f32 %v6863_v34, %v8122_v47  ;;  %v9737_v34 = vld [vmem:[#allocation15_spill] sm:$0xff] }
 0xb84   :  { %v5346_v4 = vsel %vm4211_vm10, %v5265_v35, 0.0 }
 0xb94   :  { %4381 = vadd.xlane.f32.xlu0 %v4380_v59  ;;  %v8419_v59 = vpop.permute.xlu0 %5119 }
 0xb97   :  { %4858 = vadd.xlane.f32.xlu1 %v4857_v52 }
 0xb98   :  { %4819 = vadd.xlane.f32.xlu0 %v4818_v48  ;;  %v8423_v52 = vpop.xlane.xlu0 %4333  ;;  %v4740_v48 = vmul.f32 %v6866_v22, %v7659_v12  ;;  %v5382_v22 = vsel %vm4211_vm10, %v5277_v29, 0.0 }
 0xb99   :  { %9732 = vst [vmem:[#allocation121_spill] sm:$0xff] %v8423_v52 }
 0xb9a   :  { %v4821_v7 = vsel %vm4211_vm10, %v4740_v48, 0.0 }
 0xb9c   :  { %5344 = vadd.xlane.f32.xlu0 %v5343_v30  ;;  %v8431_v37 = vpop.permute.xlu0 %4606 }
 0xba0   :  { %4813 = vadd.xlane.f32.xlu0 %v4812_v15  ;;  %v8437_v19 = vpop.permute.xlu0 %5131 }
 0xba4   :  { %5338 = vadd.xlane.f32.xlu0 %v5337_v56  ;;  %v8439_v45 = vpop.xlane.xlu0 %4351 }
 0xba5   :  { %9733 = vst [vmem:[#allocation122_spill] sm:$0xff] %v8439_v45 }
 0xba8   :  { %4822 = vadd.xlane.f32.xlu0 %v4821_v7  ;;  %5185 = vrot.lane.b32.xlu1 %v9728_v25, %s6927_s16  ;;  %v8441_v12 = vpop.permute.xlu0 %4602  ;;  %v8461_v7 = vpop.permute.xlu1 %4648 }
 0xba9   :  { %9736 = vst [vmem:[#allocation125_spill] sm:$0xff] %v8461_v7 }
 0xbac   :  { %5347 = vadd.xlane.f32.xlu0 %v5346_v4  ;;  %v8443_v30 = vpop.permute.xlu0 %5127  ;;  %v4123_v4 = vld [vmem:[%s9564_s1 + $0x1f0] sm:$0xff] }
 0xbad   :  { %v4198_v29 = vmul.f32 %v9648_v40, %v4123_v4 }
 0xbb0   :  { %v8445_v13 = vpop.xlane.xlu0 %4345 }
 0xbb1   :  { %9734 = vst [vmem:[#allocation123_spill] sm:$0xff] %v8445_v13 }
 0xbb2   :  { %v4841_v47 = vpop.xlane.xlu1 %4840 }
 0xbb3   :  { %v5572_v52 = vsel %vm5562_vm11, %v7768_v20, %v4841_v47  ;;  %v6867_v20 = vld [vmem:[%s9564_s1 + $0x68] sm:$0xff] }
 0xbb4   :  { %v8452_v15 = vpop.permute.xlu0 %4614 }
 0xbb6   :  { %v8473_v13 = vpop.permute.xlu1 %5173 }
 0xbb7   :  { %9739 = vst [vmem:[#allocation127_spill] sm:$0xff] %v8473_v13 }
 0xbb8   :  { %v8455_v48 = vpop.permute.xlu0 %5139 }
 0xbbc   :  { %v8457_v56 = vpop.xlane.xlu0 %4363 }
 0xbbd   :  { %9735 = vst [vmem:[#allocation124_spill] sm:$0xff] %v8457_v56  ;;  %v4398_v56 = vsel %vm4211_vm10, %v4198_v29, 0.0 }
 0xbc0   :  { %v8459_v35 = vpop.permute.xlu0 %4610 }
 0xbc2   :  { %4638 = vrot.lane.b32.xlu0 %v9669_v3, %s6926_s4 }
 0xbc6   :  { %5163 = vrot.lane.b32.xlu0 %v9669_v3, %s6927_s16  ;;  %v8466_v3 = vpop.permute.xlu0 %5135 }
 0xbcc   :  { %5383 = vadd.xlane.f32.xlu1 %v5382_v22  ;;  %v8471_v22 = vpop.xlane.xlu0 %4357 }
 0xbcd   :  { %9738 = vst [vmem:[#allocation126_spill] sm:$0xff] %v8471_v22 }
 0xbd0   :  { %v8476_v45 = vpop.permute.xlu0 %4622 }
 0xbd4   :  { %v8485_v40 = vpop.permute.xlu0 %5147 }
 0xbd8   :  { %v8487_v4 = vpop.xlane.xlu0 %4375 }
 0xbd9   :  { %9740 = vst [vmem:[#allocation128_spill] sm:$0xff] %v8487_v4 }
 0xbdc   :  { %v8489_v22 = vpop.permute.xlu0 %4618 }
 0xbdd   :  { %4656 = vrot.lane.b32.xlu1 %v9737_v34, %s6926_s4 }
 0xbe5   :  { %4399 = vadd.xlane.f32.xlu0 %v4398_v56  ;;  %v8497_v56 = vpop.permute.xlu0 %5143 }
 0xbe7   :  { %v5366_v7 = vpop.xlane.xlu1 %5365 }
 0xbe8   :  { %v5648_v25 = vsel %vm5638_vm12, %v5572_v52, %v5366_v7  ;;  %v4750_v52 = vmul.f32 %v6867_v20, %v8141_v46  ;;  %v4121_v46 = vld [vmem:[%s9564_s1 + $0x1e0] sm:$0xff] }
 0xbe9   :  { %5724 = vst.msk [vmem:[%s9565_s5 + $0x48] sm:$0xff] %vm5714_vm13, %v5648_v25  ;;  %v8502_v7 = vpop.xlane.xlu0 %4369 }
 0xbea   :  { %v4851_v25 = vsel %vm4211_vm10, %v4750_v52, 0.0  ;;  %9741 = vst [vmem:[#allocation129_spill] sm:$0xff] %v8502_v7  ;;  %v6868_v52 = vld [vmem:[%s9564_s1 + $0x30] sm:$0xff] }
 0xbed   :  { %v8504_v47 = vpop.permute.xlu0 %4630 }
 0xbee   :  { %9742 = vst [vmem:[#allocation130_spill] sm:$0xff] %v8504_v47 }
 0xbf1   :  { %v8506_v29 = vpop.permute.xlu0 %5155 }
 0xbf2   :  { %9743 = vst [vmem:[#allocation131_spill] sm:$0xff] %v8506_v29 }
 0xbf5   :  { %v8508_v4 = vpop.xlane.xlu0 %4387 }
 0xbf6   :  { %9744 = vst [vmem:[#allocation132_spill] sm:$0xff] %v8508_v4 }
 0xbf9   :  { %v8515_v13 = vpop.permute.xlu0 %4626 }
 0xbfa   :  { %9745 = vst [vmem:[#allocation133_spill] sm:$0xff] %v8515_v13 }
 0xbfb   :  { %4634 = vrot.lane.b32.xlu0 %v9671_v5, %s6926_s4 }
 0xbfd   :  { %v8522_v7 = vpop.permute.xlu0 %5151 }
 0xbff   :  { %5159 = vrot.lane.b32.xlu0 %v9671_v5, %s6927_s16  ;;  %v4196_v5 = vmul.f32 %v4121_v46, %v9651_v41  ;;  %v6869_v41 = vld [vmem:[%s9564_s1 + $0x20] sm:$0xff] }
 0xc00   :  { %v4741_v46 = vmul.f32 %v6869_v41, %v7702_v23 }
 0xc01   :  { %4852 = vadd.xlane.f32.xlu1 %v4851_v25  ;;  %v4743_v25 = vmul.f32 %v6868_v52, %v7688_v8  ;;  %v4392_v4 = vsel %vm4211_vm10, %v4196_v5, 0.0  ;;  %v5266_v5 = vmul.f32 %v6869_v41, %v7720_v17  ;;  %v5275_v17 = vmul.f32 %v6867_v20, %v8163_v28 }
 0xc03   :  { %v4830_v47 = vsel %vm4211_vm10, %v4743_v25, 0.0  ;;  %v8550_v25 = vld [vmem:[%s9564_s1 + $0x248] sm:$0xff]  ;;  %v5376_v20 = vsel %vm4211_vm10, %v5275_v17, 0.0 }
 0xc12   :  { %5181 = vrot.lane.b32.xlu1 %v9737_v34, %s6927_s16  ;;  %v5268_v34 = vmul.f32 %v6868_v52, %v7696_v21  ;;  %v4824_v52 = vsel %vm4211_vm10, %v4741_v46, 0.0  ;;  %v9746_v46 = vld [vmem:[#allocation16_spill] sm:$0xff] }
 0xc14   :  { %v5355_v8 = vsel %vm4211_vm10, %v5268_v34, 0.0  ;;  %v5349_v34 = vsel %vm4211_vm10, %v5266_v5, 0.0 }
 0xc1e   :  { %4393 = vadd.xlane.f32.xlu0 %v4392_v4 }
 0xc21   :  { %v8526_v29 = vpop.xlane.xlu0 %4381 }
 0xc22   :  { %4831 = vadd.xlane.f32.xlu0 %v4830_v47 }
 0xc25   :  { %v4820_v13 = vpop.xlane.xlu0 %4819 }
 0xc26   :  { %5356 = vadd.xlane.f32.xlu0 %v5355_v8  ;;  %v5565_v21 = vsel %vm5562_vm11, %v7684_v60, %v4820_v13  ;;  %v4209_v8 = vmul.f32 %v8550_v25, %v9746_v46 }
 0xc29   :  { %v5345_v4 = vpop.xlane.xlu0 %5344 }
 0xc2a   :  { %v5641_v47 = vsel %vm5638_vm12, %v5565_v21, %v5345_v4  ;;  %4825 = vadd.xlane.f32.xlu0 %v4824_v52  ;;  %v4431_v52 = vsel %vm4211_vm10, %v4209_v8, 0.0 }
 0xc2b   :  { %5717 = vst.msk [vmem:[%s9565_s5 + $0x10] sm:$0xff] %vm5714_vm13, %v5641_v47 }
 0xc2d   :  { %v4814_v23 = vpop.xlane.xlu0 %4813 }
 0xc2e   :  { %5350 = vadd.xlane.f32.xlu0 %v5349_v34  ;;  %v5563_v60 = vsel %vm5562_vm11, %v7897_v36, %v4814_v23  ;;  %v6870_v36 = vld [vmem:[%s9564_s1 + $0x98] sm:$0xff] }
 0xc2f   :  { %v4756_v5 = vmul.f32 %v6870_v36, %v8172_v49  ;;  %v5281_v23 = vmul.f32 %v6870_v36, %v8183_v50  ;;  %v8574_v49 = vpop.xlane.xlu1 %4426 }
 0xc31   :  { %v5339_v13 = vpop.xlane.xlu0 %5338  ;;  %v4869_v34 = vsel %vm4211_vm10, %v4756_v5, 0.0 }
 0xc32   :  { %v5639_v41 = vsel %vm5638_vm12, %v5563_v60, %v5339_v13  ;;  %v5394_v60 = vsel %vm4211_vm10, %v5281_v23, 0.0 }
 0xc33   :  { %5715 = vst.msk [vmem:[%s9565_s5] sm:$0xff] %vm5714_vm13, %v5639_v41  ;;  %v8584_v50 = vpop.xlane.xlu1 %4420 }
 0xc35   :  { %v4823_v28 = vpop.xlane.xlu0 %4822 }
 0xc36   :  { %5377 = vadd.xlane.f32.xlu1 %v5376_v20  ;;  %v5566_v21 = vsel %vm5562_vm11, %v7686_v2, %v4823_v28  ;;  %v6871_v2 = vld [vmem:[%s9564_s1 + $0x88] sm:$0xff] }
 0xc37   :  { %v4754_v17 = vmul.f32 %v6871_v2, %v8212_v10  ;;  %v5279_v13 = vmul.f32 %v6871_v2, %v8234_v27  ;;  %v6872_v10 = vld [vmem:[%s9564_s1 + $0xb8] sm:$0xff]  ;;  %v8594_v20 = vpop.permute.xlu1 %4660 }
 0xc38   :  { %v4760_v8 = vmul.f32 %v6872_v10, %v8243_v53  ;;  %v5285_v27 = vmul.f32 %v6872_v10, %v8254_v0  ;;  %v6874_v0 = vld [vmem:[%s9564_s1 + $0xd8] sm:$0xff] }
 0xc39   :  { %v5348_v4 = vpop.xlane.xlu0 %5347  ;;  %v4863_v41 = vsel %vm4211_vm10, %v4754_v17, 0.0  ;;  %v5388_v28 = vsel %vm4211_vm10, %v5279_v13, 0.0  ;;  %v4764_v23 = vmul.f32 %v6874_v0, %v8275_v16  ;;  %v4127_v16 = vld [vmem:[%s9564_s1 + $0x210] sm:$0xff] }
 0xc3a   :  { %v5642_v47 = vsel %vm5638_vm12, %v5566_v21, %v5348_v4  ;;  %4432 = vadd.xlane.f32.xlu1 %v4431_v52  ;;  %v4881_v36 = vsel %vm4211_vm10, %v4760_v8, 0.0  ;;  %v5406_v4 = vsel %vm4211_vm10, %v5285_v27, 0.0 }
 0xc3b   :  { %5718 = vst.msk [vmem:[%s9565_s5 + $0x18] sm:$0xff] %vm5714_vm13, %v5642_v47  ;;  %v4859_v5 = vpop.xlane.xlu1 %4858  ;;  %v4893_v13 = vsel %vm4211_vm10, %v4764_v23, 0.0 }
 0xc3e   :  { %4870 = vadd.xlane.f32.xlu1 %v4869_v34  ;;  %v9747_v34 = vld [vmem:[#allocation25_spill] sm:$0xff] }
 0xc3f   :  { %v8604_v52 = vpop.permute.xlu1 %5185  ;;  %v5578_v2 = vsel %vm5562_vm11, %v9747_v34, %v4859_v5  ;;  %v6876_v5 = vld [vmem:[%s9564_s1 + $0xf8] sm:$0xff] }
 0xc42   :  { %5395 = vadd.xlane.f32.xlu1 %v5394_v60 }
 0xc44   :  { %4646 = vrot.lane.b32.xlu0 %v7445_v31, %s6926_s4 }
 0xc46   :  { %4864 = vadd.xlane.f32.xlu1 %v4863_v41  ;;  %v6875_v41 = vld [vmem:[%s9564_s1 + $0xc8] sm:$0xff] }
 0xc47   :  { %v4762_v10 = vmul.f32 %v6875_v41, %v8290_v18 }
 0xc48   :  { %5171 = vrot.lane.b32.xlu0 %v7445_v31, %s6927_s16  ;;  %v6873_v31 = vld [vmem:[%s9564_s1 + $0xa8] sm:$0xff] }
 0xc49   :  { %v4758_v21 = vmul.f32 %v6873_v31, %v8261_v24  ;;  %v5283_v53 = vmul.f32 %v6873_v31, %v8263_v1  ;;  %v5289_v1 = vmul.f32 %v6874_v0, %v8282_v61  ;;  %v5287_v61 = vmul.f32 %v6875_v41, %v8296_v58  ;;  %v6877_v58 = vld [vmem:[%s9564_s1 + $0xe8] sm:$0xff] }
 0xc4a   :  { %5389 = vadd.xlane.f32.xlu1 %v5388_v28  ;;  %v4202_v28 = vmul.f32 %v9677_v9, %v4127_v16  ;;  %v4887_v27 = vsel %vm4211_vm10, %v4762_v10, 0.0  ;;  %v4768_v31 = vmul.f32 %v6876_v5, %v8304_v39  ;;  %v5293_v9 = vmul.f32 %v6876_v5, %v8306_v14  ;;  %v6878_v14 = vld [vmem:[%s9564_s1 + $0x118] sm:$0xff]  ;;  %v8676_v16 = vpop.permute.xlu0 %4638 }
 0xc4b   :  { %v4875_v47 = vsel %vm4211_vm10, %v4758_v21, 0.0  ;;  %v5400_v17 = vsel %vm4211_vm10, %v5283_v53, 0.0  ;;  %v5418_v8 = vsel %vm4211_vm10, %v5289_v1, 0.0  ;;  %v5412_v18 = vsel %vm4211_vm10, %v5287_v61, 0.0 }
 0xc4c   :  { %v4905_v21 = vsel %vm4211_vm10, %v4768_v31, 0.0  ;;  %v5430_v53 = vsel %vm4211_vm10, %v5293_v9, 0.0  ;;  %v4772_v0 = vmul.f32 %v6878_v14, %v8322_v62  ;;  %v5297_v34 = vmul.f32 %v6878_v14, %v8324_v6  ;;  %v6883_v31 = vld [vmem:[%s9564_s1 + $0x50] sm:$0xff] }
 0xc4e   :  { %4882 = vadd.xlane.f32.xlu1 %v4881_v36  ;;  %v4410_v36 = vsel %vm4211_vm10, %v4202_v28, 0.0  ;;  %v5442_v62 = vsel %vm4211_vm10, %v5297_v34, 0.0 }
 0xc52   :  { %5407 = vadd.xlane.f32.xlu1 %v5406_v4  ;;  %v4766_v4 = vmul.f32 %v6877_v58, %v8312_v11  ;;  %v4917_v11 = vsel %vm4211_vm10, %v4772_v0, 0.0  ;;  %v6885_v0 = vld [vmem:[%s9564_s1 + $0x40] sm:$0xff] }
 0xc54   :  { %v4899_v39 = vsel %vm4211_vm10, %v4766_v4, 0.0  ;;  %v9749_v4 = vld [vmem:[#allocation18_spill] sm:$0xff] }
 0xc56   :  { %4876 = vadd.xlane.f32.xlu1 %v4875_v47  ;;  %v5291_v47 = vmul.f32 %v6877_v58, %v8318_v38  ;;  %v6879_v38 = vld [vmem:[%s9564_s1 + $0x108] sm:$0xff] }
 0xc57   :  { %v5295_v6 = vmul.f32 %v6879_v38, %v8351_v42  ;;  %v6881_v42 = vld [vmem:[%s9564_s1 + $0x128] sm:$0xff] }
 0xc58   :  { %v5424_v23 = vsel %vm4211_vm10, %v5291_v47, 0.0 }
 0xc59   :  { %v5384_v24 = vpop.xlane.xlu1 %5383  ;;  %v5436_v1 = vsel %vm4211_vm10, %v5295_v6, 0.0 }
 0xc5a   :  { %v5654_v60 = vsel %vm5638_vm12, %v5578_v2, %v5384_v24  ;;  %5401 = vadd.xlane.f32.xlu1 %v5400_v17  ;;  %v4770_v2 = vmul.f32 %v6879_v38, %v8341_v51  ;;  %v6880_v17 = vld [vmem:[%s9564_s1 + $0x138] sm:$0xff] }
 0xc5b   :  { %5730 = vst.msk [vmem:[%s9565_s5 + $0x78] sm:$0xff] %vm5714_vm13, %v5654_v60  ;;  %v4776_v60 = vmul.f32 %v6880_v17, %v8359_v57  ;;  %v5301_v51 = vmul.f32 %v6880_v17, %v8363_v54  ;;  %v5299_v57 = vmul.f32 %v6881_v42, %v8379_v32  ;;  %v8681_v54 = vpop.permute.xlu0 %5163  ;;  %v6886_v38 = vld [vmem:[%s9564_s1 + $0x178] sm:$0xff] }
 0xc5c   :  { %v4911_v24 = vsel %vm4211_vm10, %v4770_v2, 0.0 }
 0xc5d   :  { %v5454_v41 = vsel %vm4211_vm10, %v5301_v51, 0.0  ;;  %v5448_v61 = vsel %vm4211_vm10, %v5299_v57, 0.0 }
 0xc5e   :  { %4894 = vadd.xlane.f32.xlu1 %v4893_v13  ;;  %v4774_v13 = vmul.f32 %v6881_v42, %v8375_v44  ;;  %v6882_v44 = vld [vmem:[%s9564_s1 + $0x158] sm:$0xff] }
 0xc5f   :  { %v4780_v28 = vmul.f32 %v6882_v44, %v8390_v26 }
 0xc60   :  { %v4923_v10 = vsel %vm4211_vm10, %v4774_v13, 0.0 }
 0xc61   :  { %v4941_v5 = vsel %vm4211_vm10, %v4780_v28, 0.0 }
 0xc62   :  { %5419 = vadd.xlane.f32.xlu1 %v5418_v8  ;;  %v4125_v8 = vld [vmem:[%s9564_s1 + $0x200] sm:$0xff] }
 0xc63   :  { %v4200_v32 = vmul.f32 %v4125_v8, %v7443_v33  ;;  %v6884_v33 = vld [vmem:[%s9564_s1 + $0x148] sm:$0xff] }
 0xc65   :  { %v4404_v26 = vsel %vm4211_vm10, %v4200_v32, 0.0 }
 0xc66   :  { %4888 = vadd.xlane.f32.xlu1 %v4887_v27 }
 0xc67   :  { %4411 = vadd.xlane.f32.xlu0 %v4410_v36  ;;  %v5305_v36 = vmul.f32 %v6882_v44, %v8395_v63  ;;  %v8740_v44 = vpop.permute.xlu1 %4656 }
 0xc69   :  { %v5466_v63 = vsel %vm4211_vm10, %v5305_v36, 0.0 }
 0xc6a   :  { %5413 = vadd.xlane.f32.xlu1 %v5412_v18  ;;  %v9748_v18 = vld [vmem:[#allocation17_spill] sm:$0xff] }
 0xc6b   :  { %v4747_v9 = vmul.f32 %v6883_v31, %v9748_v18 }
 0xc6d   :  { %v4842_v47 = vsel %vm4211_vm10, %v4747_v9, 0.0 }
 0xc6e   :  { %4906 = vadd.xlane.f32.xlu1 %v4905_v21  ;;  %v4778_v21 = vmul.f32 %v6884_v33, %v8411_v43  ;;  %v9750_v43 = vld [vmem:[#allocation19_spill] sm:$0xff] }
 0xc70   :  { %v4935_v14 = vsel %vm4211_vm10, %v4778_v21, 0.0  ;;  %v6889_v21 = vld [vmem:[%s9564_s1 + $0x188] sm:$0xff] }
 0xc72   :  { %5431 = vadd.xlane.f32.xlu1 %v5430_v53  ;;  %v8692_v27 = vpop.xlane.xlu0 %4399  ;;  %v5272_v53 = vmul.f32 %v6883_v31, %v9749_v4 }
 0xc76   :  { %4900 = vadd.xlane.f32.xlu1 %v4899_v39  ;;  %v8705_v58 = vpop.permute.xlu0 %4634  ;;  %v5303_v39 = vmul.f32 %v6884_v33, %v8419_v59  ;;  %v4784_v59 = vmul.f32 %v6886_v38, %v8431_v37  ;;  %v6887_v37 = vld [vmem:[%s9564_s1 + $0x168] sm:$0xff] }
 0xc77   :  { %v4782_v42 = vmul.f32 %v6887_v37, %v8441_v12  ;;  %v5307_v8 = vmul.f32 %v6887_v37, %v8443_v30 }
 0xc78   :  { %v5460_v2 = vsel %vm4211_vm10, %v5303_v39, 0.0 }
 0xc79   :  { %v4947_v12 = vsel %vm4211_vm10, %v4782_v42, 0.0  ;;  %v5472_v30 = vsel %vm4211_vm10, %v5307_v8, 0.0  ;;  %v9757_v42 = vld [vmem:[#allocation32_spill] sm:$0xff] }
 0xc7a   :  { %5425 = vadd.xlane.f32.xlu1 %v5424_v23  ;;  %v4745_v23 = vmul.f32 %v6885_v0, %v9750_v43  ;;  %v8716_v34 = vpop.permute.xlu0 %5159 }
 0xc7c   :  { %v4836_v17 = vsel %vm4211_vm10, %v4745_v23, 0.0  ;;  %v6890_v23 = vld [vmem:[%s9564_s1 + $0x1b8] sm:$0xff] }
 0xc7d   :  { %4642 = vrot.lane.b32.xlu0 %v7447_v55, %s6926_s4 }
 0xc7e   :  { %4918 = vadd.xlane.f32.xlu1 %v4917_v11  ;;  %v5367_v11 = vsel %vm4211_vm10, %v5272_v53, 0.0 }
 0xc81   :  { %5167 = vrot.lane.b32.xlu0 %v7447_v55, %s6927_s16  ;;  %v4929_v55 = vsel %vm4211_vm10, %v4776_v60, 0.0  ;;  %v5309_v60 = vmul.f32 %v6886_v38, %v8437_v19 }
 0xc82   :  { %5443 = vadd.xlane.f32.xlu1 %v5442_v62  ;;  %v9751_v62 = vld [vmem:[#allocation20_spill] sm:$0xff] }
 0xc83   :  { %v5270_v6 = vmul.f32 %v6885_v0, %v9751_v62  ;;  %v5478_v13 = vsel %vm4211_vm10, %v5309_v60, 0.0  ;;  %v9756_v62 = vld [vmem:[#allocation31_spill] sm:$0xff] }
 0xc86   :  { %4912 = vadd.xlane.f32.xlu1 %v4911_v24 }
 0xc8a   :  { %5437 = vadd.xlane.f32.xlu1 %v5436_v1  ;;  %v4953_v1 = vsel %vm4211_vm10, %v4784_v59, 0.0  ;;  %v5317_v59 = vmul.f32 %v6890_v23, %v8485_v40 }
 0xc8c   :  { %v5502_v40 = vsel %vm4211_vm10, %v5317_v59, 0.0 }
 0xc8e   :  { %4930 = vadd.xlane.f32.xlu1 %v4929_v55  ;;  %v5361_v55 = vsel %vm4211_vm10, %v5270_v6, 0.0  ;;  %v4853_v36 = vpop.xlane.xlu1 %4852 }
 0xc92   :  { %5455 = vadd.xlane.f32.xlu1 %v5454_v41  ;;  %v9752_v41 = vld [vmem:[#allocation54_spill] sm:$0xff] }
 0xc96   :  { %4924 = vadd.xlane.f32.xlu1 %v4923_v10 }
 0xc9a   :  { %5449 = vadd.xlane.f32.xlu1 %v5448_v61  ;;  %v6888_v61 = vld [vmem:[%s9564_s1 + $0x198] sm:$0xff] }
 0xc9b   :  { %v4788_v32 = vmul.f32 %v6888_v61, %v8452_v15  ;;  %v8761_v15 = vpop.permute.xlu1 %5181 }
 0xc9d   :  { %v4965_v33 = vsel %vm4211_vm10, %v4788_v32, 0.0  ;;  %v9760_v32 = vld [vmem:[#allocation37_spill] sm:$0xff] }
 0xc9e   :  { %4942 = vadd.xlane.f32.xlu1 %v4941_v5  ;;  %v9753_v5 = vld [vmem:[#allocation62_spill] sm:$0xff] }
 0xca0   :  { %4405 = vadd.xlane.f32.xlu0 %v4404_v26  ;;  %v5313_v26 = vmul.f32 %v6888_v61, %v8455_v48  ;;  %v9754_v48 = vld [vmem:[#allocation26_spill] sm:$0xff] }
 0xca1   :  { %v5576_v53 = vsel %vm5562_vm11, %v9754_v48, %v4853_v36 }
 0xca2   :  { %5467 = vadd.xlane.f32.xlu1 %v5466_v63  ;;  %v4786_v63 = vmul.f32 %v6889_v21, %v8459_v35  ;;  %v5490_v4 = vsel %vm4211_vm10, %v5313_v26, 0.0  ;;  %v9755_v35 = vld [vmem:[#allocation12_spill] sm:$0xff] }
 0xca4   :  { %4843 = vadd.xlane.f32.xlu0 %v4842_v47  ;;  %v4959_v0 = vsel %vm4211_vm10, %v4786_v63, 0.0  ;;  %v9762_v63 = vld [vmem:[#allocation10_spill] sm:$0xff] }
 0xca6   :  { %4936 = vadd.xlane.f32.xlu1 %v4935_v14  ;;  %v5311_v14 = vmul.f32 %v6889_v21, %v8466_v3 }
 0xca8   :  { %5368 = vadd.xlane.f32.xlu0 %v5367_v11  ;;  %v4792_v11 = vmul.f32 %v6890_v23, %v8476_v45  ;;  %v5484_v3 = vsel %vm4211_vm10, %v5311_v14, 0.0  ;;  %v6891_v45 = vld [vmem:[%s9564_s1 + $0x1a8] sm:$0xff]  ;;  %v6894_v23 = vld [vmem:[%s9564_s1 + $0x1f8] sm:$0xff] }
 0xca9   :  { %v5325_v59 = vmul.f32 %v6894_v23, %v8681_v54 }
 0xcaa   :  { %5461 = vadd.xlane.f32.xlu1 %v5460_v2  ;;  %v4977_v2 = vsel %vm4211_vm10, %v4792_v11, 0.0  ;;  %v4800_v11 = vmul.f32 %v6894_v23, %v8676_v16 }
 0xcab   :  { %v8725_v24 = vpop.xlane.xlu0 %4393  ;;  %v5526_v54 = vsel %vm4211_vm10, %v5325_v59, 0.0 }
 0xcac   :  { %4837 = vadd.xlane.f32.xlu0 %v4836_v17 }
 0xcae   :  { %4954 = vadd.xlane.f32.xlu1 %v4953_v1  ;;  %v4790_v1 = vmul.f32 %v6891_v45, %v8489_v22 }
 0xcaf   :  { %v4832_v51 = vpop.xlane.xlu0 %4831 }
 0xcb0   :  { %5362 = vadd.xlane.f32.xlu0 %v5361_v55  ;;  %v5569_v57 = vsel %vm5562_vm11, %v9752_v41, %v4832_v51  ;;  %v5315_v55 = vmul.f32 %v6891_v45, %v8497_v56  ;;  %v4971_v37 = vsel %vm4211_vm10, %v4790_v1, 0.0 }
 0xcb2   :  { %5479 = vadd.xlane.f32.xlu1 %v5478_v13  ;;  %v5496_v56 = vsel %vm4211_vm10, %v5315_v55, 0.0 }
 0xcb3   :  { %v5357_v19 = vpop.xlane.xlu0 %5356 }
 0xcb4   :  { %v5645_v10 = vsel %vm5638_vm12, %v5569_v57, %v5357_v19  ;;  %v6892_v57 = vld [vmem:[%s9564_s1 + $0x1d8] sm:$0xff]  ;;  %v9758_v19 = vld [vmem:[#allocation130_spill] sm:$0xff] }
 0xcb5   :  { %5721 = vst.msk [vmem:[%s9565_s5 + $0x30] sm:$0xff] %vm5714_vm13, %v5645_v10  ;;  %v4796_v10 = vmul.f32 %v6892_v57, %v9758_v19 }
 0xcb6   :  { %4948 = vadd.xlane.f32.xlu1 %v4947_v12  ;;  %v9759_v12 = vld [vmem:[#allocation131_spill] sm:$0xff] }
 0xcb7   :  { %v4826_v28 = vpop.xlane.xlu0 %4825  ;;  %v4989_v61 = vsel %vm4211_vm10, %v4796_v10, 0.0 }
 0xcb8   :  { %v5567_v31 = vsel %vm5562_vm11, %v9753_v5, %v4826_v28  ;;  %v5321_v28 = vmul.f32 %v6892_v57, %v9759_v12  ;;  %v9767_v12 = vld [vmem:[#allocation49_spill] sm:$0xff] }
 0xcba   :  { %5473 = vadd.xlane.f32.xlu1 %v5472_v30 }
 0xcbb   :  { %v5351_v18 = vpop.xlane.xlu0 %5350 }
 0xcbc   :  { %v5643_v9 = vsel %vm5638_vm12, %v5567_v31, %v5351_v18  ;;  %v8824_v31 = vld [vmem:[%s9564_s1 + $0x230] sm:$0xff]  ;;  %v6893_v18 = vld [vmem:[%s9564_s1 + $0x1c8] sm:$0xff] }
 0xcbd   :  { %5719 = vst.msk [vmem:[%s9565_s5 + $0x20] sm:$0xff] %vm5714_vm13, %v5643_v9  ;;  %v9761_v9 = vld [vmem:[#allocation133_spill] sm:$0xff]  ;;  %v5319_v48 = vmul.f32 %v6893_v18, %v8522_v7 }
 0xcbe   :  { %4966 = vadd.xlane.f32.xlu1 %v4965_v33  ;;  %v4794_v26 = vmul.f32 %v6893_v18, %v9761_v9  ;;  %v5514_v33 = vsel %vm4211_vm10, %v5321_v28, 0.0 }
 0xcbf   :  { %v5508_v7 = vsel %vm4211_vm10, %v5319_v48, 0.0 }
 0xcc2   :  { %5491 = vadd.xlane.f32.xlu1 %v5490_v4  ;;  %v4206_v4 = vmul.f32 %v9762_v63, %v8824_v31  ;;  %v9770_v63 = vld [vmem:[#allocation50_spill] sm:$0xff] }
 0xcc3   :  { %v5378_v47 = vpop.xlane.xlu1 %5377 }
 0xcc4   :  { %v5652_v39 = vsel %vm5638_vm12, %v5576_v53, %v5378_v47  ;;  %v4983_v53 = vsel %vm4211_vm10, %v4794_v26, 0.0  ;;  %v9763_v47 = vld [vmem:[#allocation38_spill] sm:$0xff] }
 0xcc5   :  { %5728 = vst.msk [vmem:[%s9565_s5 + $0x68] sm:$0xff] %vm5714_vm13, %v5652_v39 }
 0xcc6   :  { %4654 = vrot.lane.b32.xlu0 %v9755_v35, %s6926_s4  ;;  %4960 = vadd.xlane.f32.xlu1 %v4959_v0 }
 0xcc7   :  { %v8779_v43 = vpop.xlane.xlu1 %4432 }
 0xcca   :  { %5179 = vrot.lane.b32.xlu0 %v9755_v35, %s6927_s16  ;;  %5485 = vadd.xlane.f32.xlu1 %v5484_v3  ;;  %v4422_v35 = vsel %vm4211_vm10, %v4206_v4, 0.0 }
 0xccb   :  { %v4871_v38 = vpop.xlane.xlu1 %4870 }
 0xccc   :  { %v5582_v6 = vsel %vm5562_vm11, %v9756_v62, %v4871_v38  ;;  %v4647_v38 = vpop.permute.xlu0 %4646  ;;  %v9764_v62 = vld [vmem:[#allocation43_spill] sm:$0xff] }
 0xcce   :  { %4978 = vadd.xlane.f32.xlu1 %v4977_v2  ;;  %v5001_v2 = vsel %vm4211_vm10, %v4800_v11, 0.0 }
 0xccf   :  { %v5396_v17 = vpop.xlane.xlu1 %5395 }
 0xcd0   :  { %v5658_v60 = vsel %vm5638_vm12, %v5582_v6, %v5396_v17  ;;  %v5172_v1 = vpop.permute.xlu0 %5171 }
 0xcd1   :  { %5734 = vst.msk [vmem:[%s9565_s5 + $0x98] sm:$0xff] %vm5714_vm13, %v5658_v60  ;;  %v6895_v60 = vld [vmem:[%s9564_s1 + $0x1e8] sm:$0xff] }
 0xcd2   :  { %5503 = vadd.xlane.f32.xlu1 %v5502_v40  ;;  %v4798_v45 = vmul.f32 %v6895_v60, %v8705_v58 }
 0xcd3   :  { %v4865_v51 = vpop.xlane.xlu1 %4864 }
 0xcd4   :  { %v5580_v13 = vsel %vm5562_vm11, %v9757_v42, %v4865_v51  ;;  %v5323_v51 = vmul.f32 %v6895_v60, %v8716_v34  ;;  %v4995_v55 = vsel %vm4211_vm10, %v4798_v45, 0.0  ;;  %v9765_v42 = vld [vmem:[#allocation44_spill] sm:$0xff] }
 0xcd6   :  { %4972 = vadd.xlane.f32.xlu1 %v4971_v37  ;;  %v5520_v34 = vsel %vm4211_vm10, %v5323_v51, 0.0 }
 0xcd7   :  { %v5390_v41 = vpop.xlane.xlu1 %5389 }
 0xcd8   :  { %v5656_v22 = vsel %vm5638_vm12, %v5580_v13, %v5390_v41 }
 0xcd9   :  { %5732 = vst.msk [vmem:[%s9565_s5 + $0x88] sm:$0xff] %vm5714_vm13, %v5656_v22  ;;  %v9766_v22 = vld [vmem:[#allocation95_spill] sm:$0xff] }
 0xcda   :  { %5497 = vadd.xlane.f32.xlu1 %v5496_v56  ;;  %v4804_v57 = vmul.f32 %v4647_v38, %v9766_v22  ;;  %v5329_v56 = vmul.f32 %v5172_v1, %v9766_v22  ;;  %v6896_v1 = vld [vmem:[%s9564_s1 + $0x70] sm:$0xff]  ;;  %v9777_v22 = vld [vmem:[#allocation61_spill] sm:$0xff] }
 0xcdb   :  { %v4883_v8 = vpop.xlane.xlu1 %4882 }
 0xcdc   :  { %v5586_v36 = vsel %vm5562_vm11, %v9760_v32, %v4883_v8  ;;  %v5013_v8 = vsel %vm4211_vm10, %v4804_v57, 0.0  ;;  %v5538_v18 = vsel %vm4211_vm10, %v5329_v56, 0.0  ;;  %v9778_v56 = vld [vmem:[#allocation23_spill] sm:$0xff] }
 0xcde   :  { %4990 = vadd.xlane.f32.xlu1 %v4989_v61  ;;  %v9768_v61 = vld [vmem:[#allocation13_spill] sm:$0xff] }
 0xcdf   :  { %v5408_v30 = vpop.xlane.xlu1 %5407 }
 0xce0   :  { %v5662_v5 = vsel %vm5638_vm12, %v5586_v36, %v5408_v30  ;;  %v9769_v30 = vld [vmem:[#allocation96_spill] sm:$0xff] }
 0xce1   :  { %5738 = vst.msk [vmem:[%s9565_s5 + $0xb8] sm:$0xff] %vm5714_vm13, %v5662_v5 }
 0xce2   :  { %5515 = vadd.xlane.f32.xlu1 %v5514_v33 }
 0xce3   :  { %v4877_v21 = vpop.xlane.xlu1 %4876 }
 0xce4   :  { %v5584_v39 = vsel %vm5562_vm11, %v9763_v47, %v4877_v21 }
 0xce6   :  { %4984 = vadd.xlane.f32.xlu1 %v4983_v53 }
 0xce7   :  { %v5402_v14 = vpop.xlane.xlu1 %5401 }
 0xce8   :  { %v5660_v0 = vsel %vm5638_vm12, %v5584_v39, %v5402_v14  ;;  %v9771_v14 = vld [vmem:[#allocation56_spill] sm:$0xff] }
 0xce9   :  { %5736 = vst.msk [vmem:[%s9565_s5 + $0xa8] sm:$0xff] %vm5714_vm13, %v5660_v0  ;;  %4423 = vadd.xlane.f32.xlu0 %v4422_v35 }
 0xcea   :  { %5509 = vadd.xlane.f32.xlu1 %v5508_v7  ;;  %v9772_v7 = vld [vmem:[#allocation4_spill] sm:$0xff] }
 0xceb   :  { %v4895_v3 = vpop.xlane.xlu1 %4894 }
 0xcec   :  { %v5590_v6 = vsel %vm5562_vm11, %v9764_v62, %v4895_v3 }
 0xcee   :  { %5002 = vadd.xlane.f32.xlu1 %v5001_v2  ;;  %v8921_v2 = vld [vmem:[%s9564_s1 + $0x220] sm:$0xff] }
 0xcef   :  { %v5420_v16 = vpop.xlane.xlu1 %5419 }
 0xcf0   :  { %v5666_v17 = vsel %vm5638_vm12, %v5590_v6, %v5420_v16  ;;  %v9773_v6 = vld [vmem:[#allocation11_spill] sm:$0xff] }
 0xcf1   :  { %5742 = vst.msk [vmem:[%s9565_s5 + $0xd8] sm:$0xff] %vm5714_vm13, %v5666_v17  ;;  %v4204_v16 = vmul.f32 %v8921_v2, %v9773_v6  ;;  %v9774_v17 = vld [vmem:[#allocation60_spill] sm:$0xff] }
 0xcf2   :  { %5527 = vadd.xlane.f32.xlu1 %v5526_v54 }
 0xcf3   :  { %v4889_v40 = vpop.xlane.xlu1 %4888 }
 0xcf4   :  { %v8868_v37 = vpop.xlane.xlu0 %4411  ;;  %v5588_v58 = vsel %vm5562_vm11, %v9765_v42, %v4889_v40  ;;  %v9775_v40 = vld [vmem:[#allocation21_spill] sm:$0xff] }
 0xcf5   :  { %v4751_v51 = vmul.f32 %v6896_v1, %v9775_v40 }
 0xcf6   :  { %4996 = vadd.xlane.f32.xlu1 %v4995_v55  ;;  %v4416_v55 = vsel %vm4211_vm10, %v4204_v16, 0.0 }
 0xcf7   :  { %v5414_v13 = vpop.xlane.xlu1 %5413 }
 0xcf8   :  { %v5664_v41 = vsel %vm5638_vm12, %v5588_v58, %v5414_v13  ;;  %v4643_v10 = vpop.permute.xlu0 %4642  ;;  %v9776_v58 = vld [vmem:[#allocation22_spill] sm:$0xff] }
 0xcf9   :  { %5740 = vst.msk [vmem:[%s9565_s5 + $0xc8] sm:$0xff] %vm5714_vm13, %v5664_v41  ;;  %v4802_v5 = vmul.f32 %v4643_v10, %v9769_v30  ;;  %v5276_v13 = vmul.f32 %v6896_v1, %v9776_v58  ;;  %v4854_v41 = vsel %vm4211_vm10, %v4751_v51, 0.0  ;;  %v6897_v10 = vld [vmem:[%s9564_s1 + $0x60] sm:$0xff]  ;;  %v9786_v51 = vld [vmem:[#allocation112_spill] sm:$0xff] }
 0xcfa   :  { %5521 = vadd.xlane.f32.xlu1 %v5520_v34 }
 0xcfb   :  { %v4907_v19 = vpop.xlane.xlu1 %4906  ;;  %v5007_v21 = vsel %vm4211_vm10, %v4802_v5, 0.0  ;;  %v8958_v5 = vld [vmem:[%s9564_s1 + $0x250] sm:$0xff] }
 0xcfc   :  { %v5594_v28 = vsel %vm5562_vm11, %v9767_v12, %v4907_v19  ;;  %v5168_v9 = vpop.permute.xlu0 %5167  ;;  %v5379_v12 = vsel %vm4211_vm10, %v5276_v13, 0.0 }
 0xcfd   :  { %v5327_v33 = vmul.f32 %v5168_v9, %v9769_v30 }
 0xcfe   :  { %5014 = vadd.xlane.f32.xlu1 %v5013_v8  ;;  %v4749_v8 = vmul.f32 %v6897_v10, %v9778_v56 }
 0xcff   :  { %4650 = vrot.lane.b32.xlu0 %v9768_v61, %s6926_s4  ;;  %v5432_v32 = vpop.xlane.xlu1 %5431  ;;  %v5532_v47 = vsel %vm4211_vm10, %v5327_v33, 0.0 }
 0xd00   :  { %v5670_v36 = vsel %vm5638_vm12, %v5594_v28, %v5432_v32  ;;  %v4848_v30 = vsel %vm4211_vm10, %v4749_v8, 0.0  ;;  %v9788_v8 = vld [vmem:[#allocation76_spill] sm:$0xff] }
 0xd01   :  { %5746 = vst.msk [vmem:[%s9565_s5 + $0xf8] sm:$0xff] %vm5714_vm13, %v5670_v36 }
 0xd02   :  { %5539 = vadd.xlane.f32.xlu1 %v5538_v18  ;;  %v9780_v18 = vld [vmem:[#allocation66_spill] sm:$0xff] }
 0xd03   :  { %5175 = vrot.lane.b32.xlu0 %v9768_v61, %s6927_s16  ;;  %v4901_v26 = vpop.xlane.xlu1 %4900  ;;  %v9779_v61 = vld [vmem:[#allocation24_spill] sm:$0xff] }
 0xd04   :  { %v5592_v4 = vsel %vm5562_vm11, %v9770_v63, %v4901_v26  ;;  %v5274_v32 = vmul.f32 %v6897_v10, %v9779_v61 }
 0xd06   :  { %5008 = vadd.xlane.f32.xlu1 %v5007_v21  ;;  %v9781_v21 = vld [vmem:[#allocation14_spill] sm:$0xff] }
 0xd07   :  { %v5426_v48 = vpop.xlane.xlu1 %5425  ;;  %v4210_v63 = vmul.f32 %v9781_v21, %v8958_v5  ;;  %v9790_v21 = vld [vmem:[#allocation82_spill] sm:$0xff] }
 0xd08   :  { %v5668_v53 = vsel %vm5638_vm12, %v5592_v4, %v5426_v48  ;;  %v5373_v48 = vsel %vm4211_vm10, %v5274_v32, 0.0 }
 0xd09   :  { %5744 = vst.msk [vmem:[%s9565_s5 + $0xe8] sm:$0xff] %vm5714_vm13, %v5668_v53 }
 0xd0a   :  { %5533 = vadd.xlane.f32.xlu1 %v5532_v47  ;;  %v9782_v47 = vld [vmem:[#allocation8_spill] sm:$0xff] }
 0xd0b   :  { %v4919_v39 = vpop.xlane.xlu1 %4918 }
 0xd0c   :  { %v5598_v0 = vsel %vm5562_vm11, %v9771_v14, %v4919_v39 }
 0xd0f   :  { %v5444_v35 = vpop.xlane.xlu1 %5443 }
 0xd10   :  { %v5674_v23 = vsel %vm5638_vm12, %v5598_v0, %v5444_v35  ;;  %v4434_v0 = vsel %vm4211_vm10, %v4210_v63, 0.0 }
 0xd11   :  { %5750 = vst.msk [vmem:[%s9565_s5 + $0x118] sm:$0xff] %vm5714_vm13, %v5674_v23  ;;  %v9783_v23 = vld [vmem:[#allocation67_spill] sm:$0xff] }
 0xd13   :  { %v4913_v11 = vpop.xlane.xlu1 %4912 }
 0xd14   :  { %v5596_v3 = vsel %vm5562_vm11, %v9772_v7, %v4913_v11 }
 0xd17   :  { %v5438_v38 = vpop.xlane.xlu1 %5437 }
 0xd18   :  { %v5672_v59 = vsel %vm5638_vm12, %v5596_v3, %v5438_v38 }
 0xd19   :  { %5748 = vst.msk [vmem:[%s9565_s5 + $0x108] sm:$0xff] %vm5714_vm13, %v5672_v59 }
 0xd1b   :  { %v4931_v62 = vpop.xlane.xlu1 %4930 }
 0xd1c   :  { %v5602_v60 = vsel %vm5562_vm11, %v9774_v17, %v4931_v62  ;;  %v9784_v62 = vld [vmem:[#allocation80_spill] sm:$0xff] }
 0xd1f   :  { %v5456_v45 = vpop.xlane.xlu1 %5455 }
 0xd20   :  { %v5678_v54 = vsel %vm5638_vm12, %v5602_v60, %v5456_v45  ;;  %v9785_v60 = vld [vmem:[#allocation7_spill] sm:$0xff] }
 0xd21   :  { %5754 = vst.msk [vmem:[%s9565_s5 + $0x138] sm:$0xff] %vm5714_vm13, %v5678_v54 }
 0xd22   :  { %4417 = vadd.xlane.f32.xlu0 %v4416_v55 }
 0xd23   :  { %v4925_v42 = vpop.xlane.xlu1 %4924 }
 0xd24   :  { %v5600_v57 = vsel %vm5562_vm11, %v9777_v22, %v4925_v42  ;;  %v9787_v22 = vld [vmem:[#allocation72_spill] sm:$0xff] }
 0xd26   :  { %4855 = vadd.xlane.f32.xlu0 %v4854_v41 }
 0xd27   :  { %v5450_v34 = vpop.xlane.xlu1 %5449 }
 0xd28   :  { %v5676_v19 = vsel %vm5638_vm12, %v5600_v57, %v5450_v34 }
 0xd29   :  { %5752 = vst.msk [vmem:[%s9565_s5 + $0x128] sm:$0xff] %vm5714_vm13, %v5676_v19 }
 0xd2a   :  { %5380 = vadd.xlane.f32.xlu0 %v5379_v12 }
 0xd2b   :  { %v4943_v28 = vpop.xlane.xlu1 %4942 }
 0xd2c   :  { %v5606_v9 = vsel %vm5562_vm11, %v9780_v18, %v4943_v28 }
 0xd2d   :  { %v8952_v36 = vpop.xlane.xlu0 %4405 }
 0xd2e   :  { %4849 = vadd.xlane.f32.xlu0 %v4848_v30  ;;  %v9789_v30 = vld [vmem:[#allocation77_spill] sm:$0xff] }
 0xd2f   :  { %v5468_v26 = vpop.xlane.xlu1 %5467 }
 0xd30   :  { %v5682_v33 = vsel %vm5638_vm12, %v5606_v9, %v5468_v26 }
 0xd31   :  { %5758 = vst.msk [vmem:[%s9565_s5 + $0x158] sm:$0xff] %vm5714_vm13, %v5682_v33  ;;  %v4844_v4 = vpop.xlane.xlu0 %4843 }
 0xd32   :  { %5374 = vadd.xlane.f32.xlu0 %v5373_v48  ;;  %v5573_v39 = vsel %vm5562_vm11, %v9782_v47, %v4844_v4  ;;  %v9791_v47 = vld [vmem:[#allocation83_spill] sm:$0xff] }
 0xd33   :  { %v4937_v53 = vpop.xlane.xlu1 %4936 }
 0xd34   :  { %v5604_v11 = vsel %vm5562_vm11, %v9783_v23, %v4937_v53  ;;  %v9038_v53 = vld [vmem:[%s9564_s1 + $0x240] sm:$0xff] }
 0xd35   :  { %v5369_v14 = vpop.xlane.xlu0 %5368 }
 0xd36   :  { %v5649_v35 = vsel %vm5638_vm12, %v5573_v39, %v5369_v14  ;;  %4435 = vadd.xlane.f32.xlu0 %v4434_v0 }
 0xd37   :  { %5725 = vst.msk [vmem:[%s9565_s5 + $0x50] sm:$0xff] %vm5714_vm13, %v5649_v35  ;;  %v5462_v7 = vpop.xlane.xlu1 %5461  ;;  %v9792_v35 = vld [vmem:[#allocation15_spill] sm:$0xff] }
 0xd38   :  { %v5680_v3 = vsel %vm5638_vm12, %v5604_v11, %v5462_v7  ;;  %v4208_v23 = vmul.f32 %v9038_v53, %v9792_v35  ;;  %v6898_v7 = vld [vmem:[%s9564_s1 + $0x90] sm:$0xff]  ;;  %v6902_v35 = vld [vmem:[%s9564_s1 + $0xa0] sm:$0xff] }
 0xd39   :  { %5756 = vst.msk [vmem:[%s9565_s5 + $0x148] sm:$0xff] %vm5714_vm13, %v5680_v3  ;;  %v4838_v38 = vpop.xlane.xlu0 %4837  ;;  %v9793_v3 = vld [vmem:[#allocation27_spill] sm:$0xff] }
 0xd3a   :  { %v5571_v6 = vsel %vm5562_vm11, %v9784_v62, %v4838_v38  ;;  %v4755_v38 = vmul.f32 %v6898_v7, %v9793_v3  ;;  %v9794_v62 = vld [vmem:[#allocation88_spill] sm:$0xff]  ;;  %v9803_v3 = vld [vmem:[#allocation99_spill] sm:$0xff] }
 0xd3b   :  { %v4955_v59 = vpop.xlane.xlu1 %4954 }
 0xd3c   :  { %v5610_v45 = vsel %vm5562_vm11, %v9785_v60, %v4955_v59  ;;  %v4428_v59 = vsel %vm4211_vm10, %v4208_v23, 0.0  ;;  %v9795_v60 = vld [vmem:[#allocation28_spill] sm:$0xff]  ;;  %v9802_v23 = vld [vmem:[#allocation35_spill] sm:$0xff] }
 0xd3d   :  { %v5363_v16 = vpop.xlane.xlu0 %5362 }
 0xd3e   :  { %v5647_v17 = vsel %vm5638_vm12, %v5571_v6, %v5363_v16 }
 0xd3f   :  { %5723 = vst.msk [vmem:[%s9565_s5 + $0x40] sm:$0xff] %vm5714_vm13, %v5647_v17  ;;  %v5480_v54 = vpop.xlane.xlu1 %5479 }
 0xd40   :  { %v5686_v1 = vsel %vm5638_vm12, %v5610_v45, %v5480_v54  ;;  %v5280_v45 = vmul.f32 %v6898_v7, %v9795_v60  ;;  %v4866_v54 = vsel %vm4211_vm10, %v4755_v38, 0.0 }
 0xd41   :  { %5762 = vst.msk [vmem:[%s9565_s5 + $0x178] sm:$0xff] %vm5714_vm13, %v5686_v1  ;;  %v4655_v40 = vpop.permute.xlu0 %4654 }
 0xd42   :  { %v4808_v55 = vmul.f32 %v4655_v40, %v9786_v51  ;;  %v6899_v40 = vld [vmem:[%s9564_s1 + $0x80] sm:$0xff] }
 0xd43   :  { %v4949_v42 = vpop.xlane.xlu1 %4948 }
 0xd44   :  { %v5025_v58 = vsel %vm4211_vm10, %v4808_v55, 0.0  ;;  %v5608_v57 = vsel %vm5562_vm11, %v9787_v22, %v4949_v42 }
 0xd45   :  { %v5180_v13 = vpop.permute.xlu0 %5179  ;;  %5026 = vadd.xlane.f32.xlu1 %v5025_v58  ;;  %v5391_v58 = vsel %vm4211_vm10, %v5280_v45, 0.0  ;;  %v6903_v45 = vld [vmem:[%s9564_s1 + $0xd0] sm:$0xff] }
 0xd46   :  { %v5333_v41 = vmul.f32 %v5180_v13, %v9786_v51  ;;  %v9796_v51 = vld [vmem:[#allocation29_spill] sm:$0xff] }
 0xd47   :  { %v5474_v34 = vpop.xlane.xlu1 %5473  ;;  %v4753_v55 = vmul.f32 %v6899_v40, %v9796_v51  ;;  %v9797_v13 = vld [vmem:[#allocation89_spill] sm:$0xff]  ;;  %v9806_v51 = vld [vmem:[#allocation114_spill] sm:$0xff] }
 0xd48   :  { %v5684_v19 = vsel %vm5638_vm12, %v5608_v57, %v5474_v34  ;;  %v5550_v10 = vsel %vm4211_vm10, %v5333_v41, 0.0  ;;  %v9798_v34 = vld [vmem:[#allocation30_spill] sm:$0xff] }
 0xd49   :  { %5760 = vst.msk [vmem:[%s9565_s5 + $0x168] sm:$0xff] %vm5714_vm13, %v5684_v19  ;;  %5551 = vadd.xlane.f32.xlu1 %v5550_v10  ;;  %v5278_v19 = vmul.f32 %v6899_v40, %v9798_v34 }
 0xd4b   :  { %v4967_v56 = vpop.xlane.xlu1 %4966 }
 0xd4c   :  { %4658 = vrot.lane.b32.xlu0 %v9746_v46, %s6926_s4  ;;  %v5614_v12 = vsel %vm5562_vm11, %v9788_v8, %v4967_v56  ;;  %v4860_v56 = vsel %vm4211_vm10, %v4753_v55, 0.0  ;;  %v6900_v8 = vld [vmem:[%s9564_s1 + $0x228] sm:$0xff] }
 0xd4f   :  { %v5492_v28 = vpop.xlane.xlu1 %5491 }
 0xd50   :  { %v5690_v61 = vsel %vm5638_vm12, %v5614_v12, %v5492_v28  ;;  %5183 = vrot.lane.b32.xlu0 %v9746_v46, %s6927_s16 }
 0xd51   :  { %5766 = vst.msk [vmem:[%s9565_s5 + $0x198] sm:$0xff] %vm5714_vm13, %v5690_v61 }
 0xd53   :  { %v4961_v32 = vpop.xlane.xlu1 %4960 }
 0xd54   :  { %v5612_v18 = vsel %vm5562_vm11, %v9789_v30, %v4961_v32  ;;  %v6901_v32 = vld [vmem:[%s9564_s1 + $0xb0] sm:$0xff]  ;;  %v9799_v30 = vld [vmem:[#allocation33_spill] sm:$0xff] }
 0xd57   :  { %v5486_v9 = vpop.xlane.xlu1 %5485 }
 0xd58   :  { %v5688_v26 = vsel %vm5638_vm12, %v5612_v18, %v5486_v9  ;;  %v4759_v18 = vmul.f32 %v6901_v32, %v9799_v30  ;;  %v9810_v30 = vld [vmem:[#allocation42_spill] sm:$0xff] }
 0xd59   :  { %5764 = vst.msk [vmem:[%s9565_s5 + $0x188] sm:$0xff] %vm5714_vm13, %v5688_v26  ;;  %v5385_v26 = vsel %vm4211_vm10, %v5278_v19, 0.0  ;;  %v6904_v19 = vld [vmem:[%s9564_s1 + $0xc0] sm:$0xff] }
 0xd5b   :  { %v4979_v33 = vpop.xlane.xlu1 %4978 }
 0xd5c   :  { %v5618_v46 = vsel %vm5562_vm11, %v9790_v21, %v4979_v33  ;;  %v9800_v33 = vld [vmem:[#allocation97_spill] sm:$0xff] }
 0xd5f   :  { %v5504_v63 = vpop.xlane.xlu1 %5503 }
 0xd60   :  { %v5694_v4 = vsel %vm5638_vm12, %v5618_v46, %v5504_v63 }
 0xd61   :  { %5770 = vst.msk [vmem:[%s9565_s5 + $0x1b8] sm:$0xff] %vm5714_vm13, %v5694_v4 }
 0xd63   :  { %v4973_v48 = vpop.xlane.xlu1 %4972 }
 0xd64   :  { %v5616_v39 = vsel %vm5562_vm11, %v9791_v47, %v4973_v48  ;;  %v9801_v47 = vld [vmem:[#allocation34_spill] sm:$0xff] }
 0xd67   :  { %v5498_v14 = vpop.xlane.xlu1 %5497 }
 0xd68   :  { %v5692_v0 = vsel %vm5638_vm12, %v5616_v39, %v5498_v14  ;;  %v5284_v39 = vmul.f32 %v6901_v32, %v9801_v47  ;;  %v4878_v14 = vsel %vm4211_vm10, %v4759_v18, 0.0  ;;  %v5286_v18 = vmul.f32 %v6904_v19, %v9810_v30  ;;  %v6906_v47 = vld [vmem:[%s9564_s1 + $0xe0] sm:$0xff]  ;;  %v9822_v30 = vld [vmem:[#allocation5_spill] sm:$0xff] }
 0xd69   :  { %5768 = vst.msk [vmem:[%s9565_s5 + $0x1a8] sm:$0xff] %vm5714_vm13, %v5692_v0 }
 0xd6a   :  { %v5403_v7 = vsel %vm4211_vm10, %v5284_v39, 0.0  ;;  %v9813_v39 = vld [vmem:[#allocation47_spill] sm:$0xff] }
 0xd6b   :  { %v4991_v11 = vpop.xlane.xlu1 %4990 }
 0xd6c   :  { %v5622_v6 = vsel %vm5562_vm11, %v9794_v62, %v4991_v11  ;;  %v4757_v11 = vmul.f32 %v6902_v35, %v9802_v23 }
 0xd6f   :  { %4429 = vadd.xlane.f32.xlu0 %v4428_v59  ;;  %v5516_v16 = vpop.xlane.xlu1 %5515 }
 0xd70   :  { %v5698_v17 = vsel %vm5638_vm12, %v5622_v6, %v5516_v16  ;;  %v9804_v6 = vld [vmem:[#allocation36_spill] sm:$0xff] }
 0xd71   :  { %5774 = vst.msk [vmem:[%s9565_s5 + $0x1d8] sm:$0xff] %vm5714_vm13, %v5698_v17  ;;  %v5282_v16 = vmul.f32 %v6902_v35, %v9804_v6  ;;  %v4872_v17 = vsel %vm4211_vm10, %v4757_v11, 0.0  ;;  %v9814_v35 = vld [vmem:[#allocation48_spill] sm:$0xff] }
 0xd72   :  { %v5290_v23 = vmul.f32 %v6906_v47, %v9814_v35  ;;  %v9816_v6 = vld [vmem:[#allocation52_spill] sm:$0xff] }
 0xd73   :  { %4867 = vadd.xlane.f32.xlu0 %v4866_v54  ;;  %v4985_v1 = vpop.xlane.xlu1 %4984  ;;  %v9805_v54 = vld [vmem:[#allocation39_spill] sm:$0xff]  ;;  %v5397_v40 = vsel %vm4211_vm10, %v5282_v16, 0.0 }
 0xd74   :  { %v5620_v41 = vsel %vm5562_vm11, %v9797_v13, %v4985_v1  ;;  %v4763_v1 = vmul.f32 %v6903_v45, %v9805_v54  ;;  %v9817_v54 = vld [vmem:[#allocation53_spill] sm:$0xff] }
 0xd76   :  { %v9067_v42 = vpop.xlane.xlu0 %4423 }
 0xd77   :  { %5392 = vadd.xlane.f32.xlu0 %v5391_v58  ;;  %v5510_v22 = vpop.xlane.xlu1 %5509 }
 0xd78   :  { %v5696_v57 = vsel %vm5638_vm12, %v5620_v41, %v5510_v22  ;;  %v9807_v41 = vld [vmem:[#allocation40_spill] sm:$0xff] }
 0xd79   :  { %5772 = vst.msk [vmem:[%s9565_s5 + $0x1c8] sm:$0xff] %vm5714_vm13, %v5696_v57  ;;  %v5288_v22 = vmul.f32 %v6903_v45, %v9807_v41  ;;  %v4890_v57 = vsel %vm4211_vm10, %v4763_v1, 0.0  ;;  %v6908_v45 = vld [vmem:[%s9564_s1 + $0x100] sm:$0xff]  ;;  %v9819_v41 = vld [vmem:[#allocation55_spill] sm:$0xff] }
 0xd7a   :  { %v4651_v10 = vpop.permute.xlu0 %4650  ;;  %v4769_v1 = vmul.f32 %v6908_v45, %v9817_v54 }
 0xd7b   :  { %v4806_v12 = vmul.f32 %v6900_v8, %v4651_v10  ;;  %4861 = vadd.xlane.f32.xlu0 %v4860_v56  ;;  %v5003_v28 = vpop.xlane.xlu1 %5002  ;;  %v9808_v10 = vld [vmem:[#allocation41_spill] sm:$0xff] }
 0xd7c   :  { %v5626_v21 = vsel %vm5562_vm11, %v9800_v33, %v5003_v28  ;;  %v4761_v56 = vmul.f32 %v6904_v19, %v9808_v10  ;;  %v9811_v33 = vld [vmem:[#allocation45_spill] sm:$0xff]  ;;  %v6909_v19 = vld [vmem:[%s9564_s1 + $0x130] sm:$0xff] }
 0xd7d   :  { %v5019_v61 = vsel %vm4211_vm10, %v4806_v12, 0.0  ;;  %v9809_v12 = vld [vmem:[#allocation115_spill] sm:$0xff]  ;;  %v9820_v10 = vld [vmem:[#allocation57_spill] sm:$0xff] }
 0xd7e   :  { %v5176_v9 = vpop.permute.xlu0 %5175  ;;  %5020 = vadd.xlane.f32.xlu1 %v5019_v61 }
 0xd7f   :  { %v5331_v46 = vmul.f32 %v6900_v8, %v5176_v9  ;;  %5386 = vadd.xlane.f32.xlu0 %v5385_v26  ;;  %v5528_v63 = vpop.xlane.xlu1 %5527  ;;  %v5415_v8 = vsel %vm4211_vm10, %v5288_v22, 0.0  ;;  %v4884_v9 = vsel %vm4211_vm10, %v4761_v56, 0.0  ;;  %v6905_v26 = vld [vmem:[%s9564_s1 + $0xf0] sm:$0xff]  ;;  %v5294_v22 = vmul.f32 %v6908_v45, %v9819_v41 }
 0xd80   :  { %v5702_v4 = vsel %vm5638_vm12, %v5626_v21, %v5528_v63  ;;  %v4767_v21 = vmul.f32 %v6905_v26, %v9811_v33  ;;  %v9812_v63 = vld [vmem:[#allocation46_spill] sm:$0xff]  ;;  %v4775_v56 = vmul.f32 %v6909_v19, %v9820_v10  ;;  %v9827_v45 = vld [vmem:[#allocation64_spill] sm:$0xff] }
 0xd81   :  { %5778 = vst.msk [vmem:[%s9565_s5 + $0x1f8] sm:$0xff] %vm5714_vm13, %v5702_v4  ;;  %v5544_v48 = vsel %vm4211_vm10, %v5331_v46, 0.0  ;;  %v5409_v46 = vsel %vm4211_vm10, %v5286_v18, 0.0  ;;  %v5292_v4 = vmul.f32 %v6905_v26, %v9812_v63  ;;  %v5300_v18 = vmul.f32 %v6909_v19, %v9822_v30  ;;  %v6910_v33 = vld [vmem:[%s9564_s1 + $0x120] sm:$0xff]  ;;  %v9830_v19 = vld [vmem:[#allocation69_spill] sm:$0xff] }
 0xd82   :  { %5545 = vadd.xlane.f32.xlu1 %v5544_v48  ;;  %v4902_v48 = vsel %vm4211_vm10, %v4767_v21, 0.0  ;;  %v9823_v21 = vld [vmem:[#allocation58_spill] sm:$0xff] }
 0xd83   :  { %4879 = vadd.xlane.f32.xlu0 %v4878_v14  ;;  %v4997_v0 = vpop.xlane.xlu1 %4996  ;;  %v4765_v14 = vmul.f32 %v6906_v47, %v9813_v39  ;;  %v5451_v63 = vsel %vm4211_vm10, %v5300_v18, 0.0  ;;  %v9824_v47 = vld [vmem:[#allocation59_spill] sm:$0xff] }
 0xd84   :  { %v5624_v38 = vsel %vm5562_vm11, %v9803_v3, %v4997_v0  ;;  %v5427_v0 = vsel %vm4211_vm10, %v5292_v4, 0.0  ;;  %v9815_v3 = vld [vmem:[#allocation51_spill] sm:$0xff]  ;;  %v5298_v39 = vmul.f32 %v6910_v33, %v9824_v47  ;;  %v6916_v47 = vld [vmem:[%s9564_s1 + $0x180] sm:$0xff] }
 0xd85   :  { %v4896_v11 = vsel %vm4211_vm10, %v4765_v14, 0.0 }
 0xd87   :  { %5404 = vadd.xlane.f32.xlu0 %v5403_v7  ;;  %v5522_v59 = vpop.xlane.xlu1 %5521  ;;  %v6907_v7 = vld [vmem:[%s9564_s1 + $0x110] sm:$0xff] }
 0xd88   :  { %v5700_v62 = vsel %vm5638_vm12, %v5624_v38, %v5522_v59  ;;  %v4771_v38 = vmul.f32 %v6907_v7, %v9815_v3  ;;  %v5421_v59 = vsel %vm4211_vm10, %v5290_v23, 0.0  ;;  %v5296_v16 = vmul.f32 %v6907_v7, %v9816_v6  ;;  %v9825_v7 = vld [vmem:[#allocation2_spill] sm:$0xff]  ;;  %v9826_v6 = vld [vmem:[#allocation63_spill] sm:$0xff] }
 0xd89   :  { %5776 = vst.msk [vmem:[%s9565_s5 + $0x1e8] sm:$0xff] %vm5714_vm13, %v5700_v62 }
 0xd8b   :  { %4873 = vadd.xlane.f32.xlu0 %v4872_v17  ;;  %v5015_v60 = vpop.xlane.xlu1 %5014  ;;  %v4914_v17 = vsel %vm4211_vm10, %v4771_v38, 0.0  ;;  %v5445_v38 = vsel %vm4211_vm10, %v5298_v39, 0.0  ;;  %v9835_v39 = vld [vmem:[#allocation75_spill] sm:$0xff] }
 0xd8c   :  { %v5630_v55 = vsel %vm5562_vm11, %v9806_v51, %v5015_v60  ;;  %v9818_v51 = vld [vmem:[#allocation91_spill] sm:$0xff] }
 0xd8f   :  { %5398 = vadd.xlane.f32.xlu0 %v5397_v40  ;;  %v5540_v58 = vpop.xlane.xlu1 %5539  ;;  %v5439_v40 = vsel %vm4211_vm10, %v5296_v16, 0.0 }
 0xd90   :  { %v5706_v13 = vsel %vm5638_vm12, %v5630_v55, %v5540_v58 }
 0xd91   :  { %5782 = vst.msk [vmem:[%s9565_s5 + $0x218] sm:$0xff] %vm5714_vm13, %v5706_v13 }
 0xd93   :  { %4891 = vadd.xlane.f32.xlu0 %v4890_v57  ;;  %v5009_v34 = vpop.xlane.xlu1 %5008  ;;  %v4908_v57 = vsel %vm4211_vm10, %v4769_v1, 0.0 }
 0xd94   :  { %v5628_v28 = vsel %vm5562_vm11, %v9809_v12, %v5009_v34  ;;  %v9821_v12 = vld [vmem:[#allocation6_spill] sm:$0xff] }
 0xd97   :  { %5416 = vadd.xlane.f32.xlu0 %v5415_v8  ;;  %v5534_v61 = vpop.xlane.xlu1 %5533  ;;  %v5433_v8 = vsel %vm4211_vm10, %v5294_v22, 0.0  ;;  %v9829_v22 = vld [vmem:[#allocation68_spill] sm:$0xff] }
 0xd98   :  { %v5704_v32 = vsel %vm5638_vm12, %v5628_v28, %v5534_v61 }
 0xd99   :  { %5780 = vst.msk [vmem:[%s9565_s5 + $0x208] sm:$0xff] %vm5714_vm13, %v5704_v32 }
 0xd9b   :  { %4885 = vadd.xlane.f32.xlu0 %v4884_v9  ;;  %v4926_v9 = vsel %vm4211_vm10, %v4775_v56, 0.0 }
 0xd9f   :  { %5410 = vadd.xlane.f32.xlu0 %v5409_v46  ;;  %v4773_v46 = vmul.f32 %v6910_v33, %v9823_v21  ;;  %v9833_v33 = vld [vmem:[#allocation73_spill] sm:$0xff] }
 0xda1   :  { %v4920_v14 = vsel %vm4211_vm10, %v4773_v46, 0.0 }
 0xda3   :  { %4903 = vadd.xlane.f32.xlu0 %v4902_v48 }
 0xda7   :  { %5428 = vadd.xlane.f32.xlu0 %v5427_v0 }
 0xdab   :  { %4897 = vadd.xlane.f32.xlu0 %v4896_v11  ;;  %v6911_v11 = vld [vmem:[%s9564_s1 + $0x150] sm:$0xff] }
 0xdac   :  { %v4779_v3 = vmul.f32 %v6911_v11, %v9825_v7  ;;  %v5304_v16 = vmul.f32 %v6911_v11, %v9826_v6 }
 0xdaf   :  { %v9159_v62 = vpop.xlane.xlu0 %4417  ;;  %5422 = vadd.xlane.f32.xlu0 %v5421_v59 }
 0xdb3   :  { %v4856_v60 = vpop.xlane.xlu0 %4855  ;;  %4915 = vadd.xlane.f32.xlu0 %v4914_v17 }
 0xdb4   :  { %v5577_v55 = vsel %vm5562_vm11, %v9818_v51, %v4856_v60  ;;  %v4938_v60 = vsel %vm4211_vm10, %v4779_v3, 0.0  ;;  %v5463_v51 = vsel %vm4211_vm10, %v5304_v16, 0.0  ;;  %v6917_v3 = vld [vmem:[%s9564_s1 + $0x1b0] sm:$0xff] }
 0xdb7   :  { %v5381_v58 = vpop.xlane.xlu0 %5380  ;;  %5440 = vadd.xlane.f32.xlu0 %v5439_v40 }
 0xdb8   :  { %v5653_v13 = vsel %vm5638_vm12, %v5577_v55, %v5381_v58  ;;  %v9828_v58 = vld [vmem:[#allocation65_spill] sm:$0xff] }
 0xdb9   :  { %5729 = vst.msk [vmem:[%s9565_s5 + $0x70] sm:$0xff] %vm5714_vm13, %v5653_v13 }
 0xdbb   :  { %v4850_v34 = vpop.xlane.xlu0 %4849  ;;  %4909 = vadd.xlane.f32.xlu0 %v4908_v57 }
 0xdbc   :  { %v5575_v28 = vsel %vm5562_vm11, %v9821_v12, %v4850_v34  ;;  %v9831_v12 = vld [vmem:[#allocation70_spill] sm:$0xff] }
 0xdbf   :  { %v5375_v61 = vpop.xlane.xlu0 %5374  ;;  %5434 = vadd.xlane.f32.xlu0 %v5433_v8  ;;  %v6914_v8 = vld [vmem:[%s9564_s1 + $0x160] sm:$0xff] }
 0xdc0   :  { %v5651_v32 = vsel %vm5638_vm12, %v5575_v28, %v5375_v61  ;;  %v4781_v28 = vmul.f32 %v6914_v8, %v9831_v12  ;;  %v6919_v12 = vld [vmem:[%s9564_s1 + $0x1d0] sm:$0xff] }
 0xdc1   :  { %5727 = vst.msk [vmem:[%s9565_s5 + $0x60] sm:$0xff] %vm5714_vm13, %v5651_v32  ;;  %v9832_v32 = vld [vmem:[#allocation71_spill] sm:$0xff] }
 0xdc2   :  { %v5306_v30 = vmul.f32 %v6914_v8, %v9832_v32  ;;  %v4944_v18 = vsel %vm4211_vm10, %v4781_v28, 0.0  ;;  %v9843_v28 = vld [vmem:[#allocation84_spill] sm:$0xff] }
 0xdc3   :  { %v9191_v26 = vpop.xlane.xlu0 %4435  ;;  %4927 = vadd.xlane.f32.xlu0 %v4926_v9  ;;  %v6915_v9 = vld [vmem:[%s9564_s1 + $0x190] sm:$0xff] }
 0xdc4   :  { %v4787_v21 = vmul.f32 %v6915_v9, %v9833_v33  ;;  %v5469_v46 = vsel %vm4211_vm10, %v5306_v30, 0.0 }
 0xdc7   :  { %5452 = vadd.xlane.f32.xlu0 %v5451_v63  ;;  %v4659_v4 = vpop.permute.xlu0 %4658  ;;  %v9834_v63 = vld [vmem:[#allocation74_spill] sm:$0xff] }
 0xdc8   :  { %v4810_v48 = vmul.f32 %v4659_v4, %v8550_v25  ;;  %v5312_v4 = vmul.f32 %v6915_v9, %v9834_v63 }
 0xdca   :  { %v5031_v0 = vsel %vm4211_vm10, %v4810_v48, 0.0  ;;  %v4962_v48 = vsel %vm4211_vm10, %v4787_v21, 0.0  ;;  %v9844_v21 = vld [vmem:[#allocation85_spill] sm:$0xff] }
 0xdcb   :  { %4921 = vadd.xlane.f32.xlu0 %v4920_v14  ;;  %v5184_v35 = vpop.permute.xlu0 %5183  ;;  %5032 = vadd.xlane.f32.xlu1 %v5031_v0  ;;  %v4785_v14 = vmul.f32 %v6916_v47, %v9835_v39  ;;  %v5487_v0 = vsel %vm4211_vm10, %v5312_v4, 0.0  ;;  %v9845_v4 = vld [vmem:[#allocation103_spill] sm:$0xff]  ;;  %v6920_v39 = vld [vmem:[%s9564_s1 + $0x1c0] sm:$0xff] }
 0xdcc   :  { %v5335_v23 = vmul.f32 %v5184_v35, %v8550_v25  ;;  %v6912_v25 = vld [vmem:[%s9564_s1 + $0x140] sm:$0xff]  ;;  %v9836_v35 = vld [vmem:[#allocation9_spill] sm:$0xff] }
 0xdcd   :  { %v4777_v54 = vmul.f32 %v6912_v25, %v9827_v45  ;;  %v5302_v13 = vmul.f32 %v6912_v25, %v9828_v58  ;;  %v4956_v11 = vsel %vm4211_vm10, %v4785_v14, 0.0  ;;  %v9839_v45 = vld [vmem:[#allocation98_spill] sm:$0xff] }
 0xdce   :  { %v5556_v59 = vsel %vm4211_vm10, %v5335_v23, 0.0  ;;  %v5310_v23 = vmul.f32 %v6916_v47, %v9836_v35  ;;  %v9846_v14 = vld [vmem:[#allocation86_spill] sm:$0xff] }
 0xdcf   :  { %5446 = vadd.xlane.f32.xlu0 %v5445_v38  ;;  %5557 = vadd.xlane.f32.xlu1 %v5556_v59  ;;  %v4932_v41 = vsel %vm4211_vm10, %v4777_v54, 0.0  ;;  %v5457_v34 = vsel %vm4211_vm10, %v5302_v13, 0.0  ;;  %v9837_v38 = vld [vmem:[#allocation78_spill] sm:$0xff] }
 0xdd0   :  { %v4791_v59 = vmul.f32 %v6917_v3, %v9837_v38  ;;  %v5481_v6 = vsel %vm4211_vm10, %v5310_v23, 0.0 }
 0xdd2   :  { %v5027_v17 = vpop.xlane.xlu1 %5026  ;;  %v4974_v25 = vsel %vm4211_vm10, %v4791_v59, 0.0  ;;  %v9848_v59 = vld [vmem:[#allocation105_spill] sm:$0xff] }
 0xdd3   :  { %4939 = vadd.xlane.f32.xlu0 %v4938_v60  ;;  %v5634_v1 = vsel %vm5562_vm11, %v8574_v49, %v5027_v17  ;;  %v6913_v49 = vld [vmem:[%s9564_s1 + $0x170] sm:$0xff]  ;;  %v9838_v17 = vld [vmem:[#allocation79_spill] sm:$0xff] }
 0xdd4   :  { %v4783_v57 = vmul.f32 %v6913_v49, %v9829_v22  ;;  %v5308_v10 = vmul.f32 %v6913_v49, %v9830_v19  ;;  %v5316_v60 = vmul.f32 %v6917_v3, %v9838_v17  ;;  %v9841_v49 = vld [vmem:[#allocation81_spill] sm:$0xff]  ;;  %v9842_v19 = vld [vmem:[#allocation102_spill] sm:$0xff] }
 0xdd6   :  { %v5552_v40 = vpop.xlane.xlu1 %5551  ;;  %v4950_v56 = vsel %vm4211_vm10, %v4783_v57, 0.0  ;;  %v5475_v61 = vsel %vm4211_vm10, %v5308_v10, 0.0  ;;  %v5499_v13 = vsel %vm4211_vm10, %v5316_v60, 0.0  ;;  %v6921_v60 = vld [vmem:[%s9564_s1 + $0x1f0] sm:$0xff] }
 0xdd7   :  { %v5710_v55 = vsel %vm5638_vm12, %v5634_v1, %v5552_v40  ;;  %5464 = vadd.xlane.f32.xlu0 %v5463_v51  ;;  %v6918_v51 = vld [vmem:[%s9564_s1 + $0x1a0] sm:$0xff] }
 0xdd8   :  { %5786 = vst.msk [vmem:[%s9565_s5 + $0x238] sm:$0xff] %vm5714_vm13, %v5710_v55  ;;  %v9840_v55 = vld [vmem:[#allocation3_spill] sm:$0xff]  ;;  %v5314_v22 = vmul.f32 %v6918_v51, %v9841_v49 }
 0xdd9   :  { %v4789_v58 = vmul.f32 %v6918_v51, %v9840_v55 }
 0xdda   :  { %v5493_v32 = vsel %vm4211_vm10, %v5314_v22, 0.0  ;;  %v6922_v22 = vld [vmem:[%s9564_s1 + $0x1e0] sm:$0xff] }
 0xddb   :  { %4933 = vadd.xlane.f32.xlu0 %v4932_v41  ;;  %v4968_v57 = vsel %vm4211_vm10, %v4789_v58, 0.0  ;;  %v9851_v58 = vld [vmem:[#allocation107_spill] sm:$0xff] }
 0xddf   :  { %5458 = vadd.xlane.f32.xlu0 %v5457_v34 }
 0xde3   :  { %4951 = vadd.xlane.f32.xlu0 %v4950_v56 }
 0xde7   :  { %5476 = vadd.xlane.f32.xlu0 %v5475_v61  ;;  %v4795_v61 = vmul.f32 %v6919_v12, %v9843_v28  ;;  %v9854_v28 = vld [vmem:[#allocation108_spill] sm:$0xff] }
 0xde9   :  { %v4986_v63 = vsel %vm4211_vm10, %v4795_v61, 0.0 }
 0xdeb   :  { %4945 = vadd.xlane.f32.xlu0 %v4944_v18 }
 0xdef   :  { %5470 = vadd.xlane.f32.xlu0 %v5469_v46  ;;  %v5320_v46 = vmul.f32 %v6919_v12, %v9844_v21 }
 0xdf1   :  { %v5511_v35 = vsel %vm4211_vm10, %v5320_v46, 0.0 }
 0xdf3   :  { %4963 = vadd.xlane.f32.xlu0 %v4962_v48 }
 0xdf7   :  { %5488 = vadd.xlane.f32.xlu0 %v5487_v0  ;;  %v4793_v0 = vmul.f32 %v6920_v39, %v9846_v14 }
 0xdf9   :  { %v4980_v38 = vsel %vm4211_vm10, %v4793_v0, 0.0  ;;  %v6924_v0 = vld [vmem:[%s9564_s1 + $0x200] sm:$0xff] }
 0xdfb   :  { %4957 = vadd.xlane.f32.xlu0 %v4956_v11  ;;  %v9847_v11 = vld [vmem:[#allocation87_spill] sm:$0xff] }
 0xdfc   :  { %v9253_v7 = vpop.xlane.xlu0 %4429  ;;  %v5318_v3 = vmul.f32 %v6920_v39, %v9847_v11 }
 0xdff   :  { %5482 = vadd.xlane.f32.xlu0 %v5481_v6 }
 0xe00   :  { %v4868_v16 = vpop.xlane.xlu0 %4867 }
 0xe01   :  { %v5581_v54 = vsel %vm5562_vm11, %v9839_v45, %v4868_v16 }
 0xe03   :  { %4975 = vadd.xlane.f32.xlu0 %v4974_v25  ;;  %v9849_v25 = vld [vmem:[#allocation90_spill] sm:$0xff] }
 0xe04   :  { %v5393_v1 = vpop.xlane.xlu0 %5392  ;;  %v4799_v45 = vmul.f32 %v6921_v60, %v9849_v25 }
 0xe05   :  { %v5657_v40 = vsel %vm5638_vm12, %v5581_v54, %v5393_v1  ;;  %v5505_v54 = vsel %vm4211_vm10, %v5318_v3, 0.0 }
 0xe06   :  { %5733 = vst.msk [vmem:[%s9565_s5 + $0x90] sm:$0xff] %vm5714_vm13, %v5657_v40  ;;  %v9850_v40 = vld [vmem:[#allocation92_spill] sm:$0xff]  ;;  %v4998_v55 = vsel %vm4211_vm10, %v4799_v45, 0.0 }
 0xe07   :  { %5500 = vadd.xlane.f32.xlu0 %v5499_v13  ;;  %v5324_v51 = vmul.f32 %v6921_v60, %v9850_v40  ;;  %v9861_v45 = vld [vmem:[#allocation116_spill] sm:$0xff] }
 0xe08   :  { %v4862_v41 = vpop.xlane.xlu0 %4861 }
 0xe09   :  { %v5579_v10 = vsel %vm5562_vm11, %v9842_v19, %v4862_v41  ;;  %v5523_v19 = vsel %vm4211_vm10, %v5324_v51, 0.0  ;;  %v9862_v51 = vld [vmem:[#allocation118_spill] sm:$0xff] }
 0xe0b   :  { %4969 = vadd.xlane.f32.xlu0 %v4968_v57  ;;  %v5021_v34 = vpop.xlane.xlu1 %5020  ;;  %v9852_v57 = vld [vmem:[#allocation93_spill] sm:$0xff] }
 0xe0c   :  { %v5387_v56 = vpop.xlane.xlu0 %5386  ;;  %v5632_v30 = vsel %vm5562_vm11, %v8584_v50, %v5021_v34  ;;  %v4797_v34 = vmul.f32 %v6922_v22, %v9852_v57  ;;  %v9864_v57 = vld [vmem:[#allocation125_spill] sm:$0xff] }
 0xe0d   :  { %v5655_v8 = vsel %vm5638_vm12, %v5579_v10, %v5387_v56  ;;  %v9853_v56 = vld [vmem:[#allocation94_spill] sm:$0xff] }
 0xe0e   :  { %5731 = vst.msk [vmem:[%s9565_s5 + $0x80] sm:$0xff] %vm5714_vm13, %v5655_v8  ;;  %v5322_v8 = vmul.f32 %v6922_v22, %v9853_v56  ;;  %v4992_v12 = vsel %vm4211_vm10, %v4797_v34, 0.0  ;;  %v4805_v34 = vmul.f32 %v9864_v57, %v8921_v2  ;;  %v9873_v57 = vld [vmem:[#allocation124_spill] sm:$0xff] }
 0xe0f   :  { %5494 = vadd.xlane.f32.xlu0 %v5493_v32  ;;  %v5546_v18 = vpop.xlane.xlu1 %5545 }
 0xe10   :  { %v5708_v9 = vsel %vm5638_vm12, %v5632_v30, %v5546_v18  ;;  %v4880_v33 = vpop.xlane.xlu0 %4879  ;;  %v6923_v18 = vld [vmem:[%s9564_s1 + $0x210] sm:$0xff]  ;;  %v5517_v21 = vsel %vm4211_vm10, %v5322_v8, 0.0  ;;  %v5016_v8 = vsel %vm4211_vm10, %v4805_v34, 0.0 }
 0xe11   :  { %5784 = vst.msk [vmem:[%s9565_s5 + $0x228] sm:$0xff] %vm5714_vm13, %v5708_v9  ;;  %v5585_v48 = vsel %vm5562_vm11, %v9845_v4, %v4880_v33  ;;  %v9855_v9 = vld [vmem:[#allocation100_spill] sm:$0xff] }
 0xe12   :  { %v4803_v33 = vmul.f32 %v6923_v18, %v9855_v9  ;;  %v4809_v9 = vmul.f32 %v8740_v44, %v9038_v53 }
 0xe13   :  { %4987 = vadd.xlane.f32.xlu0 %v4986_v63  ;;  %v9856_v63 = vld [vmem:[#allocation101_spill] sm:$0xff] }
 0xe14   :  { %v5405_v47 = vpop.xlane.xlu0 %5404  ;;  %v5328_v4 = vmul.f32 %v6923_v18, %v9856_v63 }
 0xe15   :  { %v5661_v50 = vsel %vm5638_vm12, %v5585_v48, %v5405_v47  ;;  %v5010_v48 = vsel %vm4211_vm10, %v4803_v33, 0.0  ;;  %v9857_v47 = vld [vmem:[#allocation109_spill] sm:$0xff] }
 0xe16   :  { %5737 = vst.msk [vmem:[%s9565_s5 + $0xb0] sm:$0xff] %vm5714_vm13, %v5661_v50  ;;  %v5535_v11 = vsel %vm4211_vm10, %v5328_v4, 0.0  ;;  %v5334_v4 = vmul.f32 %v8761_v15, %v9038_v53 }
 0xe17   :  { %5512 = vadd.xlane.f32.xlu0 %v5511_v35  ;;  %v9858_v35 = vld [vmem:[#allocation104_spill] sm:$0xff] }
 0xe18   :  { %v4874_v23 = vpop.xlane.xlu0 %4873 }
 0xe19   :  { %v5583_v6 = vsel %vm5562_vm11, %v9848_v59, %v4874_v23  ;;  %v4801_v23 = vmul.f32 %v6924_v0, %v9858_v35 }
 0xe1b   :  { %4981 = vadd.xlane.f32.xlu0 %v4980_v38  ;;  %v9859_v38 = vld [vmem:[#allocation106_spill] sm:$0xff] }
 0xe1c   :  { %v5399_v16 = vpop.xlane.xlu0 %5398  ;;  %v5326_v59 = vmul.f32 %v6924_v0, %v9859_v38 }
 0xe1d   :  { %v5659_v17 = vsel %vm5638_vm12, %v5583_v6, %v5399_v16  ;;  %v5004_v6 = vsel %vm4211_vm10, %v4801_v23, 0.0  ;;  %v9860_v16 = vld [vmem:[#allocation110_spill] sm:$0xff] }
 0xe1e   :  { %5735 = vst.msk [vmem:[%s9565_s5 + $0xa0] sm:$0xff] %vm5714_vm13, %v5659_v17 }
 0xe1f   :  { %5506 = vadd.xlane.f32.xlu0 %v5505_v54  ;;  %v4807_v54 = vmul.f32 %v9861_v45, %v8824_v31 }
 0xe20   :  { %v4892_v1 = vpop.xlane.xlu0 %4891 }
 0xe21   :  { %v5589_v13 = vsel %vm5562_vm11, %v9851_v58, %v4892_v1  ;;  %v5529_v1 = vsel %vm4211_vm10, %v5326_v59, 0.0  ;;  %v5022_v58 = vsel %vm4211_vm10, %v4807_v54, 0.0  ;;  %v9871_v54 = vld [vmem:[#allocation122_spill] sm:$0xff] }
 0xe23   :  { %4999 = vadd.xlane.f32.xlu0 %v4998_v55  ;;  %v5332_v55 = vmul.f32 %v9862_v51, %v8824_v31 }
 0xe24   :  { %v5417_v41 = vpop.xlane.xlu0 %5416 }
 0xe25   :  { %v5665_v49 = vsel %vm5638_vm12, %v5589_v13, %v5417_v41  ;;  %v9863_v13 = vld [vmem:[#allocation111_spill] sm:$0xff] }
 0xe26   :  { %5741 = vst.msk [vmem:[%s9565_s5 + $0xd0] sm:$0xff] %vm5714_vm13, %v5665_v49 }
 0xe27   :  { %5524 = vadd.xlane.f32.xlu0 %v5523_v19  ;;  %v5547_v19 = vsel %vm4211_vm10, %v5332_v55, 0.0 }
 0xe28   :  { %v4886_v10 = vpop.xlane.xlu0 %4885 }
 0xe29   :  { %v5587_v61 = vsel %vm5562_vm11, %v9854_v28, %v4886_v10  ;;  %v9865_v10 = vld [vmem:[#allocation127_spill] sm:$0xff] }
 0xe2a   :  { %v5330_v56 = vmul.f32 %v9865_v10, %v8921_v2 }
 0xe2b   :  { %4993 = vadd.xlane.f32.xlu0 %v4992_v12  ;;  %v9866_v12 = vld [vmem:[#allocation113_spill] sm:$0xff] }
 0xe2c   :  { %v5411_v32 = vpop.xlane.xlu0 %5410  ;;  %v5541_v18 = vsel %vm4211_vm10, %v5330_v56, 0.0  ;;  %v9874_v56 = vld [vmem:[#allocation126_spill] sm:$0xff] }
 0xe2d   :  { %v5663_v30 = vsel %vm5638_vm12, %v5587_v61, %v5411_v32 }
 0xe2e   :  { %5739 = vst.msk [vmem:[%s9565_s5 + $0xc0] sm:$0xff] %vm5714_vm13, %v5663_v30  ;;  %v4811_v30 = vmul.f32 %v8594_v20, %v8958_v5 }
 0xe2f   :  { %5518 = vadd.xlane.f32.xlu0 %v5517_v21  ;;  %v9867_v21 = vld [vmem:[#allocation117_spill] sm:$0xff] }
 0xe30   :  { %v4904_v46 = vpop.xlane.xlu0 %4903  ;;  %v5034_v33 = vsel %vm4211_vm10, %v4811_v30, 0.0 }
 0xe31   :  { %v5593_v50 = vsel %vm5562_vm11, %v9857_v47, %v4904_v46 }
 0xe33   :  { %5011 = vadd.xlane.f32.xlu0 %v5010_v48  ;;  %v5028_v48 = vsel %vm4211_vm10, %v4809_v9, 0.0 }
 0xe34   :  { %v5429_v39 = vpop.xlane.xlu0 %5428 }
 0xe35   :  { %v5669_v14 = vsel %vm5638_vm12, %v5593_v50, %v5429_v39  ;;  %v5336_v50 = vmul.f32 %v8604_v52, %v8958_v5  ;;  %v5553_v39 = vsel %vm4211_vm10, %v5334_v4, 0.0  ;;  %v9869_v5 = vld [vmem:[#allocation120_spill] sm:$0xff] }
 0xe36   :  { %5745 = vst.msk [vmem:[%s9565_s5 + $0xf0] sm:$0xff] %vm5714_vm13, %v5669_v14  ;;  %v9868_v14 = vld [vmem:[#allocation119_spill] sm:$0xff]  ;;  %v9877_v4 = vld [vmem:[#allocation132_spill] sm:$0xff] }
 0xe37   :  { %5536 = vadd.xlane.f32.xlu0 %v5535_v11  ;;  %v5559_v52 = vsel %vm4211_vm10, %v5336_v50, 0.0 }
 0xe38   :  { %v4898_v3 = vpop.xlane.xlu0 %4897 }
 0xe39   :  { %v5591_v17 = vsel %vm5562_vm11, %v9860_v16, %v4898_v3  ;;  %v9870_v16 = vld [vmem:[#allocation121_spill] sm:$0xff] }
 0xe3b   :  { %5005 = vadd.xlane.f32.xlu0 %v5004_v6 }
 0xe3c   :  { %v5423_v60 = vpop.xlane.xlu0 %5422 }
 0xe3d   :  { %v5667_v25 = vsel %vm5638_vm12, %v5591_v17, %v5423_v60 }
 0xe3e   :  { %5743 = vst.msk [vmem:[%s9565_s5 + $0xe0] sm:$0xff] %vm5714_vm13, %v5667_v25 }
 0xe3f   :  { %5530 = vadd.xlane.f32.xlu0 %v5529_v1 }
 0xe40   :  { %v4916_v40 = vpop.xlane.xlu0 %4915 }
 0xe41   :  { %v5597_v41 = vsel %vm5562_vm11, %v9863_v13, %v4916_v40 }
 0xe43   :  { %5023 = vadd.xlane.f32.xlu0 %v5022_v58  ;;  %v9872_v58 = vld [vmem:[#allocation123_spill] sm:$0xff] }
 0xe44   :  { %v5441_v49 = vpop.xlane.xlu0 %5440 }
 0xe45   :  { %v5673_v22 = vsel %vm5638_vm12, %v5597_v41, %v5441_v49 }
 0xe46   :  { %5749 = vst.msk [vmem:[%s9565_s5 + $0x110] sm:$0xff] %vm5714_vm13, %v5673_v22 }
 0xe47   :  { %5548 = vadd.xlane.f32.xlu0 %v5547_v19 }
 0xe48   :  { %v4910_v31 = vpop.xlane.xlu0 %4909 }
 0xe49   :  { %v5595_v28 = vsel %vm5562_vm11, %v9866_v12, %v4910_v31 }
 0xe4b   :  { %5017 = vadd.xlane.f32.xlu0 %v5016_v8 }
 0xe4c   :  { %v5435_v61 = vpop.xlane.xlu0 %5434 }
 0xe4d   :  { %v5671_v32 = vsel %vm5638_vm12, %v5595_v28, %v5435_v61 }
 0xe4e   :  { %5747 = vst.msk [vmem:[%s9565_s5 + $0x100] sm:$0xff] %vm5714_vm13, %v5671_v32  ;;  %v9875_v32 = vld [vmem:[#allocation128_spill] sm:$0xff] }
 0xe4f   :  { %5542 = vadd.xlane.f32.xlu0 %v5541_v18 }
 0xe50   :  { %v4928_v2 = vpop.xlane.xlu0 %4927 }
 0xe51   :  { %v5601_v46 = vsel %vm5562_vm11, %v9867_v21, %v4928_v2 }
 0xe53   :  { %5035 = vadd.xlane.f32.xlu0 %v5034_v33  ;;  %v9876_v33 = vld [vmem:[#allocation129_spill] sm:$0xff] }
 0xe54   :  { %v5453_v63 = vpop.xlane.xlu0 %5452 }
 0xe55   :  { %v5677_v20 = vsel %vm5638_vm12, %v5601_v46, %v5453_v63 }
 0xe56   :  { %5753 = vst.msk [vmem:[%s9565_s5 + $0x130] sm:$0xff] %vm5714_vm13, %v5677_v20 }
 0xe57   :  { %5029 = vadd.xlane.f32.xlu0 %v5028_v48 }
 0xe58   :  { %v4922_v44 = vpop.xlane.xlu0 %4921  ;;  %v5033_v47 = vpop.xlane.xlu1 %5032 }
 0xe59   :  { %v5599_v0 = vsel %vm5562_vm11, %v9868_v14, %v4922_v44  ;;  %v5636_v15 = vsel %vm5562_vm11, %v8779_v43, %v5033_v47 }
 0xe5b   :  { %5554 = vadd.xlane.f32.xlu0 %v5553_v39 }
 0xe5c   :  { %v5447_v53 = vpop.xlane.xlu0 %5446  ;;  %v5558_v35 = vpop.xlane.xlu1 %5557 }
 0xe5d   :  { %v5675_v23 = vsel %vm5638_vm12, %v5599_v0, %v5447_v53  ;;  %v5712_v11 = vsel %vm5638_vm12, %v5636_v15, %v5558_v35 }
 0xe5e   :  { %5751 = vst.msk [vmem:[%s9565_s5 + $0x120] sm:$0xff] %vm5714_vm13, %v5675_v23  ;;  %5788 = vst.msk [vmem:[%s9565_s5 + $0x248] sm:$0xff] %vm5714_vm13, %v5712_v11 }
 0xe5f   :  { %5560 = vadd.xlane.f32.xlu0 %v5559_v52 }
 0xe60   :  { %v4940_v43 = vpop.xlane.xlu0 %4939 }
 0xe61   :  { %v5605_v3 = vsel %vm5562_vm11, %v9869_v5, %v4940_v43 }
 0xe64   :  { %v5465_v38 = vpop.xlane.xlu0 %5464 }
 0xe65   :  { %v5681_v59 = vsel %vm5638_vm12, %v5605_v3, %v5465_v38 }
 0xe66   :  { %5757 = vst.msk [vmem:[%s9565_s5 + $0x150] sm:$0xff] %vm5714_vm13, %v5681_v59 }
 0xe68   :  { %v4934_v6 = vpop.xlane.xlu0 %4933 }
 0xe69   :  { %v5603_v17 = vsel %vm5562_vm11, %v9870_v16, %v4934_v6 }
 0xe6c   :  { %v5459_v60 = vpop.xlane.xlu0 %5458 }
 0xe6d   :  { %v5679_v25 = vsel %vm5638_vm12, %v5603_v17, %v5459_v60 }
 0xe6e   :  { %5755 = vst.msk [vmem:[%s9565_s5 + $0x140] sm:$0xff] %vm5714_vm13, %v5679_v25 }
 0xe70   :  { %v4952_v45 = vpop.xlane.xlu0 %4951 }
 0xe71   :  { %v5609_v1 = vsel %vm5562_vm11, %v9871_v54, %v4952_v45 }
 0xe74   :  { %v5477_v40 = vpop.xlane.xlu0 %5476 }
 0xe75   :  { %v5685_v51 = vsel %vm5638_vm12, %v5609_v1, %v5477_v40 }
 0xe76   :  { %5761 = vst.msk [vmem:[%s9565_s5 + $0x170] sm:$0xff] %vm5714_vm13, %v5685_v51 }
 0xe78   :  { %v4946_v55 = vpop.xlane.xlu0 %4945 }
 0xe79   :  { %v5607_v13 = vsel %vm5562_vm11, %v9872_v58, %v4946_v55 }
 0xe7c   :  { %v5471_v41 = vpop.xlane.xlu0 %5470 }
 0xe7d   :  { %v5683_v49 = vsel %vm5638_vm12, %v5607_v13, %v5471_v41 }
 0xe7e   :  { %5759 = vst.msk [vmem:[%s9565_s5 + $0x160] sm:$0xff] %vm5714_vm13, %v5683_v49 }
 0xe80   :  { %v4964_v22 = vpop.xlane.xlu0 %4963 }
 0xe81   :  { %v5613_v34 = vsel %vm5562_vm11, %v9873_v57, %v4964_v22 }
 0xe84   :  { %v5489_v19 = vpop.xlane.xlu0 %5488 }
 0xe85   :  { %v5689_v31 = vsel %vm5638_vm12, %v5613_v34, %v5489_v19 }
 0xe86   :  { %5765 = vst.msk [vmem:[%s9565_s5 + $0x190] sm:$0xff] %vm5714_vm13, %v5689_v31 }
 0xe88   :  { %v4958_v10 = vpop.xlane.xlu0 %4957 }
 0xe89   :  { %v5611_v8 = vsel %vm5562_vm11, %v9874_v56, %v4958_v10 }
 0xe8c   :  { %v5483_v12 = vpop.xlane.xlu0 %5482 }
 0xe8d   :  { %v5687_v28 = vsel %vm5638_vm12, %v5611_v8, %v5483_v12 }
 0xe8e   :  { %5763 = vst.msk [vmem:[%s9565_s5 + $0x180] sm:$0xff] %vm5714_vm13, %v5687_v28 }
 0xe90   :  { %v4976_v61 = vpop.xlane.xlu0 %4975 }
 0xe91   :  { %v5617_v30 = vsel %vm5562_vm11, %v9875_v32, %v4976_v61 }
 0xe94   :  { %v5501_v18 = vpop.xlane.xlu0 %5500 }
 0xe95   :  { %v5693_v2 = vsel %vm5638_vm12, %v5617_v30, %v5501_v18 }
 0xe96   :  { %5769 = vst.msk [vmem:[%s9565_s5 + $0x1b0] sm:$0xff] %vm5714_vm13, %v5693_v2 }
 0xe98   :  { %v4970_v9 = vpop.xlane.xlu0 %4969 }
 0xe99   :  { %v5615_v21 = vsel %vm5562_vm11, %v9876_v33, %v4970_v9 }
 0xe9c   :  { %v5495_v46 = vpop.xlane.xlu0 %5494 }
 0xe9d   :  { %v5691_v63 = vsel %vm5638_vm12, %v5615_v21, %v5495_v46 }
 0xe9e   :  { %5767 = vst.msk [vmem:[%s9565_s5 + $0x1a0] sm:$0xff] %vm5714_vm13, %v5691_v63 }
 0xea0   :  { %v4988_v20 = vpop.xlane.xlu0 %4987 }
 0xea1   :  { %v5621_v48 = vsel %vm5562_vm11, %v9877_v4, %v4988_v20 }
 0xea4   :  { %v5513_v44 = vpop.xlane.xlu0 %5512 }
 0xea5   :  { %v5697_v47 = vsel %vm5638_vm12, %v5621_v48, %v5513_v44 }
 0xea6   :  { %5773 = vst.msk [vmem:[%s9565_s5 + $0x1d0] sm:$0xff] %vm5714_vm13, %v5697_v47 }
 0xea8   :  { %v4982_v50 = vpop.xlane.xlu0 %4981 }
 0xea9   :  { %v5619_v39 = vsel %vm5562_vm11, %v8526_v29, %v4982_v50 }
 0xeac   :  { %v5507_v14 = vpop.xlane.xlu0 %5506 }
 0xead   :  { %v5695_v0 = vsel %vm5638_vm12, %v5619_v39, %v5507_v14 }
 0xeae   :  { %5771 = vst.msk [vmem:[%s9565_s5 + $0x1c0] sm:$0xff] %vm5714_vm13, %v5695_v0 }
 0xeb0   :  { %v5000_v15 = vpop.xlane.xlu0 %4999 }
 0xeb1   :  { %v5625_v53 = vsel %vm5562_vm11, %v8692_v27, %v5000_v15 }
 0xeb4   :  { %v5525_v35 = vpop.xlane.xlu0 %5524 }
 0xeb5   :  { %v5701_v23 = vsel %vm5638_vm12, %v5625_v53, %v5525_v35 }
 0xeb6   :  { %5777 = vst.msk [vmem:[%s9565_s5 + $0x1f0] sm:$0xff] %vm5714_vm13, %v5701_v23 }
 0xeb8   :  { %v4994_v29 = vpop.xlane.xlu0 %4993 }
 0xeb9   :  { %v5623_v11 = vsel %vm5562_vm11, %v8725_v24, %v4994_v29 }
 0xebc   :  { %v5519_v52 = vpop.xlane.xlu0 %5518 }
 0xebd   :  { %v5699_v43 = vsel %vm5638_vm12, %v5623_v11, %v5519_v52 }
 0xebe   :  { %5775 = vst.msk [vmem:[%s9565_s5 + $0x1e0] sm:$0xff] %vm5714_vm13, %v5699_v43 }
 0xec0   :  { %v5012_v27 = vpop.xlane.xlu0 %5011 }
 0xec1   :  { %v5629_v5 = vsel %vm5562_vm11, %v8868_v37, %v5012_v27 }
 0xec4   :  { %v5537_v3 = vpop.xlane.xlu0 %5536 }
 0xec5   :  { %v5705_v38 = vsel %vm5638_vm12, %v5629_v5, %v5537_v3 }
 0xec6   :  { %5781 = vst.msk [vmem:[%s9565_s5 + $0x210] sm:$0xff] %vm5714_vm13, %v5705_v38 }
 0xec8   :  { %v5006_v24 = vpop.xlane.xlu0 %5005 }
 0xec9   :  { %v5627_v59 = vsel %vm5562_vm11, %v8952_v36, %v5006_v24 }
 0xecc   :  { %v5531_v6 = vpop.xlane.xlu0 %5530 }
 0xecd   :  { %v5703_v16 = vsel %vm5638_vm12, %v5627_v59, %v5531_v6 }
 0xece   :  { %5779 = vst.msk [vmem:[%s9565_s5 + $0x200] sm:$0xff] %vm5714_vm13, %v5703_v16 }
 0xed0   :  { %v5024_v37 = vpop.xlane.xlu0 %5023 }
 0xed1   :  { %v5633_v17 = vsel %vm5562_vm11, %v9067_v42, %v5024_v37 }
 0xed4   :  { %v5549_v60 = vpop.xlane.xlu0 %5548 }
 0xed5   :  { %v5709_v25 = vsel %vm5638_vm12, %v5633_v17, %v5549_v60 }
 0xed6   :  { %5785 = vst.msk [vmem:[%s9565_s5 + $0x230] sm:$0xff] %vm5714_vm13, %v5709_v25 }
 0xed8   :  { %v5018_v36 = vpop.xlane.xlu0 %5017 }
 0xed9   :  { %v5631_v45 = vsel %vm5562_vm11, %v9159_v62, %v5018_v36 }
 0xedc   :  { %v5543_v54 = vpop.xlane.xlu0 %5542 }
 0xedd   :  { %v5707_v1 = vsel %vm5638_vm12, %v5631_v45, %v5543_v54 }
 0xede   :  { %5783 = vst.msk [vmem:[%s9565_s5 + $0x220] sm:$0xff] %vm5714_vm13, %v5707_v1 }
 0xee0   :  { %v5036_v42 = vpop.xlane.xlu0 %5035 }
 0xee1   :  { %v5637_v62 = vsel %vm5562_vm11, %v9191_v26, %v5036_v42 }
 0xee4   :  { %v5030_v40 = vpop.xlane.xlu0 %5029 }
 0xee5   :  { %v5635_v51 = vsel %vm5562_vm11, %v9253_v7, %v5030_v40 }
 0xee8   :  { %v5555_v55 = vpop.xlane.xlu0 %5554 }
 0xee9   :  { %v5711_v58 = vsel %vm5638_vm12, %v5635_v51, %v5555_v55 }
 0xeea   :  { %5787 = vst.msk [vmem:[%s9565_s5 + $0x240] sm:$0xff] %vm5714_vm13, %v5711_v58 }
 0xeec   :  { %v5561_v13 = vpop.xlane.xlu0 %5560 }
 0xeed   :  { %v5713_v41 = vsel %vm5638_vm12, %v5637_v62, %v5561_v13 }
 0xeee   :  { %5789 = vst.msk [vmem:[%s9565_s5 + $0x250] sm:$0xff] %vm5714_vm13, %v5713_v41 }

</bundles_post_ra>
